<compile_context>
chip_gen: v5e
topology: v5e:2x2
jax: 0.10.0
libtpu: 0.0.40
codegen_flags: <defaults>
</compile_context>

<pallas_src>
import functools

import jax
import jax.numpy as jnp
from jax import lax
from jax.experimental import pallas as pl
from jax.experimental.pallas import tpu as pltpu


def _sigmoid(x):
    # Stable sigmoid via tanh (EUP transcendental path; no exp overflow).
    return 0.5 * jnp.tanh(0.5 * x) + 0.5


# ---------------------------------------------------------------------------
# Fused kernel: gates + c_next/m_next + conv_o + conv_h_next -> h,c,m next
# ---------------------------------------------------------------------------
def _predrnn_kernel(xhm_ref, c_ref, m_ref, w1_ref, b1_ref, w2_ref, b2_ref,
                    h_out_ref, c_out_ref, m_out_ref, cm_pad_ref,
                    *, H, W, KH, KW, Cin, Ch, Cm):
    HW = H * W
    ph, pw = KH // 2, KW // 2
    Cc = Cin + Ch + Cm
    Ccm = Ch + Cm

    # ---- stage 1: im2col over padded [x, h, m] -> one big matmul ----------
    taps = []
    for ki in range(KH * KW):                      # static, unrolled
        dy, dx = ki // KW, ki % KW
        taps.append(xhm_ref[0, dy:dy + H, dx:dx + W, :].reshape(HW, Cc))
    slab1 = jnp.concatenate(taps, axis=-1)         # (HW, KH*KW*Cc)
    acc1 = jnp.dot(slab1, w1_ref[...],
                   preferred_element_type=jnp.float32) + b1_ref[...]

    # column layout of acc1: [i f g (3*Ch) | i_m f_m g_m (3*Cm) | conv_o(x,h)+b_o (Ch)]
    i = _sigmoid(acc1[:, 0:Ch])
    f = _sigmoid(acc1[:, Ch:2 * Ch])
    g = jnp.tanh(acc1[:, 2 * Ch:3 * Ch])
    i_m = _sigmoid(acc1[:, 3 * Ch:3 * Ch + Cm])
    f_m = _sigmoid(acc1[:, 3 * Ch + Cm:3 * Ch + 2 * Cm])
    g_m = jnp.tanh(acc1[:, 3 * Ch + 2 * Cm:3 * Ch + 3 * Cm])
    o_xh = acc1[:, 3 * Ch + 3 * Cm:]               # conv_o(x,h part) + b_o

    c_cur = c_ref[0].reshape(HW, Ch)               # f32 recurrent state
    m_cur = m_ref[0].reshape(HW, Cm)
    c_next = f * c_cur + i * g
    m_next = f_m * m_cur + i_m * g_m

    # ---- keep padded [c_next, m_next] in VMEM scratch (zero halo) ---------
    cm = jnp.concatenate([c_next, m_next], axis=-1)          # (HW, Ch+Cm)
    cm_pad_ref[...] = jnp.zeros_like(cm_pad_ref)             # zero halo every step
    cm_pad_ref[ph:ph + H, pw:pw + W, :] = (
        cm.reshape(H, W, Ccm).astype(cm_pad_ref.dtype))

    # ---- stage 2: im2col over padded [c_next, m_next] -> one matmul -------
    taps2 = []
    for ki in range(KH * KW):
        dy, dx = ki // KW, ki % KW
        taps2.append(cm_pad_ref[dy:dy + H, dx:dx + W, :].reshape(HW, Ccm))
    slab2 = jnp.concatenate(taps2, axis=-1)        # (HW, KH*KW*(Ch+Cm))
    acc2 = jnp.dot(slab2, w2_ref[...],
                   preferred_element_type=jnp.float32) + b2_ref[...]

    # columns of acc2: [conv_o(c,m part) (Ch) | conv_h_next + b_hn (Ch)]
    o = _sigmoid(o_xh + acc2[:, :Ch])
    h_next = o * jnp.tanh(acc2[:, Ch:])

    h_out_ref[...] = h_next.reshape(1, H, W, Ch)
    c_out_ref[...] = c_next.reshape(1, H, W, Ch)
    m_out_ref[...] = m_next.reshape(1, H, W, Cm)


# ---------------------------------------------------------------------------
# One-time weight preparation (hoisted out of the per-timestep call)
# ---------------------------------------------------------------------------
def prepare_params(params, input_dim, hidden_dim, hidden_dim_m, kernel_size,
                   compute_dtype=jnp.float32):
    Cin, Ch, Cm = input_dim, hidden_dim, hidden_dim_m
    KH, KW = kernel_size
    T = KH * KW
    Cc = Cin + Ch + Cm
    Ccm = Ch + Cm
    N1 = 3 * Ch + 3 * Cm + Ch
    N2 = 2 * Ch

    def taps(w):  # torch (Cout, Cin, KH, KW) -> (KH*KW, Cin, Cout)
        co, ci, kh, kw = w.shape
        return jnp.transpose(w, (2, 3, 1, 0)).reshape(kh * kw, ci, co)

    whc = taps(params["w_hc"])                    # (T, Cin+Ch, 3*Ch)
    wm = taps(params["w_m"])                      # (T, Cin+Cm, 3*Cm)
    wo = taps(params["w_o"])                      # (T, Cin+2*Ch+Cm, Ch)
    whn = jnp.transpose(params["w_hn"][:, :, 0, 0])   # (Ch+Cm, Ch)

    # stage-1 fused weight: per-tap input rows [x | h | m],
    # output cols [hc gates | m gates | conv_o(x,h)]
    w1 = jnp.zeros((T, Cc, N1), jnp.float32)
    w1 = w1.at[:, :Cin, 0:3 * Ch].set(whc[:, :Cin])
    w1 = w1.at[:, Cin:Cin + Ch, 0:3 * Ch].set(whc[:, Cin:])
    w1 = w1.at[:, :Cin, 3 * Ch:3 * Ch + 3 * Cm].set(wm[:, :Cin])
    w1 = w1.at[:, Cin + Ch:, 3 * Ch:3 * Ch + 3 * Cm].set(wm[:, Cin:])
    w1 = w1.at[:, :Cin, 3 * Ch + 3 * Cm:].set(wo[:, :Cin])
    w1 = w1.at[:, Cin:Cin + Ch, 3 * Ch + 3 * Cm:].set(wo[:, Cin:Cin + Ch])
    w1 = w1.reshape(T * Cc, N1)

    # stage-2 fused weight: per-tap input rows [c_next | m_next],
    # output cols [conv_o(c,m) | conv_h_next (centre tap only)]
    w2 = jnp.zeros((T, Ccm, N2), jnp.float32)
    w2 = w2.at[:, :, :Ch].set(wo[:, Cin + Ch:])
    center = (KH // 2) * KW + (KW // 2)
    w2 = w2.at[center, :, Ch:].set(whn)
    w2 = w2.reshape(T * Ccm, N2)

    b1 = jnp.concatenate([params["b_hc"], params["b_m"],
                          params["b_o"]]).reshape(1, N1).astype(jnp.float32)
    b2 = jnp.concatenate([jnp.zeros((Ch,), jnp.float32),
                          params["b_hn"]]).reshape(1, N2).astype(jnp.float32)

    return {"w1": w1.astype(compute_dtype), "b1": b1,
            "w2": w2.astype(compute_dtype), "b2": b2}


# ---------------------------------------------------------------------------
# Per-timestep forward
# ---------------------------------------------------------------------------
def predrnn_cell_forward(x, h_cur, c_cur, m_cur, prepared, kernel_size):
    """NHWC inputs (f32 states). Returns (h_next, c_next, m_next) in f32."""
    B, H, W, Cin = x.shape
    Ch = h_cur.shape[-1]
    Cm = m_cur.shape[-1]
    KH, KW = kernel_size
    ph, pw = KH // 2, KW // 2
    Hp, Wp = H + 2 * ph, W + 2 * pw
    Cc = Cin + Ch + Cm
    cdt = prepared["w1"].dtype                    # compute dtype (f32 or bf16)

    # single combined + padded activation tensor, read once by the kernel
    xhm = jnp.concatenate([x, h_cur, m_cur], axis=-1).astype(cdt)
    xhm_p = jnp.pad(xhm, ((0, 0), (ph, ph), (pw, pw), (0, 0)))

    K1, N1 = prepared["w1"].shape
    K2, N2 = prepared["w2"].shape
    f32 = jnp.float32

    kern = functools.partial(_predrnn_kernel, H=H, W=W, KH=KH, KW=KW,
                             Cin=Cin, Ch=Ch, Cm=Cm)

    h_next, c_next, m_next = pl.pallas_call(
        kern,
        out_shape=(jax.ShapeDtypeStruct((B, H, W, Ch), f32),
                   jax.ShapeDtypeStruct((B, H, W, Ch), f32),
                   jax.ShapeDtypeStruct((B, H, W, Cm), f32)),
        grid=(B,),
        in_specs=[
            pl.BlockSpec((1, Hp, Wp, Cc), lambda b: (b, 0, 0, 0)),
            pl.BlockSpec((1, H, W, Ch), lambda b: (b, 0, 0, 0)),
            pl.BlockSpec((1, H, W, Cm), lambda b: (b, 0, 0, 0)),
            pl.BlockSpec((K1, N1), lambda b: (0, 0)),
            pl.BlockSpec((1, N1), lambda b: (0, 0)),
            pl.BlockSpec((K2, N2), lambda b: (0, 0)),
            pl.BlockSpec((1, N2), lambda b: (0, 0)),
        ],
        out_specs=(pl.BlockSpec((1, H, W, Ch), lambda b: (b, 0, 0, 0)),
                   pl.BlockSpec((1, H, W, Ch), lambda b: (b, 0, 0, 0)),
                   pl.BlockSpec((1, H, W, Cm), lambda b: (b, 0, 0, 0))),
        scratch_shapes=[pltpu.VMEM((Hp, Wp, Ch + Cm), cdt)],
        compiler_params=pltpu.CompilerParams(
            dimension_semantics=("parallel",),
            vmem_limit_bytes=48 * 1024 * 1024),
    )(xhm_p, c_cur, m_cur,
      prepared["w1"], prepared["b1"], prepared["w2"], prepared["b2"])
    return h_next, c_next, m_next


# ---------------------------------------------------------------------------
# Pure-JAX reference (NHWC) for validation
# ---------------------------------------------------------------------------
def _conv_ref(x, w_oihw, b, pad):
    w = jnp.transpose(w_oihw, (2, 3, 1, 0))  # HWIO
    y = lax.conv_general_dilated(x, w, (1, 1), [(pad, pad), (pad, pad)],
                                 dimension_numbers=('NHWC', 'HWIO', 'NHWC'))
    return y + b.reshape(1, 1, 1, -1)


def predrnn_cell_ref(x, h_cur, c_cur, m_cur, params, kernel_size):
    Ch = h_cur.shape[-1]
    Cm = m_cur.shape[-1]
    p = kernel_size[0] // 2
    chc = _conv_ref(jnp.concatenate([x, h_cur], -1), params["w_hc"], params["b_hc"], p)
    cc_i, cc_f, cc_g = jnp.split(chc, [Ch, 2 * Ch], axis=-1)
    cm = _conv_ref(jnp.concatenate([x, m_cur], -1), params["w_m"], params["b_m"], p)
    cc_im, cc_fm, cc_gm = jnp.split(cm, [Cm, 2 * Cm], axis=-1)
    i, f, g = jax.nn.sigmoid(cc_i), jax.nn.sigmoid(cc_f), jnp.tanh(cc_g)
    c_next = f * c_cur + i * g
    i_m, f_m, g_m = jax.nn.sigmoid(cc_im), jax.nn.sigmoid(cc_fm), jnp.tanh(cc_gm)
    m_next = f_m * m_cur + i_m * g_m
    co = _conv_ref(jnp.concatenate([x, h_cur, c_next, m_next], -1),
                   params["w_o"], params["b_o"], p)
    o = jax.nn.sigmoid(co)
    hn = _conv_ref(jnp.concatenate([c_next, m_next], -1),
                   params["w_hn"], params["b_hn"], 0)
    h_next = o * jnp.tanh(hn)
    return h_next, c_next, m_next


if __name__ == "__main__":
    B, Cin, H, W = 2, 4, 16, 16
    Ch, Cm = 8, 8
    KH, KW = 3, 3

    key = jax.random.PRNGKey(0)
    ks = jax.random.split(key, 12)
    sc = 0.1
    params = {
        "w_hc": sc * jax.random.normal(ks[0], (3 * Ch, Cin + Ch, KH, KW), jnp.float32),
        "b_hc": sc * jax.random.normal(ks[1], (3 * Ch,), jnp.float32),
        "w_m":  sc * jax.random.normal(ks[2], (3 * Cm, Cin + Cm, KH, KW), jnp.float32),
        "b_m":  sc * jax.random.normal(ks[3], (3 * Cm,), jnp.float32),
        "w_o":  sc * jax.random.normal(ks[4], (Ch, Cin + 2 * Ch + Cm, KH, KW), jnp.float32),
        "b_o":  sc * jax.random.normal(ks[5], (Ch,), jnp.float32),
        "w_hn": sc * jax.random.normal(ks[6], (Ch, Ch + Cm, 1, 1), jnp.float32),
        "b_hn": sc * jax.random.normal(ks[7], (Ch,), jnp.float32),
    }

    # NHWC inputs (PyTorch module uses NCHW; documented layout choice)
    x = jax.random.normal(ks[8], (B, H, W, Cin), jnp.float32)
    h_cur = jax.random.normal(ks[9], (B, H, W, Ch), jnp.float32)
    c_cur = jax.random.normal(ks[10], (B, H, W, Ch), jnp.float32)
    m_cur = jax.random.normal(ks[11], (B, H, W, Cm), jnp.float32)

    h_ref, c_ref, m_ref = predrnn_cell_ref(x, h_cur, c_cur, m_cur, params, (KH, KW))

    # --- f32 compute path (strict check; v5e default) ----------------------
    prep32 = prepare_params(params, Cin, Ch, Cm, (KH, KW), compute_dtype=jnp.float32)
    h32, c32, m32 = jax.block_until_ready(
        predrnn_cell_forward(x, h_cur, c_cur, m_cur, prep32, (KH, KW)))
    assert jnp.allclose(h32, h_ref, atol=1e-4, rtol=1e-4)
    assert jnp.allclose(c32, c_ref, atol=1e-4, rtol=1e-4)
    assert jnp.allclose(m32, m_ref, atol=1e-4, rtol=1e-4)

    # --- bf16 compute path (v6e/v7x MXU; f32 accumulate + f32 states) ------
    prep16 = prepare_params(params, Cin, Ch, Cm, (KH, KW), compute_dtype=jnp.bfloat16)
    h16, c16, m16 = jax.block_until_ready(
        predrnn_cell_forward(x, h_cur, c_cur, m_cur, prep16, (KH, KW)))
    assert jnp.allclose(h16, h_ref, atol=1e-1, rtol=1e-1)
    assert jnp.allclose(c16, c_ref, atol=1e-1, rtol=1e-1)
    assert jnp.allclose(m16, m_ref, atol=1e-1, rtol=1e-1)

    print("KERNEL_OK")
</pallas_src>

<mosaic_0001>
module attributes {stable_mosaic.version = 11 : i64} {
  func.func @_predrnn_kernel(%arg0: i32, %arg1: memref<1x18x18x20xf32, #tpu.memory_space<vmem>>, %arg2: memref<1x16x16x8xf32, #tpu.memory_space<vmem>>, %arg3: memref<1x16x16x8xf32, #tpu.memory_space<vmem>>, %arg4: memref<180x56xf32, #tpu.memory_space<vmem>>, %arg5: memref<1x56xf32, #tpu.memory_space<vmem>>, %arg6: memref<144x16xf32, #tpu.memory_space<vmem>>, %arg7: memref<1x16xf32, #tpu.memory_space<vmem>>, %arg8: memref<1x16x16x8xf32, #tpu.memory_space<vmem>>, %arg9: memref<1x16x16x8xf32, #tpu.memory_space<vmem>>, %arg10: memref<1x16x16x8xf32, #tpu.memory_space<vmem>>, %arg11: memref<18x18x16xf32, #tpu.memory_space<vmem>>) attributes {dimension_semantics = [#tpu.dimension_semantics<parallel>], iteration_bounds = array<i64: 2>, scalar_prefetch = 0 : i64, scratch_operands = 1 : i64, tpu.core_type = #tpu.core_type<tc>, window_params = [{transform_indices = @transform_0, window_bounds = array<i64: 1, 18, 18, 20>}, {transform_indices = @transform_1, window_bounds = array<i64: 1, 16, 16, 8>}, {transform_indices = @transform_2, window_bounds = array<i64: 1, 16, 16, 8>}, {pipeline_mode = #tpu.pipeline_mode<synchronous>, transform_indices = @transform_3, window_bounds = array<i64: 180, 56>}, {pipeline_mode = #tpu.pipeline_mode<synchronous>, transform_indices = @transform_4, window_bounds = array<i64: 1, 56>}, {pipeline_mode = #tpu.pipeline_mode<synchronous>, transform_indices = @transform_5, window_bounds = array<i64: 144, 16>}, {pipeline_mode = #tpu.pipeline_mode<synchronous>, transform_indices = @transform_6, window_bounds = array<i64: 1, 16>}, {transform_indices = @transform_7, window_bounds = array<i64: 1, 16, 16, 8>}, {transform_indices = @transform_8, window_bounds = array<i64: 1, 16, 16, 8>}, {transform_indices = @transform_9, window_bounds = array<i64: 1, 16, 16, 8>}]} {
    %c0 = arith.constant 0 : index
    %c0_0 = arith.constant 0 : index
    %c0_1 = arith.constant 0 : index
    %c0_2 = arith.constant 0 : index
    %0 = vector.load %arg1[%c0, %c0_0, %c0_1, %c0_2] : memref<1x18x18x20xf32, #tpu.memory_space<vmem>>, vector<1x16x16x20xf32>
    %1 = vector.shape_cast %0 : vector<1x16x16x20xf32> to vector<16x16x20xf32>
    %2 = vector.shape_cast %1 : vector<16x16x20xf32> to vector<256x20xf32>
    %c0_3 = arith.constant 0 : index
    %c0_4 = arith.constant 0 : index
    %c1 = arith.constant 1 : index
    %c0_5 = arith.constant 0 : index
    %3 = vector.load %arg1[%c0_3, %c0_4, %c1, %c0_5] : memref<1x18x18x20xf32, #tpu.memory_space<vmem>>, vector<1x16x16x20xf32>
    %4 = vector.shape_cast %3 : vector<1x16x16x20xf32> to vector<16x16x20xf32>
    %5 = vector.shape_cast %4 : vector<16x16x20xf32> to vector<256x20xf32>
    %c0_6 = arith.constant 0 : index
    %c0_7 = arith.constant 0 : index
    %c2 = arith.constant 2 : index
    %c0_8 = arith.constant 0 : index
    %6 = vector.load %arg1[%c0_6, %c0_7, %c2, %c0_8] : memref<1x18x18x20xf32, #tpu.memory_space<vmem>>, vector<1x16x16x20xf32>
    %7 = vector.shape_cast %6 : vector<1x16x16x20xf32> to vector<16x16x20xf32>
    %8 = vector.shape_cast %7 : vector<16x16x20xf32> to vector<256x20xf32>
    %c0_9 = arith.constant 0 : index
    %c1_10 = arith.constant 1 : index
    %c0_11 = arith.constant 0 : index
    %c0_12 = arith.constant 0 : index
    %9 = vector.load %arg1[%c0_9, %c1_10, %c0_11, %c0_12] : memref<1x18x18x20xf32, #tpu.memory_space<vmem>>, vector<1x16x16x20xf32>
    %10 = vector.shape_cast %9 : vector<1x16x16x20xf32> to vector<16x16x20xf32>
    %11 = vector.shape_cast %10 : vector<16x16x20xf32> to vector<256x20xf32>
    %c0_13 = arith.constant 0 : index
    %c1_14 = arith.constant 1 : index
    %c1_15 = arith.constant 1 : index
    %c0_16 = arith.constant 0 : index
    %12 = vector.load %arg1[%c0_13, %c1_14, %c1_15, %c0_16] : memref<1x18x18x20xf32, #tpu.memory_space<vmem>>, vector<1x16x16x20xf32>
    %13 = vector.shape_cast %12 : vector<1x16x16x20xf32> to vector<16x16x20xf32>
    %14 = vector.shape_cast %13 : vector<16x16x20xf32> to vector<256x20xf32>
    %c0_17 = arith.constant 0 : index
    %c1_18 = arith.constant 1 : index
    %c2_19 = arith.constant 2 : index
    %c0_20 = arith.constant 0 : index
    %15 = vector.load %arg1[%c0_17, %c1_18, %c2_19, %c0_20] : memref<1x18x18x20xf32, #tpu.memory_space<vmem>>, vector<1x16x16x20xf32>
    %16 = vector.shape_cast %15 : vector<1x16x16x20xf32> to vector<16x16x20xf32>
    %17 = vector.shape_cast %16 : vector<16x16x20xf32> to vector<256x20xf32>
    %c0_21 = arith.constant 0 : index
    %c2_22 = arith.constant 2 : index
    %c0_23 = arith.constant 0 : index
    %c0_24 = arith.constant 0 : index
    %18 = vector.load %arg1[%c0_21, %c2_22, %c0_23, %c0_24] : memref<1x18x18x20xf32, #tpu.memory_space<vmem>>, vector<1x16x16x20xf32>
    %19 = vector.shape_cast %18 : vector<1x16x16x20xf32> to vector<16x16x20xf32>
    %20 = vector.shape_cast %19 : vector<16x16x20xf32> to vector<256x20xf32>
    %c0_25 = arith.constant 0 : index
    %c2_26 = arith.constant 2 : index
    %c1_27 = arith.constant 1 : index
    %c0_28 = arith.constant 0 : index
    %21 = vector.load %arg1[%c0_25, %c2_26, %c1_27, %c0_28] : memref<1x18x18x20xf32, #tpu.memory_space<vmem>>, vector<1x16x16x20xf32>
    %22 = vector.shape_cast %21 : vector<1x16x16x20xf32> to vector<16x16x20xf32>
    %23 = vector.shape_cast %22 : vector<16x16x20xf32> to vector<256x20xf32>
    %c0_29 = arith.constant 0 : index
    %c2_30 = arith.constant 2 : index
    %c2_31 = arith.constant 2 : index
    %c0_32 = arith.constant 0 : index
    %24 = vector.load %arg1[%c0_29, %c2_30, %c2_31, %c0_32] : memref<1x18x18x20xf32, #tpu.memory_space<vmem>>, vector<1x16x16x20xf32>
    %25 = vector.shape_cast %24 : vector<1x16x16x20xf32> to vector<16x16x20xf32>
    %26 = vector.shape_cast %25 : vector<16x16x20xf32> to vector<256x20xf32>
    %27 = tpu.concatenate %2, %5, %8, %11, %14, %17, %20, %23, %26 in 1 : vector<256x20xf32>, vector<256x20xf32>, vector<256x20xf32>, vector<256x20xf32>, vector<256x20xf32>, vector<256x20xf32>, vector<256x20xf32>, vector<256x20xf32>, vector<256x20xf32> -> vector<256x180xf32>
    %c0_33 = arith.constant 0 : index
    %c0_34 = arith.constant 0 : index
    %28 = vector.load %arg4[%c0_33, %c0_34] : memref<180x56xf32, #tpu.memory_space<vmem>>, vector<180x56xf32>
    %cst = arith.constant dense<0.000000e+00> : vector<256x56xf32>
    %29 = tpu.matmul %27, %28, %cst {dimension_numbers = #tpu.dot_dimension_numbers<[1], [0], [0], [1], [0, 0, 1, 1], [], []>} : vector<256x180xf32>, vector<180x56xf32>, vector<256x56xf32> -> vector<256x56xf32>
    %c0_35 = arith.constant 0 : index
    %c0_36 = arith.constant 0 : index
    %30 = vector.load %arg5[%c0_35, %c0_36] : memref<1x56xf32, #tpu.memory_space<vmem>>, vector<1x56xf32>
    %31 = vector.broadcast %30 : vector<1x56xf32> to vector<256x56xf32>
    %32 = arith.addf %29, %31 : vector<256x56xf32>
    %33 = vector.extract_strided_slice %32 {offsets = [0, 0], sizes = [256, 8], strides = [1, 1]} : vector<256x56xf32> to vector<256x8xf32>
    %cst_37 = arith.constant 5.000000e-01 : f32
    %34 = vector.broadcast %cst_37 : f32 to vector<256x8xf32>
    %35 = arith.mulf %34, %33 : vector<256x8xf32>
    %36 = math.tanh %35 : vector<256x8xf32>
    %cst_38 = arith.constant 5.000000e-01 : f32
    %37 = vector.broadcast %cst_38 : f32 to vector<256x8xf32>
    %38 = arith.mulf %37, %36 : vector<256x8xf32>
    %cst_39 = arith.constant 5.000000e-01 : f32
    %39 = vector.broadcast %cst_39 : f32 to vector<256x8xf32>
    %40 = arith.addf %38, %39 : vector<256x8xf32>
    %41 = vector.extract_strided_slice %32 {offsets = [0, 8], sizes = [256, 8], strides = [1, 1]} : vector<256x56xf32> to vector<256x8xf32>
    %cst_40 = arith.constant 5.000000e-01 : f32
    %42 = vector.broadcast %cst_40 : f32 to vector<256x8xf32>
    %43 = arith.mulf %42, %41 : vector<256x8xf32>
    %44 = math.tanh %43 : vector<256x8xf32>
    %cst_41 = arith.constant 5.000000e-01 : f32
    %45 = vector.broadcast %cst_41 : f32 to vector<256x8xf32>
    %46 = arith.mulf %45, %44 : vector<256x8xf32>
    %cst_42 = arith.constant 5.000000e-01 : f32
    %47 = vector.broadcast %cst_42 : f32 to vector<256x8xf32>
    %48 = arith.addf %46, %47 : vector<256x8xf32>
    %49 = vector.extract_strided_slice %32 {offsets = [0, 16], sizes = [256, 8], strides = [1, 1]} : vector<256x56xf32> to vector<256x8xf32>
    %50 = math.tanh %49 : vector<256x8xf32>
    %51 = vector.extract_strided_slice %32 {offsets = [0, 24], sizes = [256, 8], strides = [1, 1]} : vector<256x56xf32> to vector<256x8xf32>
    %cst_43 = arith.constant 5.000000e-01 : f32
    %52 = vector.broadcast %cst_43 : f32 to vector<256x8xf32>
    %53 = arith.mulf %52, %51 : vector<256x8xf32>
    %54 = math.tanh %53 : vector<256x8xf32>
    %cst_44 = arith.constant 5.000000e-01 : f32
    %55 = vector.broadcast %cst_44 : f32 to vector<256x8xf32>
    %56 = arith.mulf %55, %54 : vector<256x8xf32>
    %cst_45 = arith.constant 5.000000e-01 : f32
    %57 = vector.broadcast %cst_45 : f32 to vector<256x8xf32>
    %58 = arith.addf %56, %57 : vector<256x8xf32>
    %59 = vector.extract_strided_slice %32 {offsets = [0, 32], sizes = [256, 8], strides = [1, 1]} : vector<256x56xf32> to vector<256x8xf32>
    %cst_46 = arith.constant 5.000000e-01 : f32
    %60 = vector.broadcast %cst_46 : f32 to vector<256x8xf32>
    %61 = arith.mulf %60, %59 : vector<256x8xf32>
    %62 = math.tanh %61 : vector<256x8xf32>
    %cst_47 = arith.constant 5.000000e-01 : f32
    %63 = vector.broadcast %cst_47 : f32 to vector<256x8xf32>
    %64 = arith.mulf %63, %62 : vector<256x8xf32>
    %cst_48 = arith.constant 5.000000e-01 : f32
    %65 = vector.broadcast %cst_48 : f32 to vector<256x8xf32>
    %66 = arith.addf %64, %65 : vector<256x8xf32>
    %67 = vector.extract_strided_slice %32 {offsets = [0, 40], sizes = [256, 8], strides = [1, 1]} : vector<256x56xf32> to vector<256x8xf32>
    %68 = math.tanh %67 : vector<256x8xf32>
    %69 = vector.extract_strided_slice %32 {offsets = [0, 48], sizes = [256, 8], strides = [1, 1]} : vector<256x56xf32> to vector<256x8xf32>
    %c0_49 = arith.constant 0 : index
    %c0_50 = arith.constant 0 : index
    %c0_51 = arith.constant 0 : index
    %c0_52 = arith.constant 0 : index
    %70 = vector.load %arg2[%c0_49, %c0_50, %c0_51, %c0_52] : memref<1x16x16x8xf32, #tpu.memory_space<vmem>>, vector<1x16x16x8xf32>
    %71 = vector.shape_cast %70 : vector<1x16x16x8xf32> to vector<16x16x8xf32>
    %72 = vector.shape_cast %71 : vector<16x16x8xf32> to vector<256x8xf32>
    %c0_53 = arith.constant 0 : index
    %c0_54 = arith.constant 0 : index
    %c0_55 = arith.constant 0 : index
    %c0_56 = arith.constant 0 : index
    %73 = vector.load %arg3[%c0_53, %c0_54, %c0_55, %c0_56] : memref<1x16x16x8xf32, #tpu.memory_space<vmem>>, vector<1x16x16x8xf32>
    %74 = vector.shape_cast %73 : vector<1x16x16x8xf32> to vector<16x16x8xf32>
    %75 = vector.shape_cast %74 : vector<16x16x8xf32> to vector<256x8xf32>
    %76 = arith.mulf %48, %72 : vector<256x8xf32>
    %77 = arith.mulf %40, %50 : vector<256x8xf32>
    %78 = arith.addf %76, %77 : vector<256x8xf32>
    %79 = arith.mulf %66, %75 : vector<256x8xf32>
    %80 = arith.mulf %58, %68 : vector<256x8xf32>
    %81 = arith.addf %79, %80 : vector<256x8xf32>
    %82 = tpu.concatenate %78, %81 in 1 : vector<256x8xf32>, vector<256x8xf32> -> vector<256x16xf32>
    %cst_57 = arith.constant 0.000000e+00 : f32
    %83 = vector.broadcast %cst_57 : f32 to vector<18x18x16xf32>
    %c0_58 = arith.constant 0 : index
    %c0_59 = arith.constant 0 : index
    %c0_60 = arith.constant 0 : index
    %84 = vector.load %arg11[%c0_58, %c0_59, %c0_60] : memref<18x18x16xf32, #tpu.memory_space<vmem>>, vector<18x18x16xf32>
    tpu.vector_store %arg11[%c0_58, %c0_59, %c0_60], %83 {strides = array<i32>} : memref<18x18x16xf32, #tpu.memory_space<vmem>>, vector<18x18x16xf32>,
    %85 = vector.shape_cast %82 : vector<256x16xf32> to vector<16x16x16xf32>
    %c1_61 = arith.constant 1 : index
    %c1_62 = arith.constant 1 : index
    %c0_63 = arith.constant 0 : index
    %86 = vector.load %arg11[%c1_61, %c1_62, %c0_63] : memref<18x18x16xf32, #tpu.memory_space<vmem>>, vector<16x16x16xf32>
    tpu.vector_store %arg11[%c1_61, %c1_62, %c0_63], %85 {strides = array<i32>} : memref<18x18x16xf32, #tpu.memory_space<vmem>>, vector<16x16x16xf32>,
    %c0_64 = arith.constant 0 : index
    %c0_65 = arith.constant 0 : index
    %c0_66 = arith.constant 0 : index
    %87 = vector.load %arg11[%c0_64, %c0_65, %c0_66] : memref<18x18x16xf32, #tpu.memory_space<vmem>>, vector<16x16x16xf32>
    %88 = vector.shape_cast %87 : vector<16x16x16xf32> to vector<256x16xf32>
    %c0_67 = arith.constant 0 : index
    %c1_68 = arith.constant 1 : index
    %c0_69 = arith.constant 0 : index
    %89 = vector.load %arg11[%c0_67, %c1_68, %c0_69] : memref<18x18x16xf32, #tpu.memory_space<vmem>>, vector<16x16x16xf32>
    %90 = vector.shape_cast %89 : vector<16x16x16xf32> to vector<256x16xf32>
    %c0_70 = arith.constant 0 : index
    %c2_71 = arith.constant 2 : index
    %c0_72 = arith.constant 0 : index
    %91 = vector.load %arg11[%c0_70, %c2_71, %c0_72] : memref<18x18x16xf32, #tpu.memory_space<vmem>>, vector<16x16x16xf32>
    %92 = vector.shape_cast %91 : vector<16x16x16xf32> to vector<256x16xf32>
    %c1_73 = arith.constant 1 : index
    %c0_74 = arith.constant 0 : index
    %c0_75 = arith.constant 0 : index
    %93 = vector.load %arg11[%c1_73, %c0_74, %c0_75] : memref<18x18x16xf32, #tpu.memory_space<vmem>>, vector<16x16x16xf32>
    %94 = vector.shape_cast %93 : vector<16x16x16xf32> to vector<256x16xf32>
    %c1_76 = arith.constant 1 : index
    %c1_77 = arith.constant 1 : index
    %c0_78 = arith.constant 0 : index
    %95 = vector.load %arg11[%c1_76, %c1_77, %c0_78] : memref<18x18x16xf32, #tpu.memory_space<vmem>>, vector<16x16x16xf32>
    %96 = vector.shape_cast %95 : vector<16x16x16xf32> to vector<256x16xf32>
    %c1_79 = arith.constant 1 : index
    %c2_80 = arith.constant 2 : index
    %c0_81 = arith.constant 0 : index
    %97 = vector.load %arg11[%c1_79, %c2_80, %c0_81] : memref<18x18x16xf32, #tpu.memory_space<vmem>>, vector<16x16x16xf32>
    %98 = vector.shape_cast %97 : vector<16x16x16xf32> to vector<256x16xf32>
    %c2_82 = arith.constant 2 : index
    %c0_83 = arith.constant 0 : index
    %c0_84 = arith.constant 0 : index
    %99 = vector.load %arg11[%c2_82, %c0_83, %c0_84] : memref<18x18x16xf32, #tpu.memory_space<vmem>>, vector<16x16x16xf32>
    %100 = vector.shape_cast %99 : vector<16x16x16xf32> to vector<256x16xf32>
    %c2_85 = arith.constant 2 : index
    %c1_86 = arith.constant 1 : index
    %c0_87 = arith.constant 0 : index
    %101 = vector.load %arg11[%c2_85, %c1_86, %c0_87] : memref<18x18x16xf32, #tpu.memory_space<vmem>>, vector<16x16x16xf32>
    %102 = vector.shape_cast %101 : vector<16x16x16xf32> to vector<256x16xf32>
    %c2_88 = arith.constant 2 : index
    %c2_89 = arith.constant 2 : index
    %c0_90 = arith.constant 0 : index
    %103 = vector.load %arg11[%c2_88, %c2_89, %c0_90] : memref<18x18x16xf32, #tpu.memory_space<vmem>>, vector<16x16x16xf32>
    %104 = vector.shape_cast %103 : vector<16x16x16xf32> to vector<256x16xf32>
    %105 = tpu.concatenate %88, %90, %92, %94, %96, %98, %100, %102, %104 in 1 : vector<256x16xf32>, vector<256x16xf32>, vector<256x16xf32>, vector<256x16xf32>, vector<256x16xf32>, vector<256x16xf32>, vector<256x16xf32>, vector<256x16xf32>, vector<256x16xf32> -> vector<256x144xf32>
    %c0_91 = arith.constant 0 : index
    %c0_92 = arith.constant 0 : index
    %106 = vector.load %arg6[%c0_91, %c0_92] : memref<144x16xf32, #tpu.memory_space<vmem>>, vector<144x16xf32>
    %cst_93 = arith.constant dense<0.000000e+00> : vector<256x16xf32>
    %107 = tpu.matmul %105, %106, %cst_93 {dimension_numbers = #tpu.dot_dimension_numbers<[1], [0], [0], [1], [0, 0, 1, 1], [], []>} : vector<256x144xf32>, vector<144x16xf32>, vector<256x16xf32> -> vector<256x16xf32>
    %c0_94 = arith.constant 0 : index
    %c0_95 = arith.constant 0 : index
    %108 = vector.load %arg7[%c0_94, %c0_95] : memref<1x16xf32, #tpu.memory_space<vmem>>, vector<1x16xf32>
    %109 = vector.broadcast %108 : vector<1x16xf32> to vector<256x16xf32>
    %110 = arith.addf %107, %109 : vector<256x16xf32>
    %111 = vector.extract_strided_slice %110 {offsets = [0, 0], sizes = [256, 8], strides = [1, 1]} : vector<256x16xf32> to vector<256x8xf32>
    %112 = arith.addf %69, %111 : vector<256x8xf32>
    %cst_96 = arith.constant 5.000000e-01 : f32
    %113 = vector.broadcast %cst_96 : f32 to vector<256x8xf32>
    %114 = arith.mulf %113, %112 : vector<256x8xf32>
    %115 = math.tanh %114 : vector<256x8xf32>
    %cst_97 = arith.constant 5.000000e-01 : f32
    %116 = vector.broadcast %cst_97 : f32 to vector<256x8xf32>
    %117 = arith.mulf %116, %115 : vector<256x8xf32>
    %cst_98 = arith.constant 5.000000e-01 : f32
    %118 = vector.broadcast %cst_98 : f32 to vector<256x8xf32>
    %119 = arith.addf %117, %118 : vector<256x8xf32>
    %120 = vector.extract_strided_slice %110 {offsets = [0, 8], sizes = [256, 8], strides = [1, 1]} : vector<256x16xf32> to vector<256x8xf32>
    %121 = math.tanh %120 : vector<256x8xf32>
    %122 = arith.mulf %119, %121 : vector<256x8xf32>
    %123 = vector.shape_cast %122 : vector<256x8xf32> to vector<1x16x16x8xf32>
    %c0_99 = arith.constant 0 : index
    %c0_100 = arith.constant 0 : index
    %c0_101 = arith.constant 0 : index
    %c0_102 = arith.constant 0 : index
    %124 = vector.load %arg8[%c0_99, %c0_100, %c0_101, %c0_102] : memref<1x16x16x8xf32, #tpu.memory_space<vmem>>, vector<1x16x16x8xf32>
    tpu.vector_store %arg8[%c0_99, %c0_100, %c0_101, %c0_102], %123 {strides = array<i32>} : memref<1x16x16x8xf32, #tpu.memory_space<vmem>>, vector<1x16x16x8xf32>,
    %125 = vector.shape_cast %78 : vector<256x8xf32> to vector<1x16x16x8xf32>
    %c0_103 = arith.constant 0 : index
    %c0_104 = arith.constant 0 : index
    %c0_105 = arith.constant 0 : index
    %c0_106 = arith.constant 0 : index
    %126 = vector.load %arg9[%c0_103, %c0_104, %c0_105, %c0_106] : memref<1x16x16x8xf32, #tpu.memory_space<vmem>>, vector<1x16x16x8xf32>
    tpu.vector_store %arg9[%c0_103, %c0_104, %c0_105, %c0_106], %125 {strides = array<i32>} : memref<1x16x16x8xf32, #tpu.memory_space<vmem>>, vector<1x16x16x8xf32>,
    %127 = vector.shape_cast %81 : vector<256x8xf32> to vector<1x16x16x8xf32>
    %c0_107 = arith.constant 0 : index
    %c0_108 = arith.constant 0 : index
    %c0_109 = arith.constant 0 : index
    %c0_110 = arith.constant 0 : index
    %128 = vector.load %arg10[%c0_107, %c0_108, %c0_109, %c0_110] : memref<1x16x16x8xf32, #tpu.memory_space<vmem>>, vector<1x16x16x8xf32>
    tpu.vector_store %arg10[%c0_107, %c0_108, %c0_109, %c0_110], %127 {strides = array<i32>} : memref<1x16x16x8xf32, #tpu.memory_space<vmem>>, vector<1x16x16x8xf32>,
    return
  }
  func.func @transform_0(%arg0: i32) -> (i32, i32, i32, i32) {
    %c0_i32 = arith.constant 0 : i32
    %c0_i32_0 = arith.constant 0 : i32
    %c0_i32_1 = arith.constant 0 : i32
    %c0_i32_2 = arith.constant 0 : i32
    return %arg0, %c0_i32, %c0_i32_0, %c0_i32_1 : i32, i32, i32, i32
  }
  func.func @transform_1(%arg0: i32) -> (i32, i32, i32, i32) {
    %c0_i32 = arith.constant 0 : i32
    %c0_i32_0 = arith.constant 0 : i32
    %c0_i32_1 = arith.constant 0 : i32
    %c0_i32_2 = arith.constant 0 : i32
    return %arg0, %c0_i32, %c0_i32_0, %c0_i32_1 : i32, i32, i32, i32
  }
  func.func @transform_2(%arg0: i32) -> (i32, i32, i32, i32) {
    %c0_i32 = arith.constant 0 : i32
    %c0_i32_0 = arith.constant 0 : i32
    %c0_i32_1 = arith.constant 0 : i32
    %c0_i32_2 = arith.constant 0 : i32
    return %arg0, %c0_i32, %c0_i32_0, %c0_i32_1 : i32, i32, i32, i32
  }
  func.func @transform_3(%arg0: i32) -> (i32, i32) {
    %c0_i32 = arith.constant 0 : i32
    %c0_i32_0 = arith.constant 0 : i32
    %c0_i32_1 = arith.constant 0 : i32
    return %c0_i32, %c0_i32_0 : i32, i32
  }
  func.func @transform_4(%arg0: i32) -> (i32, i32) {
    %c0_i32 = arith.constant 0 : i32
    %c0_i32_0 = arith.constant 0 : i32
    %c0_i32_1 = arith.constant 0 : i32
    return %c0_i32, %c0_i32_0 : i32, i32
  }
  func.func @transform_5(%arg0: i32) -> (i32, i32) {
    %c0_i32 = arith.constant 0 : i32
    %c0_i32_0 = arith.constant 0 : i32
    %c0_i32_1 = arith.constant 0 : i32
    return %c0_i32, %c0_i32_0 : i32, i32
  }
  func.func @transform_6(%arg0: i32) -> (i32, i32) {
    %c0_i32 = arith.constant 0 : i32
    %c0_i32_0 = arith.constant 0 : i32
    %c0_i32_1 = arith.constant 0 : i32
    return %c0_i32, %c0_i32_0 : i32, i32
  }
  func.func @transform_7(%arg0: i32) -> (i32, i32, i32, i32) {
    %c0_i32 = arith.constant 0 : i32
    %c0_i32_0 = arith.constant 0 : i32
    %c0_i32_1 = arith.constant 0 : i32
    %c0_i32_2 = arith.constant 0 : i32
    return %arg0, %c0_i32, %c0_i32_0, %c0_i32_1 : i32, i32, i32, i32
  }
  func.func @transform_8(%arg0: i32) -> (i32, i32, i32, i32) {
    %c0_i32 = arith.constant 0 : i32
    %c0_i32_0 = arith.constant 0 : i32
    %c0_i32_1 = arith.constant 0 : i32
    %c0_i32_2 = arith.constant 0 : i32
    return %arg0, %c0_i32, %c0_i32_0, %c0_i32_1 : i32, i32, i32, i32
  }
  func.func @transform_9(%arg0: i32) -> (i32, i32, i32, i32) {
    %c0_i32 = arith.constant 0 : i32
    %c0_i32_0 = arith.constant 0 : i32
    %c0_i32_1 = arith.constant 0 : i32
    %c0_i32_2 = arith.constant 0 : i32
    return %arg0, %c0_i32, %c0_i32_0, %c0_i32_1 : i32, i32, i32, i32
  }
}

</mosaic_0001>

<bundles_post_ra>
// kernel: tpu_custom_call.1
= control target key start
LH: loop header
LB: loop body
LE: loop exit
PB: predicated region body
PF: predicated region fallthrough
CT: control target
= control target key end

     0   :  { %s7943_s30 = smov 0   ;;  %s12589_s0 = inlined_call_operand.vmem [shape: f32[2,18,18,20], index: 0, kind: input, shape index: {}]   ;;  %s12590_s1 = inlined_call_operand.vmem [shape: f32[2,16,16,8], index: 1, kind: input, shape index: {}]   ;;  %s12591_s2 = inlined_call_operand.vmem [shape: f32[2,16,16,8], index: 2, kind: input, shape index: {}]   ;;  %s12592_s3 = inlined_call_operand.vmem [shape: f32[180,56], index: 3, kind: input, shape index: {}]   ;;  %s12593_s4 = inlined_call_operand.vmem [shape: f32[1,56], index: 4, kind: input, shape index: {}]   ;;  %s12594_s5 = inlined_call_operand.vmem [shape: f32[144,16], index: 5, kind: input, shape index: {}]   ;;  %s12595_s6 = inlined_call_operand.vmem [shape: f32[1,16], index: 6, kind: input, shape index: {}]   ;;  %s12596_s7 = inlined_call_operand.vmem [shape: f32[2,16,16,8], index: 7, kind: output, shape index: {0}]   ;;  %s12597_s8 = inlined_call_operand.vmem [shape: f32[2,16,16,8], index: 8, kind: output, shape index: {1}]   ;;  %s12598_s9 = inlined_call_operand.vmem [shape: f32[2,16,16,8], index: 9, kind: output, shape index: {2}]  }
   0x1 LB: > { %s6306_s10 = sadd.s32 4294967295, %s7875_s30   ;;  %p6310_p0 = scmp.ge.s32.totalorder %s7875_s30, 1  ;;  %s7875_s30 = sphi %s7943_s30, %s20_s30  }
   0x2   : > { %p312_p1 = scmp.lt.s32.totalorder %s7875_s30, 3 }
   0x4   : > { %p313_p2 = pnand %p6310_p0, %p312_p1 }
   0x6   : > { %316 = sbr.rel (%p313_p2) target bundleno = 2476 (0x9ac), region = 48 }
   0xb   : > { %p368_p3 = scmp.lt.s32.totalorder %s6306_s10, 1  ;;  %s7877_s15 = smov 20   ;;  %vm1712_vm0 = vcmask 162816   ;;  %vm1778_vm1 = vcmask 490496   ;;  %vm1745_vm2 = vcmask 326656   ;;  %vm1811_vm3 = vcmask 654336  }
   0xc   : > { %s7878_s16 = smov 40   ;;  %s7879_s17 = smov 60   ;;  %vm1877_vm4 = vcmask 982016   ;;  %vm1844_vm5 = vcmask 818176   ;;  %vm2100_vm6 = vcmask 1043456   ;;  %vm1910_vm7 = vcmask 97280  }
   0xd   : > { %s13276_s10 = smov (!%p368_p3, %s6306_s10), 1  ;;  %s7880_s18 = smov 80   ;;  %vm2003_vm8 = vcmask 424960   ;;  %vm1943_vm9 = vcmask 261120   ;;  %vm3482_vm10 = vcmask 64512   ;;  %vm3515_vm11 = vcmask 130048  }
   0xe   : > { %s6586_s11 = smul.u32 432, %s13276_s10  ;;  %s7881_s19 = smov 100   ;;  %vm3518_vm12 = vcmask 123904   ;;  %vm4853_vm13 = vcmask 392192   ;;  %vm4886_vm14 = vcmask 523264   ;;  %vm4951_vm15 = vcmask 785408  }
   0xf   : > { %s7882_s20 = smov 120   ;;  %s7883_s23 = smov 12  }
  0x10   : > { %s7957_s14 = scalar_lea.vmem %s12589_s0, %s6586_s11  ;;  %s7884_s24 = smov 32  }
  0x11   : > { %v438_v0 = vld [vmem:[%s7957_s14 + $0x61] sm:$0xff]  ;;  %v439_v1 = vld [vmem:[%s7957_s14 + $0x69] sm:$0xff]  ;;  %v434_v2 = vld [vmem:[%s7957_s14 + $0x31] sm:$0xff]  ;;  %s9202_s25 = sshll.u32 %s13276_s10, 8  ;;  %s7885_s10 = smov 8  }
  0x12   : > { %v7962_v3 = vpack.i.bf16 %v439_v1, %v438_v0  ;;  %v435_v4 = vld [vmem:[%s7957_s14 + $0x39] sm:$0xff]  ;;  %v430_v5 = vld [vmem:[%s7957_s14 + $0x1] sm:$0xff]  ;;  %v431_v6 = vld [vmem:[%s7957_s14 + $0x9] sm:$0xff]  ;;  %s9211_s28 = scalar_lea.vmem %s12590_s1, %s9202_s25  ;;  %s7886_s11 = smov 112  }
  0x13   : > { %v7967_v7 = vpack.i.bf16 %v435_v4, %v434_v2  ;;  %v6611_v8 = vpack.i.bf16 %v431_v6, %v430_v5  ;;  %v440_v9 = vld [vmem:[%s7957_s14 + $0x79] sm:$0xff]  ;;  %v441_v10 = vld [vmem:[%s7957_s14 + $0x81] sm:$0xff]  ;;  %v436_v11 = vld [vmem:[%s7957_s14 + $0x49] sm:$0xff]  ;;  %s10314_s21 = scalar_lea.vmem %s12597_s8, %s9202_s25 }
  0x14   : > { %6632 = vrot.lane.b32.xlu2 %v7962_v3, %s7877_s15  ;;  %v437_v12 = vld [vmem:[%s7957_s14 + $0x51] sm:$0xff]  ;;  %v432_v13 = vld [vmem:[%s7957_s14 + $0x19] sm:$0xff]  ;;  %v433_v14 = vld [vmem:[%s7957_s14 + $0x21] sm:$0xff]  ;;  %v7980_v15 = vpack.i.bf16 %v441_v10, %v440_v9 }
  0x15   : > { %6622 = vrot.lane.b32.xlu1 %v7967_v7, %s7877_s15  ;;  %6612 = vrot.lane.b32.xlu0 %v6611_v8, %s7877_s15  ;;  %v7982_v16 = vpack.i.bf16 %v437_v12, %v436_v11  ;;  %v7984_v17 = vpack.i.bf16 %v433_v14, %v432_v13  ;;  %v446_v18 = vld [vmem:[%s7957_s14 + $0xc1] sm:$0xff]  ;;  %v447_v19 = vld [vmem:[%s7957_s14 + $0xc9] sm:$0xff] }
  0x16   : > { %v444_v20 = vld [vmem:[%s7957_s14 + $0xa9] sm:$0xff]  ;;  %v445_v21 = vld [vmem:[%s7957_s14 + $0xb1] sm:$0xff]  ;;  %v443_v23 = vld [vmem:[%s7957_s14 + $0x99] sm:$0xff]  ;;  %v7998_v24 = vpack.i.bf16 %v447_v19, %v446_v18 }
  0x17   : > { %v442_v22 = vld [vmem:[%s7957_s14 + $0x91] sm:$0xff]  ;;  %v8000_v25 = vpack.i.bf16 %v445_v21, %v444_v20  ;;  %v452_v27 = vld [vmem:[%s7957_s14 + $0x109] sm:$0xff]  ;;  %v451_v30 = vld [vmem:[%s7957_s14 + $0xf9] sm:$0xff] }
  0x18   : > { %v8002_v26 = vpack.i.bf16 %v443_v23, %v442_v22  ;;  %v453_v28 = vld [vmem:[%s7957_s14 + $0x111] sm:$0xff]  ;;  %v448_v31 = vld [vmem:[%s7957_s14 + $0xd9] sm:$0xff]  ;;  %v449_v32 = vld [vmem:[%s7957_s14 + $0xe1] sm:$0xff] }
  0x19   : > { %v450_v29 = vld [vmem:[%s7957_s14 + $0xf1] sm:$0xff]  ;;  %v8016_v33 = vpack.i.bf16 %v453_v28, %v452_v27  ;;  %v8020_v35 = vpack.i.bf16 %v449_v32, %v448_v31  ;;  %v459_v37 = vld [vmem:[%s7957_s14 + $0x159] sm:$0xff]  ;;  %v457_v39 = vld [vmem:[%s7957_s14 + $0x141] sm:$0xff] }
  0x1a   : > { %v8018_v34 = vpack.i.bf16 %v451_v30, %v450_v29  ;;  %v458_v36 = vld [vmem:[%s7957_s14 + $0x151] sm:$0xff]  ;;  %v456_v38 = vld [vmem:[%s7957_s14 + $0x139] sm:$0xff]  ;;  %v454_v40 = vld [vmem:[%s7957_s14 + $0x121] sm:$0xff] }
  0x1b   : > { %v455_v41 = vld [vmem:[%s7957_s14 + $0x129] sm:$0xff]  ;;  %v8034_v42 = vpack.i.bf16 %v459_v37, %v458_v36  ;;  %v8036_v43 = vpack.i.bf16 %v457_v39, %v456_v38  ;;  %v464_v45 = vld [vmem:[%s7957_s14 + $0x1a] sm:$0xff]  ;;  %v461_v50 = vld [vmem:[%s7957_s14 + $0x171] sm:$0xff] }
  0x1c   : > { %6637 = vrot.lane.b32.xlu2 %v7980_v15, %s7877_s15  ;;  %v8038_v44 = vpack.i.bf16 %v455_v41, %v454_v40  ;;  %v465_v46 = vld [vmem:[%s7957_s14 + $0x22] sm:$0xff]  ;;  %v463_v48 = vld [vmem:[%s7957_s14 + $0xa] sm:$0xff]  ;;  %v469_v57 = vld [vmem:[%s7957_s14 + $0x52] sm:$0xff] }
  0x1d   : > { %6627 = vrot.lane.b32.xlu1 %v7982_v16, %s7877_s15  ;;  %6617 = vrot.lane.b32.xlu0 %v7984_v17, %s7877_s15  ;;  %v462_v47 = vld [vmem:[%s7957_s14 + $0x2] sm:$0xff]  ;;  %v8052_v51 = vpack.i.bf16 %v465_v46, %v464_v45  ;;  %v471_v55 = vld [vmem:[%s7957_s14 + $0x6a] sm:$0xff] }
  0x1e   : > { %v460_v49 = vld [vmem:[%s7957_s14 + $0x169] sm:$0xff]  ;;  %v6691_v52 = vpack.i.bf16 %v463_v48, %v462_v47  ;;  %v466_v58 = vld [vmem:[%s7957_s14 + $0x32] sm:$0xff]  ;;  %v467_v59 = vld [vmem:[%s7957_s14 + $0x3a] sm:$0xff] }
  0x1f   : > { %v8054_v53 = vpack.i.bf16 %v461_v50, %v460_v49  ;;  %v470_v54 = vld [vmem:[%s7957_s14 + $0x62] sm:$0xff]  ;;  %v468_v56 = vld [vmem:[%s7957_s14 + $0x4a] sm:$0xff]  ;;  %v8071_v62 = vpack.i.bf16 %v467_v59, %v466_v58  ;;  %v477_v0 = vld [vmem:[%s7957_s14 + $0xb2] sm:$0xff] }
  0x20   : > { %v8067_v60 = vpack.i.bf16 %v471_v55, %v470_v54  ;;  %v8069_v61 = vpack.i.bf16 %v469_v57, %v468_v56  ;;  %v476_v63 = vld [vmem:[%s7957_s14 + $0xaa] sm:$0xff]  ;;  %v474_v1 = vld [vmem:[%s7957_s14 + $0x92] sm:$0xff]  ;;  %v475_v2 = vld [vmem:[%s7957_s14 + $0x9a] sm:$0xff] }
  0x21   : > { %v472_v4 = vld [vmem:[%s7957_s14 + $0x7a] sm:$0xff]  ;;  %v473_v5 = vld [vmem:[%s7957_s14 + $0x82] sm:$0xff]  ;;  %v8085_v6 = vpack.i.bf16 %v477_v0, %v476_v63  ;;  %v8087_v8 = vpack.i.bf16 %v475_v2, %v474_v1  ;;  %v482_v10 = vld [vmem:[%s7957_s14 + $0xf2] sm:$0xff] }
  0x22   : > { %v8089_v9 = vpack.i.bf16 %v473_v5, %v472_v4  ;;  %v483_v11 = vld [vmem:[%s7957_s14 + $0xfa] sm:$0xff]  ;;  %v481_v13 = vld [vmem:[%s7957_s14 + $0xe2] sm:$0xff]  ;;  %v479_v18 = vld [vmem:[%s7957_s14 + $0xca] sm:$0xff] }
  0x23   : > { %v480_v12 = vld [vmem:[%s7957_s14 + $0xda] sm:$0xff]  ;;  %v478_v14 = vld [vmem:[%s7957_s14 + $0xc2] sm:$0xff]  ;;  %v8103_v19 = vpack.i.bf16 %v483_v11, %v482_v10  ;;  %v487_v28 = vld [vmem:[%s7957_s14 + $0x12a] sm:$0xff] }
  0x24   : > { %6652 = vrot.lane.b32.xlu2 %v7998_v24, %s7877_s15  ;;  %v8105_v20 = vpack.i.bf16 %v481_v13, %v480_v12  ;;  %v8107_v21 = vpack.i.bf16 %v479_v18, %v478_v14  ;;  %v488_v22 = vld [vmem:[%s7957_s14 + $0x13a] sm:$0xff]  ;;  %v489_v23 = vld [vmem:[%s7957_s14 + $0x142] sm:$0xff]  ;;  %v484_v29 = vld [vmem:[%s7957_s14 + $0x10a] sm:$0xff] }
  0x25   : > { %6647 = vrot.lane.b32.xlu1 %v8000_v25, %s7877_s15  ;;  %6642 = vrot.lane.b32.xlu0 %v8002_v26, %s7877_s15  ;;  %v486_v27 = vld [vmem:[%s7957_s14 + $0x122] sm:$0xff]  ;;  %v485_v30 = vld [vmem:[%s7957_s14 + $0x112] sm:$0xff]  ;;  %v8121_v31 = vpack.i.bf16 %v489_v23, %v488_v22 }
  0x26   : > { %v8123_v32 = vpack.i.bf16 %v487_v28, %v486_v27  ;;  %v8125_v36 = vpack.i.bf16 %v485_v30, %v484_v29  ;;  %v8130_v37 = vld [vmem:[%s7957_s14 + $0x18] sm:$0xff]  ;;  %v8137_v38 = vld [vmem:[%s7957_s14 + $0x20] sm:$0xff]  ;;  %v492_v39 = vld [vmem:[%s7957_s14 + $0x16a] sm:$0xff] }
  0x27   : > { %12806 = vst [vmem:[#allocation3_spill] sm:$0xff] %v8130_v37  ;;  %v493_v40 = vld [vmem:[%s7957_s14 + $0x172] sm:$0xff]  ;;  %v491_v45 = vld [vmem:[%s7957_s14 + $0x15a] sm:$0xff]  ;;  %v6771_v46 = vpack.i.bf16 %v8137_v38, %v8130_v37  ;;  %v8158_v50 = vld [vmem:[%s7957_s14 + $0x68] sm:$0xff] }
  0x28   : > { %12807 = vst [vmem:[#allocation4_spill] sm:$0xff] %v8137_v38  ;;  %v490_v41 = vld [vmem:[%s7957_s14 + $0x152] sm:$0xff]  ;;  %v8145_v47 = vpack.i.bf16 %v493_v40, %v492_v39  ;;  %v8151_v49 = vld [vmem:[%s7957_s14 + $0x60] sm:$0xff]  ;;  %v8180_v63 = vld [vmem:[%s7957_s14 + $0xa8] sm:$0xff] }
  0x29   : > { %v8147_v48 = vpack.i.bf16 %v491_v45, %v490_v41  ;;  %v8164_v54 = vld [vmem:[%s7957_s14 + $0x50] sm:$0xff]  ;;  %v8170_v56 = vld [vmem:[%s7957_s14 + $0x38] sm:$0xff]  ;;  %v6786_v57 = vpack.i.bf16 %v8158_v50, %v8151_v49  ;;  %v8199_v10 = vld [vmem:[%s7957_s14 + $0x80] sm:$0xff] }
  0x2a   : > { %v8167_v55 = vld [vmem:[%s7957_s14 + $0x30] sm:$0xff]  ;;  %v8193_v4 = vld [vmem:[%s7957_s14 + $0x98] sm:$0xff]  ;;  %v8222_v27 = vld [vmem:[%s7957_s14 + $0xe0] sm:$0xff] }
  0x2b   : > { %v6776_v59 = vpack.i.bf16 %v8170_v56, %v8167_v55  ;;  %v8185_v0 = vld [vmem:[%s7957_s14 + $0xb0] sm:$0xff]  ;;  %v8196_v5 = vld [vmem:[%s7957_s14 + $0x78] sm:$0xff]  ;;  %v8225_v28 = vld [vmem:[%s7957_s14 + $0xc0] sm:$0xff] }
  0x2c   : > { %6667 = vrot.lane.b32.xlu2 %v8016_v33, %s7877_s15  ;;  %v8188_v1 = vld [vmem:[%s7957_s14 + $0x90] sm:$0xff]  ;;  %v6801_v11 = vpack.i.bf16 %v8185_v0, %v8180_v63  ;;  %v6791_v13 = vpack.i.bf16 %v8199_v10, %v8196_v5  ;;  %v8214_v18 = vld [vmem:[%s7957_s14 + $0xf8] sm:$0xff]  ;;  %v8228_v29 = vld [vmem:[%s7957_s14 + $0xc8] sm:$0xff] }
  0x2d   : > { %6662 = vrot.lane.b32.xlu1 %v8018_v34, %s7877_s15  ;;  %6657 = vrot.lane.b32.xlu0 %v8020_v35, %s7877_s15  ;;  %v6796_v12 = vpack.i.bf16 %v8193_v4, %v8188_v1  ;;  %v8209_v14 = vld [vmem:[%s7957_s14 + $0xf0] sm:$0xff]  ;;  %v8217_v22 = vld [vmem:[%s7957_s14 + $0xd8] sm:$0xff]  ;;  %v6806_v40 = vpack.i.bf16 %v8228_v29, %v8225_v28 }
  0x2e   : > { %v6816_v30 = vpack.i.bf16 %v8214_v18, %v8209_v14  ;;  %v6811_v39 = vpack.i.bf16 %v8222_v27, %v8217_v22  ;;  %v8238_v41 = vld [vmem:[%s7957_s14 + $0x138] sm:$0xff]  ;;  %v8243_v45 = vld [vmem:[%s7957_s14 + $0x140] sm:$0xff]  ;;  %v8283_v38 = vld [vmem:[%s7957_s14 + $0x150] sm:$0xff] }
  0x2f   : > { %12810 = vst [vmem:[#allocation7_spill] sm:$0xff] %v8238_v41  ;;  %v8286_v37 = vld [vmem:[%s7957_s14 + $0x158] sm:$0xff] }
  0x30   : > { %12811 = vst [vmem:[#allocation8_spill] sm:$0xff] %v8243_v45 }
  0x34   : > { %6682 = vrot.lane.b32.xlu2 %v8034_v42, %s7877_s15 }
  0x35   : > { %6677 = vrot.lane.b32.xlu1 %v8036_v43, %s7877_s15  ;;  %6672 = vrot.lane.b32.xlu0 %v8038_v44, %s7877_s15 }
  0x3c   : > { %6697 = vrot.lane.b32.xlu2 %v8052_v51, %s7878_s16 }
  0x3d   : > { %6692 = vrot.lane.b32.xlu1 %v6691_v52, %s7878_s16  ;;  %6687 = vrot.lane.b32.xlu0 %v8054_v53, %s7877_s15  ;;  %v8161_v52 = vld [vmem:[%s7957_s14 + $0x48] sm:$0xff]  ;;  %s9974_s15 = scalar_lea.vmem %s12591_s2, %s9202_s25 }
  0x3e   : > { %v6781_v58 = vpack.i.bf16 %v8164_v54, %v8161_v52 }
  0x44   : > { %6712 = vrot.lane.b32.xlu2 %v8067_v60, %s7878_s16 }
  0x45   : > { %6707 = vrot.lane.b32.xlu1 %v8069_v61, %s7878_s16  ;;  %6702 = vrot.lane.b32.xlu0 %v8071_v62, %s7878_s16 }
  0x4c   : > { %6727 = vrot.lane.b32.xlu2 %v8085_v6, %s7878_s16 }
  0x4d   : > { %6722 = vrot.lane.b32.xlu1 %v8087_v8, %s7878_s16  ;;  %6717 = vrot.lane.b32.xlu0 %v8089_v9, %s7878_s16 }
  0x54   : > { %6742 = vrot.lane.b32.xlu2 %v8103_v19, %s7878_s16 }
  0x55   : > { %6737 = vrot.lane.b32.xlu1 %v8105_v20, %s7878_s16  ;;  %6732 = vrot.lane.b32.xlu0 %v8107_v21, %s7878_s16 }
  0x5c   : > { %6757 = vrot.lane.b32.xlu2 %v8121_v31, %s7878_s16 }
  0x5d   : > { %6752 = vrot.lane.b32.xlu1 %v8123_v32, %s7878_s16  ;;  %6747 = vrot.lane.b32.xlu0 %v8125_v36, %s7878_s16 }
  0x64   : > { %6772 = vrot.lane.b32.xlu2 %v6771_v46, %s7879_s17  ;;  %v8246_v46 = vld [vmem:[%s7957_s14 + $0x120] sm:$0xff] }
  0x65   : > { %6767 = vrot.lane.b32.xlu1 %v8145_v47, %s7878_s16  ;;  %6762 = vrot.lane.b32.xlu0 %v8147_v48, %s7878_s16 }
  0x6c   : > { %6787 = vrot.lane.b32.xlu2 %v6786_v57, %s7879_s17 }
  0x6d   : > { %6782 = vrot.lane.b32.xlu1 %v6781_v58, %s7879_s17  ;;  %6777 = vrot.lane.b32.xlu0 %v6776_v59, %s7879_s17  ;;  %v8251_v58 = vld [vmem:[%s7957_s14 + $0x128] sm:$0xff] }
  0x6e   : > { %v8190_v2 = vpop.permute.xlu2 %6632  ;;  %v8254_v59 = vld [vmem:[%s7957_s14 + $0x108] sm:$0xff] }
  0x6f   : > { %12808 = vst [vmem:[#allocation5_spill] sm:$0xff] %v8190_v2  ;;  %v8280_v2 = vld [vmem:[%s7957_s14 + $0x170] sm:$0xff] }
  0x74   : > { %6802 = vrot.lane.b32.xlu2 %v6801_v11, %s7879_s17  ;;  %v8257_v11 = vld [vmem:[%s7957_s14 + $0x110] sm:$0xff] }
  0x75   : > { %6797 = vrot.lane.b32.xlu1 %v6796_v12, %s7879_s17  ;;  %6792 = vrot.lane.b32.xlu0 %v6791_v13, %s7879_s17  ;;  %v6831_v12 = vpack.i.bf16 %v8243_v45, %v8238_v41  ;;  %v6826_v13 = vpack.i.bf16 %v8251_v58, %v8246_v46  ;;  %v6836_v45 = vpack.i.bf16 %v8286_v37, %v8283_v38 }
  0x76   : > { %v8219_v23 = vpop.permute.xlu2 %6637 }
  0x77   : > { %12809 = vst [vmem:[#allocation6_spill] sm:$0xff] %v8219_v23 }
  0x7c   : > { %6817 = vrot.lane.b32.xlu2 %v6816_v30, %s7879_s17  ;;  %v6821_v30 = vpack.i.bf16 %v8257_v11, %v8254_v59 }
  0x7d   : > { %6812 = vrot.lane.b32.xlu1 %v6811_v39, %s7879_s17  ;;  %6807 = vrot.lane.b32.xlu0 %v6806_v40, %s7879_s17  ;;  %v8267_v39 = vld [vmem:[%s7957_s14 + $0x180] sm:$0xff]  ;;  %v8272_v40 = vld [vmem:[%s7957_s14 + $0x188] sm:$0xff] }
  0x7e   : > { %v8248_v57 = vpop.permute.xlu2 %6652 }
  0x7f   : > { %12812 = vst [vmem:[#allocation9_spill] sm:$0xff] %v8248_v57  ;;  %v8275_v57 = vld [vmem:[%s7957_s14 + $0x168] sm:$0xff] }
  0x84   : > { %6832 = vrot.lane.b32.xlu2 %v6831_v12, %s7879_s17 }
  0x85   : > { %6827 = vrot.lane.b32.xlu1 %v6826_v13, %s7879_s17  ;;  %6822 = vrot.lane.b32.xlu0 %v6821_v30, %s7879_s17  ;;  %v6846_v13 = vpack.i.bf16 %v8272_v40, %v8267_v39  ;;  %v6841_v30 = vpack.i.bf16 %v8280_v2, %v8275_v57 }
  0x86   : > { %v8277_v23 = vpop.permute.xlu2 %6667 }
  0x87   : > { %12813 = vst [vmem:[#allocation10_spill] sm:$0xff] %v8277_v23  ;;  %v8288_v41 = vpop.permute.xlu1 %6622  ;;  %v8290_v12 = vpop.permute.xlu0 %6612 }
  0x88   : > { %12814 = vst [vmem:[#allocation11_spill] sm:$0xff] %v8288_v41 }
  0x89   : > { %12815 = vst [vmem:[#allocation12_spill] sm:$0xff] %v8290_v12 }
  0x8c   : > { %6847 = vrot.lane.b32.xlu2 %v6846_v13, %s7879_s17 }
  0x8d   : > { %6842 = vrot.lane.b32.xlu1 %v6841_v30, %s7879_s17  ;;  %6837 = vrot.lane.b32.xlu0 %v6836_v45, %s7879_s17  ;;  %s7887_s17 = smov 104  }
  0x8e   : > { %v8301_v23 = vpop.permute.xlu2 %6682 }
  0x8f   : > { %12816 = vst [vmem:[#allocation13_spill] sm:$0xff] %v8301_v23  ;;  %v8303_v41 = vpop.permute.xlu1 %6627  ;;  %v8305_v12 = vpop.permute.xlu0 %6617 }
  0x94   : > { %6862 = vrot.lane.b32.xlu2 %v7982_v16, %s7880_s18 }
  0x95   : > { %6857 = vrot.lane.b32.xlu1 %v7967_v7, %s7880_s18  ;;  %6852 = vrot.lane.b32.xlu0 %v7984_v17, %s7880_s18 }
  0x96   : > { %v8313_v13 = vpop.permute.xlu2 %6697 }
  0x97   : > { %v8315_v30 = vpop.permute.xlu1 %6647  ;;  %v8317_v45 = vpop.permute.xlu0 %6642 }
  0x9c   : > { %6877 = vrot.lane.b32.xlu2 %v8002_v26, %s7880_s18 }
  0x9d   : > { %6872 = vrot.lane.b32.xlu1 %v7980_v15, %s7880_s18  ;;  %6867 = vrot.lane.b32.xlu0 %v7962_v3, %s7880_s18 }
  0x9e   : > { %v8325_v16 = vpop.permute.xlu2 %6712 }
  0x9f   : > { %v8327_v7 = vpop.permute.xlu1 %6662  ;;  %v8329_v17 = vpop.permute.xlu0 %6657 }
  0xa0   : > { %12817 = vst [vmem:[#allocation14_spill] sm:$0xff] %v8327_v7 }
  0xa1   : > { %12818 = vst [vmem:[#allocation15_spill] sm:$0xff] %v8329_v17  ;;  %v6463_v17 = vld [vmem:[%s7957_s14 + $0xc9] sm:$0xff] }
  0xa4   : > { %6892 = vrot.lane.b32.xlu2 %v8020_v35, %s7880_s18 }
  0xa5   : > { %6887 = vrot.lane.b32.xlu1 %v7998_v24, %s7880_s18  ;;  %6882 = vrot.lane.b32.xlu0 %v8000_v25, %s7880_s18 }
  0xa6   : > { %v8337_v15 = vpop.permute.xlu2 %6727 }
  0xa7   : > { %v8339_v3 = vpop.permute.xlu1 %6677  ;;  %v8341_v26 = vpop.permute.xlu0 %6672 }
  0xa8   : > { %12819 = vst [vmem:[#allocation16_spill] sm:$0xff] %v8339_v3 }
  0xa9   : > { %12820 = vst [vmem:[#allocation17_spill] sm:$0xff] %v8341_v26 }
  0xac   : > { %6907 = vrot.lane.b32.xlu2 %v8038_v44, %s7880_s18 }
  0xad   : > { %6902 = vrot.lane.b32.xlu1 %v8016_v33, %s7880_s18  ;;  %6897 = vrot.lane.b32.xlu0 %v8018_v34, %s7880_s18  ;;  %v8364_v33 = vld [vmem:[%s7957_s14 + $0x181] sm:$0xff]  ;;  %v8367_v34 = vld [vmem:[%s7957_s14 + $0x189] sm:$0xff] }
  0xae   : > { %v8349_v24 = vpop.permute.xlu2 %6742 }
  0xaf   : > { %12821 = vst [vmem:[#allocation18_spill] sm:$0xff] %v8349_v24  ;;  %v8351_v35 = vpop.permute.xlu1 %6692  ;;  %v8353_v25 = vpop.permute.xlu0 %6687 }
  0xb0   : > { %12822 = vst [vmem:[#allocation19_spill] sm:$0xff] %v8353_v25  ;;  %v6926_v25 = vpack.i.bf16 %v8367_v34, %v8364_v33 }
  0xb4   : > { %6922 = vrot.lane.b32.xlu2 %v8054_v53, %s7880_s18 }
  0xb5   : > { %6917 = vrot.lane.b32.xlu1 %v8034_v42, %s7880_s18  ;;  %6912 = vrot.lane.b32.xlu0 %v8036_v43, %s7880_s18 }
  0xb6   : > { %v8361_v44 = vpop.permute.xlu2 %6757 }
  0xb7   : > { %12823 = vst [vmem:[#allocation20_spill] sm:$0xff] %v8361_v44  ;;  %v8369_v23 = vpop.permute.xlu1 %6707  ;;  %v8371_v3 = vpop.permute.xlu0 %6702  ;;  %v6417_v44 = vld [vmem:[%s7957_s14 + $0x18a] sm:$0xff] }
  0xbc   : > { %6937 = vrot.lane.b32.xlu2 %v8071_v62, %s7881_s19 }
  0xbd   : > { %6932 = vrot.lane.b32.xlu1 %v8052_v51, %s7881_s19  ;;  %6927 = vrot.lane.b32.xlu0 %v6926_v25, %s7880_s18 }
  0xbe   : > { %v8380_v42 = vpop.permute.xlu2 %6772 }
  0xbf   : > { %v8382_v43 = vpop.permute.xlu1 %6722  ;;  %v8384_v53 = vpop.permute.xlu0 %6717 }
  0xc4   : > { %6952 = vrot.lane.b32.xlu2 %v8089_v9, %s7881_s19 }
  0xc5   : > { %6947 = vrot.lane.b32.xlu1 %v8067_v60, %s7881_s19  ;;  %6942 = vrot.lane.b32.xlu0 %v8069_v61, %s7881_s19 }
  0xc6   : > { %v8392_v62 = vpop.permute.xlu2 %6787 }
  0xc7   : > { %v8394_v51 = vpop.permute.xlu1 %6737  ;;  %v8396_v25 = vpop.permute.xlu0 %6732 }
  0xc8   : > { %12824 = vst [vmem:[#allocation21_spill] sm:$0xff] %v8394_v51  ;;  %v6775_v51 = vunpack.i.h.bf16 %v8380_v42 }
  0xcc   : > { %6967 = vrot.lane.b32.xlu2 %v8107_v21, %s7881_s19 }
  0xcd   : > { %6962 = vrot.lane.b32.xlu1 %v8085_v6, %s7881_s19  ;;  %6957 = vrot.lane.b32.xlu0 %v8087_v8, %s7881_s19 }
  0xce   : > { %v8404_v60 = vpop.permute.xlu2 %6802 }
  0xcf   : > { %v8406_v61 = vpop.permute.xlu1 %6752  ;;  %v8408_v9 = vpop.permute.xlu0 %6747 }
  0xd0   : > { %12825 = vst [vmem:[#allocation22_spill] sm:$0xff] %v8406_v61 }
  0xd1   : > { %12826 = vst [vmem:[#allocation23_spill] sm:$0xff] %v8408_v9 }
  0xd4   : > { %6982 = vrot.lane.b32.xlu2 %v8125_v36, %s7881_s19 }
  0xd5   : > { %6977 = vrot.lane.b32.xlu1 %v8103_v19, %s7881_s19  ;;  %6972 = vrot.lane.b32.xlu0 %v8105_v20, %s7881_s19  ;;  %v6416_v19 = vld [vmem:[%s7957_s14 + $0x182] sm:$0xff] }
  0xd6   : > { %v8416_v6 = vpop.permute.xlu2 %6817 }
  0xd7   : > { %12827 = vst [vmem:[#allocation24_spill] sm:$0xff] %v8416_v6  ;;  %v8418_v21 = vpop.permute.xlu1 %6767  ;;  %v8420_v8 = vpop.permute.xlu0 %6762  ;;  %v6695_v6 = vunpack.i.h.bf16 %v8351_v35 }
  0xd8   : > { %12828 = vst [vmem:[#allocation25_spill] sm:$0xff] %v8418_v21  ;;  %v7006_v21 = vpack.i.bf16 %v6417_v44, %v6416_v19 }
  0xd9   : > { %12829 = vst [vmem:[#allocation26_spill] sm:$0xff] %v8420_v8 }
  0xdc   : > { %6997 = vrot.lane.b32.xlu2 %v8147_v48, %s7881_s19 }
  0xdd   : > { %6992 = vrot.lane.b32.xlu1 %v8121_v31, %s7881_s19  ;;  %6987 = vrot.lane.b32.xlu0 %v8123_v32, %s7881_s19 }
  0xde   : > { %v8428_v36 = vpop.permute.xlu2 %6832 }
  0xdf   : > { %12830 = vst [vmem:[#allocation27_spill] sm:$0xff] %v8428_v36  ;;  %v8432_v20 = vpop.permute.xlu1 %6782  ;;  %v8434_v61 = vpop.permute.xlu0 %6777 }
  0xe4   : > { %1360 = vrot.lane.b32.xlu2 %v8167_v55, %s7882_s20 }
  0xe5   : > { %7007 = vrot.lane.b32.xlu1 %v7006_v21, %s7881_s19  ;;  %7002 = vrot.lane.b32.xlu0 %v8145_v47, %s7881_s19 }
  0xe6   : > { %v8441_v31 = vpop.permute.xlu2 %6847 }
  0xe7   : > { %12831 = vst [vmem:[#allocation28_spill] sm:$0xff] %v8441_v31  ;;  %v8443_v32 = vpop.permute.xlu1 %6797  ;;  %v8445_v48 = vpop.permute.xlu0 %6792 }
  0xec   : > { %1366 = vrot.lane.b32.xlu2 %v8164_v54, %s7882_s20 }
  0xed   : > { %1364 = vrot.lane.b32.xlu1 %v8161_v52, %s7882_s20  ;;  %1362 = vrot.lane.b32.xlu0 %v8170_v56, %s7882_s20 }
  0xee   : > { %v8453_v44 = vpop.permute.xlu2 %6862 }
  0xef   : > { %v8455_v21 = vpop.permute.xlu1 %6812  ;;  %v8457_v47 = vpop.permute.xlu0 %6807 }
  0xf4   : > { %1372 = vrot.lane.b32.xlu2 %v8196_v5, %s7882_s20 }
  0xf5   : > { %1370 = vrot.lane.b32.xlu1 %v8158_v50, %s7882_s20  ;;  %1368 = vrot.lane.b32.xlu0 %v8151_v49, %s7882_s20 }
  0xf6   : > { %v8465_v19 = vpop.permute.xlu2 %6877 }
  0xf7   : > { %v8467_v31 = vpop.permute.xlu1 %6827  ;;  %v8469_v8 = vpop.permute.xlu0 %6822 }
  0xf8   : > { %12832 = vst [vmem:[#allocation29_spill] sm:$0xff] %v8467_v31  ;;  %v1991_v31 = vld [vmem:[%s12592_s3 + $0x78] sm:$0xff] }
  0xf9   : > { %12833 = vst [vmem:[#allocation30_spill] sm:$0xff] %v8469_v8  ;;  %2104 = vmatpush.msra.mxu0 %v1991_v31  ;;  %v6449_v8 = vld [vmem:[%s7957_s14 + $0x1a0] sm:$0xff] }
  0xfc   : > { %1378 = vrot.lane.b32.xlu2 %v8193_v4, %s7882_s20  ;;  %v1990_v4 = vld [vmem:[%s12592_s3 + $0x70] sm:$0xff] }
  0xfd   : > { %1376 = vrot.lane.b32.xlu1 %v8188_v1, %s7882_s20  ;;  %1374 = vrot.lane.b32.xlu0 %v8199_v10, %s7882_s20  ;;  %v1989_v1 = vld [vmem:[%s12592_s3 + $0x68] sm:$0xff] }
  0xfe   : > { %v8477_v36 = vpop.permute.xlu2 %6892  ;;  %2105 = vmatpush.msra.mxu0 %v1990_v4  ;;  %v1985_v4 = vld [vmem:[%s12592_s3 + $0x48] sm:$0xff] }
  0xff   : > { %12834 = vst [vmem:[#allocation31_spill] sm:$0xff] %v8477_v36  ;;  %v8479_v26 = vpop.permute.xlu1 %6842  ;;  %v8481_v9 = vpop.permute.xlu0 %6837 }
 0x100   : > { %12835 = vst [vmem:[#allocation32_spill] sm:$0xff] %v8479_v26  ;;  %2106 = vmatpush.msra.mxu0 %v1989_v1 }
 0x101   : > { %12836 = vst [vmem:[#allocation33_spill] sm:$0xff] %v8481_v9 }
 0x104   : > { %1384 = vrot.lane.b32.xlu2 %v8225_v28, %s7882_s20  ;;  %v1988_v28 = vld [vmem:[%s12592_s3 + $0x60] sm:$0xff] }
 0x105   : > { %1382 = vrot.lane.b32.xlu1 %v8185_v0, %s7882_s20  ;;  %1380 = vrot.lane.b32.xlu0 %v8180_v63, %s7882_s20  ;;  %v1987_v63 = vld [vmem:[%s12592_s3 + $0x58] sm:$0xff]  ;;  %v1986_v0 = vld [vmem:[%s12592_s3 + $0x50] sm:$0xff] }
 0x106   : > { %v8498_v26 = vpop.permute.xlu2 %6907  ;;  %2107 = vmatpush.msra.mxu0 %v1988_v28 }
 0x107   : > { %12837 = vst [vmem:[#allocation34_spill] sm:$0xff] %v8498_v26  ;;  %v8500_v9 = vpop.permute.xlu1 %6857  ;;  %v8502_v31 = vpop.permute.xlu0 %6852 }
 0x108   : > { %2108 = vmatpush.msra.mxu0 %v1987_v63 }
 0x10a   : > { %2109 = vmatpush.msra.mxu0 %v1986_v0  ;;  %v1981_v0 = vld [vmem:[%s12592_s3 + $0x28] sm:$0xff] }
 0x10c   : > { %1390 = vrot.lane.b32.xlu2 %v8222_v27, %s7882_s20  ;;  %2110 = vmatpush.msra.mxu0 %v1985_v4  ;;  %v1984_v27 = vld [vmem:[%s12592_s3 + $0x40] sm:$0xff] }
 0x10d   : > { %1388 = vrot.lane.b32.xlu1 %v8217_v22, %s7882_s20  ;;  %1386 = vrot.lane.b32.xlu0 %v8228_v29, %s7882_s20  ;;  %v1983_v22 = vld [vmem:[%s12592_s3 + $0x38] sm:$0xff]  ;;  %v1982_v29 = vld [vmem:[%s12592_s3 + $0x30] sm:$0xff] }
 0x10e   : > { %v8522_v1 = vpop.permute.xlu2 %6922  ;;  %2111 = vmatpush.msra.mxu0 %v1984_v27 }
 0x10f   : > { %12838 = vst [vmem:[#allocation35_spill] sm:$0xff] %v8522_v1  ;;  %v8524_v28 = vpop.permute.xlu1 %6872  ;;  %v8526_v63 = vpop.permute.xlu0 %6867 }
 0x110   : > { %2112 = vmatpush.msra.mxu0 %v1983_v22 }
 0x112   : > { %2113 = vmatpush.msra.mxu0 %v1982_v29  ;;  %v1977_v29 = vld [vmem:[%s12592_s3 + $0x8] sm:$0xff] }
 0x114   : > { %1396 = vrot.lane.b32.xlu2 %v8254_v59, %s7882_s20  ;;  %2114 = vmatpush.msra.mxu0 %v1981_v0  ;;  %v1980_v59 = vld [vmem:[%s12592_s3 + $0x20] sm:$0xff] }
 0x115   : > { %1394 = vrot.lane.b32.xlu1 %v8214_v18, %s7882_s20  ;;  %1392 = vrot.lane.b32.xlu0 %v8209_v14, %s7882_s20  ;;  %v1979_v14 = vld [vmem:[%s12592_s3 + $0x18] sm:$0xff]  ;;  %v1978_v18 = vld [vmem:[%s12592_s3 + $0x10] sm:$0xff] }
 0x116   : > { %v8546_v4 = vpop.permute.xlu2 %6937  ;;  %2115 = vmatpush.msra.mxu0 %v1980_v59 }
 0x117   : > { %v8548_v27 = vpop.permute.xlu1 %6887  ;;  %v8550_v22 = vpop.permute.xlu0 %6882 }
 0x118   : > { %2116 = vmatpush.msra.mxu0 %v1979_v14 }
 0x11a   : > { %2117 = vmatpush.msra.mxu0 %v1978_v18 }
 0x11c   : > { %1402 = vrot.lane.b32.xlu2 %v8251_v58, %s7882_s20  ;;  %2118 = vmatpush.msra.mxu0 %v1977_v29  ;;  %v1976_v58 = vld [vmem:[%s12592_s3] sm:$0xff] }
 0x11d   : > { %1400 = vrot.lane.b32.xlu1 %v8246_v46, %s7882_s20  ;;  %1398 = vrot.lane.b32.xlu0 %v8257_v11, %s7882_s20  ;;  %v12841_v46 = vld [vmem:[#allocation8_spill] sm:$0xff]  ;;  %v12842_v11 = vld [vmem:[#allocation7_spill] sm:$0xff] }
 0x11e   : > { %v8570_v0 = vpop.permute.xlu2 %6952  ;;  %2119 = vmatpush.msra.mxu0 %v1976_v58 }
 0x11f   : > { %v8572_v59 = vpop.permute.xlu1 %6902  ;;  %v8574_v14 = vpop.permute.xlu0 %6897 }
 0x120   : > { %12839 = vst [vmem:[#allocation36_spill] sm:$0xff] %v8572_v59 }
 0x121   : > { %12840 = vst [vmem:[#allocation37_spill] sm:$0xff] %v8574_v14  ;;  %v6458_v14 = vld [vmem:[%s7957_s14 + $0x91] sm:$0xff] }
 0x124   : > { %1408 = vrot.lane.b32.xlu2 %v8283_v38, %s7882_s20 }
 0x125   : > { %1406 = vrot.lane.b32.xlu1 %v12841_v46, %s7882_s20  ;;  %1404 = vrot.lane.b32.xlu0 %v12842_v11, %s7882_s20  ;;  %v6448_v11 = vld [vmem:[%s7957_s14 + $0x198] sm:$0xff] }
 0x126   : > { %v8585_v18 = vpop.permute.xlu2 %6967 }
 0x127   : > { %v8587_v29 = vpop.permute.xlu1 %6917  ;;  %v8589_v1 = vpop.permute.xlu0 %6912 }
 0x128   : > { %12843 = vst [vmem:[#allocation8_spill] sm:$0xff] %v8587_v29  ;;  %v398_v29 = vld [vmem:[%s7957_s14] sm:$0xff] }
 0x129   : > { %12844 = vst [vmem:[#allocation7_spill] sm:$0xff] %v8589_v1  ;;  %v6694_v1 = vunpack.i.l.bf16 %v8351_v35 }
 0x12c   : > { %1414 = vrot.lane.b32.xlu2 %v8280_v2, %s7882_s20  ;;  %v12847_v2 = vld [vmem:[#allocation12_spill] sm:$0xff] }
 0x12d   : > { %1412 = vrot.lane.b32.xlu1 %v8275_v57, %s7882_s20  ;;  %1410 = vrot.lane.b32.xlu0 %v8286_v37, %s7882_s20  ;;  %v6614_v37 = vunpack.i.l.bf16 %v12847_v2 }
 0x12e   : > { %v8597_v38 = vpop.permute.xlu2 %6982 }
 0x12f   : > { %12845 = vst [vmem:[#allocation38_spill] sm:$0xff] %v8597_v38  ;;  %v8599_v58 = vpop.permute.xlu1 %6932  ;;  %v8601_v46 = vpop.permute.xlu0 %6927  ;;  %v6451_v38 = vld [vmem:[%s7957_s14 + $0x39] sm:$0xff] }
 0x130   : > { %12846 = vst [vmem:[#allocation39_spill] sm:$0xff] %v8601_v46  ;;  %v6934_v59 = vunpack.i.l.bf16 %v8599_v58  ;;  %v6935_v36 = vunpack.i.h.bf16 %v8599_v58 }
 0x134   : > { %1420 = vrot.lane.b32.xlu2 %v6448_v11, %s7882_s20  ;;  %v6774_v11 = vunpack.i.l.bf16 %v8380_v42 }
 0x135   : > { %1418 = vrot.lane.b32.xlu1 %v8272_v40, %s7882_s20  ;;  %1416 = vrot.lane.b32.xlu0 %v8267_v39, %s7882_s20  ;;  %v6854_v40 = vunpack.i.l.bf16 %v8502_v31  ;;  %v1713_v39 = vsel %vm1712_vm0, %v398_v29, %v6614_v37 }
 0x136   : > { %v8610_v57 = vpop.permute.xlu2 %6997  ;;  %v1746_v24 = vsel %vm1745_vm2, %v1713_v39, %v6694_v1 }
 0x137   : > { %12848 = vst [vmem:[#allocation12_spill] sm:$0xff] %v8610_v57  ;;  %v8614_v46 = vpop.permute.xlu1 %6947  ;;  %v8616_v26 = vpop.permute.xlu0 %6942  ;;  %v6450_v57 = vld [vmem:[%s7957_s14 + $0x31] sm:$0xff]  ;;  %v1779_v7 = vsel %vm1778_vm1, %v1746_v24, %v6774_v11  ;;  %v6452_v11 = vld [vmem:[%s7957_s14 + $0x49] sm:$0xff] }
 0x138   : > { %v1812_v29 = vsel %vm1811_vm3, %v1779_v7, %v6854_v40 }
 0x139   : > { %v1845_v1 = vsel %vm1844_vm5, %v1812_v29, %v6934_v59  ;;  %v6457_v29 = vld [vmem:[%s7957_s14 + $0x81] sm:$0xff] }
 0x13c   : > { %1490 = vrot.lane.b32.xlu2 %v6451_v38, %s7883_s23 }
 0x13d   : > { %1488 = vrot.lane.b32.xlu1 %v6450_v57, %s7883_s23  ;;  %1422 = vrot.lane.b32.xlu0 %v6449_v8, %s7882_s20  ;;  %v6454_v57 = vld [vmem:[%s7957_s14 + $0x61] sm:$0xff]  ;;  %v6453_v8 = vld [vmem:[%s7957_s14 + $0x51] sm:$0xff] }
 0x13e   : > { %v8631_v37 = vpop.permute.xlu2 %1360 }
 0x13f   : > { %12849 = vst [vmem:[#allocation40_spill] sm:$0xff] %v8631_v37  ;;  %v8634_v38 = vpop.permute.xlu1 %6962  ;;  %v8636_v39 = vpop.permute.xlu0 %6957  ;;  %v1878_v24 = vsel %vm1877_vm4, %v1845_v1, %v8631_v37  ;;  %v6456_v1 = vld [vmem:[%s7957_s14 + $0x79] sm:$0xff]  ;;  %v6460_v37 = vld [vmem:[%s7957_s14 + $0xa9] sm:$0xff] }
 0x140   : > { %2120 = vmatmul.f32.vlgmr.msra.gmra.mxu0 %v1878_v24  ;;  %v6455_v24 = vld [vmem:[%s7957_s14 + $0x69] sm:$0xff] }
 0x144   : > { %1496 = vrot.lane.b32.xlu2 %v6454_v57, %s7883_s23 }
 0x145   : > { %1494 = vrot.lane.b32.xlu1 %v6453_v8, %s7883_s23  ;;  %1492 = vrot.lane.b32.xlu0 %v6452_v11, %s7883_s23 }
 0x146   : > { %v8646_v7 = vpop.permute.xlu2 %1366 }
 0x147   : > { %v8648_v59 = vpop.permute.xlu1 %6977  ;;  %v8650_v40 = vpop.permute.xlu0 %6972 }
 0x148   : > { %12850 = vst [vmem:[#allocation41_spill] sm:$0xff] %v8648_v59  ;;  %v6459_v59 = vld [vmem:[%s7957_s14 + $0x99] sm:$0xff] }
 0x149   : > { %12851 = vst [vmem:[#allocation42_spill] sm:$0xff] %v8650_v40  ;;  %v6462_v40 = vld [vmem:[%s7957_s14 + $0xc1] sm:$0xff] }
 0x14c   : > { %1502 = vrot.lane.b32.xlu2 %v6457_v29, %s7883_s23 }
 0x14d   : > { %1500 = vrot.lane.b32.xlu1 %v6456_v1, %s7883_s23  ;;  %1498 = vrot.lane.b32.xlu0 %v6455_v24, %s7883_s23  ;;  %v6615_v1 = vunpack.i.h.bf16 %v12847_v2 }
 0x14e   : > { %v8658_v57 = vpop.permute.xlu2 %1372 }
 0x14f   : > { %v8660_v8 = vpop.permute.xlu1 %6992  ;;  %v8662_v11 = vpop.permute.xlu0 %6987 }
 0x150   : > { %12852 = vst [vmem:[#allocation43_spill] sm:$0xff] %v8660_v8 }
 0x151   : > { %12853 = vst [vmem:[#allocation44_spill] sm:$0xff] %v8662_v11  ;;  %v399_v11 = vld [vmem:[%s7957_s14 + $0x8] sm:$0xff] }
 0x154   : > { %1508 = vrot.lane.b32.xlu2 %v6460_v37, %s7883_s23  ;;  %v6855_v37 = vunpack.i.h.bf16 %v8502_v31  ;;  %v6619_v31 = vunpack.i.l.bf16 %v8305_v12 }
 0x155   : > { %1506 = vrot.lane.b32.xlu1 %v6459_v59, %s7883_s23  ;;  %1504 = vrot.lane.b32.xlu0 %v6458_v14, %s7883_s23  ;;  %v6461_v59 = vld [vmem:[%s7957_s14 + $0xb1] sm:$0xff]  ;;  %v1714_v14 = vsel %vm1712_vm0, %v399_v11, %v6615_v1 }
 0x156   : > { %v8670_v29 = vpop.permute.xlu2 %1378  ;;  %v1747_v2 = vsel %vm1745_vm2, %v1714_v14, %v6695_v6  ;;  %v6465_v14 = vld [vmem:[%s7957_s14 + $0xe1] sm:$0xff] }
 0x157   : > { %v8673_v24 = vpop.permute.xlu1 %7007  ;;  %v8675_v8 = vpop.permute.xlu0 %7002  ;;  %v1780_v35 = vsel %vm1778_vm1, %v1747_v2, %v6775_v51  ;;  %v6466_v51 = vld [vmem:[%s7957_s14 + $0xf1] sm:$0xff]  ;;  %v6464_v2 = vld [vmem:[%s7957_s14 + $0xd9] sm:$0xff] }
 0x158   : > { %12854 = vst [vmem:[#allocation45_spill] sm:$0xff] %v8673_v24  ;;  %v1813_v42 = vsel %vm1811_vm3, %v1780_v35, %v6855_v37  ;;  %v6859_v37 = vunpack.i.l.bf16 %v8500_v9  ;;  %v12857_v35 = vld [vmem:[#allocation3_spill] sm:$0xff] }
 0x159   : > { %12855 = vst [vmem:[#allocation46_spill] sm:$0xff] %v8675_v8  ;;  %v1846_v6 = vsel %vm1844_vm5, %v1813_v42, %v6935_v36  ;;  %v1715_v24 = vsel %vm1712_vm0, %v12857_v35, %v6619_v31  ;;  %v6939_v36 = vunpack.i.l.bf16 %v8546_v4  ;;  %v6620_v8 = vunpack.i.h.bf16 %v8305_v12  ;;  %v6468_v12 = vld [vmem:[%s7957_s14 + $0x109] sm:$0xff] }
 0x15c   : > { %1514 = vrot.lane.b32.xlu2 %v6463_v17, %s7883_s23  ;;  %v6699_v17 = vunpack.i.l.bf16 %v8313_v13 }
 0x15d   : > { %1512 = vrot.lane.b32.xlu1 %v6462_v40, %s7883_s23  ;;  %1510 = vrot.lane.b32.xlu0 %v6461_v59, %s7883_s23  ;;  %v6779_v59 = vunpack.i.l.bf16 %v8434_v61 }
 0x15e   : > { %v8699_v1 = vpop.permute.xlu2 %1384  ;;  %v1748_v42 = vsel %vm1745_vm2, %v1715_v24, %v6699_v17  ;;  %v6700_v17 = vunpack.i.h.bf16 %v8313_v13 }
 0x15f   : > { %v8693_v11 = vpop.permute.xlu1 %1364  ;;  %v8695_v58 = vpop.permute.xlu0 %1362 }
 0x160   : > { %12856 = vst [vmem:[#allocation47_spill] sm:$0xff] %v8695_v58  ;;  %v1879_v40 = vsel %vm1877_vm4, %v1846_v6, %v8695_v58  ;;  %v1781_v6 = vsel %vm1778_vm1, %v1748_v42, %v6779_v59  ;;  %v6860_v59 = vunpack.i.h.bf16 %v8500_v9  ;;  %v6467_v42 = vld [vmem:[%s7957_s14 + $0xf9] sm:$0xff] }
 0x161   : > { %2123 = vmatmul.f32.gmra.mxu0 %v1879_v40  ;;  %v1814_v40 = vsel %vm1811_vm3, %v1781_v6, %v6859_v37  ;;  %v12858_v6 = vld [vmem:[#allocation4_spill] sm:$0xff] }
 0x162   : > { %v1847_v24 = vsel %vm1844_vm5, %v1814_v40, %v6939_v36  ;;  %v1716_v58 = vsel %vm1712_vm0, %v12858_v6, %v6620_v8  ;;  %v6940_v36 = vunpack.i.h.bf16 %v8546_v4  ;;  %v12859_v40 = vld [vmem:[#allocation11_spill] sm:$0xff] }
 0x163   : > { %v1749_v13 = vsel %vm1745_vm2, %v1716_v58, %v6700_v17  ;;  %v6704_v58 = vunpack.i.l.bf16 %v8371_v3 }
 0x164   : > { %1520 = vrot.lane.b32.xlu2 %v6466_v51, %s7883_s23  ;;  %v1880_v51 = vsel %vm1877_vm4, %v1847_v24, %v8693_v11  ;;  %v6624_v24 = vunpack.i.l.bf16 %v12859_v40 }
 0x165   : > { %1518 = vrot.lane.b32.xlu1 %v6465_v14, %s7883_s23  ;;  %1516 = vrot.lane.b32.xlu0 %v6464_v2, %s7883_s23  ;;  %v6780_v14 = vunpack.i.h.bf16 %v8434_v61  ;;  %v6469_v2 = vld [vmem:[%s7957_s14 + $0x111] sm:$0xff] }
 0x166   : > { %v8729_v37 = vpop.permute.xlu2 %1390  ;;  %v1717_v6 = vsel %vm1712_vm0, %v8167_v55, %v6624_v24  ;;  %v6625_v55 = vunpack.i.h.bf16 %v12859_v40 }
 0x167   : > { %v8718_v31 = vpop.permute.xlu1 %1370  ;;  %v8720_v35 = vpop.permute.xlu0 %1368  ;;  %v1782_v61 = vsel %vm1778_vm1, %v1749_v13, %v6780_v14  ;;  %v6864_v14 = vunpack.i.l.bf16 %v8453_v44  ;;  %v6944_v13 = vunpack.i.l.bf16 %v8616_v26 }
 0x168   : > { %v1815_v9 = vsel %vm1811_vm3, %v1782_v61, %v6860_v59  ;;  %v6471_v59 = vld [vmem:[%s7957_s14 + $0x129] sm:$0xff]  ;;  %v1718_v40 = vsel %vm1712_vm0, %v8170_v56, %v6625_v55  ;;  %v6629_v56 = vunpack.i.l.bf16 %v8303_v41 }
 0x169   : > { %2126 = vmatmul.f32.gmra.mxu0 %v1880_v51  ;;  %v1848_v4 = vsel %vm1844_vm5, %v1815_v9, %v6940_v36  ;;  %v1750_v36 = vsel %vm1745_vm2, %v1717_v6, %v6704_v58  ;;  %v6705_v6 = vunpack.i.h.bf16 %v8371_v3 }
 0x16a   : > { %v1881_v17 = vsel %vm1877_vm4, %v1848_v4, %v8646_v7 }
 0x16c   : > { %1526 = vrot.lane.b32.xlu2 %v6469_v2, %s7883_s23  ;;  %v6784_v2 = vunpack.i.l.bf16 %v8432_v20 }
 0x16d   : > { %1524 = vrot.lane.b32.xlu1 %v6468_v12, %s7883_s23  ;;  %1522 = vrot.lane.b32.xlu0 %v6467_v42, %s7883_s23  ;;  %v6472_v12 = vld [vmem:[%s7957_s14 + $0x139] sm:$0xff]  ;;  %v6470_v42 = vld [vmem:[%s7957_s14 + $0x121] sm:$0xff] }
 0x16e   : > { %v8760_v61 = vpop.permute.xlu2 %1396  ;;  %v1783_v9 = vsel %vm1778_vm1, %v1750_v36, %v6784_v2  ;;  %v6865_v2 = vunpack.i.h.bf16 %v8453_v44  ;;  %v6473_v36 = vld [vmem:[%s7957_s14 + $0x141] sm:$0xff] }
 0x16f   : > { %v8743_v8 = vpop.permute.xlu1 %1376  ;;  %v8745_v51 = vpop.permute.xlu0 %1374  ;;  %v1816_v4 = vsel %vm1811_vm3, %v1783_v9, %v6864_v14  ;;  %v6474_v14 = vld [vmem:[%s7957_s14 + $0x151] sm:$0xff]  ;;  %v6945_v9 = vunpack.i.h.bf16 %v8616_v26 }
 0x170   : > { %v1849_v58 = vsel %vm1844_vm5, %v1816_v4, %v6944_v13  ;;  %v1751_v13 = vsel %vm1745_vm2, %v1718_v40, %v6705_v6 }
 0x171   : > { %2129 = vmatmul.f32.gmra.mxu0 %v1881_v17 }
 0x174   : > { %1532 = vrot.lane.b32.xlu2 %v6472_v12, %s7883_s23  ;;  %v1882_v12 = vsel %vm1877_vm4, %v1849_v58, %v8720_v35  ;;  %v6709_v58 = vunpack.i.l.bf16 %v8369_v23 }
 0x175   : > { %1530 = vrot.lane.b32.xlu1 %v6471_v59, %s7883_s23  ;;  %1528 = vrot.lane.b32.xlu0 %v6470_v42, %s7883_s23  ;;  %v6785_v59 = vunpack.i.h.bf16 %v8432_v20  ;;  %v6475_v42 = vld [vmem:[%s7957_s14 + $0x159] sm:$0xff] }
 0x176   : > { %v8789_v20 = vpop.permute.xlu2 %1402 }
 0x177   : > { %v8768_v24 = vpop.permute.xlu1 %1382  ;;  %v8770_v17 = vpop.permute.xlu0 %1380  ;;  %v1784_v3 = vsel %vm1778_vm1, %v1751_v13, %v6785_v59  ;;  %v6869_v59 = vunpack.i.l.bf16 %v8526_v63 }
 0x178   : > { %v1817_v44 = vsel %vm1811_vm3, %v1784_v3, %v6865_v2  ;;  %v6476_v2 = vld [vmem:[%s7957_s14 + $0x169] sm:$0xff]  ;;  %v6630_v3 = vunpack.i.h.bf16 %v8303_v41  ;;  %v6480_v41 = vld [vmem:[%s7957_s14 + $0x199] sm:$0xff] }
 0x179   : > { %2132 = vmatmul.f32.gmra.mxu0 %v1882_v12  ;;  %v1850_v55 = vsel %vm1844_vm5, %v1817_v44, %v6945_v9  ;;  %v6789_v12 = vunpack.i.l.bf16 %v8392_v62 }
 0x17a   : > { %v1883_v6 = vsel %vm1877_vm4, %v1850_v55, %v8718_v31  ;;  %v6710_v55 = vunpack.i.h.bf16 %v8369_v23 }
 0x17c   : > { %1538 = vrot.lane.b32.xlu2 %v6475_v42, %s7883_s23  ;;  %v6477_v42 = vld [vmem:[%s7957_s14 + $0x171] sm:$0xff] }
 0x17d   : > { %1536 = vrot.lane.b32.xlu1 %v6474_v14, %s7883_s23  ;;  %1534 = vrot.lane.b32.xlu0 %v6473_v36, %s7883_s23  ;;  %v1719_v14 = vsel %vm1712_vm0, %v8161_v52, %v6629_v56  ;;  %v6949_v36 = vunpack.i.l.bf16 %v8614_v46 }
 0x17e   : > { %v1752_v40 = vsel %vm1745_vm2, %v1719_v14, %v6709_v58  ;;  %v12862_v14 = vld [vmem:[#allocation5_spill] sm:$0xff] }
 0x17f   : > { %v8793_v4 = vpop.permute.xlu1 %1388  ;;  %v8795_v26 = vpop.permute.xlu0 %1386  ;;  %v1785_v9 = vsel %vm1778_vm1, %v1752_v40, %v6789_v12  ;;  %v6481_v12 = vld [vmem:[%s7957_s14 + $0x1a1] sm:$0xff] }
 0x180   : > { %v1818_v13 = vsel %vm1811_vm3, %v1785_v9, %v6869_v59  ;;  %v6870_v59 = vunpack.i.h.bf16 %v8526_v63  ;;  %v6714_v9 = vunpack.i.l.bf16 %v8325_v16 }
 0x181   : > { %2135 = vmatmul.f32.gmra.mxu0 %v1883_v6  ;;  %v1851_v56 = vsel %vm1844_vm5, %v1818_v13, %v6949_v36  ;;  %v6790_v6 = vunpack.i.h.bf16 %v8392_v62 }
 0x182   : > { %v1884_v58 = vsel %vm1877_vm4, %v1851_v56, %v8658_v57  ;;  %v6874_v56 = vunpack.i.l.bf16 %v8524_v28 }
 0x184   : > { %1544 = vrot.lane.b32.xlu2 %v8364_v33, %s7883_s23  ;;  %v8822_v33 = vpop.permute.xlu2 %1408 }
 0x185   : > { %1542 = vrot.lane.b32.xlu1 %v6477_v42, %s7883_s23  ;;  %1540 = vrot.lane.b32.xlu0 %v6476_v2, %s7883_s23  ;;  %v1720_v42 = vsel %vm1712_vm0, %v8164_v54, %v6630_v3  ;;  %v6950_v2 = vunpack.i.h.bf16 %v8614_v46  ;;  %v6634_v54 = vunpack.i.l.bf16 %v12862_v14  ;;  %v6794_v3 = vunpack.i.l.bf16 %v8445_v48 }
 0x186   : > { %v1753_v23 = vsel %vm1745_vm2, %v1720_v42, %v6710_v55 }
 0x187   : > { %v8816_v52 = vpop.permute.xlu1 %1394  ;;  %v8818_v44 = vpop.permute.xlu0 %1392  ;;  %v1786_v62 = vsel %vm1778_vm1, %v1753_v23, %v6790_v6  ;;  %v6482_v6 = vld [vmem:[%s7957_s14 + $0x32] sm:$0xff] }
 0x188   : > { %12860 = vst [vmem:[#allocation3_spill] sm:$0xff] %v8816_v52  ;;  %v1819_v63 = vsel %vm1811_vm3, %v1786_v62, %v6870_v59  ;;  %v6954_v59 = vunpack.i.l.bf16 %v8570_v0 }
 0x189   : > { %12861 = vst [vmem:[#allocation4_spill] sm:$0xff] %v8818_v44  ;;  %2138 = vmatmul.f32.gmra.mxu0 %v1884_v58  ;;  %v1852_v40 = vsel %vm1844_vm5, %v1819_v63, %v6950_v2  ;;  %v6483_v58 = vld [vmem:[%s7957_s14 + $0x3a] sm:$0xff] }
 0x18a   : > { %v1885_v13 = vsel %vm1877_vm4, %v1852_v40, %v8745_v51 }
 0x18c   : > { %1550 = vrot.lane.b32.xlu2 %v6481_v12, %s7883_s23  ;;  %v8852_v55 = vpop.permute.xlu2 %1414  ;;  %v1721_v12 = vsel %vm1712_vm0, %v8151_v49, %v6634_v54  ;;  %v6635_v49 = vunpack.i.h.bf16 %v12862_v14  ;;  %v6715_v54 = vunpack.i.h.bf16 %v8325_v16 }
 0x18d   : > { %1548 = vrot.lane.b32.xlu1 %v6480_v41, %s7883_s23  ;;  %1546 = vrot.lane.b32.xlu0 %v8367_v34, %s7883_s23  ;;  %v6484_v34 = vld [vmem:[%s7957_s14 + $0x4a] sm:$0xff]  ;;  %v1754_v41 = vsel %vm1745_vm2, %v1721_v12, %v6714_v9  ;;  %v6795_v9 = vunpack.i.h.bf16 %v8445_v48 }
 0x18e   : > { %v1787_v42 = vsel %vm1778_vm1, %v1754_v41, %v6794_v3  ;;  %v6875_v3 = vunpack.i.h.bf16 %v8524_v28  ;;  %v1722_v14 = vsel %vm1712_vm0, %v8158_v50, %v6635_v49  ;;  %v12864_v50 = vld [vmem:[#allocation6_spill] sm:$0xff]  ;;  %v6799_v49 = vunpack.i.l.bf16 %v8443_v32 }
 0x18f   : > { %v8841_v36 = vpop.permute.xlu1 %1400  ;;  %v8843_v46 = vpop.permute.xlu0 %1398  ;;  %v1820_v2 = vsel %vm1811_vm3, %v1787_v42, %v6874_v56  ;;  %v6485_v56 = vld [vmem:[%s7957_s14 + $0x52] sm:$0xff]  ;;  %v6639_v12 = vunpack.i.l.bf16 %v12864_v50  ;;  %v6719_v42 = vunpack.i.l.bf16 %v8384_v53 }
 0x190   : > { %12863 = vst [vmem:[#allocation11_spill] sm:$0xff] %v8843_v46  ;;  %v1853_v63 = vsel %vm1844_vm5, %v1820_v2, %v6954_v59 }
 0x191   : > { %2141 = vmatmul.f32.gmra.mxu0 %v1885_v13  ;;  %v1886_v40 = vsel %vm1877_vm4, %v1853_v63, %v8743_v8  ;;  %v6487_v13 = vld [vmem:[%s7957_s14 + $0x6a] sm:$0xff]  ;;  %v6490_v63 = vld [vmem:[%s7957_s14 + $0x92] sm:$0xff] }
 0x194   : > { %1620 = vrot.lane.b32.xlu2 %v6484_v34, %s7884_s24  ;;  %v6486_v34 = vld [vmem:[%s7957_s14 + $0x62] sm:$0xff]  ;;  %v8883_v16 = vpop.permute.xlu2 %1420 }
 0x195   : > { %1618 = vrot.lane.b32.xlu1 %v6483_v58, %s7884_s24  ;;  %1616 = vrot.lane.b32.xlu0 %v6482_v6, %s7884_s24  ;;  %v6955_v58 = vunpack.i.h.bf16 %v8570_v0  ;;  %v1755_v6 = vsel %vm1745_vm2, %v1722_v14, %v6715_v54  ;;  %v6879_v54 = vunpack.i.l.bf16 %v8465_v19 }
 0x196   : > { %v1788_v48 = vsel %vm1778_vm1, %v1755_v6, %v6795_v9  ;;  %v6488_v9 = vld [vmem:[%s7957_s14 + $0x7a] sm:$0xff] }
 0x197   : > { %v8866_v23 = vpop.permute.xlu1 %1406  ;;  %v8868_v62 = vpop.permute.xlu0 %1404  ;;  %v1821_v28 = vsel %vm1811_vm3, %v1788_v48, %v6875_v3  ;;  %v6959_v3 = vunpack.i.l.bf16 %v8636_v39 }
 0x198   : > { %v1854_v41 = vsel %vm1844_vm5, %v1821_v28, %v6955_v58 }
 0x199   : > { %2144 = vmatmul.f32.gmra.mxu0 %v1886_v40  ;;  %v1887_v2 = vsel %vm1877_vm4, %v1854_v41, %v8670_v29  ;;  %v6489_v40 = vld [vmem:[%s7957_s14 + $0x82] sm:$0xff] }
 0x19c   : > { %1626 = vrot.lane.b32.xlu2 %v6487_v13, %s7884_s24  ;;  %v1723_v13 = vsel %vm1712_vm0, %v8196_v5, %v6639_v12  ;;  %v8912_v14 = vpop.permute.xlu2 %1490  ;;  %v6640_v5 = vunpack.i.h.bf16 %v12864_v50  ;;  %v6720_v12 = vunpack.i.h.bf16 %v8384_v53 }
 0x19d   : > { %1624 = vrot.lane.b32.xlu1 %v6486_v34, %s7884_s24  ;;  %1622 = vrot.lane.b32.xlu0 %v6485_v56, %s7884_s24  ;;  %v1756_v34 = vsel %vm1745_vm2, %v1723_v13, %v6719_v42  ;;  %v6800_v42 = vunpack.i.h.bf16 %v8443_v32 }
 0x19e   : > { %v1789_v56 = vsel %vm1778_vm1, %v1756_v34, %v6799_v49  ;;  %v6880_v49 = vunpack.i.h.bf16 %v8465_v19  ;;  %v1724_v50 = vsel %vm1712_vm0, %v8199_v10, %v6640_v5  ;;  %v6644_v10 = vunpack.i.l.bf16 %v8317_v45  ;;  %v6496_v5 = vld [vmem:[%s7957_s14 + $0xda] sm:$0xff] }
 0x19f   : > { %v8891_v0 = vpop.permute.xlu1 %1412  ;;  %v8893_v59 = vpop.permute.xlu0 %1410  ;;  %v1822_v58 = vsel %vm1811_vm3, %v1789_v56, %v6879_v54  ;;  %v6491_v54 = vld [vmem:[%s7957_s14 + $0x9a] sm:$0xff] }
 0x1a0   : > { %v1855_v28 = vsel %vm1844_vm5, %v1822_v58, %v6959_v3  ;;  %v6724_v3 = vunpack.i.l.bf16 %v8382_v43  ;;  %v6804_v58 = vunpack.i.l.bf16 %v8404_v60 }
 0x1a1   : > { %2147 = vmatmul.f32.gmra.mxu0 %v1887_v2  ;;  %v1888_v41 = vsel %vm1877_vm4, %v1855_v28, %v8770_v17  ;;  %v6493_v2 = vld [vmem:[%s7957_s14 + $0xb2] sm:$0xff]  ;;  %v6884_v28 = vunpack.i.l.bf16 %v8550_v22 }
 0x1a4   : > { %1632 = vrot.lane.b32.xlu2 %v6490_v63, %s7884_s24  ;;  %v6492_v63 = vld [vmem:[%s7957_s14 + $0xaa] sm:$0xff]  ;;  %v8945_v34 = vpop.permute.xlu2 %1496 }
 0x1a5   : > { %1630 = vrot.lane.b32.xlu1 %v6489_v40, %s7884_s24  ;;  %1628 = vrot.lane.b32.xlu0 %v6488_v9, %s7884_s24  ;;  %v6960_v40 = vunpack.i.h.bf16 %v8636_v39  ;;  %v1757_v9 = vsel %vm1745_vm2, %v1724_v50, %v6720_v12  ;;  %v6495_v12 = vld [vmem:[%s7957_s14 + $0xca] sm:$0xff] }
 0x1a6   : > { %v1790_v53 = vsel %vm1778_vm1, %v1757_v9, %v6800_v42  ;;  %v7829_v42 = vld [vmem:[%s7957_s14 + $0x90] sm:$0xff] }
 0x1a7   : > { %v8916_v6 = vpop.permute.xlu1 %1418  ;;  %v8918_v48 = vpop.permute.xlu0 %1416  ;;  %v1823_v32 = vsel %vm1811_vm3, %v1790_v53, %v6880_v49  ;;  %v6964_v49 = vunpack.i.l.bf16 %v8634_v38 }
 0x1a8   : > { %v1856_v13 = vsel %vm1844_vm5, %v1823_v32, %v6960_v40  ;;  %v6645_v40 = vunpack.i.h.bf16 %v8317_v45  ;;  %v6498_v45 = vld [vmem:[%s7957_s14 + $0xf2] sm:$0xff] }
 0x1a9   : > { %2150 = vmatmul.f32.gmra.mxu0 %v1888_v41  ;;  %v1889_v56 = vsel %vm1877_vm4, %v1856_v13, %v8768_v24  ;;  %v6494_v41 = vld [vmem:[%s7957_s14 + $0xc2] sm:$0xff] }
 0x1ac   : > { %1638 = vrot.lane.b32.xlu2 %v6493_v2, %s7884_s24  ;;  %v1725_v2 = vsel %vm1712_vm0, %v7829_v42, %v6644_v10  ;;  %v6725_v10 = vunpack.i.h.bf16 %v8382_v43  ;;  %v6965_v42 = vunpack.i.h.bf16 %v8634_v38 }
 0x1ad   : > { %1636 = vrot.lane.b32.xlu1 %v6492_v63, %s7884_s24  ;;  %1634 = vrot.lane.b32.xlu0 %v6491_v54, %s7884_s24  ;;  %v1758_v63 = vsel %vm1745_vm2, %v1725_v2, %v6724_v3  ;;  %v6805_v3 = vunpack.i.h.bf16 %v8404_v60  ;;  %v6649_v2 = vunpack.i.l.bf16 %v8315_v30 }
 0x1ae   : > { %v1791_v54 = vsel %vm1778_vm1, %v1758_v63, %v6804_v58  ;;  %v6885_v58 = vunpack.i.h.bf16 %v8550_v22 }
 0x1af   : > { %v8939_v19 = vpop.permute.xlu1 %1488  ;;  %v8941_v39 = vpop.permute.xlu0 %1422  ;;  %v1824_v50 = vsel %vm1811_vm3, %v1791_v54, %v6884_v28  ;;  %v6497_v28 = vld [vmem:[%s7957_s14 + $0xe2] sm:$0xff]  ;;  %v6729_v54 = vunpack.i.l.bf16 %v8337_v15 }
 0x1b0   : > { %v1857_v32 = vsel %vm1844_vm5, %v1824_v50, %v6964_v49 }
 0x1b1   : > { %2153 = vmatmul.f32.gmra.mxu0 %v1889_v56  ;;  %v1890_v13 = vsel %vm1877_vm4, %v1857_v32, %v8699_v1  ;;  %v6499_v56 = vld [vmem:[%s7957_s14 + $0xfa] sm:$0xff]  ;;  %v6502_v32 = vld [vmem:[%s7957_s14 + $0x122] sm:$0xff] }
 0x1b4   : > { %1644 = vrot.lane.b32.xlu2 %v6496_v5, %s7884_s24  ;;  %v8975_v5 = vpop.permute.xlu2 %1502 }
 0x1b5   : > { %1642 = vrot.lane.b32.xlu1 %v6495_v12, %s7884_s24  ;;  %1640 = vrot.lane.b32.xlu0 %v6494_v41, %s7884_s24  ;;  %v7830_v12 = vld [vmem:[%s7957_s14 + $0x98] sm:$0xff] }
 0x1b6   : > { %v1726_v41 = vsel %vm1712_vm0, %v7830_v12, %v6645_v40  ;;  %v6809_v40 = vunpack.i.l.bf16 %v8457_v47 }
 0x1b7   : > { %v8964_v9 = vpop.permute.xlu1 %1494  ;;  %v8966_v53 = vpop.permute.xlu0 %1492  ;;  %v1759_v43 = vsel %vm1745_vm2, %v1726_v41, %v6725_v10  ;;  %v6889_v10 = vunpack.i.l.bf16 %v8548_v27 }
 0x1b8   : > { %v1792_v60 = vsel %vm1778_vm1, %v1759_v43, %v6805_v3  ;;  %v6500_v3 = vld [vmem:[%s7957_s14 + $0x10a] sm:$0xff]  ;;  %v6650_v43 = vunpack.i.h.bf16 %v8315_v30 }
 0x1b9   : > { %2156 = vmatmul.f32.gmra.mxu0 %v1890_v13  ;;  %v1825_v22 = vsel %vm1811_vm3, %v1792_v60, %v6885_v58  ;;  %v6501_v13 = vld [vmem:[%s7957_s14 + $0x112] sm:$0xff] }
 0x1ba   : > { %v1858_v63 = vsel %vm1844_vm5, %v1825_v22, %v6965_v42  ;;  %v7832_v30 = vld [vmem:[%s7957_s14 + $0xb0] sm:$0xff] }
 0x1bb   : > { %v1891_v50 = vsel %vm1877_vm4, %v1858_v63, %v8795_v26  ;;  %v6730_v63 = vunpack.i.h.bf16 %v8337_v15 }
 0x1bc   : > { %1650 = vrot.lane.b32.xlu2 %v6499_v56, %s7884_s24  ;;  %v7831_v56 = vld [vmem:[%s7957_s14 + $0xa8] sm:$0xff]  ;;  %v9006_v12 = vpop.permute.xlu2 %1508 }
 0x1bd   : > { %1648 = vrot.lane.b32.xlu1 %v6498_v45, %s7884_s24  ;;  %1646 = vrot.lane.b32.xlu0 %v6497_v28, %s7884_s24  ;;  %v1727_v58 = vsel %vm1712_vm0, %v7831_v56, %v6649_v2  ;;  %v6969_v45 = vunpack.i.l.bf16 %v8585_v18  ;;  %v6970_v56 = vunpack.i.h.bf16 %v8585_v18 }
 0x1be   : > { %v1760_v28 = vsel %vm1745_vm2, %v1727_v58, %v6729_v54 }
 0x1bf   : > { %v8989_v49 = vpop.permute.xlu1 %1500  ;;  %v8991_v38 = vpop.permute.xlu0 %1498  ;;  %v1793_v41 = vsel %vm1778_vm1, %v1760_v28, %v6809_v40  ;;  %v6890_v40 = vunpack.i.h.bf16 %v8548_v27 }
 0x1c0   : > { %v1826_v42 = vsel %vm1811_vm3, %v1793_v41, %v6889_v10  ;;  %v6504_v10 = vld [vmem:[%s7957_s14 + $0x13a] sm:$0xff] }
 0x1c1   : > { %2159 = vmatmul.f32.gmra.mxu0 %v1891_v50  ;;  %v1859_v2 = vsel %vm1844_vm5, %v1826_v42, %v6969_v45  ;;  %v6810_v50 = vunpack.i.h.bf16 %v8457_v47  ;;  %v12865_v45 = vld [vmem:[#allocation9_spill] sm:$0xff] }
 0x1c2   : > { %v1892_v54 = vsel %vm1877_vm4, %v1859_v2, %v8793_v4  ;;  %v6654_v18 = vunpack.i.l.bf16 %v12865_v45 }
 0x1c4   : > { %1656 = vrot.lane.b32.xlu2 %v6502_v32, %s7884_s24  ;;  %v6505_v32 = vld [vmem:[%s7957_s14 + $0x142] sm:$0xff]  ;;  %v9035_v47 = vpop.permute.xlu2 %1514 }
 0x1c5   : > { %1654 = vrot.lane.b32.xlu1 %v6501_v13, %s7884_s24  ;;  %1652 = vrot.lane.b32.xlu0 %v6500_v3, %s7884_s24  ;;  %v6503_v13 = vld [vmem:[%s7957_s14 + $0x12a] sm:$0xff]  ;;  %v1728_v3 = vsel %vm1712_vm0, %v7832_v30, %v6650_v43  ;;  %v6734_v43 = vunpack.i.l.bf16 %v8396_v25 }
 0x1c6   : > { %v1761_v58 = vsel %vm1745_vm2, %v1728_v3, %v6730_v63  ;;  %v6814_v63 = vunpack.i.l.bf16 %v8455_v21  ;;  %v12867_v3 = vld [vmem:[#allocation42_spill] sm:$0xff] }
 0x1c7   : > { %v9014_v60 = vpop.permute.xlu1 %1506  ;;  %v9016_v22 = vpop.permute.xlu0 %1504  ;;  %v1794_v15 = vsel %vm1778_vm1, %v1761_v58, %v6810_v50  ;;  %v12866_v50 = vld [vmem:[#allocation31_spill] sm:$0xff]  ;;  %v6974_v58 = vunpack.i.l.bf16 %v12867_v3 }
 0x1c8   : > { %v1827_v27 = vsel %vm1811_vm3, %v1794_v15, %v6890_v40  ;;  %v6507_v40 = vld [vmem:[%s7957_s14 + $0x15a] sm:$0xff] }
 0x1c9   : > { %2162 = vmatmul.f32.gmra.mxu0 %v1892_v54  ;;  %v1860_v42 = vsel %vm1844_vm5, %v1827_v27, %v6970_v56  ;;  %v6508_v54 = vld [vmem:[%s7957_s14 + $0x16a] sm:$0xff] }
 0x1ca   : > { %v1893_v2 = vsel %vm1877_vm4, %v1860_v42, %v8729_v37  ;;  %v6655_v42 = vunpack.i.h.bf16 %v12865_v45  ;;  %v1998_v45 = vld [vmem:[%s12592_s3 + $0xb0] sm:$0xf] }
 0x1cb   : > { %6514 = vmatpush.msk.msra.mxu1 %vm2100_vm6, %v1998_v45  ;;  %v12871_v45 = vld [vmem:[#allocation21_spill] sm:$0xff] }
 0x1cc   : > { %1662 = vrot.lane.b32.xlu2 %v6505_v32, %s7884_s24  ;;  %v6894_v32 = vunpack.i.l.bf16 %v12866_v50 }
 0x1cd   : > { %1660 = vrot.lane.b32.xlu1 %v6504_v10, %s7884_s24  ;;  %1658 = vrot.lane.b32.xlu0 %v6503_v13, %s7884_s24  ;;  %v6506_v10 = vld [vmem:[%s7957_s14 + $0x152] sm:$0xff]  ;;  %v7833_v13 = vld [vmem:[%s7957_s14 + $0xc0] sm:$0xff] }
 0x1ce   : > { %v1729_v30 = vsel %vm1712_vm0, %v7833_v13, %v6654_v18  ;;  %v6895_v13 = vunpack.i.h.bf16 %v12866_v50  ;;  %v1997_v50 = vld [vmem:[%s12592_s3 + $0xa8] sm:$0xff] }
 0x1cf   : > { %v9039_v28 = vpop.permute.xlu1 %1512  ;;  %v9041_v41 = vpop.permute.xlu0 %1510  ;;  %v1762_v56 = vsel %vm1745_vm2, %v1729_v30, %v6734_v43  ;;  %v6510_v30 = vld [vmem:[%s7957_s14 + $0x182] sm:$0xff]  ;;  %2227 = vmatpush.msra.mxu1 %v1997_v50 }
 0x1d0   : > { %v1795_v15 = vsel %vm1778_vm1, %v1762_v56, %v6814_v63  ;;  %v9071_v63 = vpop.permute.xlu2 %1520  ;;  %v6513_v50 = vld [vmem:[%s7957_s14 + $0x1a2] sm:$0xff] }
 0x1d1   : > { %2165 = vmatmul.f32.gmra.mxu0 %v1893_v2  ;;  %v1828_v27 = vsel %vm1811_vm3, %v1795_v15, %v6894_v32  ;;  %v6511_v32 = vld [vmem:[%s7957_s14 + $0x18a] sm:$0xff]  ;;  %v6975_v15 = vunpack.i.h.bf16 %v12867_v3 }
 0x1d2   : > { %v1861_v43 = vsel %vm1844_vm5, %v1828_v27, %v6974_v58  ;;  %v6509_v58 = vld [vmem:[%s7957_s14 + $0x172] sm:$0xff] }
 0x1d3   : > { %v12868_v3 = vld [vmem:[#allocation15_spill] sm:$0xff] }
 0x1d4   : > { %1668 = vrot.lane.b32.xlu2 %v6508_v54, %s7884_s24  ;;  %v6735_v54 = vunpack.i.h.bf16 %v8396_v25  ;;  %v7834_v25 = vld [vmem:[%s7957_s14 + $0xc8] sm:$0xff] }
 0x1d5   : > { %1666 = vrot.lane.b32.xlu1 %v6507_v40, %s7884_s24  ;;  %1664 = vrot.lane.b32.xlu0 %v6506_v10, %s7884_s24  ;;  %v1894_v40 = vsel %vm1877_vm4, %v1861_v43, %v8818_v44  ;;  %v6815_v10 = vunpack.i.h.bf16 %v8455_v21  ;;  %v1730_v56 = vsel %vm1712_vm0, %v7834_v25, %v6655_v42  ;;  %v6659_v42 = vunpack.i.l.bf16 %v12868_v3 }
 0x1d6   : > { %v1763_v21 = vsel %vm1745_vm2, %v1730_v56, %v6735_v54  ;;  %v1995_v56 = vld [vmem:[%s12592_s3 + $0x98] sm:$0xff] }
 0x1d7   : > { %v9062_v18 = vpop.permute.xlu1 %1518  ;;  %v9064_v2 = vpop.permute.xlu0 %1516  ;;  %v1796_v27 = vsel %vm1778_vm1, %v1763_v21, %v6815_v10  ;;  %v1996_v10 = vld [vmem:[%s12592_s3 + $0xa0] sm:$0xff] }
 0x1d8   : > { %v1829_v43 = vsel %vm1811_vm3, %v1796_v27, %v6895_v13  ;;  %2228 = vmatpush.msra.mxu1 %v1996_v10  ;;  %v12873_v21 = vld [vmem:[#allocation37_spill] sm:$0xff] }
 0x1d9   : > { %2168 = vmatmul.f32.gmra.mxu0 %v1894_v40  ;;  %v6899_v27 = vunpack.i.l.bf16 %v12873_v21  ;;  %v12874_v10 = vld [vmem:[#allocation41_spill] sm:$0xff] }
 0x1da   : > { %2229 = vmatpush.msra.mxu1 %v1995_v56  ;;  %v1993_v56 = vld [vmem:[%s12592_s3 + $0x88] sm:$0xff] }
 0x1dc   : > { %1674 = vrot.lane.b32.xlu2 %v6511_v32, %s7884_s24  ;;  %v1862_v32 = vsel %vm1844_vm5, %v1829_v43, %v6975_v15  ;;  %v1994_v15 = vld [vmem:[%s12592_s3 + $0x90] sm:$0xff]  ;;  %v6512_v43 = vld [vmem:[%s7957_s14 + $0x19a] sm:$0xff] }
 0x1dd   : > { %1672 = vrot.lane.b32.xlu1 %v6510_v30, %s7884_s24  ;;  %1670 = vrot.lane.b32.xlu0 %v6509_v58, %s7884_s24  ;;  %v6739_v30 = vunpack.i.l.bf16 %v12871_v45  ;;  %v1895_v13 = vsel %vm1877_vm4, %v1862_v32, %v8816_v52  ;;  %v12872_v58 = vld [vmem:[#allocation24_spill] sm:$0xff]  ;;  %v6979_v52 = vunpack.i.l.bf16 %v12874_v10 }
 0x1de   : > { %v6819_v25 = vunpack.i.l.bf16 %v12872_v58  ;;  %2230 = vmatpush.msra.mxu1 %v1994_v15 }
 0x1df   : > { %v9093_v54 = vpop.permute.xlu1 %1524  ;;  %v9095_v40 = vpop.permute.xlu0 %1522 }
 0x1e0   : > { %12869 = vst [vmem:[#allocation5_spill] sm:$0xff] %v9093_v54  ;;  %v7835_v54 = vld [vmem:[%s7957_s14 + $0xd8] sm:$0xff]  ;;  %2231 = vmatpush.msra.mxu1 %v1993_v56 }
 0x1e1   : > { %12870 = vst [vmem:[#allocation6_spill] sm:$0xff] %v9095_v40  ;;  %2171 = vmatmul.f32.gmra.mxu0 %v1895_v13  ;;  %v1731_v32 = vsel %vm1712_vm0, %v7835_v54, %v6659_v42  ;;  %v9117_v40 = vpop.permute.xlu2 %1526  ;;  %v6660_v54 = vunpack.i.h.bf16 %v12868_v3  ;;  %v6900_v3 = vunpack.i.h.bf16 %v12873_v21 }
 0x1e2   : > { %12875 = vst [vmem:[#allocation9_spill] sm:$0xff] %v9117_v40  ;;  %v1764_v13 = vsel %vm1745_vm2, %v1731_v32, %v6739_v30 }
 0x1e3   : > { %v1797_v44 = vsel %vm1778_vm1, %v1764_v13, %v6819_v25  ;;  %v6740_v25 = vunpack.i.h.bf16 %v12871_v45 }
 0x1e4   : > { %v1830_v42 = vsel %vm1811_vm3, %v1797_v44, %v6899_v27  ;;  %v6820_v44 = vunpack.i.h.bf16 %v12872_v58  ;;  %v7836_v27 = vld [vmem:[%s7957_s14 + $0xe0] sm:$0xff] }
 0x1e5   : > { %1678 = vrot.lane.b32.xlu1 %v6513_v50, %s7884_s24  ;;  %1676 = vrot.lane.b32.xlu0 %v6512_v43, %s7884_s24  ;;  %v1863_v15 = vsel %vm1844_vm5, %v1830_v42, %v6979_v52  ;;  %v1992_v50 = vld [vmem:[%s12592_s3 + $0x80] sm:$0xff]  ;;  %v1732_v32 = vsel %vm1712_vm0, %v7836_v27, %v6660_v54  ;;  %v6980_v52 = vunpack.i.h.bf16 %v12874_v10 }
 0x1e6   : > { %v1896_v43 = vsel %vm1877_vm4, %v1863_v15, %v8760_v61  ;;  %2232 = vmatpush.msra.mxu1 %v1992_v50  ;;  %v1765_v13 = vsel %vm1745_vm2, %v1732_v32, %v6740_v25  ;;  %v12879_v15 = vld [vmem:[#allocation14_spill] sm:$0xff]  ;;  %v12884_v32 = vld [vmem:[#allocation36_spill] sm:$0xff] }
 0x1e7   : > { %v9128_v40 = vpop.permute.xlu1 %1530  ;;  %v9130_v30 = vpop.permute.xlu0 %1528  ;;  %v1798_v45 = vsel %vm1778_vm1, %v1765_v13, %v6820_v44  ;;  %v6664_v50 = vunpack.i.l.bf16 %v12879_v15  ;;  %v12883_v25 = vld [vmem:[#allocation30_spill] sm:$0xff]  ;;  %v6904_v44 = vunpack.i.l.bf16 %v12884_v32  ;;  %v7837_v13 = vld [vmem:[%s7957_s14 + $0xf0] sm:$0xff] }
 0x1e8   : > { %12876 = vst [vmem:[#allocation31_spill] sm:$0xff] %v9128_v40  ;;  %v1831_v42 = vsel %vm1811_vm3, %v1798_v45, %v6900_v3  ;;  %v12882_v40 = vld [vmem:[#allocation18_spill] sm:$0xff]  ;;  %v6824_v27 = vunpack.i.l.bf16 %v12883_v25 }
 0x1e9   : > { %12877 = vst [vmem:[#allocation42_spill] sm:$0xff] %v9130_v30  ;;  %2174 = vmatmul.f32.gmra.mxu0 %v1896_v43  ;;  %v9145_v56 = vpop.permute.xlu2 %1532  ;;  %v1864_v21 = vsel %vm1844_vm5, %v1831_v42, %v6980_v52  ;;  %v6744_v54 = vunpack.i.l.bf16 %v12882_v40  ;;  %v1733_v3 = vsel %vm1712_vm0, %v7837_v13, %v6664_v50  ;;  %v12885_v45 = vld [vmem:[#allocation38_spill] sm:$0xff]  ;;  %v6825_v13 = vunpack.i.h.bf16 %v12883_v25 }
 0x1ea   : > { %12878 = vst [vmem:[#allocation15_spill] sm:$0xff] %v9145_v56  ;;  %v1897_v10 = vsel %vm1877_vm4, %v1864_v21, %v8843_v46  ;;  %v6665_v56 = vunpack.i.h.bf16 %v12879_v15  ;;  %v6745_v46 = vunpack.i.h.bf16 %v12882_v40  ;;  %v7838_v15 = vld [vmem:[%s7957_s14 + $0xf8] sm:$0xff] }
 0x1ef   : > { %v9150_v58 = vpop.permute.xlu1 %1536  ;;  %v9152_v43 = vpop.permute.xlu0 %1534 }
 0x1f0   : > { %12880 = vst [vmem:[#allocation21_spill] sm:$0xff] %v9150_v58  ;;  %v6984_v58 = vunpack.i.l.bf16 %v12885_v45 }
 0x1f1   : > { %12881 = vst [vmem:[#allocation24_spill] sm:$0xff] %v9152_v43  ;;  %2177 = vmatmul.f32.gmra.mxu0 %v1897_v10  ;;  %v1766_v43 = vsel %vm1745_vm2, %v1733_v3, %v6744_v54  ;;  %v9167_v21 = vpop.permute.xlu2 %1538 }
 0x1f2   : > { %v1799_v52 = vsel %vm1778_vm1, %v1766_v43, %v6824_v27  ;;  %v6905_v43 = vunpack.i.h.bf16 %v12884_v32  ;;  %v1734_v27 = vsel %vm1712_vm0, %v7838_v15, %v6665_v56  ;;  %v12889_v32 = vld [vmem:[#allocation23_spill] sm:$0xff]  ;;  %v12890_v15 = vld [vmem:[#allocation29_spill] sm:$0xff] }
 0x1f3   : > { %v1832_v42 = vsel %vm1811_vm3, %v1799_v52, %v6904_v44  ;;  %v6985_v44 = vunpack.i.h.bf16 %v12885_v45  ;;  %v12887_v52 = vld [vmem:[#allocation10_spill] sm:$0xff]  ;;  %v6829_v45 = vunpack.i.l.bf16 %v12890_v15 }
 0x1f4   : > { %v1865_v10 = vsel %vm1844_vm5, %v1832_v42, %v6984_v58  ;;  %v1767_v58 = vsel %vm1745_vm2, %v1734_v27, %v6745_v46  ;;  %v6669_v25 = vunpack.i.l.bf16 %v12887_v52  ;;  %v12892_v46 = vld [vmem:[#allocation34_spill] sm:$0xff] }
 0x1f5   : > { %v1898_v50 = vsel %vm1877_vm4, %v1865_v10, %v8841_v36  ;;  %v1800_v40 = vsel %vm1778_vm1, %v1767_v58, %v6825_v13  ;;  %v6909_v13 = vunpack.i.l.bf16 %v12892_v46  ;;  %v7839_v27 = vld [vmem:[%s7957_s14 + $0x108] sm:$0xff]  ;;  %v12893_v58 = vld [vmem:[#allocation44_spill] sm:$0xff] }
 0x1f6   : > { %v1833_v3 = vsel %vm1811_vm3, %v1800_v40, %v6905_v43  ;;  %v1735_v43 = vsel %vm1712_vm0, %v7839_v27, %v6669_v25  ;;  %v6989_v40 = vunpack.i.l.bf16 %v12893_v58  ;;  %v6670_v25 = vunpack.i.h.bf16 %v12887_v52  ;;  %v2491_v52 = vld [vmem:[%s9211_s28 + $0x8] sm:$0xff] }
 0x1f7   : > { %v9169_v30 = vpop.permute.xlu0 %1540  ;;  %v9176_v54 = vpop.permute.xlu1 %1542  ;;  %v1866_v10 = vsel %vm1844_vm5, %v1833_v3, %v6985_v44  ;;  %2588 = vrot.lane.b32.xlu0 %v2491_v52, %s7885_s10  ;;  %v12899_v52 = vld [vmem:[#allocation22_spill] sm:$0xff] }
 0x1f8   : > { %12886 = vst [vmem:[#allocation37_spill] sm:$0xff] %v9176_v54  ;;  %v1899_v56 = vsel %vm1877_vm4, %v1866_v10, %v8789_v20 }
 0x1f9   : > { %2180 = vmatmul.f32.gmra.mxu0 %v1898_v50  ;;  %v6749_v50 = vunpack.i.l.bf16 %v12889_v32  ;;  %v9193_v54 = vpop.permute.xlu2 %1544 }
 0x1fa   : > { %12891 = vst [vmem:[#allocation14_spill] sm:$0xff] %v9193_v54 }
 0x1fb   : > { %v1768_v44 = vsel %vm1745_vm2, %v1735_v43, %v6749_v50 }
 0x1fc   : > { %v1801_v3 = vsel %vm1778_vm1, %v1768_v44, %v6829_v45 }
 0x1fd   : > { %v1834_v10 = vsel %vm1811_vm3, %v1801_v3, %v6909_v13  ;;  %v6750_v13 = vunpack.i.h.bf16 %v12889_v32  ;;  %v6830_v3 = vunpack.i.h.bf16 %v12890_v15  ;;  %v6990_v32 = vunpack.i.h.bf16 %v12893_v58  ;;  %v9233_v15 = vpop.f32.mrf.mxu0 }
 0x1fe   : > { %v1867_v45 = vsel %vm1844_vm5, %v1834_v10, %v6989_v40 }
 0x1ff   : > { %v9186_v42 = vpop.permute.xlu0 %1546  ;;  %v1900_v43 = vsel %vm1877_vm4, %v1867_v45, %v8868_v62  ;;  %v12897_v45 = vld [vmem:[#allocation17_spill] sm:$0xff] }
 0x200   : > { %12888 = vst [vmem:[#allocation41_spill] sm:$0xff] %v9186_v42  ;;  %v9199_v42 = vpop.permute.xlu1 %1548 }
 0x201   : > { %2183 = vmatmul.f32.gmra.mxu0 %v1899_v56  ;;  %12894 = vst [vmem:[#allocation18_spill] sm:$0xff] %v9199_v42  ;;  %v12895_v56 = vld [vmem:[#allocation40_spill] sm:$0xff]  ;;  %v6910_v42 = vunpack.i.h.bf16 %v12892_v46  ;;  %v9230_v10 = vpop.permute.xlu2 %1550 }
 0x202   : > { %v1911_v27 = vsel %vm1910_vm7, %v12895_v56, %v8939_v19  ;;  %v7840_v19 = vld [vmem:[%s7957_s14 + $0x110] sm:$0xff]  ;;  %12896 = vst [vmem:[#allocation30_spill] sm:$0xff] %v9230_v10 }
 0x203   : > { %v1736_v40 = vsel %vm1712_vm0, %v7840_v19, %v6670_v25  ;;  %v6754_v19 = vunpack.i.l.bf16 %v12899_v52  ;;  %v12900_v10 = vld [vmem:[#allocation27_spill] sm:$0xff] }
 0x204   : > { %v1769_v56 = vsel %vm1745_vm2, %v1736_v40, %v6750_v13  ;;  %v6834_v54 = vunpack.i.l.bf16 %v12900_v10 }
 0x207   : > { %v1617_v50 = vpop.permute.xlu0 %1616 }
 0x208   : > { %v1944_v44 = vsel %vm1943_vm9, %v1911_v27, %v1617_v50  ;;  %v1619_v27 = vpop.permute.xlu1 %1618  ;;  %v1802_v50 = vsel %vm1778_vm1, %v1769_v56, %v6830_v3  ;;  %v12901_v3 = vld [vmem:[#allocation7_spill] sm:$0xff] }
 0x209   : > { %2186 = vmatmul.f32.gmra.mxu0 %v1900_v43  ;;  %6515 = vmatmul.msk.f32.vlgmr.msra.gmra.mxu1 %vm2003_vm8, %v1944_v44  ;;  %v1835_v46 = vsel %vm1811_vm3, %v1802_v50, %v6910_v42  ;;  %v6674_v43 = vunpack.i.l.bf16 %v12897_v45  ;;  %v12898_v44 = vld [vmem:[#allocation47_spill] sm:$0xff]  ;;  %v6914_v56 = vunpack.i.l.bf16 %v12901_v3 }
 0x20a   : > { %v1912_v25 = vsel %vm1910_vm7, %v12898_v44, %v8912_v14  ;;  %v1868_v58 = vsel %vm1844_vm5, %v1835_v46, %v6990_v32  ;;  %v2492_v42 = vld [vmem:[%s9211_s28 + $0x10] sm:$0xff]  ;;  %v7841_v14 = vld [vmem:[%s7957_s14 + $0x120] sm:$0xff] }
 0x20b   : > { %v1901_v13 = vsel %vm1877_vm4, %v1868_v58, %v8866_v23  ;;  %v1945_v40 = vsel %vm1943_vm9, %v1912_v25, %v1619_v27  ;;  %2590 = vrot.lane.b32.xlu1 %v2492_v42, %s7885_s10  ;;  %v1737_v32 = vsel %vm1712_vm0, %v7841_v14, %v6674_v43  ;;  %v12902_v50 = vld [vmem:[#allocation43_spill] sm:$0xff]  ;;  %v9256_v25 = vpop.f32.mrf.mxu0  ;;  %v1621_v58 = vpop.permute.xlu2 %1620  ;;  %v1913_v42 = vsel %vm1910_vm7, %v8693_v11, %v8966_v53  ;;  %v7842_v11 = vld [vmem:[%s7957_s14 + $0x128] sm:$0xff] }
 0x20c   : > { %v6994_v46 = vunpack.i.l.bf16 %v12902_v50  ;;  %v1770_v44 = vsel %vm1745_vm2, %v1737_v32, %v6754_v19  ;;  %v6755_v14 = vunpack.i.h.bf16 %v12899_v52  ;;  %v6835_v32 = vunpack.i.h.bf16 %v12900_v10 }
 0x20d   : > { %v1803_v27 = vsel %vm1778_vm1, %v1770_v44, %v6834_v54  ;;  %v1946_v54 = vsel %vm1943_vm9, %v1913_v42, %v1621_v58  ;;  %v6995_v52 = vunpack.i.h.bf16 %v12902_v50  ;;  %v12903_v58 = vld [vmem:[#allocation16_spill] sm:$0xff] }
 0x20f   : > { %v1623_v10 = vpop.permute.xlu0 %1622 }
 0x211   : > { %2189 = vmatmul.f32.gmra.mxu0 %v1901_v13  ;;  %6516 = vmatmul.msk.f32.gmra.mxu1 %vm2003_vm8, %v1945_v40  ;;  %v1836_v13 = vsel %vm1811_vm3, %v1803_v27, %v6914_v56  ;;  %v6675_v40 = vunpack.i.h.bf16 %v12897_v45  ;;  %v2490_v56 = vld [vmem:[%s9211_s28] sm:$0xff]  ;;  %v6915_v45 = vunpack.i.h.bf16 %v12901_v3  ;;  %v1914_v3 = vsel %vm1910_vm7, %v8646_v7, %v8964_v9  ;;  %v12906_v7 = vld [vmem:[#allocation8_spill] sm:$0xff] }
 0x212   : > { %v1869_v43 = vsel %vm1844_vm5, %v1836_v13, %v6994_v46  ;;  %2586 = vrot.lane.b32.xlu2 %v2490_v56, %s7885_s10  ;;  %v6679_v13 = vunpack.i.l.bf16 %v12903_v58  ;;  %v2494_v56 = vld [vmem:[%s9211_s28 + $0x20] sm:$0xff]  ;;  %v6919_v9 = vunpack.i.l.bf16 %v12906_v7 }
 0x213   : > { %v1902_v19 = vsel %vm1877_vm4, %v1869_v43, %v8822_v33  ;;  %v1738_v53 = vsel %vm1712_vm0, %v7842_v11, %v6675_v40  ;;  %v9283_v42 = vpop.f32.mrf.mxu0  ;;  %v12904_v43 = vld [vmem:[#allocation20_spill] sm:$0xff]  ;;  %2594 = vrot.lane.b32.xlu0 %v2494_v56, %s7885_s10 }
 0x214   : > { %v1771_v46 = vsel %vm1745_vm2, %v1738_v53, %v6755_v14  ;;  %v6759_v50 = vunpack.i.l.bf16 %v12904_v43  ;;  %v12907_v53 = vld [vmem:[#allocation12_spill] sm:$0xff]  ;;  %v6760_v56 = vunpack.i.h.bf16 %v12904_v43  ;;  %v7844_v43 = vld [vmem:[%s7957_s14 + $0x140] sm:$0xff] }
 0x215   : > { %v1804_v44 = vsel %vm1778_vm1, %v1771_v46, %v6835_v32 }
 0x216   : > { %v1837_v27 = vsel %vm1811_vm3, %v1804_v44, %v6915_v45  ;;  %v7843_v45 = vld [vmem:[%s7957_s14 + $0x138] sm:$0xff] }
 0x217   : > { %v1870_v40 = vsel %vm1844_vm5, %v1837_v27, %v6995_v52  ;;  %v1739_v11 = vsel %vm1712_vm0, %v7843_v45, %v6679_v13  ;;  %v6999_v52 = vunpack.i.l.bf16 %v12907_v53  ;;  %v2495_v13 = vld [vmem:[%s9211_s28 + $0x28] sm:$0xff]  ;;  %v7000_v45 = vunpack.i.h.bf16 %v12907_v53 }
 0x218   : > { %v1903_v14 = vsel %vm1877_vm4, %v1870_v40, %v8893_v59  ;;  %v1772_v46 = vsel %vm1745_vm2, %v1739_v11, %v6759_v50  ;;  %v1915_v40 = vsel %vm1910_vm7, %v8720_v35, %v8945_v34  ;;  %2596 = vrot.lane.b32.xlu1 %v2495_v13, %s7885_s10  ;;  %v6920_v34 = vunpack.i.h.bf16 %v12906_v7 }
 0x219   : > { %2192 = vmatmul.f32.gmra.mxu0 %v1902_v19  ;;  %6517 = vmatmul.msk.f32.gmra.mxu1 %vm2003_vm8, %v1946_v54  ;;  %v1947_v19 = vsel %vm1943_vm9, %v1914_v3, %v1623_v10  ;;  %v12905_v54 = vld [vmem:[#allocation33_spill] sm:$0xff]  ;;  %v1625_v10 = vpop.permute.xlu1 %1624  ;;  %v6680_v3 = vunpack.i.h.bf16 %v12903_v58 }
 0x21a   : > { %v6839_v32 = vunpack.i.l.bf16 %v12905_v54  ;;  %v6840_v58 = vunpack.i.h.bf16 %v12905_v54 }
 0x21b   : > { %v9315_v35 = vpop.f32.mrf.mxu0 }
 0x21c   : > { %v1805_v44 = vsel %vm1778_vm1, %v1772_v46, %v6839_v32  ;;  %v1948_v32 = vsel %vm1943_vm9, %v1915_v40, %v1625_v10  ;;  %v1627_v46 = vpop.permute.xlu2 %1626  ;;  %v2496_v40 = vld [vmem:[%s9211_s28 + $0x30] sm:$0xff] }
 0x21d   : > { %v1838_v27 = vsel %vm1811_vm3, %v1805_v44, %v6919_v9  ;;  %v1740_v9 = vsel %vm1712_vm0, %v7844_v43, %v6680_v3  ;;  %v12908_v44 = vld [vmem:[#allocation13_spill] sm:$0xff] }
 0x21e   : > { %v1773_v11 = vsel %vm1745_vm2, %v1740_v9, %v6760_v56  ;;  %v6684_v10 = vunpack.i.l.bf16 %v12908_v44  ;;  %v2498_v3 = vld [vmem:[%s9211_s28 + $0x40] sm:$0xff]  ;;  %v12910_v56 = vld [vmem:[#allocation32_spill] sm:$0xff] }
 0x220   : > { %2602 = vrot.lane.b32.xlu1 %v2498_v3, %s7885_s10  ;;  %v2497_v3 = vld [vmem:[%s9211_s28 + $0x38] sm:$0xff] }
 0x221   : > { %2195 = vmatmul.f32.gmra.mxu0 %v1903_v14  ;;  %6518 = vmatmul.msk.f32.gmra.mxu1 %vm2003_vm8, %v1947_v19  ;;  %v1871_v14 = vsel %vm1844_vm5, %v1838_v27, %v6999_v52  ;;  %v2493_v19 = vld [vmem:[%s9211_s28 + $0x18] sm:$0xff]  ;;  %v1806_v52 = vsel %vm1778_vm1, %v1773_v11, %v6840_v58  ;;  %v1916_v27 = vsel %vm1910_vm7, %v8718_v31, %v8991_v38  ;;  %v12911_v31 = vld [vmem:[#allocation35_spill] sm:$0xff] }
 0x222   : > { %v1904_v50 = vsel %vm1877_vm4, %v1871_v14, %v8891_v0  ;;  %2592 = vrot.lane.b32.xlu2 %v2493_v19, %s7885_s10  ;;  %v1839_v54 = vsel %vm1811_vm3, %v1806_v52, %v6920_v34  ;;  %v12909_v14 = vld [vmem:[#allocation26_spill] sm:$0xff]  ;;  %v1949_v13 = vsel %vm1943_vm9, %v1916_v27, %v1627_v46  ;;  %v6924_v38 = vunpack.i.l.bf16 %v12911_v31  ;;  %v1629_v52 = vpop.permute.xlu0 %1628  ;;  %2600 = vrot.lane.b32.xlu0 %v2497_v3, %s7885_s10  ;;  %v12915_v3 = vld [vmem:[#allocation28_spill] sm:$0xff] }
 0x223   : > { %v1872_v7 = vsel %vm1844_vm5, %v1839_v54, %v7000_v45  ;;  %v6764_v53 = vunpack.i.l.bf16 %v12909_v14  ;;  %v12912_v34 = vld [vmem:[#allocation46_spill] sm:$0xff]  ;;  %v9344_v9 = vpop.f32.mrf.mxu0  ;;  %v6685_v54 = vunpack.i.h.bf16 %v12908_v44  ;;  %v1917_v27 = vsel %vm1910_vm7, %v8658_v57, %v8989_v49  ;;  %v7846_v49 = vld [vmem:[%s7957_s14 + $0x158] sm:$0xff] }
 0x224   : > { %v1905_v19 = vsel %vm1877_vm4, %v1872_v7, %v8852_v55  ;;  %v7004_v43 = vunpack.i.l.bf16 %v12912_v34  ;;  %v2499_v7 = vld [vmem:[%s9211_s28 + $0x48] sm:$0xff]  ;;  %v6845_v44 = vunpack.i.h.bf16 %v12910_v56  ;;  %v6925_v57 = vunpack.i.h.bf16 %v12911_v31 }
 0x225   : > { %v1918_v31 = vsel %vm1910_vm7, %v8745_v51, %v8975_v5  ;;  %v12916_v51 = vld [vmem:[#allocation39_spill] sm:$0xff] }
 0x226   : > { %v6929_v5 = vunpack.i.l.bf16 %v12916_v51 }
 0x229   : > { %2198 = vmatmul.f32.gmra.mxu0 %v1904_v50  ;;  %6519 = vmatmul.msk.f32.gmra.mxu1 %vm2003_vm8, %v1948_v32  ;;  %v6844_v50 = vunpack.i.l.bf16 %v12910_v56  ;;  %v7845_v32 = vld [vmem:[%s7957_s14 + $0x150] sm:$0xff] }
 0x22a   : > { %2598 = vrot.lane.b32.xlu2 %v2496_v40, %s7885_s10  ;;  %v1741_v58 = vsel %vm1712_vm0, %v7845_v32, %v6684_v10  ;;  %v2501_v40 = vld [vmem:[%s9211_s28 + $0x58] sm:$0xff] }
 0x22b   : > { %v1774_v45 = vsel %vm1745_vm2, %v1741_v58, %v6764_v53  ;;  %2608 = vrot.lane.b32.xlu1 %v2501_v40, %s7885_s10  ;;  %v9372_v56 = vpop.f32.mrf.mxu0  ;;  %v1631_v58 = vpop.permute.xlu1 %1630 }
 0x22c   : > { %v1807_v11 = vsel %vm1778_vm1, %v1774_v45, %v6844_v50  ;;  %v7005_v50 = vunpack.i.h.bf16 %v12912_v34  ;;  %v12913_v45 = vld [vmem:[#allocation19_spill] sm:$0xff]  ;;  %v1951_v40 = vsel %vm1943_vm9, %v1918_v31, %v1631_v58  ;;  %v1919_v58 = vsel %vm1910_vm7, %v8743_v8, %v9016_v22  ;;  %v2505_v31 = vld [vmem:[%s9211_s28 + $0x78] sm:$0xff] }
 0x22d   : > { %v1840_v46 = vsel %vm1811_vm3, %v1807_v11, %v6924_v38  ;;  %v6689_v11 = vunpack.i.l.bf16 %v12913_v45  ;;  %v2504_v34 = vld [vmem:[%s9211_s28 + $0x70] sm:$0xff]  ;;  %v6850_v8 = vunpack.i.h.bf16 %v12915_v3  ;;  %v6930_v22 = vunpack.i.h.bf16 %v12916_v51 }
 0x22e   : > { %v1873_v10 = vsel %vm1844_vm5, %v1840_v46, %v7004_v43  ;;  %v2502_v46 = vld [vmem:[%s9211_s28 + $0x60] sm:$0xff] }
 0x22f   : > { %v1906_v53 = vsel %vm1877_vm4, %v1873_v10, %v8918_v48 }
 0x231   : > { %2201 = vmatmul.f32.gmra.mxu0 %v1905_v19  ;;  %6520 = vmatmul.msk.f32.gmra.mxu1 %vm2003_vm8, %v1949_v13  ;;  %v6765_v19 = vunpack.i.h.bf16 %v12909_v14  ;;  %v1950_v13 = vsel %vm1943_vm9, %v1917_v27, %v1629_v52  ;;  %v1742_v14 = vsel %vm1712_vm0, %v7846_v49, %v6685_v54  ;;  %v2500_v54 = vld [vmem:[%s9211_s28 + $0x50] sm:$0xff]  ;;  %v12914_v27 = vld [vmem:[#allocation25_spill] sm:$0xff] }
 0x232   : > { %2604 = vrot.lane.b32.xlu2 %v2499_v7, %s7885_s10  ;;  %v6769_v10 = vunpack.i.l.bf16 %v12914_v27  ;;  %2606 = vrot.lane.b32.xlu0 %v2500_v54, %s7885_s10 }
 0x233   : > { %v1775_v38 = vsel %vm1745_vm2, %v1742_v14, %v6765_v19  ;;  %2614 = vrot.lane.b32.xlu1 %v2504_v34, %s7885_s10  ;;  %v6849_v19 = vunpack.i.l.bf16 %v12915_v3  ;;  %v6770_v34 = vunpack.i.h.bf16 %v12914_v27 }
 0x234   : > { %v1808_v32 = vsel %vm1778_vm1, %v1775_v38, %v6845_v44  ;;  %v12917_v44 = vld [vmem:[#allocation45_spill] sm:$0xff] }
 0x235   : > { %v1841_v43 = vsel %vm1811_vm3, %v1808_v32, %v6925_v57  ;;  %v7009_v57 = vunpack.i.l.bf16 %v12917_v44  ;;  %v6690_v32 = vunpack.i.h.bf16 %v12913_v45  ;;  %v7848_v45 = vld [vmem:[%s7957_s14 + $0x170] sm:$0xff] }
 0x236   : > { %v1874_v52 = vsel %vm1844_vm5, %v1841_v43, %v7005_v50  ;;  %v1633_v50 = vpop.permute.xlu2 %1632  ;;  %v9403_v43 = vpop.f32.mrf.mxu0 }
 0x237   : > { %v1907_v7 = vsel %vm1877_vm4, %v1874_v52, %v8916_v6  ;;  %v2507_v52 = vld [vmem:[%s9211_s28 + $0x88] sm:$0xff]  ;;  %v1744_v27 = vsel %vm1712_vm0, %v7848_v45, %v6690_v32  ;;  %v2513_v32 = vld [vmem:[%s9211_s28 + $0xb8] sm:$0xff] }
 0x239   : > { %2204 = vmatmul.f32.gmra.mxu0 %v1906_v53  ;;  %6521 = vmatmul.msk.f32.gmra.mxu1 %vm2003_vm8, %v1950_v13  ;;  %v7847_v53 = vld [vmem:[%s7957_s14 + $0x168] sm:$0xff]  ;;  %s7892_s14 = smov 96  }
 0x23a   : > { %2610 = vrot.lane.b32.xlu2 %v2502_v46, %s7885_s10  ;;  %v1743_v13 = vsel %vm1712_vm0, %v7847_v53, %v6689_v11  ;;  %v2503_v46 = vld [vmem:[%s9211_s28 + $0x68] sm:$0xff]  ;;  %v1920_v53 = vsel %vm1910_vm7, %v8670_v29, %v9014_v60  ;;  %v1637_v29 = vpop.permute.xlu1 %1636  ;;  %v1921_v60 = vsel %vm1910_vm7, %v8770_v17, %v9006_v12  ;;  %v1922_v17 = vsel %vm1910_vm7, %v8768_v24, %v9041_v41  ;;  %v2514_v12 = vld [vmem:[%s9211_s28 + $0xc0] sm:$0xff]  ;;  %v2517_v41 = vld [vmem:[%s9211_s28 + $0xd8] sm:$0xff] }
 0x23b   : > { %v1776_v49 = vsel %vm1745_vm2, %v1743_v13, %v6769_v10  ;;  %v1952_v10 = vsel %vm1943_vm9, %v1919_v58, %v1633_v50  ;;  %2620 = vrot.lane.b32.xlu1 %v2507_v52, %s7885_s10  ;;  %2612 = vrot.lane.b32.xlu0 %v2503_v46, %s7885_s10  ;;  %v2508_v13 = vld [vmem:[%s9211_s28 + $0x90] sm:$0xff]  ;;  %v2509_v58 = vld [vmem:[%s9211_s28 + $0x98] sm:$0xff]  ;;  %v1923_v24 = vsel %vm1910_vm7, %v8699_v1, %v9039_v28  ;;  %vm4984_vm0 = vcmask 916480  }
 0x23c   : > { %v1809_v14 = vsel %vm1778_vm1, %v1776_v49, %v6849_v19  ;;  %v2506_v49 = vld [vmem:[%s9211_s28 + $0x80] sm:$0xff]  ;;  %v2516_v52 = vld [vmem:[%s9211_s28 + $0xd0] sm:$0xff] }
 0x23d   : > { %v1842_v38 = vsel %vm1811_vm3, %v1809_v14, %v6929_v5  ;;  %v1635_v5 = vpop.permute.xlu0 %1634  ;;  %v2512_v46 = vld [vmem:[%s9211_s28 + $0xb0] sm:$0xff]  ;;  %v2518_v28 = vld [vmem:[%s9211_s28 + $0xe0] sm:$0xff] }
 0x23e   : > { %v1875_v11 = vsel %vm1844_vm5, %v1842_v38, %v7009_v57  ;;  %v2510_v57 = vld [vmem:[%s9211_s28 + $0xa0] sm:$0xff]  ;;  %v1953_v14 = vsel %vm1943_vm9, %v1920_v53, %v1635_v5  ;;  %v9437_v50 = vpop.f32.mrf.mxu0  ;;  %v2511_v38 = vld [vmem:[%s9211_s28 + $0xa8] sm:$0xff]  ;;  %v2520_v1 = vld [vmem:[%s9211_s28 + $0xf0] sm:$0xff] }
 0x23f   : > { %v1908_v54 = vsel %vm1877_vm4, %v1875_v11, %v8883_v16  ;;  %v1954_v11 = vsel %vm1943_vm9, %v1921_v60, %v1637_v29  ;;  %v2521_v5 = vld [vmem:[%s9211_s28 + $0xf8] sm:$0xff]  ;;  %v12920_v60 = vld [vmem:[#allocation6_spill] sm:$0xff] }
 0x241   : > { %2207 = vmatmul.f32.gmra.mxu0 %v1907_v7  ;;  %6522 = vmatmul.msk.f32.gmra.mxu1 %vm2003_vm8, %v1951_v40  ;;  %v7010_v7 = vunpack.i.h.bf16 %v12917_v44  ;;  %v1777_v40 = vsel %vm1745_vm2, %v1744_v27, %v6770_v34  ;;  %v1924_v27 = vsel %vm1910_vm7, %v8795_v26, %v9035_v47  ;;  %v1926_v47 = vsel %vm1910_vm7, %v8729_v37, %v9062_v18 }
 0x242   : > { %2616 = vrot.lane.b32.xlu2 %v2505_v31, %s7885_s10  ;;  %v1810_v19 = vsel %vm1778_vm1, %v1777_v40, %v6850_v8  ;;  %v1639_v31 = vpop.permute.xlu2 %1638  ;;  %v2515_v8 = vld [vmem:[%s9211_s28 + $0xc8] sm:$0xff]  ;;  %v1643_v45 = vpop.permute.xlu1 %1642 }
 0x243   : > { %v1843_v3 = vsel %vm1811_vm3, %v1810_v19, %v6930_v22  ;;  %2626 = vrot.lane.b32.xlu1 %v2510_v57, %s7885_s10  ;;  %2618 = vrot.lane.b32.xlu0 %v2506_v49, %s7885_s10  ;;  %v1955_v34 = vsel %vm1943_vm9, %v1922_v17, %v1639_v31  ;;  %v1925_v19 = vsel %vm1910_vm7, %v8793_v4, %v9064_v2  ;;  %v12918_v57 = vld [vmem:[#allocation4_spill] sm:$0xff] }
 0x244   : > { %v1876_v51 = vsel %vm1844_vm5, %v1843_v3, %v7010_v7  ;;  %v1957_v7 = vsel %vm1943_vm9, %v1924_v27, %v1643_v45  ;;  %v1927_v49 = vsel %vm1910_vm7, %v12918_v57, %v9071_v63 }
 0x245   : > { %v1909_v44 = vsel %vm1877_vm4, %v1876_v51, %v8941_v39  ;;  %v9497_v51 = vld [vmem:[%s12593_s4] ss:$0 sm:$0xff] }
 0x246   : > { %v2122_v4 = vadd.f32 %v9497_v51, %v9233_v15  ;;  %v2125_v18 = vadd.f32 %v9497_v51, %v9256_v25  ;;  %v2128_v25 = vadd.f32 %v9497_v51, %v9283_v42  ;;  %v2131_v42 = vadd.f32 %v9497_v51, %v9315_v35 }
 0x247   : > { %v2134_v35 = vadd.f32 %v9497_v51, %v9344_v9  ;;  %v2137_v9 = vadd.f32 %v9497_v51, %v9372_v56  ;;  %v2140_v56 = vadd.f32 %v9497_v51, %v9403_v43  ;;  %v2143_v43 = vadd.f32 %v9497_v51, %v9437_v50 }
 0x249   : > { %2210 = vmatmul.f32.gmra.mxu0 %v1908_v54  ;;  %6523 = vmatmul.msk.f32.gmra.mxu1 %vm2003_vm8, %v1952_v10  ;;  %v1641_v54 = vpop.permute.xlu0 %1640  ;;  %v2519_v10 = vld [vmem:[%s9211_s28 + $0xe8] sm:$0xff]  ;;  %s7889_s28 = smov 16  }
 0x24a   : > { %2622 = vrot.lane.b32.xlu2 %v2508_v13, %s7885_s10  ;;  %v1956_v22 = vsel %vm1943_vm9, %v1923_v24, %v1641_v54  ;;  %v1645_v40 = vpop.permute.xlu2 %1644  ;;  %v1649_v2 = vpop.permute.xlu1 %1648 }
 0x24b   : > { %2632 = vrot.lane.b32.xlu1 %v2513_v32, %s7885_s10  ;;  %2624 = vrot.lane.b32.xlu0 %v2509_v58, %s7885_s10  ;;  %v1958_v3 = vsel %vm1943_vm9, %v1925_v19, %v1645_v40  ;;  %v1960_v37 = vsel %vm1943_vm9, %v1927_v49, %v1649_v2  ;;  %v12928_v19 = vld [vmem:[#allocation42_spill] sm:$0xff] }
 0x251   : > { %2213 = vmatmul.f32.gmra.mxu0 %v1909_v44  ;;  %6524 = vmatmul.msk.f32.gmra.mxu1 %vm2003_vm8, %v1953_v14  ;;  %v1647_v26 = vpop.permute.xlu0 %1646 }
 0x252   : > { %2628 = vrot.lane.b32.xlu2 %v2511_v38, %s7885_s10  ;;  %v1959_v53 = vsel %vm1943_vm9, %v1926_v47, %v1647_v26  ;;  %v1651_v14 = vpop.permute.xlu2 %1650  ;;  %v12921_v38 = vld [vmem:[#allocation3_spill] sm:$0xff]  ;;  %v1655_v24 = vpop.permute.xlu1 %1654 }
 0x253   : > { %2638 = vrot.lane.b32.xlu1 %v2516_v52, %s7885_s10  ;;  %2630 = vrot.lane.b32.xlu0 %v2512_v46, %s7885_s10  ;;  %v1928_v32 = vsel %vm1910_vm7, %v12921_v38, %v12920_v60  ;;  %v12923_v52 = vld [vmem:[#allocation5_spill] sm:$0xff] }
 0x254   : > { %v1961_v63 = vsel %vm1943_vm9, %v1928_v32, %v1651_v14  ;;  %v1929_v46 = vsel %vm1910_vm7, %v8760_v61, %v12923_v52  ;;  %v12926_v61 = vld [vmem:[#allocation11_spill] sm:$0xff] }
 0x259   : > { %6525 = vmatmul.msk.f32.gmra.mxu1 %vm2003_vm8, %v1954_v11  ;;  %v9521_v11 = vpop.f32.mrf.mxu0  ;;  %v1653_v31 = vpop.permute.xlu0 %1652 }
 0x25a   : > { %2634 = vrot.lane.b32.xlu2 %v2514_v12, %s7885_s10  ;;  %v1962_v54 = vsel %vm1943_vm9, %v1929_v46, %v1653_v31  ;;  %v2146_v50 = vadd.f32 %v9497_v51, %v9521_v11 }
 0x25b   : > { %2644 = vrot.lane.b32.xlu1 %v2519_v10, %s7885_s10  ;;  %2636 = vrot.lane.b32.xlu0 %v2515_v8, %s7885_s10 }
 0x261   : > { %6526 = vmatmul.msk.f32.gmra.mxu1 %vm2003_vm8, %v1955_v34 }
 0x262   : > { %2640 = vrot.lane.b32.xlu2 %v2517_v41, %s7885_s10  ;;  %v9536_v41 = vpop.f32.mrf.mxu0 }
 0x263   : > { %2642 = vrot.lane.b32.xlu0 %v2518_v28, %s7885_s10  ;;  %v1657_v28 = vpop.permute.xlu2 %1656  ;;  %v2149_v11 = vadd.f32 %v9497_v51, %v9536_v41 }
 0x269   : > { %6527 = vmatmul.msk.f32.gmra.mxu1 %vm2003_vm8, %v1956_v22  ;;  %v12925_v22 = vld [vmem:[#allocation9_spill] sm:$0xff] }
 0x26a   : > { %2646 = vrot.lane.b32.xlu2 %v2520_v1, %s7885_s10  ;;  %v1930_v45 = vsel %vm1910_vm7, %v12926_v61, %v12925_v22  ;;  %v2151_v26 = vpop.f32.mrf.mxu0 }
 0x26b   : > { %2648 = vrot.lane.b32.xlu0 %v2521_v5, %s7885_s10  ;;  %v1963_v1 = vsel %vm1943_vm9, %v1930_v45, %v1655_v24  ;;  %v1931_v5 = vsel %vm1910_vm7, %v8841_v36, %v12928_v19  ;;  %v2152_v41 = vadd.f32 %v9497_v51, %v2151_v26 }
 0x26c   : > { %v1964_v47 = vsel %vm1943_vm9, %v1931_v5, %v1657_v28 }
 0x271   : > { %6528 = vmatmul.msk.f32.gmra.mxu1 %vm2003_vm8, %v1957_v7 }
 0x279   : > { %6529 = vmatmul.msk.f32.gmra.mxu1 %vm2003_vm8, %v1958_v3 }
 0x281   : > { %6530 = vmatmul.msk.f32.gmra.mxu1 %vm2003_vm8, %v1959_v53  ;;  %v1659_v53 = vpop.permute.xlu0 %1658 }
 0x286   : > { %v2234_v13 = vpop.f32.mrf.mxu1 }
 0x287   : > { %v9505_v44 = vadd.f32 %v2234_v13, %v2122_v4  ;;  %v12930_v13 = vld [vmem:[#allocation31_spill] sm:$0xff] }
 0x288   : > { %v1932_v36 = vsel %vm1910_vm7, %v8789_v20, %v12930_v13  ;;  %v12940_v13 = vld [vmem:[#allocation37_spill] sm:$0xff] }
 0x289   : > { %12919 = vst [vmem:[#allocation36_spill] sm:$0xff] %v9505_v44  ;;  %7573 = vtanh.f32 %v9505_v44  ;;  %6531 = vmatmul.msk.f32.gmra.mxu1 %vm2003_vm8, %v1960_v37  ;;  %v1965_v49 = vsel %vm1943_vm9, %v1932_v36, %v1659_v53  ;;  %v2154_v37 = vpop.f32.mrf.mxu0  ;;  %v1665_v46 = vpop.permute.xlu0 %1664 }
 0x28a   : > { %v2155_v26 = vadd.f32 %v9497_v51, %v2154_v37 }
 0x28e   : > { %v2237_v29 = vpop.f32.mrf.mxu1 }
 0x28f   : > { %v7574_v15 = vpop.eup %7573  ;;  %v9515_v58 = vadd.f32 %v2237_v29, %v2125_v18  ;;  %v1661_v18 = vpop.permute.xlu1 %1660 }
 0x290   : > { %2746 = vrot.lane.b32.xlu1 %v7574_v15, %s7886_s11  ;;  %v12932_v15 = vld [vmem:[#allocation15_spill] sm:$0xff] }
 0x291   : > { %12922 = vst [vmem:[#allocation38_spill] sm:$0xff] %v9515_v58  ;;  %7575 = vtanh.f32 %v9515_v58  ;;  %6532 = vmatmul.msk.f32.gmra.mxu1 %vm2003_vm8, %v1961_v63  ;;  %v1933_v20 = vsel %vm1910_vm7, %v8868_v62, %v12932_v15  ;;  %v2157_v32 = vpop.f32.mrf.mxu0  ;;  %v1663_v63 = vpop.permute.xlu2 %1662 }
 0x292   : > { %v1966_v38 = vsel %vm1943_vm9, %v1933_v20, %v1661_v18  ;;  %v1671_v53 = vpop.permute.xlu0 %1670  ;;  %v2158_v37 = vadd.f32 %v9497_v51, %v2157_v32 }
 0x296   : > { %v2240_v17 = vpop.f32.mrf.mxu1 }
 0x297   : > { %v7576_v12 = vpop.eup %7575  ;;  %v9528_v34 = vadd.f32 %v2240_v17, %v2128_v25  ;;  %v12934_v17 = vld [vmem:[#allocation24_spill] sm:$0xff]  ;;  %v1667_v61 = vpop.permute.xlu1 %1666 }
 0x298   : > { %2748 = vrot.lane.b32.xlu2 %v7576_v12, %s7886_s11  ;;  %v1934_v62 = vsel %vm1910_vm7, %v8866_v23, %v12934_v17 }
 0x299   : > { %12924 = vst [vmem:[#allocation10_spill] sm:$0xff] %v9528_v34  ;;  %7577 = vtanh.f32 %v9528_v34  ;;  %6533 = vmatmul.msk.f32.gmra.mxu1 %vm2003_vm8, %v1962_v54  ;;  %v1967_v52 = vsel %vm1943_vm9, %v1934_v62, %v1663_v63  ;;  %v2160_v54 = vpop.f32.mrf.mxu0 }
 0x29a   : > { %v2161_v32 = vadd.f32 %v9497_v51, %v2160_v54 }
 0x29e   : > { %v2243_v10 = vpop.f32.mrf.mxu1 }
 0x29f   : > { %v7578_v8 = vpop.eup %7577  ;;  %v9541_v27 = vadd.f32 %v2243_v10, %v2131_v42  ;;  %v12936_v10 = vld [vmem:[#allocation21_spill] sm:$0xff] }
 0x2a0   : > { %2750 = vrot.lane.b32.xlu0 %v7578_v8, %s7886_s11  ;;  %v1935_v23 = vsel %vm1910_vm7, %v8822_v33, %v12936_v10  ;;  %v1936_v33 = vsel %vm1910_vm7, %v8893_v59, %v9167_v21  ;;  %v1937_v59 = vsel %vm1910_vm7, %v8891_v0, %v9169_v30  ;;  %v1938_v0 = vsel %vm1910_vm7, %v8852_v55, %v12940_v13 }
 0x2a1   : > { %12927 = vst [vmem:[#allocation23_spill] sm:$0xff] %v9541_v27  ;;  %7579 = vtanh.f32 %v9541_v27  ;;  %6534 = vmatmul.msk.f32.gmra.mxu1 %vm2003_vm8, %v1963_v1  ;;  %v1968_v22 = vsel %vm1943_vm9, %v1935_v23, %v1665_v46  ;;  %v2163_v28 = vpop.f32.mrf.mxu0  ;;  %v1971_v36 = vsel %vm1943_vm9, %v1938_v0, %v1671_v53 }
 0x2a6   : > { %v2246_v7 = vpop.f32.mrf.mxu1 }
 0x2a7   : > { %v7580_v40 = vpop.eup %7579  ;;  %v9552_v3 = vadd.f32 %v2246_v7, %v2134_v35  ;;  %v1969_v7 = vsel %vm1943_vm9, %v1936_v33, %v1667_v61 }
 0x2a8   : > { %2752 = vrot.lane.b32.xlu1 %v7580_v40, %s7886_s11  ;;  %v1669_v40 = vpop.permute.xlu2 %1668 }
 0x2a9   : > { %12929 = vst [vmem:[#allocation29_spill] sm:$0xff] %v9552_v3  ;;  %7581 = vtanh.f32 %v9552_v3  ;;  %6535 = vmatmul.msk.f32.gmra.mxu1 %vm2003_vm8, %v1964_v47  ;;  %v1970_v47 = vsel %vm1943_vm9, %v1937_v59, %v1669_v40 }
 0x2ae   : > { %v2249_v4 = vpop.f32.mrf.mxu1 }
 0x2af   : > { %v7582_v2 = vpop.eup %7581  ;;  %v9563_v57 = vadd.f32 %v2249_v4, %v2137_v9  ;;  %v2166_v9 = vpop.f32.mrf.mxu0 }
 0x2b0   : > { %2754 = vrot.lane.b32.xlu2 %v7582_v2, %s7886_s11 }
 0x2b1   : > { %12931 = vst [vmem:[#allocation34_spill] sm:$0xff] %v9563_v57  ;;  %7583 = vtanh.f32 %v9563_v57  ;;  %6536 = vmatmul.msk.f32.gmra.mxu1 %vm2003_vm8, %v1965_v49 }
 0x2b6   : > { %v2252_v14 = vpop.f32.mrf.mxu1 }
 0x2b7   : > { %v7584_v29 = vpop.eup %7583  ;;  %v9574_v60 = vadd.f32 %v2252_v14, %v2140_v56  ;;  %v2169_v49 = vpop.f32.mrf.mxu0 }
 0x2b8   : > { %2756 = vrot.lane.b32.xlu0 %v7584_v29, %s7886_s11  ;;  %v1673_v56 = vpop.permute.xlu1 %1672  ;;  %v12942_v29 = vld [vmem:[#allocation14_spill] sm:$0xff] }
 0x2b9   : > { %12933 = vst [vmem:[#allocation44_spill] sm:$0xff] %v9574_v60  ;;  %7585 = vtanh.f32 %v9574_v60  ;;  %6537 = vmatmul.msk.f32.gmra.mxu1 %vm2003_vm8, %v1966_v38  ;;  %v1939_v55 = vsel %vm1910_vm7, %v8918_v48, %v12942_v29  ;;  %v1675_v38 = vpop.permute.xlu2 %1674 }
 0x2ba   : > { %v1972_v20 = vsel %vm1943_vm9, %v1939_v55, %v1673_v56 }
 0x2be   : > { %v2255_v25 = vpop.f32.mrf.mxu1 }
 0x2bf   : > { %v7586_v31 = vpop.eup %7585  ;;  %v9585_v12 = vadd.f32 %v2255_v25, %v2143_v43  ;;  %v2172_v43 = vpop.f32.mrf.mxu0 }
 0x2c0   : > { %2758 = vrot.lane.b32.xlu1 %v7586_v31, %s7886_s11  ;;  %v12944_v31 = vld [vmem:[#allocation41_spill] sm:$0xff]  ;;  %v2173_v59 = vadd.f32 %v9497_v51, %v2172_v43 }
 0x2c1   : > { %12935 = vst [vmem:[#allocation40_spill] sm:$0xff] %v9585_v12  ;;  %7587 = vtanh.f32 %v9585_v12  ;;  %6538 = vmatmul.msk.f32.gmra.mxu1 %vm2003_vm8, %v1967_v52  ;;  %v1940_v48 = vsel %vm1910_vm7, %v8916_v6, %v12944_v31  ;;  %v2164_v52 = vadd.f32 %v9497_v51, %v2163_v28  ;;  %v9684_v0 = vpop.permute.xlu2 %2586 }
 0x2c2   : > { %v1973_v62 = vsel %vm1943_vm9, %v1940_v48, %v1675_v38 }
 0x2c6   : > { %v2258_v42 = vpop.f32.mrf.mxu1 }
 0x2c7   : > { %v7588_v24 = vpop.eup %7587  ;;  %v9596_v8 = vadd.f32 %v2258_v42, %v2146_v50  ;;  %v1677_v50 = vpop.permute.xlu0 %1676  ;;  %v12946_v42 = vld [vmem:[#allocation18_spill] sm:$0xff] }
 0x2c8   : > { %2760 = vrot.lane.b32.xlu2 %v7588_v24, %s7886_s11  ;;  %v1941_v24 = vsel %vm1910_vm7, %v8883_v16, %v12946_v42  ;;  %v2175_v23 = vpop.f32.mrf.mxu0 }
 0x2c9   : > { %12937 = vst [vmem:[#allocation17_spill] sm:$0xff] %v9596_v8  ;;  %7589 = vtanh.f32 %v9596_v8  ;;  %6539 = vmatmul.msk.f32.gmra.mxu1 %vm2003_vm8, %v1968_v22  ;;  %v1974_v10 = vsel %vm1943_vm9, %v1941_v24, %v1677_v50  ;;  %v2167_v22 = vadd.f32 %v9497_v51, %v2166_v9  ;;  %v2176_v53 = vadd.f32 %v9497_v51, %v2175_v23 }
 0x2ce   : > { %v2261_v45 = vpop.f32.mrf.mxu1 }
 0x2cf   : > { %v7590_v1 = vpop.eup %7589  ;;  %v9607_v35 = vadd.f32 %v2261_v45, %v2149_v11  ;;  %v1679_v11 = vpop.permute.xlu1 %1678 }
 0x2d0   : > { %2762 = vrot.lane.b32.xlu0 %v7590_v1, %s7886_s11  ;;  %v12948_v1 = vld [vmem:[#allocation30_spill] sm:$0xff] }
 0x2d1   : > { %12938 = vst [vmem:[#allocation47_spill] sm:$0xff] %v9607_v35  ;;  %7591 = vtanh.f32 %v9607_v35  ;;  %6540 = vmatmul.msk.f32.gmra.mxu1 %vm2003_vm8, %v1969_v7  ;;  %v1942_v16 = vsel %vm1910_vm7, %v8941_v39, %v12948_v1  ;;  %v2178_v7 = vpop.f32.mrf.mxu0 }
 0x2d2   : > { %v1975_v28 = vsel %vm1943_vm9, %v1942_v16, %v1679_v11 }
 0x2d6   : > { %v2264_v19 = vpop.f32.mrf.mxu1 }
 0x2d7   : > { %v7592_v5 = vpop.eup %7591  ;;  %v9617_v21 = vadd.f32 %v2264_v19, %v2152_v41  ;;  %v2170_v41 = vadd.f32 %v9497_v51, %v2169_v49  ;;  %v9689_v49 = vpop.permute.xlu1 %2590 }
 0x2d8   : > { %2764 = vrot.lane.b32.xlu1 %v7592_v5, %s7886_s11 }
 0x2d9   : > { %12939 = vst [vmem:[#allocation22_spill] sm:$0xff] %v9617_v21  ;;  %7593 = vtanh.f32 %v9617_v21  ;;  %6541 = vmatmul.msk.f32.gmra.mxu1 %vm2003_vm8, %v1970_v47  ;;  %v2181_v39 = vpop.f32.mrf.mxu0 }
 0x2de   : > { %v2267_v4 = vpop.f32.mrf.mxu1 }
 0x2df   : > { %v7594_v2 = vpop.eup %7593  ;;  %v9627_v30 = vadd.f32 %v2267_v4, %v2155_v26  ;;  %v9700_v38 = vpop.permute.xlu1 %2596 }
 0x2e0   : > { %2766 = vrot.lane.b32.xlu2 %v7594_v2, %s7886_s11 }
 0x2e1   : > { %12941 = vst [vmem:[#allocation27_spill] sm:$0xff] %v9627_v30  ;;  %7595 = vtanh.f32 %v9627_v30  ;;  %6542 = vmatmul.msk.f32.gmra.mxu1 %vm2003_vm8, %v1971_v36  ;;  %v2184_v4 = vpop.f32.mrf.mxu0 }
 0x2e2   : > { %v2185_v50 = vadd.f32 %v9497_v51, %v2184_v4 }
 0x2e6   : > { %v2270_v18 = vpop.f32.mrf.mxu1 }
 0x2e7   : > { %v7596_v14 = vpop.eup %7595  ;;  %v9637_v15 = vadd.f32 %v2270_v18, %v2158_v37  ;;  %v2179_v37 = vadd.f32 %v9497_v51, %v2178_v7 }
 0x2e8   : > { %2768 = vrot.lane.b32.xlu0 %v7596_v14, %s7886_s11  ;;  %v9693_v14 = vpop.permute.xlu2 %2592 }
 0x2e9   : > { %12943 = vst [vmem:[#allocation7_spill] sm:$0xff] %v9637_v15  ;;  %7597 = vtanh.f32 %v9637_v15  ;;  %6543 = vmatmul.msk.f32.gmra.mxu1 %vm2003_vm8, %v1972_v20  ;;  %v2187_v55 = vpop.f32.mrf.mxu0  ;;  %v9698_v20 = vpop.permute.xlu0 %2588 }
 0x2ee   : > { %v2273_v63 = vpop.f32.mrf.mxu1 }
 0x2ef   : > { %v7598_v25 = vpop.eup %7597  ;;  %v9647_v17 = vadd.f32 %v2273_v63, %v2161_v32  ;;  %v2182_v32 = vadd.f32 %v9497_v51, %v2181_v39 }
 0x2f0   : > { %2770 = vrot.lane.b32.xlu1 %v7598_v25, %s7886_s11  ;;  %v9707_v31 = vpop.permute.xlu2 %2598 }
 0x2f1   : > { %12945 = vst [vmem:[#allocation43_spill] sm:$0xff] %v9647_v17  ;;  %7599 = vtanh.f32 %v9647_v17  ;;  %6544 = vmatmul.msk.f32.gmra.mxu1 %vm2003_vm8, %v1973_v62  ;;  %v9709_v48 = vpop.permute.xlu0 %2594  ;;  %v2190_v62 = vpop.f32.mrf.mxu0 }
 0x2f6   : > { %v2276_v46 = vpop.f32.mrf.mxu1 }
 0x2f7   : > { %v7600_v54 = vpop.eup %7599  ;;  %v9657_v6 = vadd.f32 %v2276_v46, %v2164_v52  ;;  %v9712_v52 = vpop.permute.xlu1 %2602 }
 0x2f8   : > { %2772 = vrot.lane.b32.xlu2 %v7600_v54, %s7886_s11 }
 0x2f9   : > { %12947 = vst [vmem:[#allocation16_spill] sm:$0xff] %v9657_v6  ;;  %7601 = vtanh.f32 %v9657_v6  ;;  %6545 = vmatmul.msk.f32.gmra.mxu1 %vm2003_vm8, %v1974_v10  ;;  %v9718_v24 = vpop.permute.xlu0 %2600  ;;  %v9721_v10 = vpop.permute.xlu2 %2604 }
 0x2fa   : > { %v2193_v23 = vpop.f32.mrf.mxu0 }
 0x2fe   : > { %v2279_v61 = vpop.f32.mrf.mxu1 }
 0x2ff   : > { %v7602_v45 = vpop.eup %7601  ;;  %v9667_v33 = vadd.f32 %v2279_v61, %v2167_v22  ;;  %v2188_v22 = vadd.f32 %v9497_v51, %v2187_v55  ;;  %v9724_v11 = vpop.permute.xlu1 %2608 }
 0x300   : > { %2774 = vrot.lane.b32.xlu0 %v7602_v45, %s7886_s11 }
 0x301   : > { %12949 = vst [vmem:[#allocation20_spill] sm:$0xff] %v9667_v33  ;;  %7603 = vtanh.f32 %v9667_v33  ;;  %6546 = vmatmul.msk.f32.gmra.mxu1 %vm2003_vm8, %v1975_v28  ;;  %v9730_v16 = vpop.permute.xlu0 %2606  ;;  %v2191_v28 = vadd.f32 %v9497_v51, %v2190_v62  ;;  %v9733_v7 = vpop.permute.xlu2 %2610 }
 0x306   : > { %v2282_v40 = vpop.f32.mrf.mxu1 }
 0x307   : > { %v7604_v19 = vpop.eup %7603  ;;  %v9674_v5 = vadd.f32 %v2282_v40, %v2170_v41  ;;  %v2196_v41 = vpop.f32.mrf.mxu0 }
 0x308   : > { %2776 = vrot.lane.b32.xlu1 %v7604_v19, %s7886_s11  ;;  %v9735_v39 = vpop.permute.xlu1 %2614 }
 0x309   : > { %12950 = vst [vmem:[#allocation33_spill] sm:$0xff] %v9674_v5  ;;  %7605 = vtanh.f32 %v9674_v5 }
 0x30e   : > { %v2285_v47 = vpop.f32.mrf.mxu1 }
 0x30f   : > { %v7606_v9 = vpop.eup %7605  ;;  %v9679_v26 = vadd.f32 %v2285_v47, %v2173_v59  ;;  %v2194_v47 = vadd.f32 %v9497_v51, %v2193_v23 }
 0x310   : > { %2778 = vrot.lane.b32.xlu2 %v7606_v9, %s7886_s11  ;;  %v9742_v9 = vpop.permute.xlu0 %2612 }
 0x311   : > { %12951 = vst [vmem:[#allocation8_spill] sm:$0xff] %v9679_v26  ;;  %7607 = vtanh.f32 %v9679_v26 }
 0x316   : > { %v2288_v2 = vpop.f32.mrf.mxu1 }
 0x317   : > { %v7608_v13 = vpop.eup %7607  ;;  %v9686_v36 = vadd.f32 %v2288_v2, %v2176_v53  ;;  %v9744_v2 = vpop.permute.xlu2 %2616 }
 0x318   : > { %2780 = vrot.lane.b32.xlu0 %v7608_v13, %s7886_s11 }
 0x319   : > { %12952 = vst [vmem:[#allocation12_spill] sm:$0xff] %v9686_v36  ;;  %7609 = vtanh.f32 %v9686_v36 }
 0x31e   : > { %v2291_v56 = vpop.f32.mrf.mxu1 }
 0x31f   : > { %v7610_v18 = vpop.eup %7609  ;;  %v9695_v29 = vadd.f32 %v2291_v56, %v2179_v37  ;;  %v2199_v37 = vpop.f32.mrf.mxu0 }
 0x320   : > { %2782 = vrot.lane.b32.xlu1 %v7610_v18, %s7886_s11  ;;  %v9749_v56 = vpop.permute.xlu1 %2620  ;;  %v2197_v18 = vadd.f32 %v9497_v51, %v2196_v41  ;;  %v9758_v62 = vpop.permute.xlu2 %2622 }
 0x321   : > { %12953 = vst [vmem:[#allocation13_spill] sm:$0xff] %v9695_v29  ;;  %7611 = vtanh.f32 %v9695_v29 }
 0x322   : > { %12959 = vst [vmem:[#allocation25_spill] sm:$0xff] %v9749_v56 }
 0x326   : > { %v2294_v43 = vpop.f32.mrf.mxu1 }
 0x327   : > { %v7612_v63 = vpop.eup %7611  ;;  %v9704_v25 = vadd.f32 %v2294_v43, %v2182_v32  ;;  %v9753_v43 = vpop.permute.xlu0 %2618 }
 0x328   : > { %2784 = vrot.lane.b32.xlu2 %v7612_v63, %s7886_s11 }
 0x329   : > { %12954 = vst [vmem:[#allocation26_spill] sm:$0xff] %v9704_v25  ;;  %7613 = vtanh.f32 %v9704_v25 }
 0x32e   : > { %v2297_v46 = vpop.f32.mrf.mxu1 }
 0x32f   : > { %v7614_v54 = vpop.eup %7613  ;;  %v9715_v42 = vadd.f32 %v2297_v46, %v2185_v50  ;;  %v2202_v50 = vpop.f32.mrf.mxu0 }
 0x330   : > { %2786 = vrot.lane.b32.xlu0 %v7614_v54, %s7886_s11  ;;  %v9761_v46 = vpop.permute.xlu1 %2626  ;;  %v2200_v54 = vadd.f32 %v9497_v51, %v2199_v37 }
 0x331   : > { %12955 = vst [vmem:[#allocation32_spill] sm:$0xff] %v9715_v42  ;;  %7615 = vtanh.f32 %v9715_v42 }
 0x332   : > { %12961 = vst [vmem:[#allocation39_spill] sm:$0xff] %v9761_v46 }
 0x336   : > { %v2300_v61 = vpop.f32.mrf.mxu1 }
 0x337   : > { %v7616_v45 = vpop.eup %7615  ;;  %v9726_v1 = vadd.f32 %v2300_v61, %v2188_v22  ;;  %v2205_v41 = vpop.f32.mrf.mxu0 }
 0x338   : > { %2788 = vrot.lane.b32.xlu1 %v7616_v45, %s7886_s11  ;;  %v9767_v45 = vpop.permute.xlu0 %2624 }
 0x339   : > { %12956 = vst [vmem:[#allocation35_spill] sm:$0xff] %v9726_v1  ;;  %7617 = vtanh.f32 %v9726_v1 }
 0x33a   : > { %12963 = vst [vmem:[#allocation4_spill] sm:$0xff] %v9767_v45  ;;  %v2547_v45 = vld [vmem:[%s9974_s15 + $0xc8] sm:$0xff] }
 0x33e   : > { %v2303_v40 = vpop.f32.mrf.mxu1 }
 0x33f   : > { %v7618_v19 = vpop.eup %7617  ;;  %v9737_v59 = vadd.f32 %v2303_v40, %v2191_v28  ;;  %v9770_v28 = vpop.permute.xlu2 %2628  ;;  %v2203_v40 = vadd.f32 %v9497_v51, %v2202_v50 }
 0x340   : > { %2790 = vrot.lane.b32.xlu2 %v7618_v19, %s7886_s11  ;;  %v9773_v19 = vpop.permute.xlu1 %2632  ;;  %v9779_v37 = vpop.permute.xlu0 %2630 }
 0x341   : > { %12957 = vst [vmem:[#allocation46_spill] sm:$0xff] %v9737_v59  ;;  %7619 = vtanh.f32 %v9737_v59 }
 0x342   : > { %12964 = vst [vmem:[#allocation6_spill] sm:$0xff] %v9773_v19 }
 0x343   : > { %12966 = vst [vmem:[#allocation5_spill] sm:$0xff] %v9779_v37 }
 0x346   : > { %v2306_v53 = vpop.f32.mrf.mxu1 }
 0x347   : > { %v7620_v4 = vpop.eup %7619  ;;  %v9746_v13 = vadd.f32 %v2306_v53, %v2194_v47 }
 0x348   : > { %2792 = vrot.lane.b32.xlu0 %v7620_v4, %s7886_s11  ;;  %v9784_v50 = vpop.permute.xlu1 %2638 }
 0x349   : > { %12958 = vst [vmem:[#allocation19_spill] sm:$0xff] %v9746_v13  ;;  %7621 = vtanh.f32 %v9746_v13 }
 0x34a   : > { %12968 = vst [vmem:[#allocation11_spill] sm:$0xff] %v9784_v50 }
 0x34e   : > { %v2309_v55 = vpop.f32.mrf.mxu1 }
 0x34f   : > { %v7622_v32 = vpop.eup %7621  ;;  %v9755_v63 = vadd.f32 %v2309_v55, %v2197_v18  ;;  %v2206_v18 = vadd.f32 %v9497_v51, %v2205_v41  ;;  %v9782_v55 = vpop.permute.xlu2 %2634 }
 0x350   : > { %2794 = vrot.lane.b32.xlu1 %v7622_v32, %s7886_s11  ;;  %12967 = vst [vmem:[#allocation9_spill] sm:$0xff] %v9782_v55  ;;  %v2208_v32 = vpop.f32.mrf.mxu0 }
 0x351   : > { %12960 = vst [vmem:[#allocation28_spill] sm:$0xff] %v9755_v63  ;;  %7623 = vtanh.f32 %v9755_v63 }
 0x356   : > { %v2312_v23 = vpop.f32.mrf.mxu1 }
 0x357   : > { %v7624_v22 = vpop.eup %7623  ;;  %v9764_v61 = vadd.f32 %v2312_v23, %v2200_v54  ;;  %v9794_v46 = vpop.permute.xlu2 %2640 }
 0x358   : > { %2796 = vrot.lane.b32.xlu2 %v7624_v22, %s7886_s11  ;;  %12971 = vst [vmem:[#allocation15_spill] sm:$0xff] %v9794_v46  ;;  %v2211_v50 = vpop.f32.mrf.mxu0 }
 0x359   : > { %12962 = vst [vmem:[#allocation45_spill] sm:$0xff] %v9764_v61  ;;  %7625 = vtanh.f32 %v9764_v61 }
 0x35e   : > { %v2315_v47 = vpop.f32.mrf.mxu1 }
 0x35f   : > { %v7626_v53 = vpop.eup %7625  ;;  %v9775_v4 = vadd.f32 %v2315_v47, %v2203_v40  ;;  %v2330_v40 = vmul.f32 0.5, %v9505_v44  ;;  %v2209_v47 = vadd.f32 %v9497_v51, %v2208_v32  ;;  %v2333_v32 = vmul.f32 0.5, %v9541_v27 }
 0x360   : > { %2798 = vrot.lane.b32.xlu0 %v7626_v53, %s7886_s11  ;;  %v9792_v53 = vpop.permute.xlu0 %2636  ;;  %v2212_v44 = vadd.f32 %v9497_v51, %v2211_v50  ;;  %v2214_v27 = vpop.f32.mrf.mxu0  ;;  %v2334_v50 = vmul.f32 0.5, %v9552_v3 }
 0x361   : > { %12965 = vst [vmem:[#allocation3_spill] sm:$0xff] %v9775_v4  ;;  %7627 = vtanh.f32 %v9775_v4 }
 0x362   : > { %12970 = vst [vmem:[#allocation31_spill] sm:$0xff] %v9792_v53 }
 0x366   : > { %v2318_v54 = vpop.f32.mrf.mxu1 }
 0x367   : > { %v7628_v23 = vpop.eup %7627  ;;  %v9786_v22 = vadd.f32 %v2318_v54, %v2206_v18  ;;  %v9799_v18 = vpop.permute.xlu1 %2644  ;;  %v2331_v54 = vmul.f32 0.5, %v9515_v58  ;;  %v2332_v58 = vmul.f32 0.5, %v9528_v34 }
 0x368   : > { %2800 = vrot.lane.b32.xlu1 %v7628_v23, %s7886_s11  ;;  %12973 = vst [vmem:[#allocation21_spill] sm:$0xff] %v9799_v18  ;;  %v9805_v46 = vpop.permute.xlu0 %2642 }
 0x369   : > { %12969 = vst [vmem:[#allocation42_spill] sm:$0xff] %v9786_v22  ;;  %7629 = vtanh.f32 %v9786_v22 }
 0x36a   : > { %7631 = vtanh.f32 %v2330_v40  ;;  %12974 = vst [vmem:[#allocation37_spill] sm:$0xff] %v9805_v46 }
 0x36e   : > { %v2321_v41 = vpop.f32.mrf.mxu1 }
 0x36f   : > { %v7630_v19 = vpop.eup %7629  ;;  %v9796_v37 = vadd.f32 %v2321_v41, %v2209_v47  ;;  %v2747_v18 = vpop.permute.xlu1 %2746 }
 0x370   : > { %2802 = vrot.lane.b32.xlu2 %v7630_v19, %s7886_s11  ;;  %v7632_v23 = vpop.eup %7631  ;;  %v9810_v19 = vpop.permute.xlu2 %2646 }
 0x371   : > { %12972 = vst [vmem:[#allocation24_spill] sm:$0xff] %v9796_v37  ;;  %7633 = vtanh.f32 %v9796_v37  ;;  %v2394_v41 = vmul.f32 0.5, %v7632_v23  ;;  %v9824_v3 = vpop.permute.xlu0 %2648 }
 0x372   : > { %7635 = vtanh.f32 %v2331_v54  ;;  %12976 = vst [vmem:[#allocation41_spill] sm:$0xff] %v9810_v19  ;;  %v2336_v54 = vmul.f32 0.5, %v9574_v60 }
 0x373   : > { %7637 = vtanh.f32 %v2333_v32  ;;  %v9815_v56 = vadd.f32 0.5, %v2394_v41  ;;  %12978 = vst [vmem:[#allocation30_spill] sm:$0xff] %v9824_v3 }
 0x375   : > { %v2842_v23 = vmul.f32 %v2747_v18, %v9815_v56 }
 0x376   : > { %v2324_v53 = vpop.f32.mrf.mxu1 }
 0x377   : > { %v7634_v40 = vpop.eup %7633  ;;  %v9807_v47 = vadd.f32 %v2324_v53, %v2212_v44  ;;  %v2215_v53 = vadd.f32 %v9497_v51, %v2214_v27  ;;  %v2335_v51 = vmul.f32 0.5, %v9563_v57 }
 0x378   : > { %2804 = vrot.lane.b32.xlu0 %v7634_v40, %s7886_s11  ;;  %v7636_v44 = vpop.eup %7635  ;;  %v2749_v27 = vpop.permute.xlu2 %2748 }
 0x379   : > { %12975 = vst [vmem:[#allocation14_spill] sm:$0xff] %v9807_v47  ;;  %7639 = vtanh.f32 %v9807_v47  ;;  %v7638_v32 = vpop.eup %7637  ;;  %v2395_v34 = vmul.f32 0.5, %v7636_v44  ;;  %v2339_v44 = vmul.f32 0.5, %v9607_v35 }
 0x37a   : > { %7641 = vtanh.f32 %v2332_v58  ;;  %v2397_v41 = vmul.f32 0.5, %v7638_v32  ;;  %v2337_v58 = vmul.f32 0.5, %v9585_v12 }
 0x37b   : > { %7643 = vtanh.f32 %v2334_v50  ;;  %v9829_v50 = vadd.f32 0.5, %v2395_v34 }
 0x37c   : > { %7645 = vtanh.f32 %v2336_v54  ;;  %v2753_v54 = vpop.permute.xlu1 %2752 }
 0x37d   : > { %v2843_v32 = vmul.f32 %v2749_v27, %v9829_v50  ;;  %v2751_v27 = vpop.permute.xlu0 %2750 }
 0x37e   : > { %v2327_v40 = vpop.f32.mrf.mxu1 }
 0x37f   : > { %v7640_v46 = vpop.eup %7639  ;;  %v9820_v19 = vadd.f32 %v2327_v40, %v2215_v53 }
 0x380   : > { %2806 = vrot.lane.b32.xlu1 %v7640_v46, %s7886_s11  ;;  %2906 = vrot.lane.b32.xlu0 %v2842_v23, %s7885_s10  ;;  %v7642_v18 = vpop.eup %7641  ;;  %v9832_v46 = vadd.f32 0.5, %v2397_v41  ;;  %v2338_v41 = vmul.f32 0.5, %v9596_v8  ;;  %v2755_v35 = vpop.permute.xlu2 %2754 }
 0x381   : > { %12977 = vst [vmem:[#allocation18_spill] sm:$0xff] %v9820_v19  ;;  %7647 = vtanh.f32 %v9820_v19  ;;  %v7644_v53 = vpop.eup %7643  ;;  %v2396_v60 = vmul.f32 0.5, %v7642_v18  ;;  %v2342_v18 = vmul.f32 0.5, %v9637_v15 }
 0x382   : > { %12979 = vst [vmem:[#allocation48_spill] sm:$0xff] %v9832_v46  ;;  %v7646_v23 = vpop.eup %7645  ;;  %7649 = vtanh.f32 %v2335_v51  ;;  %v2845_v57 = vmul.f32 %v2753_v54, %v9832_v46  ;;  %v2398_v12 = vmul.f32 0.5, %v7644_v53  ;;  %v2340_v51 = vmul.f32 0.5, %v9617_v21 }
 0x383   : > { %7651 = vtanh.f32 %v2337_v58  ;;  %v2400_v34 = vmul.f32 0.5, %v7646_v23  ;;  %v9841_v58 = vadd.f32 0.5, %v2396_v60 }
 0x384   : > { %7653 = vtanh.f32 %v2339_v44  ;;  %v9843_v54 = vadd.f32 0.5, %v2398_v12  ;;  %v2759_v44 = vpop.permute.xlu1 %2758 }
 0x385   : > { %7655 = vtanh.f32 %v2338_v41  ;;  %v2343_v41 = vmul.f32 0.5, %v9647_v17  ;;  %v2757_v15 = vpop.permute.xlu0 %2756 }
 0x386   : > { %7657 = vtanh.f32 %v2340_v51 }
 0x387   : > { %v7648_v40 = vpop.eup %7647  ;;  %7659 = vtanh.f32 %v2342_v18 }
 0x388   : > { %2808 = vrot.lane.b32.xlu2 %v7648_v40, %s7886_s11  ;;  %2908 = vrot.lane.b32.xlu1 %v2843_v32, %s7885_s10  ;;  %v7650_v3 = vpop.eup %7649  ;;  %v9846_v40 = vadd.f32 0.5, %v2400_v34  ;;  %v2844_v32 = vmul.f32 %v2751_v27, %v9841_v58  ;;  %v2341_v34 = vmul.f32 0.5, %v9627_v30 }
 0x389   : > { %2912 = vrot.lane.b32.xlu0 %v2845_v57, %s7885_s10  ;;  %v7652_v53 = vpop.eup %7651  ;;  %v2846_v57 = vmul.f32 %v2755_v35, %v9843_v54  ;;  %v2399_v21 = vmul.f32 0.5, %v7650_v3  ;;  %v2761_v35 = vpop.permute.xlu2 %2760  ;;  %v2345_v3 = vmul.f32 0.5, %v9667_v33 }
 0x38a   : > { %v7654_v23 = vpop.eup %7653  ;;  %v2848_v8 = vmul.f32 %v2759_v44, %v9846_v40  ;;  %v2401_v60 = vmul.f32 0.5, %v7652_v53  ;;  %7661 = vtanh.f32 %v2341_v34  ;;  %v2346_v34 = vmul.f32 0.5, %v9674_v5 }
 0x38b   : > { %v2403_v12 = vmul.f32 0.5, %v7654_v23  ;;  %v7656_v27 = vpop.eup %7655  ;;  %v9856_v51 = vadd.f32 0.5, %v2399_v21  ;;  %7663 = vtanh.f32 %v2343_v41  ;;  %v2348_v41 = vmul.f32 0.5, %v9686_v36 }
 0x38c   : > { %v9858_v44 = vadd.f32 0.5, %v2401_v60  ;;  %v2765_v18 = vpop.permute.xlu1 %2764  ;;  %v7658_v53 = vpop.eup %7657  ;;  %7665 = vtanh.f32 %v2345_v3  ;;  %v2402_v17 = vmul.f32 0.5, %v7656_v27 }
 0x38d   : > { %v7660_v23 = vpop.eup %7659  ;;  %v2404_v21 = vmul.f32 0.5, %v7658_v53  ;;  %v2763_v33 = vpop.permute.xlu0 %2762 }
 0x38e   : > { %v2406_v60 = vmul.f32 0.5, %v7660_v23  ;;  %v9874_v3 = vadd.f32 0.5, %v2402_v17 }
 0x390   : > { %2910 = vrot.lane.b32.xlu2 %v2844_v32, %s7885_s10  ;;  %2914 = vrot.lane.b32.xlu1 %v2846_v57, %s7885_s10  ;;  %v9861_v32 = vadd.f32 0.5, %v2403_v12  ;;  %v2847_v57 = vmul.f32 %v2757_v15, %v9856_v51  ;;  %v2344_v12 = vmul.f32 0.5, %v9657_v6  ;;  %v7662_v15 = vpop.eup %7661 }
 0x391   : > { %2918 = vrot.lane.b32.xlu0 %v2848_v8, %s7885_s10  ;;  %v2849_v8 = vmul.f32 %v2761_v35, %v9858_v44  ;;  %v2767_v35 = vpop.permute.xlu2 %2766  ;;  %v7664_v53 = vpop.eup %7663  ;;  %v2405_v36 = vmul.f32 0.5, %v7662_v15 }
 0x392   : > { %v2851_v30 = vmul.f32 %v2765_v18, %v9861_v32  ;;  %v9872_v18 = vadd.f32 0.5, %v2404_v21  ;;  %v7666_v23 = vpop.eup %7665  ;;  %7667 = vtanh.f32 %v2344_v12  ;;  %v2407_v5 = vmul.f32 0.5, %v7664_v53 }
 0x393   : > { %7669 = vtanh.f32 %v2346_v34  ;;  %v2409_v17 = vmul.f32 0.5, %v7666_v23  ;;  %v2347_v21 = vmul.f32 0.5, %v9679_v26  ;;  %v2351_v34 = vmul.f32 0.5, %v9715_v42 }
 0x394   : > { %v2771_v27 = vpop.permute.xlu1 %2770  ;;  %7671 = vtanh.f32 %v2348_v41  ;;  %v9889_v41 = vadd.f32 0.5, %v2405_v36  ;;  %v2350_v36 = vmul.f32 0.5, %v9704_v25  ;;  %v2354_v25 = vmul.f32 0.5, %v9746_v13 }
 0x395   : > { %7673 = vtanh.f32 %v2347_v21 }
 0x398   : > { %2916 = vrot.lane.b32.xlu2 %v2847_v57, %s7885_s10  ;;  %2920 = vrot.lane.b32.xlu1 %v2849_v8, %s7885_s10  ;;  %v9876_v57 = vadd.f32 0.5, %v2406_v60  ;;  %v2850_v8 = vmul.f32 %v2763_v33, %v9874_v3  ;;  %v2349_v60 = vmul.f32 0.5, %v9695_v29  ;;  %v7668_v33 = vpop.eup %7667 }
 0x399   : > { %2924 = vrot.lane.b32.xlu0 %v2851_v30, %s7885_s10  ;;  %v2852_v30 = vmul.f32 %v2767_v35, %v9872_v18  ;;  %v2773_v12 = vpop.permute.xlu2 %2772  ;;  %v2769_v35 = vpop.permute.xlu0 %2768  ;;  %v2408_v42 = vmul.f32 0.5, %v7668_v33 }
 0x39a   : > { %v2854_v6 = vmul.f32 %v2771_v27, %v9876_v57  ;;  %v9887_v27 = vadd.f32 0.5, %v2407_v5  ;;  %v7670_v53 = vpop.eup %7669  ;;  %7675 = vtanh.f32 %v2349_v60 }
 0x39b   : > { %v7672_v23 = vpop.eup %7671  ;;  %7677 = vtanh.f32 %v2351_v34  ;;  %v2410_v29 = vmul.f32 0.5, %v7670_v53 }
 0x39c   : > { %v2777_v15 = vpop.permute.xlu1 %2776  ;;  %v2412_v5 = vmul.f32 0.5, %v7672_v23  ;;  %7679 = vtanh.f32 %v2350_v36  ;;  %v2355_v36 = vmul.f32 0.5, %v9755_v63 }
 0x39d   : > { %v9901_v60 = vadd.f32 0.5, %v2410_v29 }
 0x39e   : > { %v9905_v53 = vadd.f32 0.5, %v2412_v5  ;;  %v2353_v5 = vmul.f32 0.5, %v9737_v59 }
 0x3a0   : > { %2922 = vrot.lane.b32.xlu2 %v2850_v8, %s7885_s10  ;;  %2926 = vrot.lane.b32.xlu1 %v2852_v30, %s7885_s10  ;;  %v9891_v8 = vadd.f32 0.5, %v2409_v17  ;;  %v2853_v30 = vmul.f32 %v2769_v35, %v9889_v41  ;;  %v2352_v17 = vmul.f32 0.5, %v9726_v1  ;;  %v7674_v35 = vpop.eup %7673  ;;  %12981 = vst [vmem:[#allocation50_spill] sm:$0xff] %v9905_v53 }
 0x3a1   : > { %2930 = vrot.lane.b32.xlu0 %v2854_v6, %s7885_s10  ;;  %v2855_v6 = vmul.f32 %v2773_v12, %v9887_v27  ;;  %v2779_v21 = vpop.permute.xlu2 %2778  ;;  %v2775_v12 = vpop.permute.xlu0 %2774  ;;  %v2411_v29 = vmul.f32 0.5, %v7674_v35 }
 0x3a2   : > { %12980 = vst [vmem:[#allocation49_spill] sm:$0xff] %v9891_v8  ;;  %v2857_v26 = vmul.f32 %v2777_v15, %v9891_v8  ;;  %v9903_v15 = vadd.f32 0.5, %v2408_v42  ;;  %v7676_v33 = vpop.eup %7675  ;;  %v2858_v23 = vmul.f32 %v2779_v21, %v9901_v60  ;;  %7681 = vtanh.f32 %v2352_v17 }
 0x3a3   : > { %v2413_v1 = vmul.f32 0.5, %v7676_v33  ;;  %7683 = vtanh.f32 %v2354_v25  ;;  %v9918_v13 = vadd.f32 0.5, %v2411_v29 }
 0x3a4   : > { %v2783_v34 = vpop.permute.xlu1 %2782  ;;  %7685 = vtanh.f32 %v2353_v5 }
 0x3a5   : > { %12983 = vst [vmem:[#allocation52_spill] sm:$0xff] %v9918_v13  ;;  %7687 = vtanh.f32 %v2355_v36 }
 0x3a8   : > { %2928 = vrot.lane.b32.xlu2 %v2853_v30, %s7885_s10  ;;  %2932 = vrot.lane.b32.xlu1 %v2855_v6, %s7885_s10  ;;  %v7678_v30 = vpop.eup %7677  ;;  %v2860_v6 = vmul.f32 %v2783_v34, %v9905_v53  ;;  %v9916_v34 = vadd.f32 0.5, %v2413_v1  ;;  %v2358_v1 = vmul.f32 0.5, %v9786_v22 }
 0x3a9   : > { %2936 = vrot.lane.b32.xlu0 %v2857_v26, %s7885_s10  ;;  %v2856_v26 = vmul.f32 %v2775_v12, %v9903_v15  ;;  %v2415_v42 = vmul.f32 0.5, %v7678_v30  ;;  %v2785_v21 = vpop.permute.xlu2 %2784  ;;  %v2781_v12 = vpop.permute.xlu0 %2780 }
 0x3aa   : > { %v7680_v17 = vpop.eup %7679  ;;  %12982 = vst [vmem:[#allocation51_spill] sm:$0xff] %v9916_v34  ;;  %v2861_v30 = vmul.f32 %v2785_v21, %v9916_v34  ;;  %7689 = vtanh.f32 %v2358_v1 }
 0x3ab   : > { %v7682_v33 = vpop.eup %7681  ;;  %v2414_v63 = vmul.f32 0.5, %v7680_v17 }
 0x3ac   : > { %v2789_v35 = vpop.permute.xlu1 %2788  ;;  %v2416_v59 = vmul.f32 0.5, %v7682_v33  ;;  %v7684_v25 = vpop.eup %7683 }
 0x3ad   : > { %v7686_v5 = vpop.eup %7685 }
 0x3ae   : > { %v9929_v21 = vadd.f32 0.5, %v2416_v59  ;;  %v7688_v36 = vpop.eup %7687 }
 0x3b0   : > { %2934 = vrot.lane.b32.xlu2 %v2856_v26, %s7885_s10  ;;  %2938 = vrot.lane.b32.xlu1 %v2858_v23, %s7885_s10  ;;  %v9920_v26 = vadd.f32 0.5, %v2415_v42  ;;  %v2859_v23 = vmul.f32 %v2781_v12, %v9918_v13  ;;  %12985 = vst [vmem:[#allocation54_spill] sm:$0xff] %v9929_v21  ;;  %v9931_v12 = vadd.f32 0.5, %v2414_v63  ;;  %v7690_v1 = vpop.eup %7689 }
 0x3b1   : > { %2942 = vrot.lane.b32.xlu0 %v2860_v6, %s7885_s10  ;;  %v2791_v29 = vpop.permute.xlu2 %2790  ;;  %v2787_v42 = vpop.permute.xlu0 %2786 }
 0x3b2   : > { %12984 = vst [vmem:[#allocation53_spill] sm:$0xff] %v9920_v26  ;;  %v2863_v6 = vmul.f32 %v2789_v35, %v9920_v26  ;;  %v2418_v35 = vmul.f32 0.5, %v7684_v25  ;;  %v2864_v17 = vmul.f32 %v2791_v29, %v9929_v21  ;;  %v2862_v33 = vmul.f32 %v2787_v42, %v9931_v12  ;;  %v2541_v21 = vld [vmem:[%s9974_s15 + $0x98] sm:$0xff] }
 0x3b3   : > { %12986 = vst [vmem:[#allocation55_spill] sm:$0xff] %v9931_v12  ;;  %v2538_v12 = vld [vmem:[%s9974_s15 + $0x80] sm:$0xff] }
 0x3b4   : > { %v9938_v22 = vadd.f32 0.5, %v2418_v35  ;;  %v2357_v35 = vmul.f32 0.5, %v9775_v4  ;;  %v2536_v4 = vld [vmem:[%s9974_s15 + $0x70] sm:$0xff] }
 0x3b6   : > { %12987 = vst [vmem:[#allocation56_spill] sm:$0xff] %v9938_v22 }
 0x3b8   : > { %2940 = vrot.lane.b32.xlu2 %v2859_v23, %s7885_s10  ;;  %2944 = vrot.lane.b32.xlu1 %v2861_v30, %s7885_s10  ;;  %v2356_v30 = vmul.f32 0.5, %v9764_v61  ;;  %v2419_v23 = vmul.f32 0.5, %v7688_v36 }
 0x3b9   : > { %2948 = vrot.lane.b32.xlu0 %v2863_v6, %s7885_s10  ;;  %v2417_v6 = vmul.f32 0.5, %v7686_v5  ;;  %v2797_v63 = vpop.permute.xlu2 %2796 }
 0x3ba   : > { %v2793_v13 = vpop.permute.xlu0 %2792  ;;  %7691 = vtanh.f32 %v2356_v30  ;;  %v9941_v29 = vadd.f32 0.5, %v2419_v23 }
 0x3bb   : > { %v9943_v42 = vadd.f32 0.5, %v2417_v6  ;;  %7693 = vtanh.f32 %v2357_v35 }
 0x3bc   : > { %12988 = vst [vmem:[#allocation57_spill] sm:$0xff] %v9941_v29  ;;  %v2867_v5 = vmul.f32 %v2797_v63, %v9941_v29 }
 0x3bd   : > { %12989 = vst [vmem:[#allocation58_spill] sm:$0xff] %v9943_v42  ;;  %v2865_v36 = vmul.f32 %v2793_v13, %v9943_v42  ;;  %v2535_v42 = vld [vmem:[%s9974_s15 + $0x68] sm:$0xff] }
 0x3c0   : > { %2946 = vrot.lane.b32.xlu2 %v2862_v33, %s7885_s10  ;;  %2950 = vrot.lane.b32.xlu1 %v2864_v17, %s7885_s10  ;;  %v2422_v17 = vmul.f32 0.5, %v7690_v1  ;;  %v7692_v33 = vpop.eup %7691 }
 0x3c1   : > { %v2420_v6 = vmul.f32 0.5, %v7692_v33  ;;  %v7694_v63 = vpop.eup %7693 }
 0x3c2   : > { %v2795_v59 = vpop.permute.xlu1 %2794  ;;  %v9951_v23 = vadd.f32 0.5, %v2422_v17  ;;  %v2421_v1 = vmul.f32 0.5, %v7694_v63 }
 0x3c3   : > { %v2866_v25 = vmul.f32 %v2795_v59, %v9938_v22  ;;  %v9956_v13 = vadd.f32 0.5, %v2420_v6  ;;  %v2544_v22 = vld [vmem:[%s9974_s15 + $0xb0] sm:$0xff] }
 0x3c4   : > { %12990 = vst [vmem:[#allocation59_spill] sm:$0xff] %v9951_v23  ;;  %v9961_v35 = vadd.f32 0.5, %v2421_v1 }
 0x3c5   : > { %2954 = vrot.lane.b32.xlu0 %v2866_v25, %s7885_s10  ;;  %v2361_v25 = vmul.f32 0.5, %v9820_v19  ;;  %12991 = vst [vmem:[#allocation60_spill] sm:$0xff] %v9956_v13 }
 0x3c6   : > { %12992 = vst [vmem:[#allocation61_spill] sm:$0xff] %v9961_v35 }
 0x3c7   : > { %7695 = vtanh.f32 %v2361_v25 }
 0x3c8   : > { %2952 = vrot.lane.b32.xlu2 %v2865_v36, %s7885_s10  ;;  %2956 = vrot.lane.b32.xlu1 %v2867_v5, %s7885_s10  ;;  %v2359_v5 = vmul.f32 0.5, %v9796_v37  ;;  %v2527_v37 = vld [vmem:[%s9974_s15 + $0x28] sm:$0xff] }
 0x3ca   : > { %v2803_v30 = vpop.permute.xlu2 %2802  ;;  %7697 = vtanh.f32 %v2359_v5 }
 0x3cb   : > { %v2870_v59 = vmul.f32 %v2803_v30, %v9951_v23 }
 0x3cd   : > { %v7696_v17 = vpop.eup %7695 }
 0x3ce   : > { %v2425_v6 = vmul.f32 0.5, %v7696_v17 }
 0x3d0   : > { %2962 = vrot.lane.b32.xlu1 %v2870_v59, %s7885_s10  ;;  %v2360_v59 = vmul.f32 0.5, %v9807_v47  ;;  %v7698_v25 = vpop.eup %7697 }
 0x3d1   : > { %v2423_v1 = vmul.f32 0.5, %v7698_v25 }
 0x3d2   : > { %v2799_v61 = vpop.permute.xlu0 %2798  ;;  %7699 = vtanh.f32 %v2360_v59 }
 0x3d3   : > { %v2868_v36 = vmul.f32 %v2799_v61, %v9956_v13  ;;  %v9966_v61 = vadd.f32 0.5, %v2425_v6  ;;  %v9976_v5 = vadd.f32 0.5, %v2423_v1  ;;  %v2522_v1 = vld [vmem:[%s9974_s15] sm:$0xff]  ;;  %v2532_v13 = vld [vmem:[%s9974_s15 + $0x50] sm:$0xff] }
 0x3d5   : > { %2958 = vrot.lane.b32.xlu2 %v2868_v36, %s7885_s10  ;;  %12993 = vst [vmem:[#allocation62_spill] sm:$0xff] %v9966_v61 }
 0x3d6   : > { %12994 = vst [vmem:[#allocation63_spill] sm:$0xff] %v9976_v5 }
 0x3d8   : > { %v7700_v17 = vpop.eup %7699 }
 0x3d9   : > { %v2424_v59 = vmul.f32 0.5, %v7700_v17  ;;  %v2525_v17 = vld [vmem:[%s9974_s15 + $0x18] sm:$0xff] }
 0x3da   : > { %v2801_v33 = vpop.permute.xlu1 %2800 }
 0x3db   : > { %v2869_v30 = vmul.f32 %v2801_v33, %v9961_v35  ;;  %v2543_v35 = vld [vmem:[%s9974_s15 + $0xa8] sm:$0xff] }
 0x3dd   : > { %2960 = vrot.lane.b32.xlu0 %v2869_v30, %s7885_s10  ;;  %v2524_v30 = vld [vmem:[%s9974_s15 + $0x10] sm:$0xff] }
 0x3e2   : > { %v2809_v36 = vpop.permute.xlu2 %2808 }
 0x3e3   : > { %v2873_v63 = vmul.f32 %v2809_v36, %v9966_v61  ;;  %v9984_v36 = vadd.f32 0.5, %v2424_v59  ;;  %v2523_v59 = vld [vmem:[%s9974_s15 + $0x8] sm:$0xff] }
 0x3e5   : > { %2968 = vrot.lane.b32.xlu1 %v2873_v63, %s7885_s10  ;;  %12995 = vst [vmem:[#allocation64_spill] sm:$0xff] %v9984_v36 }
 0x3ea   : > { %v2805_v33 = vpop.permute.xlu0 %2804  ;;  %v9982_v25 = vpop.permute.xlu2 %2910 }
 0x3eb   : > { %v2871_v6 = vmul.f32 %v2805_v33, %v9976_v5  ;;  %v2529_v5 = vld [vmem:[%s9974_s15 + $0x38] sm:$0xff] }
 0x3ed   : > { %2964 = vrot.lane.b32.xlu2 %v2871_v6, %s7885_s10  ;;  %3070 = vrot.lane.b32.xlu1 %v2524_v30, %s7884_s24  ;;  %v2530_v30 = vld [vmem:[%s9974_s15 + $0x40] sm:$0xff] }
 0x3f2   : > { %v2807_v63 = vpop.permute.xlu1 %2806  ;;  %v9996_v6 = vpop.permute.xlu2 %2916 }
 0x3f3   : > { %v2872_v19 = vmul.f32 %v2807_v63, %v9984_v36 }
 0x3f5   : > { %3066 = vrot.lane.b32.xlu2 %v2522_v1, %s7884_s24  ;;  %3076 = vrot.lane.b32.xlu1 %v2527_v37, %s7884_s24  ;;  %v2528_v37 = vld [vmem:[%s9974_s15 + $0x30] sm:$0xff]  ;;  %v2526_v1 = vld [vmem:[%s9974_s15 + $0x20] sm:$0xff] }
 0x3f6   : > { %2966 = vrot.lane.b32.xlu0 %v2872_v19, %s7885_s10  ;;  %v2533_v19 = vld [vmem:[%s9974_s15 + $0x58] sm:$0xff]  ;;  %s7890_s10 = smov 48  }
 0x3fa   : > { %v9992_v33 = vpop.permute.xlu1 %2908  ;;  %v10007_v47 = vpop.permute.xlu2 %2922 }
 0x3fd   : > { %3072 = vrot.lane.b32.xlu2 %v2525_v17, %s7884_s24  ;;  %3082 = vrot.lane.b32.xlu1 %v2530_v30, %s7884_s24  ;;  %v10012_v17 = vpop.permute.xlu0 %2906 }
 0x3fe   : > { %3068 = vrot.lane.b32.xlu0 %v2523_v59, %s7884_s24  ;;  %12996 = vst [vmem:[#allocation65_spill] sm:$0xff] %v10012_v17  ;;  %v2531_v59 = vld [vmem:[%s9974_s15 + $0x48] sm:$0xff] }
 0x402   : > { %v10002_v63 = vpop.permute.xlu1 %2914 }
 0x405   : > { %3078 = vrot.lane.b32.xlu2 %v2528_v37, %s7884_s24  ;;  %3088 = vrot.lane.b32.xlu1 %v2533_v19, %s7884_s24  ;;  %v10022_v37 = vpop.permute.xlu2 %2928  ;;  %v2534_v19 = vld [vmem:[%s9974_s15 + $0x60] sm:$0xff]  ;;  %v10029_v23 = vpop.permute.xlu0 %2912 }
 0x406   : > { %3074 = vrot.lane.b32.xlu0 %v2526_v1, %s7884_s24  ;;  %v2539_v1 = vld [vmem:[%s9974_s15 + $0x88] sm:$0xff]  ;;  %12997 = vst [vmem:[#allocation66_spill] sm:$0xff] %v10029_v23 }
 0x40a   : > { %v10014_v30 = vpop.permute.xlu1 %2920 }
 0x40d   : > { %3084 = vrot.lane.b32.xlu2 %v2531_v59, %s7884_s24  ;;  %3094 = vrot.lane.b32.xlu1 %v2536_v4, %s7884_s24  ;;  %v10034_v4 = vpop.permute.xlu2 %2934  ;;  %v2542_v59 = vld [vmem:[%s9974_s15 + $0xa0] sm:$0xff]  ;;  %v10043_v29 = vpop.permute.xlu0 %2918 }
 0x40e   : > { %3080 = vrot.lane.b32.xlu0 %v2529_v5, %s7884_s24  ;;  %12998 = vst [vmem:[#allocation67_spill] sm:$0xff] %v10034_v4  ;;  %v2537_v5 = vld [vmem:[%s9974_s15 + $0x78] sm:$0xff] }
 0x412   : > { %v10026_v61 = vpop.permute.xlu1 %2926 }
 0x415   : > { %3090 = vrot.lane.b32.xlu2 %v2534_v19, %s7884_s24  ;;  %3100 = vrot.lane.b32.xlu1 %v2539_v1, %s7884_s24  ;;  %v2540_v19 = vld [vmem:[%s9974_s15 + $0x90] sm:$0xff]  ;;  %v10048_v1 = vpop.permute.xlu2 %2940 }
 0x416   : > { %3086 = vrot.lane.b32.xlu0 %v2532_v13, %s7884_s24  ;;  %v2545_v13 = vld [vmem:[%s9974_s15 + $0xb8] sm:$0xff]  ;;  %12999 = vst [vmem:[#allocation68_spill] sm:$0xff] %v10048_v1  ;;  %v2551_v1 = vld [vmem:[%s9974_s15 + $0xe8] sm:$0xff] }
 0x41a   : > { %v10039_v36 = vpop.permute.xlu1 %2932 }
 0x41d   : > { %3096 = vrot.lane.b32.xlu2 %v2537_v5, %s7884_s24  ;;  %3106 = vrot.lane.b32.xlu1 %v2542_v59, %s7884_s24  ;;  %v10056_v59 = vpop.permute.xlu0 %2924  ;;  %v10061_v55 = vpop.permute.xlu2 %2946 }
 0x41e   : > { %3092 = vrot.lane.b32.xlu0 %v2535_v42, %s7884_s24  ;;  %v2548_v42 = vld [vmem:[%s9974_s15 + $0xd0] sm:$0xff]  ;;  %13000 = vst [vmem:[#allocation69_spill] sm:$0xff] %v10061_v55 }
 0x422   : > { %v10054_v5 = vpop.permute.xlu1 %2938 }
 0x425   : > { %3102 = vrot.lane.b32.xlu2 %v2540_v19, %s7884_s24  ;;  %3112 = vrot.lane.b32.xlu1 %v2545_v13, %s7884_s24  ;;  %v2546_v13 = vld [vmem:[%s9974_s15 + $0xc0] sm:$0xff] }
 0x426   : > { %3098 = vrot.lane.b32.xlu0 %v2538_v12, %s7884_s24  ;;  %v10068_v12 = vpop.permute.xlu0 %2930 }
 0x427   : > { %13002 = vst [vmem:[#allocation71_spill] sm:$0xff] %v10068_v12 }
 0x42a   : > { %v10066_v19 = vpop.permute.xlu1 %2944 }
 0x42b   : > { %13001 = vst [vmem:[#allocation70_spill] sm:$0xff] %v10066_v19 }
 0x42d   : > { %3108 = vrot.lane.b32.xlu2 %v2543_v35, %s7884_s24  ;;  %3118 = vrot.lane.b32.xlu1 %v2548_v42, %s7884_s24  ;;  %v10076_v35 = vpop.permute.xlu2 %2952  ;;  %v2549_v42 = vld [vmem:[%s9974_s15 + $0xd8] sm:$0xff] }
 0x42e   : > { %3104 = vrot.lane.b32.xlu0 %v2541_v21, %s7884_s24  ;;  %v2682_v21 = vmul.f32 %v9684_v0, %v9815_v56  ;;  %v10085_v34 = vpop.permute.xlu0 %2936  ;;  %v2685_v0 = vmul.f32 %v9693_v14, %v9832_v46  ;;  %v2688_v14 = vmul.f32 %v9707_v31, %v9846_v40  ;;  %v2553_v46 = vld [vmem:[%s9974_s15 + $0xf8] sm:$0xff]  ;;  %v2691_v31 = vmul.f32 %v9721_v10, %v9861_v32 }
 0x42f   : > { %13004 = vst [vmem:[#allocation73_spill] sm:$0xff] %v10085_v34 }
 0x430   : > { %v3002_v55 = vadd.f32 %v10012_v17, %v2682_v21  ;;  %v2550_v21 = vld [vmem:[%s9974_s15 + $0xe0] sm:$0xff] }
 0x432   : > { %v10082_v19 = vpop.permute.xlu1 %2950 }
 0x433   : > { %13003 = vst [vmem:[#allocation72_spill] sm:$0xff] %v10082_v19 }
 0x435   : > { %3114 = vrot.lane.b32.xlu2 %v2546_v13, %s7884_s24  ;;  %3124 = vrot.lane.b32.xlu1 %v2551_v1, %s7884_s24  ;;  %v2552_v1 = vld [vmem:[%s9974_s15 + $0xf0] sm:$0xff]  ;;  %v3005_v13 = vadd.f32 %v10029_v23, %v2685_v0  ;;  %v3008_v23 = vadd.f32 %v10043_v29, %v2688_v14 }
 0x436   : > { %3110 = vrot.lane.b32.xlu0 %v2544_v22, %s7884_s24  ;;  %v10090_v22 = vpop.permute.xlu2 %2958 }
 0x437   : > { %13005 = vst [vmem:[#allocation74_spill] sm:$0xff] %v10090_v22 }
 0x43a   : > { %v10097_v17 = vpop.permute.xlu1 %2956 }
 0x43b   : > { %13006 = vst [vmem:[#allocation75_spill] sm:$0xff] %v10097_v17 }
 0x43d   : > { %3120 = vrot.lane.b32.xlu2 %v2549_v42, %s7884_s24  ;;  %3258 = vrot.lane.b32.xlu1 %v3002_v55, %s7882_s20  ;;  %v10101_v42 = vpop.permute.xlu0 %2942  ;;  %v2683_v55 = vmul.f32 %v9698_v20, %v9829_v50  ;;  %v2686_v20 = vmul.f32 %v9709_v48, %v9843_v54 }
 0x43e   : > { %3116 = vrot.lane.b32.xlu0 %v2547_v45, %s7884_s24  ;;  %13007 = vst [vmem:[#allocation76_spill] sm:$0xff] %v10101_v42 }
 0x43f   : > { %v3003_v0 = vadd.f32 %v9992_v33, %v2683_v55  ;;  %v2684_v55 = vmul.f32 %v9689_v49, %v9841_v58  ;;  %v3006_v14 = vadd.f32 %v10002_v63, %v2686_v20  ;;  %v2689_v49 = vmul.f32 %v9718_v24, %v9858_v44 }
 0x440   : > { %v2694_v20 = vmul.f32 %v9733_v7, %v9876_v57 }
 0x445   : > { %3126 = vrot.lane.b32.xlu2 %v2552_v1, %s7884_s24  ;;  %3264 = vrot.lane.b32.xlu1 %v3005_v13, %s7882_s20  ;;  %v10116_v1 = vpop.permute.xlu1 %2962 }
 0x446   : > { %3122 = vrot.lane.b32.xlu0 %v2550_v21, %s7884_s24  ;;  %v10120_v21 = vpop.permute.xlu0 %2948 }
 0x447   : > { %v10104_v45 = vpop.permute.xlu2 %2964  ;;  %13008 = vst [vmem:[#allocation77_spill] sm:$0xff] %v10120_v21 }
 0x44d   : > { %3260 = vrot.lane.b32.xlu2 %v3003_v0, %s7882_s20  ;;  %3270 = vrot.lane.b32.xlu1 %v3008_v23, %s7882_s20  ;;  %v3011_v23 = vadd.f32 %v10056_v59, %v2691_v31  ;;  %v2687_v31 = vmul.f32 %v9700_v38, %v9856_v51  ;;  %v2692_v38 = vmul.f32 %v9730_v16, %v9872_v18 }
 0x44e   : > { %3128 = vrot.lane.b32.xlu0 %v2553_v46, %s7884_s24  ;;  %v3004_v46 = vadd.f32 %v9982_v25, %v2684_v55  ;;  %v10138_v10 = vpop.permute.xlu0 %2954  ;;  %v3009_v55 = vadd.f32 %v10014_v30, %v2689_v49  ;;  %v2697_v49 = vmul.f32 %v9744_v2, %v9891_v8  ;;  %v13019_v8 = vld [vmem:[#allocation70_spill] sm:$0xff] }
 0x44f   : > { %v10118_v13 = vpop.permute.xlu2 %3066  ;;  %13009 = vst [vmem:[#allocation78_spill] sm:$0xff] %v10138_v10 }
 0x455   : > { %3266 = vrot.lane.b32.xlu2 %v3006_v14, %s7882_s20  ;;  %3276 = vrot.lane.b32.xlu1 %v3011_v23, %s7882_s20  ;;  %v3014_v14 = vadd.f32 %v10068_v12, %v2694_v20  ;;  %v3007_v23 = vadd.f32 %v9996_v6, %v2687_v31  ;;  %v2690_v20 = vmul.f32 %v9712_v52, %v9874_v3  ;;  %v13020_v12 = vld [vmem:[#allocation68_spill] sm:$0xff] }
 0x456   : > { %3262 = vrot.lane.b32.xlu0 %v3004_v46, %s7882_s20  ;;  %v10156_v7 = vpop.permute.xlu0 %2960  ;;  %v3012_v31 = vadd.f32 %v10026_v61, %v2692_v38  ;;  %v2695_v52 = vmul.f32 %v9742_v9, %v9887_v27  ;;  %v2700_v38 = vmul.f32 %v9758_v62, %v9905_v53  ;;  %v13015_v53 = vld [vmem:[#allocation56_spill] sm:$0xff] }
 0x457   : > { %v10134_v0 = vpop.permute.xlu2 %3072  ;;  %v10136_v48 = vpop.permute.xlu1 %2968  ;;  %13010 = vst [vmem:[#allocation79_spill] sm:$0xff] %v10156_v7 }
 0x45d   : > { %3272 = vrot.lane.b32.xlu2 %v3009_v55, %s7882_s20  ;;  %3282 = vrot.lane.b32.xlu1 %v3014_v14, %s7882_s20  ;;  %v3017_v55 = vadd.f32 %v10085_v34, %v2697_v49  ;;  %v3010_v14 = vadd.f32 %v10007_v47, %v2690_v20  ;;  %v2693_v49 = vmul.f32 %v9724_v11, %v9889_v41 }
 0x45e   : > { %3268 = vrot.lane.b32.xlu0 %v3007_v23, %s7882_s20  ;;  %v3015_v20 = vadd.f32 %v10039_v36, %v2695_v52  ;;  %v2698_v11 = vmul.f32 %v9753_v43, %v9901_v60  ;;  %v2703_v52 = vmul.f32 %v9770_v28, %v9920_v26  ;;  %v13013_v26 = vld [vmem:[#allocation51_spill] sm:$0xff] }
 0x45f   : > { %v10152_v46 = vpop.permute.xlu2 %3078  ;;  %v10154_v24 = vpop.permute.xlu1 %3070 }
 0x465   : > { %3278 = vrot.lane.b32.xlu2 %v3012_v31, %s7882_s20  ;;  %3288 = vrot.lane.b32.xlu1 %v3017_v55, %s7882_s20  ;;  %v3020_v31 = vadd.f32 %v10101_v42, %v2700_v38  ;;  %v3013_v55 = vadd.f32 %v10022_v37, %v2693_v49  ;;  %v2696_v38 = vmul.f32 %v9735_v39, %v9903_v15  ;;  %v13014_v42 = vld [vmem:[#allocation4_spill] sm:$0xff] }
 0x466   : > { %3274 = vrot.lane.b32.xlu0 %v3010_v14, %s7882_s20  ;;  %v3018_v49 = vadd.f32 %v10054_v5, %v2698_v11  ;;  %v2701_v39 = vmul.f32 %v13014_v42, %v13013_v26  ;;  %v13016_v11 = vld [vmem:[#allocation9_spill] sm:$0xff] }
 0x467   : > { %v10170_v23 = vpop.permute.xlu2 %3084  ;;  %v10172_v16 = vpop.permute.xlu1 %3076  ;;  %v2706_v34 = vmul.f32 %v13016_v11, %v13015_v53  ;;  %v13022_v53 = vld [vmem:[#allocation54_spill] sm:$0xff] }
 0x468   : > { %v10174_v2 = vpop.permute.xlu0 %2966 }
 0x469   : > { %13011 = vst [vmem:[#allocation80_spill] sm:$0xff] %v10174_v2 }
 0x46d   : > { %3284 = vrot.lane.b32.xlu2 %v3015_v20, %s7882_s20  ;;  %3294 = vrot.lane.b32.xlu1 %v3020_v31, %s7882_s20  ;;  %v3023_v20 = vadd.f32 %v10120_v21, %v2703_v52  ;;  %v3016_v31 = vadd.f32 %v10034_v4, %v2696_v38  ;;  %v13017_v52 = vld [vmem:[#allocation52_spill] sm:$0xff]  ;;  %v13018_v21 = vld [vmem:[#allocation25_spill] sm:$0xff] }
 0x46e   : > { %3280 = vrot.lane.b32.xlu0 %v3013_v55, %s7882_s20  ;;  %v2699_v38 = vmul.f32 %v13018_v21, %v13017_v52  ;;  %v13023_v4 = vld [vmem:[#allocation5_spill] sm:$0xff] }
 0x46f   : > { %v10188_v14 = vpop.permute.xlu2 %3090  ;;  %v10190_v9 = vpop.permute.xlu1 %3082  ;;  %v2704_v21 = vmul.f32 %v13023_v4, %v13022_v53  ;;  %v13024_v52 = vld [vmem:[#allocation61_spill] sm:$0xff]  ;;  %v13031_v53 = vld [vmem:[#allocation31_spill] sm:$0xff] }
 0x470   : > { %v3069_v62 = vpop.permute.xlu0 %3068 }
 0x475   : > { %3290 = vrot.lane.b32.xlu2 %v3018_v49, %s7882_s20  ;;  %3300 = vrot.lane.b32.xlu1 %v3023_v20, %s7882_s20  ;;  %v3021_v49 = vadd.f32 %v13019_v8, %v2701_v39  ;;  %v3026_v20 = vadd.f32 %v10138_v10, %v2706_v34  ;;  %v13025_v39 = vld [vmem:[#allocation15_spill] sm:$0xff] }
 0x476   : > { %3286 = vrot.lane.b32.xlu0 %v3016_v31, %s7882_s20  ;;  %v3019_v31 = vadd.f32 %v13020_v12, %v2699_v38  ;;  %v2709_v8 = vmul.f32 %v13025_v39, %v13024_v52  ;;  %v13026_v34 = vld [vmem:[#allocation55_spill] sm:$0xff]  ;;  %v13028_v12 = vld [vmem:[#allocation69_spill] sm:$0xff] }
 0x477   : > { %v10204_v55 = vpop.permute.xlu2 %3096  ;;  %v10206_v43 = vpop.permute.xlu1 %3088  ;;  %v13027_v10 = vld [vmem:[#allocation39_spill] sm:$0xff]  ;;  %v13030_v52 = vld [vmem:[#allocation57_spill] sm:$0xff] }
 0x478   : > { %13012 = vst [vmem:[#allocation81_spill] sm:$0xff] %v10204_v55  ;;  %v3075_v28 = vpop.permute.xlu0 %3074  ;;  %v2702_v38 = vmul.f32 %v13027_v10, %v13026_v34  ;;  %v2707_v10 = vmul.f32 %v13031_v53, %v13030_v52  ;;  %v13032_v34 = vld [vmem:[#allocation64_spill] sm:$0xff]  ;;  %v3163_v53 = vmul.f32 %v3069_v62, %v9829_v50 }
 0x479   : > { %v3166_v50 = vmul.f32 %v3075_v28, %v9843_v54  ;;  %v3164_v54 = vmul.f32 %v10154_v24, %v9841_v58 }
 0x47d   : > { %3296 = vrot.lane.b32.xlu2 %v3021_v49, %s7882_s20  ;;  %3306 = vrot.lane.b32.xlu1 %v3026_v20, %s7882_s20  ;;  %v3024_v49 = vadd.f32 %v10082_v19, %v2704_v21  ;;  %v3029_v20 = vadd.f32 %v10156_v7, %v2709_v8  ;;  %v13033_v21 = vld [vmem:[#allocation41_spill] sm:$0xff]  ;;  %v13034_v8 = vld [vmem:[#allocation58_spill] sm:$0xff] }
 0x47e   : > { %3292 = vrot.lane.b32.xlu0 %v3019_v31, %s7882_s20  ;;  %v3022_v31 = vadd.f32 %v13028_v12, %v2702_v38  ;;  %v2712_v19 = vmul.f32 %v13033_v21, %v13032_v34  ;;  %v13035_v7 = vld [vmem:[#allocation6_spill] sm:$0xff] }
 0x47f   : > { %v10220_v55 = vpop.permute.xlu2 %3102  ;;  %v10222_v42 = vpop.permute.xlu1 %3094  ;;  %v2705_v38 = vmul.f32 %v13035_v7, %v13034_v8  ;;  %v13037_v7 = vld [vmem:[#allocation59_spill] sm:$0xff]  ;;  %v13038_v8 = vld [vmem:[#allocation37_spill] sm:$0xff] }
 0x480   : > { %13021 = vst [vmem:[#allocation51_spill] sm:$0xff] %v10220_v55  ;;  %v3081_v11 = vpop.permute.xlu0 %3080 }
 0x481   : > { %v3169_v28 = vmul.f32 %v3081_v11, %v9858_v44 }
 0x485   : > { %3302 = vrot.lane.b32.xlu2 %v3024_v49, %s7882_s20  ;;  %3312 = vrot.lane.b32.xlu1 %v3029_v20, %s7882_s20  ;;  %v3027_v49 = vadd.f32 %v10097_v17, %v2707_v10  ;;  %v3032_v20 = vadd.f32 %v10174_v2, %v2712_v19  ;;  %v2710_v10 = vmul.f32 %v13038_v8, %v13037_v7  ;;  %v13039_v17 = vld [vmem:[#allocation60_spill] sm:$0xff]  ;;  %v13040_v19 = vld [vmem:[#allocation11_spill] sm:$0xff] }
 0x486   : > { %3298 = vrot.lane.b32.xlu0 %v3022_v31, %s7882_s20  ;;  %v3025_v31 = vadd.f32 %v10076_v35, %v2705_v38  ;;  %v2708_v2 = vmul.f32 %v13040_v19, %v13039_v17  ;;  %v13044_v19 = vld [vmem:[#allocation63_spill] sm:$0xff] }
 0x487   : > { %v10236_v55 = vpop.permute.xlu2 %3108  ;;  %v10238_v4 = vpop.permute.xlu1 %3100  ;;  %v3030_v38 = vadd.f32 %v10116_v1, %v2710_v10  ;;  %v13042_v10 = vld [vmem:[#allocation62_spill] sm:$0xff] }
 0x488   : > { %13029 = vst [vmem:[#allocation4_spill] sm:$0xff] %v10236_v55  ;;  %v3087_v39 = vpop.permute.xlu0 %3086 }
 0x489   : > { %v3172_v58 = vmul.f32 %v3087_v39, %v9872_v18  ;;  %v13054_v18 = vld [vmem:[#allocation66_spill] sm:$0xff] }
 0x48d   : > { %3308 = vrot.lane.b32.xlu2 %v3027_v49, %s7882_s20  ;;  %3318 = vrot.lane.b32.xlu1 %v3032_v20, %s7882_s20  ;;  %v10263_v49 = vadd.f32 %v3163_v53, %v9992_v33  ;;  %v3028_v20 = vadd.f32 %v10090_v22, %v2708_v2  ;;  %v13043_v33 = vld [vmem:[#allocation30_spill] sm:$0xff]  ;;  %v13045_v2 = vld [vmem:[#allocation21_spill] sm:$0xff] }
 0x48e   : > { %3304 = vrot.lane.b32.xlu0 %v3025_v31, %s7882_s20  ;;  %v2713_v53 = vmul.f32 %v13043_v33, %v13042_v10  ;;  %v2711_v22 = vmul.f32 %v13045_v2, %v13044_v19  ;;  %v10301_v2 = vadd.f32 %v3169_v28, %v10014_v30  ;;  %v13051_v30 = vld [vmem:[#allocation48_spill] sm:$0xff] }
 0x48f   : > { %v10253_v55 = vpop.permute.xlu2 %3114  ;;  %v10255_v21 = vpop.permute.xlu1 %3106  ;;  %13041 = vst [vmem:[#allocation25_spill] sm:$0xff] %v10263_v49 }
 0x490   : > { %13036 = vst [vmem:[#allocation9_spill] sm:$0xff] %v10253_v55  ;;  %v3093_v34 = vpop.permute.xlu0 %3092  ;;  %v10281_v55 = vadd.f32 %v3166_v50, %v10002_v63  ;;  %v3162_v63 = vmul.f32 %v10118_v13, %v9815_v56  ;;  %v10298_v50 = vadd.f32 %v3164_v54, %v9982_v25  ;;  %v3167_v56 = vmul.f32 %v10172_v16, %v9856_v51 }
 0x491   : > { %13048 = vst [vmem:[#allocation39_spill] sm:$0xff] %v10301_v2  ;;  %v3165_v13 = vmul.f32 %v10134_v0, %v13051_v30  ;;  %v10334_v51 = vadd.f32 %v3172_v58, %v10026_v61  ;;  %v3170_v0 = vmul.f32 %v10190_v9, %v9874_v3  ;;  %v3168_v54 = vmul.f32 %v10152_v46, %v9846_v40 }
 0x492   : > { %13046 = vst [vmem:[#allocation5_spill] sm:$0xff] %v10281_v55  ;;  %v10331_v11 = vadd.f32 %v3167_v56, %v9996_v6  ;;  %v3175_v6 = vmul.f32 %v3093_v34, %v9887_v27  ;;  %v3173_v40 = vmul.f32 %v10206_v43, %v9889_v41  ;;  %v13069_v56 = vld [vmem:[#allocation54_spill] sm:$0xff] }
 0x493   : > { %13047 = vst [vmem:[#allocation15_spill] sm:$0xff] %v10298_v50  ;;  %v10337_v16 = vadd.f32 %v3165_v13, %v13054_v18  ;;  %v10361_v3 = vadd.f32 %v3170_v0, %v10007_v47  ;;  %v10367_v9 = vadd.f32 %v3168_v54, %v10043_v29  ;;  %v3171_v29 = vmul.f32 %v10170_v23, %v9861_v32  ;;  %v13070_v18 = vld [vmem:[#allocation49_spill] sm:$0xff] }
 0x494   : > { %13052 = vst [vmem:[#allocation57_spill] sm:$0xff] %v10331_v11  ;;  %v10364_v27 = vadd.f32 %v3175_v6, %v10039_v36  ;;  %v10391_v41 = vadd.f32 %v3173_v40, %v10022_v37  ;;  %v3176_v32 = vmul.f32 %v10222_v42, %v9903_v15  ;;  %v13062_v15 = vld [vmem:[#allocation67_spill] sm:$0xff]  ;;  %v13071_v0 = vld [vmem:[#allocation81_spill] sm:$0xff]  ;;  %v13074_v40 = vld [vmem:[#allocation72_spill] sm:$0xff] }
 0x495   : > { %3314 = vrot.lane.b32.xlu2 %v3030_v38, %s7882_s20  ;;  %3388 = vrot.lane.b32.xlu1 %v10263_v49, %s7887_s17  ;;  %v3033_v38 = vadd.f32 %v10136_v48, %v2713_v53  ;;  %13053 = vst [vmem:[#allocation31_spill] sm:$0xff] %v10334_v51  ;;  %v10397_v43 = vadd.f32 %v3171_v29, %v10056_v59  ;;  %v13076_v29 = vld [vmem:[#allocation73_spill] sm:$0xff] }
 0x496   : > { %3310 = vrot.lane.b32.xlu0 %v3028_v20, %s7882_s20  ;;  %v3031_v20 = vadd.f32 %v10104_v45, %v2711_v22  ;;  %13055 = vst [vmem:[#allocation41_spill] sm:$0xff] %v10337_v16  ;;  %v3174_v59 = vmul.f32 %v10188_v14, %v9876_v57  ;;  %v10421_v42 = vadd.f32 %v3176_v32, %v13062_v15  ;;  %v13068_v57 = vld [vmem:[#allocation52_spill] sm:$0xff] }
 0x497   : > { %v10271_v62 = vpop.permute.xlu2 %3120  ;;  %v10273_v8 = vpop.permute.xlu1 %3112  ;;  %13056 = vst [vmem:[#allocation6_spill] sm:$0xff] %v10361_v3  ;;  %v3179_v14 = vmul.f32 %v10238_v4, %v13068_v57  ;;  %v3177_v6 = vmul.f32 %v13071_v0, %v13070_v18  ;;  %v13072_v4 = vld [vmem:[#allocation68_spill] sm:$0xff]  ;;  %v13079_v57 = vld [vmem:[#allocation50_spill] sm:$0xff] }
 0x498   : > { %v3099_v31 = vpop.permute.xlu0 %3098  ;;  %13057 = vst [vmem:[#allocation59_spill] sm:$0xff] %v10364_v27  ;;  %v13084_v18 = vld [vmem:[#allocation76_spill] sm:$0xff] }
 0x499   : > { %13058 = vst [vmem:[#allocation37_spill] sm:$0xff] %v10367_v9  ;;  %v3178_v47 = vmul.f32 %v3099_v31, %v9901_v60  ;;  %v10462_v32 = vadd.f32 %v3177_v6, %v13076_v29  ;;  %v13086_v6 = vld [vmem:[#allocation58_spill] sm:$0xff] }
 0x49a   : > { %13059 = vst [vmem:[#allocation60_spill] sm:$0xff] %v10391_v41 }
 0x49b   : > { %v10394_v60 = vadd.f32 %v3178_v47, %v10054_v5  ;;  %13061 = vst [vmem:[#allocation62_spill] sm:$0xff] %v10397_v43 }
 0x49c   : > { %13063 = vst [vmem:[#allocation30_spill] sm:$0xff] %v10421_v42 }
 0x49d   : > { %3320 = vrot.lane.b32.xlu2 %v3033_v38, %s7882_s20  ;;  %3394 = vrot.lane.b32.xlu1 %v10281_v55, %s7887_s17  ;;  %v13049_v38 = vld [vmem:[#allocation65_spill] sm:$0xff]  ;;  %13060 = vst [vmem:[#allocation11_spill] sm:$0xff] %v10394_v60 }
 0x49e   : > { %3316 = vrot.lane.b32.xlu0 %v3031_v20, %s7882_s20  ;;  %v10304_v20 = vadd.f32 %v3162_v63, %v13049_v38  ;;  %13077 = vst [vmem:[#allocation66_spill] sm:$0xff] %v10462_v32  ;;  %s12394_s20 = scalar_lea.vmem %s12596_s7, %s9202_s25 }
 0x49f   : > { %v10291_v33 = vpop.permute.xlu2 %3126  ;;  %v10293_v53 = vpop.permute.xlu1 %3118 }
 0x4a0   : > { %v3105_v22 = vpop.permute.xlu0 %3104  ;;  %13050 = vst [vmem:[#allocation69_spill] sm:$0xff] %v10304_v20 }
 0x4a1   : > { %v3181_v37 = vmul.f32 %v3105_v22, %v13013_v26  ;;  %v13064_v26 = vld [vmem:[#allocation70_spill] sm:$0xff]  ;;  %v13066_v22 = vld [vmem:[#allocation71_spill] sm:$0xff] }
 0x4a2   : > { %v10427_v38 = vadd.f32 %v3174_v59, %v13066_v22 }
 0x4a3   : > { %v10424_v63 = vadd.f32 %v3181_v37, %v13064_v26  ;;  %v13078_v37 = vld [vmem:[#allocation55_spill] sm:$0xff] }
 0x4a4   : > { %13067 = vst [vmem:[#allocation21_spill] sm:$0xff] %v10427_v38  ;;  %v3182_v59 = vmul.f32 %v10255_v21, %v13078_v37  ;;  %v13082_v21 = vld [vmem:[#allocation75_spill] sm:$0xff]  ;;  %v13087_v37 = vld [vmem:[#allocation53_spill] sm:$0xff] }
 0x4a5   : > { %3390 = vrot.lane.b32.xlu2 %v10298_v50, %s7887_s17  ;;  %3400 = vrot.lane.b32.xlu1 %v10301_v2, %s7887_s17  ;;  %13065 = vst [vmem:[#allocation63_spill] sm:$0xff] %v10424_v63 }
 0x4a6   : > { %3386 = vrot.lane.b32.xlu0 %v10304_v20, %s7887_s17 }
 0x4a7   : > { %v10321_v44 = vpop.permute.xlu2 %3260  ;;  %v10323_v25 = vpop.permute.xlu1 %3124 }
 0x4a8   : > { %6002 = vst.msk [vmem:[%s10314_s21 + $0x8] sm:$0xff] %vm3482_vm10, %v10321_v44  ;;  %v3111_v24 = vpop.permute.xlu0 %3110 }
 0x4a9   : > { %v3184_v58 = vmul.f32 %v3111_v24, %v13069_v56  ;;  %v10456_v24 = vadd.f32 %v3179_v14, %v13072_v4  ;;  %v13080_v14 = vld [vmem:[#allocation51_spill] sm:$0xff]  ;;  %v3185_v4 = vmul.f32 %v10273_v8, %v13086_v6  ;;  %v13093_v6 = vld [vmem:[#allocation56_spill] sm:$0xff] }
 0x4aa   : > { %v3180_v56 = vmul.f32 %v13080_v14, %v13079_v57  ;;  %v13091_v14 = vld [vmem:[#allocation77_spill] sm:$0xff] }
 0x4ab   : > { %13073 = vst [vmem:[#allocation65_spill] sm:$0xff] %v10456_v24  ;;  %v10459_v47 = vadd.f32 %v3184_v58, %v13074_v40 }
 0x4ac   : > { %v10497_v0 = vadd.f32 %v3180_v56, %v13084_v18 }
 0x4ad   : > { %3396 = vrot.lane.b32.xlu2 %v10331_v11, %s7887_s17  ;;  %3406 = vrot.lane.b32.xlu1 %v10334_v51, %s7887_s17  ;;  %13075 = vst [vmem:[#allocation48_spill] sm:$0xff] %v10459_v47 }
 0x4ae   : > { %3392 = vrot.lane.b32.xlu0 %v10337_v16, %s7887_s17  ;;  %13085 = vst [vmem:[#allocation71_spill] sm:$0xff] %v10497_v0 }
 0x4af   : > { %v10348_v39 = vpop.permute.xlu2 %3266  ;;  %v10350_v61 = vpop.permute.xlu1 %3258 }
 0x4b0   : > { %6005 = vst.msk [vmem:[%s10314_s21 + $0x20] sm:$0xff] %vm3482_vm10, %v10348_v39  ;;  %v3117_v28 = vpop.permute.xlu0 %3116 }
 0x4b1   : > { %6001 = vst.msk [vmem:[%s10314_s21] sm:$0xff] %vm3482_vm10, %v10350_v61  ;;  %v3187_v15 = vmul.f32 %v3117_v28, %v13030_v52  ;;  %v10491_v52 = vadd.f32 %v3182_v59, %v13028_v12  ;;  %v13088_v59 = vld [vmem:[#allocation4_spill] sm:$0xff] }
 0x4b3   : > { %13081 = vst [vmem:[#allocation67_spill] sm:$0xff] %v10491_v52  ;;  %v10494_v28 = vadd.f32 %v3187_v15, %v13082_v21  ;;  %v3183_v15 = vmul.f32 %v13088_v59, %v13087_v37 }
 0x4b5   : > { %3402 = vrot.lane.b32.xlu2 %v10361_v3, %s7887_s17  ;;  %3412 = vrot.lane.b32.xlu1 %v10364_v27, %s7887_s17  ;;  %13083 = vst [vmem:[#allocation70_spill] sm:$0xff] %v10494_v28  ;;  %v10534_v56 = vadd.f32 %v3183_v15, %v13091_v14 }
 0x4b6   : > { %3398 = vrot.lane.b32.xlu0 %v10367_v9, %s7887_s17 }
 0x4b7   : > { %v10378_v46 = vpop.permute.xlu2 %3272  ;;  %v10380_v36 = vpop.permute.xlu1 %3264  ;;  %13092 = vst [vmem:[#allocation49_spill] sm:$0xff] %v10534_v56 }
 0x4b8   : > { %6008 = vst.msk [vmem:[%s10314_s21 + $0x38] sm:$0xff] %vm3482_vm10, %v10378_v46  ;;  %v3123_v34 = vpop.permute.xlu0 %3122 }
 0x4b9   : > { %6004 = vst.msk [vmem:[%s10314_s21 + $0x18] sm:$0xff] %vm3482_vm10, %v10380_v36  ;;  %v3190_v12 = vmul.f32 %v3123_v34, %v13037_v7  ;;  %v10526_v7 = vadd.f32 %v3185_v4, %v10076_v35  ;;  %v7888_v34 = vmov 0.0   ;;  %v3188_v35 = vmul.f32 %v10293_v53, %v13039_v17  ;;  %v13094_v4 = vld [vmem:[#allocation9_spill] sm:$0xff]  ;;  %v13095_v17 = vld [vmem:[#allocation74_spill] sm:$0xff] }
 0x4ba   : > { %3523 = vst.msk [vmem:[#allocation2 + $0x30] sm:$0xff] %vm3515_vm11, %v7888_v34 }
 0x4bb   : > { %13089 = vst [vmem:[#allocation52_spill] sm:$0xff] %v10526_v7  ;;  %v10529_v8 = vadd.f32 %v3190_v12, %v10116_v1  ;;  %v3186_v12 = vmul.f32 %v13094_v4, %v13093_v6 }
 0x4bc   : > { %3524 = vst.msk [vmem:[#allocation2 + $0x38] sm:$0xff] %vm3515_vm11, %v7888_v34 }
 0x4bd   : > { %3408 = vrot.lane.b32.xlu2 %v10391_v41, %s7887_s17  ;;  %3418 = vrot.lane.b32.xlu1 %v10394_v60, %s7887_s17  ;;  %13090 = vst [vmem:[#allocation54_spill] sm:$0xff] %v10529_v8 }
 0x4be   : > { %3404 = vrot.lane.b32.xlu0 %v10397_v43, %s7887_s17  ;;  %3516 = vst.msk [vmem:[#allocation2] sm:$0xff] %vm3515_vm11, %v7888_v34 }
 0x4bf   : > { %v10408_v23 = vpop.permute.xlu2 %3278  ;;  %v10410_v5 = vpop.permute.xlu1 %3270  ;;  %3517 = vst.msk [vmem:[#allocation2 + $0x8] sm:$0xff] %vm3515_vm11, %v7888_v34 }
 0x4c0   : > { %6011 = vst.msk [vmem:[%s10314_s21 + $0x50] sm:$0xff] %vm3482_vm10, %v10408_v23  ;;  %v3129_v31 = vpop.permute.xlu0 %3128 }
 0x4c1   : > { %6007 = vst.msk [vmem:[%s10314_s21 + $0x30] sm:$0xff] %vm3482_vm10, %v10410_v5  ;;  %v3193_v1 = vmul.f32 %v3129_v31, %v13042_v10  ;;  %v10571_v10 = vadd.f32 %v3188_v35, %v13095_v17  ;;  %v13098_v31 = vld [vmem:[#allocation78_spill] sm:$0xff]  ;;  %v13100_v35 = vld [vmem:[#allocation61_spill] sm:$0xff] }
 0x4c2   : > { %3520 = vst.msk [vmem:[#allocation2 + $0x18] sm:$0xff] %vm3515_vm11, %v7888_v34  ;;  %v10579_v59 = vadd.f32 %v3186_v12, %v13098_v31  ;;  %v13104_v12 = vld [vmem:[#allocation64_spill] sm:$0xff] }
 0x4c3   : > { %13096 = vst [vmem:[#allocation81_spill] sm:$0xff] %v10571_v10  ;;  %v10574_v53 = vadd.f32 %v3193_v1, %v10136_v48  ;;  %v3191_v48 = vmul.f32 %v10323_v25, %v13044_v19  ;;  %v3189_v1 = vmul.f32 %v10271_v62, %v13100_v35  ;;  %v13102_v62 = vld [vmem:[#allocation79_spill] sm:$0xff]  ;;  %v3192_v17 = vmul.f32 %v10291_v33, %v13104_v12 }
 0x4c4   : > { %3521 = vst.msk [vmem:[#allocation2 + $0x20] sm:$0xff] %vm3515_vm11, %v7888_v34 }
 0x4c5   : > { %3414 = vrot.lane.b32.xlu2 %v10421_v42, %s7887_s17  ;;  %3424 = vrot.lane.b32.xlu1 %v10424_v63, %s7887_s17  ;;  %13097 = vst [vmem:[#allocation68_spill] sm:$0xff] %v10574_v53  ;;  %v10615_v19 = vadd.f32 %v3191_v48, %v10104_v45  ;;  %v10620_v25 = vadd.f32 %v3189_v1, %v13102_v62  ;;  %v13105_v48 = vld [vmem:[#allocation80_spill] sm:$0xff] }
 0x4c6   : > { %3410 = vrot.lane.b32.xlu0 %v10427_v38, %s7887_s17  ;;  %13099 = vst [vmem:[#allocation72_spill] sm:$0xff] %v10579_v59  ;;  %v10654_v35 = vadd.f32 %v3192_v17, %v13105_v48 }
 0x4c7   : > { %v10438_v30 = vpop.permute.xlu2 %3284  ;;  %v10440_v13 = vpop.permute.xlu1 %3276  ;;  %3526 = vst.msk [vmem:[#allocation2 + $0x48] sm:$0xff] %vm3515_vm11, %v7888_v34 }
 0x4c8   : > { %6014 = vst.msk [vmem:[%s10314_s21 + $0x68] sm:$0xff] %vm3482_vm10, %v10438_v30  ;;  %v10447_v54 = vpop.permute.xlu0 %3262 }
 0x4c9   : > { %6003 = vst.msk [vmem:[%s10314_s21 + $0x10] sm:$0xff] %vm3482_vm10, %v10447_v54 }
 0x4ca   : > { %6010 = vst.msk [vmem:[%s10314_s21 + $0x48] sm:$0xff] %vm3482_vm10, %v10440_v13 }
 0x4cb   : > { %3527 = vst.msk [vmem:[#allocation2 + $0x50] sm:$0xff] %vm3515_vm11, %v7888_v34 }
 0x4cc   : > { %3529 = vst.msk [vmem:[#allocation2 + $0x60] sm:$0xff] %vm3515_vm11, %v7888_v34 }
 0x4cd   : > { %3420 = vrot.lane.b32.xlu2 %v10456_v24, %s7887_s17  ;;  %3430 = vrot.lane.b32.xlu1 %v10459_v47, %s7887_s17  ;;  %3530 = vst.msk [vmem:[#allocation2 + $0x68] sm:$0xff] %vm3515_vm11, %v7888_v34 }
 0x4ce   : > { %3416 = vrot.lane.b32.xlu0 %v10462_v32, %s7887_s17  ;;  %13101 = vst [vmem:[#allocation73_spill] sm:$0xff] %v10615_v19 }
 0x4cf   : > { %v10473_v26 = vpop.permute.xlu2 %3290  ;;  %v10475_v22 = vpop.permute.xlu1 %3282  ;;  %3532 = vst.msk [vmem:[#allocation2 + $0x78] sm:$0xff] %vm3515_vm11, %v7888_v34 }
 0x4d0   : > { %6017 = vst.msk [vmem:[%s10314_s21 + $0x80] sm:$0xff] %vm3482_vm10, %v10473_v26  ;;  %v10482_v58 = vpop.permute.xlu0 %3268 }
 0x4d1   : > { %6006 = vst.msk [vmem:[%s10314_s21 + $0x28] sm:$0xff] %vm3482_vm10, %v10482_v58 }
 0x4d2   : > { %6013 = vst.msk [vmem:[%s10314_s21 + $0x60] sm:$0xff] %vm3482_vm10, %v10475_v22 }
 0x4d3   : > { %13103 = vst [vmem:[#allocation55_spill] sm:$0xff] %v10620_v25 }
 0x4d4   : > { %3533 = vst.msk [vmem:[#allocation2 + $0x80] sm:$0xff] %vm3515_vm11, %v7888_v34 }
 0x4d5   : > { %3426 = vrot.lane.b32.xlu2 %v10491_v52, %s7887_s17  ;;  %3436 = vrot.lane.b32.xlu1 %v10494_v28, %s7887_s17  ;;  %3535 = vst.msk [vmem:[#allocation2 + $0x90] sm:$0xff] %vm3515_vm11, %v7888_v34 }
 0x4d6   : > { %3422 = vrot.lane.b32.xlu0 %v10497_v0, %s7887_s17  ;;  %3536 = vst.msk [vmem:[#allocation2 + $0x98] sm:$0xff] %vm3515_vm11, %v7888_v34 }
 0x4d7   : > { %v10508_v40 = vpop.permute.xlu2 %3296  ;;  %v10510_v29 = vpop.permute.xlu1 %3288  ;;  %3538 = vst.msk [vmem:[#allocation2 + $0xa8] sm:$0xff] %vm3515_vm11, %v7888_v34 }
 0x4d8   : > { %6020 = vst.msk [vmem:[%s10314_s21 + $0x98] sm:$0xff] %vm3482_vm10, %v10508_v40  ;;  %v10517_v57 = vpop.permute.xlu0 %3274 }
 0x4d9   : > { %6009 = vst.msk [vmem:[%s10314_s21 + $0x40] sm:$0xff] %vm3482_vm10, %v10517_v57 }
 0x4da   : > { %6016 = vst.msk [vmem:[%s10314_s21 + $0x78] sm:$0xff] %vm3482_vm10, %v10510_v29 }
 0x4db   : > { %3539 = vst.msk [vmem:[#allocation2 + $0xb0] sm:$0xff] %vm3515_vm11, %v7888_v34 }
 0x4dc   : > { %13106 = vst [vmem:[#allocation50_spill] sm:$0xff] %v10654_v35 }
 0x4dd   : > { %3432 = vrot.lane.b32.xlu2 %v10526_v7, %s7887_s17  ;;  %3442 = vrot.lane.b32.xlu1 %v10529_v8, %s7887_s17  ;;  %3541 = vst.msk [vmem:[#allocation2 + $0xc0] sm:$0xff] %vm3515_vm11, %v7888_v34 }
 0x4de   : > { %3428 = vrot.lane.b32.xlu0 %v10534_v56, %s7887_s17  ;;  %3542 = vst.msk [vmem:[#allocation2 + $0xc8] sm:$0xff] %vm3515_vm11, %v7888_v34 }
 0x4df   : > { %v10551_v21 = vpop.permute.xlu2 %3302  ;;  %v10553_v18 = vpop.permute.xlu1 %3294  ;;  %3544 = vst.msk [vmem:[#allocation2 + $0xd8] sm:$0xff] %vm3515_vm11, %v7888_v34 }
 0x4e0   : > { %6023 = vst.msk [vmem:[%s10314_s21 + $0xb0] sm:$0xff] %vm3482_vm10, %v10551_v21  ;;  %v10562_v37 = vpop.permute.xlu0 %3280 }
 0x4e1   : > { %6012 = vst.msk [vmem:[%s10314_s21 + $0x58] sm:$0xff] %vm3482_vm10, %v10562_v37 }
 0x4e2   : > { %6019 = vst.msk [vmem:[%s10314_s21 + $0x90] sm:$0xff] %vm3482_vm10, %v10553_v18 }
 0x4e3   : > { %3545 = vst.msk [vmem:[#allocation2 + $0xe0] sm:$0xff] %vm3515_vm11, %v7888_v34 }
 0x4e4   : > { %3547 = vst.msk [vmem:[#allocation2 + $0xf0] sm:$0xff] %vm3515_vm11, %v7888_v34 }
 0x4e5   : > { %3438 = vrot.lane.b32.xlu2 %v10571_v10, %s7887_s17  ;;  %3448 = vrot.lane.b32.xlu1 %v10574_v53, %s7887_s17  ;;  %3548 = vst.msk [vmem:[#allocation2 + $0xf8] sm:$0xff] %vm3515_vm11, %v7888_v34 }
 0x4e6   : > { %3434 = vrot.lane.b32.xlu0 %v10579_v59, %s7887_s17  ;;  %3550 = vst.msk [vmem:[#allocation2 + $0x108] sm:$0xff] %vm3515_vm11, %v7888_v34 }
 0x4e7   : > { %v10595_v15 = vpop.permute.xlu2 %3308  ;;  %v10597_v14 = vpop.permute.xlu1 %3300  ;;  %3551 = vst.msk [vmem:[#allocation2 + $0x110] sm:$0xff] %vm3515_vm11, %v7888_v34 }
 0x4e8   : > { %6026 = vst.msk [vmem:[%s10314_s21 + $0xc8] sm:$0xff] %vm3482_vm10, %v10595_v15  ;;  %v10606_v6 = vpop.permute.xlu0 %3286 }
 0x4e9   : > { %6015 = vst.msk [vmem:[%s10314_s21 + $0x70] sm:$0xff] %vm3482_vm10, %v10606_v6 }
 0x4ea   : > { %6022 = vst.msk [vmem:[%s10314_s21 + $0xa8] sm:$0xff] %vm3482_vm10, %v10597_v14 }
 0x4eb   : > { %3553 = vst.msk [vmem:[#allocation2 + $0x120] sm:$0xff] %vm3515_vm11, %v7888_v34 }
 0x4ec   : > { %3554 = vst.msk [vmem:[#allocation2 + $0x128] sm:$0xff] %vm3515_vm11, %v7888_v34 }
 0x4ed   : > { %3444 = vrot.lane.b32.xlu2 %v10615_v19, %s7887_s17  ;;  %3556 = vst.msk [vmem:[#allocation2 + $0x138] sm:$0xff] %vm3515_vm11, %v7888_v34 }
 0x4ee   : > { %3440 = vrot.lane.b32.xlu0 %v10620_v25, %s7887_s17  ;;  %3557 = vst.msk [vmem:[#allocation2 + $0x140] sm:$0xff] %vm3515_vm11, %v7888_v34 }
 0x4ef   : > { %v10632_v45 = vpop.permute.xlu2 %3314  ;;  %v10634_v4 = vpop.permute.xlu1 %3306  ;;  %3559 = vst.msk [vmem:[#allocation2 + $0x150] sm:$0xff] %vm3515_vm11, %v7888_v34 }
 0x4f0   : > { %6029 = vst.msk [vmem:[%s10314_s21 + $0xe0] sm:$0xff] %vm3482_vm10, %v10632_v45  ;;  %v10643_v31 = vpop.permute.xlu0 %3292 }
 0x4f1   : > { %6018 = vst.msk [vmem:[%s10314_s21 + $0x88] sm:$0xff] %vm3482_vm10, %v10643_v31 }
 0x4f2   : > { %6025 = vst.msk [vmem:[%s10314_s21 + $0xc0] sm:$0xff] %vm3482_vm10, %v10634_v4 }
 0x4f3   : > { %3560 = vst.msk [vmem:[#allocation2 + $0x158] sm:$0xff] %vm3515_vm11, %v7888_v34 }
 0x4f4   : > { %3562 = vst.msk [vmem:[#allocation2 + $0x168] sm:$0xff] %vm3515_vm11, %v7888_v34 }
 0x4f5   : > { %3563 = vst.msk [vmem:[#allocation2 + $0x170] sm:$0xff] %vm3515_vm11, %v7888_v34 }
 0x4f6   : > { %3446 = vrot.lane.b32.xlu0 %v10654_v35, %s7887_s17  ;;  %3565 = vst.msk [vmem:[#allocation2 + $0x180] sm:$0xff] %vm3515_vm11, %v7888_v34 }
 0x4f7   : > { %v10664_v33 = vpop.permute.xlu2 %3320  ;;  %v10666_v1 = vpop.permute.xlu1 %3312  ;;  %3566 = vst.msk [vmem:[#allocation2 + $0x188] sm:$0xff] %vm3515_vm11, %v7888_v34 }
 0x4f8   : > { %6032 = vst.msk [vmem:[%s10314_s21 + $0xf8] sm:$0xff] %vm3482_vm10, %v10664_v33  ;;  %v10673_v62 = vpop.permute.xlu0 %3298 }
 0x4f9   : > { %6021 = vst.msk [vmem:[%s10314_s21 + $0xa0] sm:$0xff] %vm3482_vm10, %v10673_v62 }
 0x4fa   : > { %6028 = vst.msk [vmem:[%s10314_s21 + $0xd8] sm:$0xff] %vm3482_vm10, %v10666_v1 }
 0x4fb   : > { %3568 = vst.msk [vmem:[#allocation2 + $0x198] sm:$0xff] %vm3515_vm11, %v7888_v34 }
 0x4fc   : > { %3569 = vst.msk [vmem:[#allocation2 + $0x1a0] sm:$0xff] %vm3515_vm11, %v7888_v34 }
 0x4fd   : > { %3528 = vst.msk [vmem:[#allocation2 + $0x58] sm:$0x3] %vm3518_vm12, %v7888_v34 }
 0x4fe   : > { %3519 = vst.msk [vmem:[#allocation2 + $0x10] sm:$0x3] %vm3518_vm12, %v7888_v34 }
 0x4ff   : > { %v3391_v12 = vpop.permute.xlu2 %3390  ;;  %v10691_v17 = vpop.permute.xlu1 %3318  ;;  %3522 = vst.msk [vmem:[#allocation2 + $0x28] sm:$0x3] %vm3518_vm12, %v7888_v34 }
 0x500   : > { %v3485_v48 = vsel %vm3482_vm10, %v10447_v54, %v3391_v12  ;;  %v10697_v35 = vpop.permute.xlu0 %3304  ;;  %6031 = vst.msk [vmem:[%s10314_s21 + $0xf0] sm:$0xff] %vm3482_vm10, %v10691_v17 }
 0x501   : > { %3574 = vst.msk [vmem:[#allocation2 + $0x31] sm:$0xff] %vm3515_vm11, %v3485_v48 }
 0x502   : > { %6024 = vst.msk [vmem:[%s10314_s21 + $0xb8] sm:$0xff] %vm3482_vm10, %v10697_v35 }
 0x503   : > { %3525 = vst.msk [vmem:[#allocation2 + $0x40] sm:$0x3] %vm3518_vm12, %v7888_v34 }
 0x504   : > { %3531 = vst.msk [vmem:[#allocation2 + $0x70] sm:$0x3] %vm3518_vm12, %v7888_v34 }
 0x505   : > { %3534 = vst.msk [vmem:[#allocation2 + $0x88] sm:$0x3] %vm3518_vm12, %v7888_v34  ;;  %v3637_v56 = vld [vmem:[#allocation2 + $0x9] sm:$0xff] }
 0x506   : > { %3537 = vst.msk [vmem:[#allocation2 + $0xa0] sm:$0x3] %vm3518_vm12, %v7888_v34 }
 0x507   : > { %v3397_v54 = vpop.permute.xlu2 %3396  ;;  %v3389_v12 = vpop.permute.xlu1 %3388  ;;  %3540 = vst.msk [vmem:[#allocation2 + $0xb8] sm:$0x3] %vm3518_vm12, %v7888_v34 }
 0x508   : > { %v10714_v48 = vpop.permute.xlu0 %3310  ;;  %v3488_v25 = vsel %vm3482_vm10, %v10482_v58, %v3397_v54  ;;  %v5034_v58 = vld [vmem:[%s12594_s5 + $0x88] sm:$0xff]  ;;  %v5033_v54 = vld [vmem:[%s12594_s5 + $0x80] sm:$0xff]  ;;  %3543 = vst.msk [vmem:[#allocation2 + $0xd0] sm:$0x3] %vm3518_vm12, %v7888_v34 }
 0x509   : > { %3577 = vst.msk [vmem:[#allocation2 + $0x51] sm:$0xff] %vm3515_vm11, %v3488_v25  ;;  %5262 = vmatpush.msra.mxu3 %v5034_v58  ;;  %v3636_v25 = vld [vmem:[#allocation2 + $0x1] sm:$0xff] }
 0x50a   : > { %3546 = vst.msk [vmem:[#allocation2 + $0xe8] sm:$0x3] %vm3518_vm12, %v7888_v34  ;;  %v7011_v53 = vpack.i.bf16 %v3637_v56, %v3636_v25  ;;  %v3484_v56 = vsel %vm3482_vm10, %v10321_v44, %v3389_v12 }
 0x50b   : > { %5263 = vmatpush.msra.mxu3 %v5033_v54  ;;  %3549 = vst.msk [vmem:[#allocation2 + $0x100] sm:$0x3] %vm3518_vm12, %v7888_v34 }
 0x50c   : > { %3552 = vst.msk [vmem:[#allocation2 + $0x118] sm:$0x3] %vm3518_vm12, %v7888_v34  ;;  %7012 = vrot.lane.b32.xlu2 %v7011_v53, %s7889_s28 }
 0x50d   : > { %3555 = vst.msk [vmem:[#allocation2 + $0x130] sm:$0x3] %vm3518_vm12, %v7888_v34 }
 0x50e   : > { %3558 = vst.msk [vmem:[#allocation2 + $0x148] sm:$0x3] %vm3518_vm12, %v7888_v34 }
 0x50f   : > { %v3403_v19 = vpop.permute.xlu2 %3402  ;;  %v3395_v59 = vpop.permute.xlu1 %3394  ;;  %3561 = vst.msk [vmem:[#allocation2 + $0x160] sm:$0x3] %vm3518_vm12, %v7888_v34 }
 0x510   : > { %v10735_v10 = vpop.permute.xlu0 %3316  ;;  %3564 = vst.msk [vmem:[#allocation2 + $0x178] sm:$0x3] %vm3518_vm12, %v7888_v34  ;;  %v3491_v25 = vsel %vm3482_vm10, %v10517_v57, %v3403_v19  ;;  %v3487_v8 = vsel %vm3482_vm10, %v10348_v39, %v3395_v59 }
 0x511   : > { %3567 = vst.msk [vmem:[#allocation2 + $0x190] sm:$0x3] %vm3518_vm12, %v7888_v34 }
 0x512   : > { %3570 = vst.msk [vmem:[#allocation2 + $0x1a8] sm:$0x3] %vm3518_vm12, %v7888_v34 }
 0x513   : > { %6027 = vst.msk [vmem:[%s10314_s21 + $0xd0] sm:$0xff] %vm3482_vm10, %v10714_v48 }
 0x514   : > { %3573 = vst.msk [vmem:[#allocation2 + $0x21] sm:$0xff] %vm3515_vm11, %v3484_v56 }
 0x515   : > { %3580 = vst.msk [vmem:[#allocation2 + $0x79] sm:$0xff] %vm3515_vm11, %v3491_v25  ;;  %v3640_v25 = vld [vmem:[#allocation2 + $0x31] sm:$0xff] }
 0x516   : > { %6030 = vst.msk [vmem:[%s10314_s21 + $0xe8] sm:$0xff] %vm3482_vm10, %v10735_v10  ;;  %s12514_s21 = scalar_lea.vmem %s12598_s9, %s9202_s25 }
 0x517   : > { %v3409_v7 = vpop.permute.xlu2 %3408  ;;  %v3401_v58 = vpop.permute.xlu1 %3400  ;;  %3576 = vst.msk [vmem:[#allocation2 + $0x49] sm:$0xff] %vm3515_vm11, %v3487_v8 }
 0x518   : > { %v3387_v0 = vpop.permute.xlu0 %3386  ;;  %v3494_v44 = vsel %vm3482_vm10, %v10562_v37, %v3409_v7  ;;  %v3490_v34 = vsel %vm3482_vm10, %v10378_v46, %v3401_v58 }
 0x519   : > { %v3483_v57 = vsel %vm3482_vm10, %v10350_v61, %v3387_v0  ;;  %3583 = vst.msk [vmem:[#allocation2 + $0x99] sm:$0xff] %vm3515_vm11, %v3494_v44 }
 0x51a   : > { %3572 = vst.msk [vmem:[#allocation2 + $0x19] sm:$0xff] %vm3515_vm11, %v3483_v57 }
 0x51b   : > { %3579 = vst.msk [vmem:[#allocation2 + $0x69] sm:$0xff] %vm3515_vm11, %v3490_v34 }
 0x51c   : > { %v11060_v38 = vld [vmem:[#allocation2 + $0x78] sm:$0xff] }
 0x51d   : > { %13109 = vst [vmem:[#allocation76_spill] sm:$0xff] %v11060_v38 }
 0x51e   : > { %v11088_v3 = vld [vmem:[#allocation2 + $0x50] sm:$0xff] }
 0x51f   : > { %v3415_v53 = vpop.permute.xlu2 %3414  ;;  %v3407_v54 = vpop.permute.xlu1 %3406  ;;  %13112 = vst [vmem:[#allocation4_spill] sm:$0xff] %v11088_v3 }
 0x520   : > { %v3393_v52 = vpop.permute.xlu0 %3392  ;;  %v3497_v39 = vsel %vm3482_vm10, %v10606_v6, %v3415_v53  ;;  %v3493_v61 = vsel %vm3482_vm10, %v10408_v23, %v3407_v54  ;;  %v3643_v6 = vld [vmem:[#allocation2 + $0x51] sm:$0xff] }
 0x521   : > { %v3486_v7 = vsel %vm3482_vm10, %v10380_v36, %v3393_v52  ;;  %3586 = vst.msk [vmem:[#allocation2 + $0xc1] sm:$0xff] %vm3515_vm11, %v3497_v39  ;;  %v3642_v52 = vld [vmem:[#allocation2 + $0x49] sm:$0xff]  ;;  %v3638_v19 = vld [vmem:[#allocation2 + $0x19] sm:$0xff] }
 0x522   : > { %3575 = vst.msk [vmem:[#allocation2 + $0x39] sm:$0xff] %vm3515_vm11, %v3486_v7  ;;  %v10816_v23 = vpack.i.bf16 %v3643_v6, %v3642_v52  ;;  %v3649_v39 = vld [vmem:[#allocation2 + $0x99] sm:$0xff] }
 0x523   : > { %3582 = vst.msk [vmem:[#allocation2 + $0x91] sm:$0xff] %vm3515_vm11, %v3493_v61  ;;  %v3646_v6 = vld [vmem:[#allocation2 + $0x79] sm:$0xff] }
 0x524   : > { %7027 = vrot.lane.b32.xlu2 %v10816_v23, %s7889_s28  ;;  %v11090_v60 = vld [vmem:[#allocation2 + $0x18] sm:$0xff]  ;;  %v11092_v16 = vld [vmem:[#allocation2 + $0x20] sm:$0xff] }
 0x525   : > { %v7171_v20 = vpack.i.bf16 %v11092_v16, %v11090_v60 }
 0x527   : > { %v3421_v37 = vpop.permute.xlu2 %3420  ;;  %v3413_v59 = vpop.permute.xlu1 %3412 }
 0x528   : > { %v3399_v0 = vpop.permute.xlu0 %3398  ;;  %v3500_v46 = vsel %vm3482_vm10, %v10643_v31, %v3421_v37  ;;  %v3496_v36 = vsel %vm3482_vm10, %v10438_v30, %v3413_v59  ;;  %v3639_v31 = vld [vmem:[#allocation2 + $0x21] sm:$0xff]  ;;  %v3645_v37 = vld [vmem:[#allocation2 + $0x69] sm:$0xff] }
 0x529   : > { %v3489_v8 = vsel %vm3482_vm10, %v10410_v5, %v3399_v0  ;;  %3589 = vst.msk [vmem:[#allocation2 + $0xe1] sm:$0xff] %vm3515_vm11, %v3500_v46  ;;  %v10822_v5 = vpack.i.bf16 %v3639_v31, %v3638_v19  ;;  %v10830_v54 = vld [vmem:[#allocation2 + $0x32] sm:$0xff]  ;;  %v3714_v11 = vld [vmem:[#allocation2 + $0xc0] sm:$0xff] }
 0x52a   : > { %3578 = vst.msk [vmem:[#allocation2 + $0x61] sm:$0xff] %vm3515_vm11, %v3489_v8  ;;  %v3641_v44 = vld [vmem:[#allocation2 + $0x39] sm:$0xff]  ;;  %6547 = vmatmul.msk.f32.vlgmr.msra.gmra.mxu3 %vm3515_vm11, %v10830_v54  ;;  %v3648_v34 = vld [vmem:[#allocation2 + $0x91] sm:$0xff] }
 0x52b   : > { %3585 = vst.msk [vmem:[#allocation2 + $0xb1] sm:$0xff] %vm3515_vm11, %v3496_v36  ;;  %7017 = vrot.lane.b32.xlu0 %v10822_v5, %s7889_s28  ;;  %v10853_v36 = vld [vmem:[#allocation2 + $0x3a] sm:$0xff] }
 0x52c   : > { %v3617_v51 = vld [vmem:[#allocation2 + $0x98] sm:$0xff] }
 0x52f   : > { %v3427_v12 = vpop.permute.xlu2 %3426  ;;  %v3419_v58 = vpop.permute.xlu1 %3418 }
 0x530   : > { %v3503_v30 = vsel %vm3482_vm10, %v10673_v62, %v3427_v12  ;;  %v3405_v56 = vpop.permute.xlu0 %3404  ;;  %v3499_v53 = vsel %vm3482_vm10, %v10473_v26, %v3419_v58  ;;  %v10837_v62 = vpack.i.bf16 %v3641_v44, %v3640_v25  ;;  %v10840_v26 = vpack.i.bf16 %v3649_v39, %v3648_v34  ;;  %v3655_v31 = vld [vmem:[#allocation2 + $0xe1] sm:$0xff]  ;;  %v10876_v25 = vld [vmem:[#allocation2 + $0x4a] sm:$0xff] }
 0x531   : > { %3592 = vst.msk [vmem:[#allocation2 + $0x109] sm:$0xff] %vm3515_vm11, %v3503_v30  ;;  %v3492_v57 = vsel %vm3482_vm10, %v10440_v13, %v3405_v56  ;;  %v3644_v7 = vld [vmem:[#allocation2 + $0x61] sm:$0xff] }
 0x532   : > { %3581 = vst.msk [vmem:[#allocation2 + $0x81] sm:$0xff] %vm3515_vm11, %v3492_v57  ;;  %7022 = vrot.lane.b32.xlu1 %v10837_v62, %s7889_s28  ;;  %v10845_v59 = vpack.i.bf16 %v3645_v37, %v3644_v7  ;;  %7042 = vrot.lane.b32.xlu2 %v10840_v26, %s7889_s28  ;;  %v3651_v34 = vld [vmem:[#allocation2 + $0xb1] sm:$0xff]  ;;  %v11113_v2 = vld [vmem:[#allocation2 + $0x60] sm:$0xff]  ;;  %v11115_v55 = vld [vmem:[#allocation2 + $0x68] sm:$0xff] }
 0x533   : > { %3588 = vst.msk [vmem:[#allocation2 + $0xd9] sm:$0xff] %vm3515_vm11, %v3499_v53  ;;  %6548 = vmatmul.msk.f32.gmra.mxu3 %vm3515_vm11, %v10853_v36 }
 0x534   : > { %7032 = vrot.lane.b32.xlu0 %v10845_v59, %s7889_s28  ;;  %13115 = vst [vmem:[#allocation9_spill] sm:$0xff] %v11113_v2 }
 0x535   : > { %13116 = vst [vmem:[#allocation74_spill] sm:$0xff] %v11115_v55 }
 0x537   : > { %v3433_v13 = vpop.permute.xlu2 %3432  ;;  %v3425_v61 = vpop.permute.xlu1 %3424 }
 0x538   : > { %v3506_v0 = vsel %vm3482_vm10, %v10697_v35, %v3433_v13  ;;  %v3411_v46 = vpop.permute.xlu0 %3410  ;;  %v3502_v8 = vsel %vm3482_vm10, %v10508_v40, %v3425_v61  ;;  %v10893_v13 = vld [vmem:[#allocation2 + $0x52] sm:$0xff]  ;;  %v3720_v49 = vld [vmem:[#allocation2 + $0x108] sm:$0xff] }
 0x539   : > { %3595 = vst.msk [vmem:[#allocation2 + $0x129] sm:$0xff] %vm3515_vm11, %v3506_v0  ;;  %v3495_v52 = vsel %vm3482_vm10, %v10475_v22, %v3411_v46  ;;  %v3647_v19 = vld [vmem:[#allocation2 + $0x81] sm:$0xff] }
 0x53a   : > { %3584 = vst.msk [vmem:[#allocation2 + $0xa9] sm:$0xff] %vm3515_vm11, %v3495_v52  ;;  %v10863_v35 = vpack.i.bf16 %v3647_v19, %v3646_v6  ;;  %v3654_v40 = vld [vmem:[#allocation2 + $0xd9] sm:$0xff]  ;;  %v3652_v0 = vld [vmem:[#allocation2 + $0xc1] sm:$0xff] }
 0x53b   : > { %3591 = vst.msk [vmem:[#allocation2 + $0xf9] sm:$0xff] %vm3515_vm11, %v3502_v8  ;;  %v10866_v12 = vpack.i.bf16 %v3655_v31, %v3654_v40  ;;  %6549 = vmatmul.msk.f32.gmra.mxu3 %vm3515_vm11, %v10876_v25  ;;  %v10912_v40 = vld [vmem:[#allocation2 + $0x62] sm:$0xff] }
 0x53c   : > { %7037 = vrot.lane.b32.xlu1 %v10863_v35, %s7889_s28 }
 0x53d   : > { %7057 = vrot.lane.b32.xlu2 %v10866_v12, %s7889_s28 }
 0x53f   : > { %v3439_v22 = vpop.permute.xlu2 %3438  ;;  %v3431_v58 = vpop.permute.xlu1 %3430 }
 0x540   : > { %v3509_v30 = vsel %vm3482_vm10, %v10714_v48, %v3439_v22  ;;  %v3417_v56 = vpop.permute.xlu0 %3416  ;;  %v3505_v53 = vsel %vm3482_vm10, %v10551_v21, %v3431_v58  ;;  %v3661_v52 = vld [vmem:[#allocation2 + $0x129] sm:$0xff] }
 0x541   : > { %3598 = vst.msk [vmem:[#allocation2 + $0x151] sm:$0xff] %vm3515_vm11, %v3509_v30  ;;  %v3498_v44 = vsel %vm3482_vm10, %v10510_v29, %v3417_v56  ;;  %v3650_v57 = vld [vmem:[#allocation2 + $0xa9] sm:$0xff] }
 0x542   : > { %3587 = vst.msk [vmem:[#allocation2 + $0xc9] sm:$0xff] %vm3515_vm11, %v3498_v44  ;;  %v10884_v39 = vpack.i.bf16 %v3651_v34, %v3650_v57  ;;  %v3657_v58 = vld [vmem:[#allocation2 + $0xf9] sm:$0xff]  ;;  %v3866_v57 = vld [vmem:[#allocation2 + $0x6a] sm:$0xff] }
 0x543   : > { %3594 = vst.msk [vmem:[#allocation2 + $0x121] sm:$0xff] %vm3515_vm11, %v3505_v53  ;;  %6550 = vmatmul.msk.f32.gmra.mxu3 %vm3515_vm11, %v10893_v13 }
 0x544   : > { %7047 = vrot.lane.b32.xlu0 %v10884_v39, %s7889_s28 }
 0x547   : > { %v3445_v21 = vpop.permute.xlu2 %3444  ;;  %v3437_v48 = vpop.permute.xlu1 %3436 }
 0x548   : > { %v3512_v7 = vsel %vm3482_vm10, %v10735_v10, %v3445_v21  ;;  %v3423_v29 = vpop.permute.xlu0 %3422  ;;  %v3508_v37 = vsel %vm3482_vm10, %v10595_v15, %v3437_v48  ;;  %v3658_v21 = vld [vmem:[#allocation2 + $0x109] sm:$0xff] }
 0x549   : > { %3601 = vst.msk [vmem:[#allocation2 + $0x171] sm:$0xff] %vm3515_vm11, %v3512_v7  ;;  %v3501_v61 = vsel %vm3482_vm10, %v10553_v18, %v3423_v29  ;;  %v3653_v46 = vld [vmem:[#allocation2 + $0xc9] sm:$0xff] }
 0x54a   : > { %3590 = vst.msk [vmem:[#allocation2 + $0xf1] sm:$0xff] %vm3515_vm11, %v3501_v61  ;;  %v10901_v8 = vpack.i.bf16 %v3653_v46, %v3652_v0  ;;  %v3660_v10 = vld [vmem:[#allocation2 + $0x121] sm:$0xff]  ;;  %v7101_v46 = vpack.i.bf16 %v10853_v36, %v10830_v54  ;;  %v3664_v54 = vld [vmem:[#allocation2 + $0x151] sm:$0xff] }
 0x54b   : > { %3597 = vst.msk [vmem:[#allocation2 + $0x141] sm:$0xff] %vm3515_vm11, %v3508_v37  ;;  %v10904_v15 = vpack.i.bf16 %v3661_v52, %v3660_v10  ;;  %6551 = vmatmul.msk.f32.gmra.mxu3 %vm3515_vm11, %v10912_v40  ;;  %v3668_v52 = vld [vmem:[#allocation2 + $0x2] sm:$0xff] }
 0x54c   : > { %7052 = vrot.lane.b32.xlu1 %v10901_v8, %s7889_s28  ;;  %v3715_v9 = vld [vmem:[#allocation2 + $0xc8] sm:$0xff] }
 0x54d   : > { %7072 = vrot.lane.b32.xlu2 %v10904_v15, %s7889_s28  ;;  %v11094_v27 = vpack.i.bf16 %v3715_v9, %v3714_v11  ;;  %v11111_v9 = vld [vmem:[#allocation2 + $0x90] sm:$0xff] }
 0x54e   : > { %13114 = vst [vmem:[#allocation56_spill] sm:$0xff] %v11111_v9 }
 0x54f   : > { %v3443_v18 = vpop.permute.xlu1 %3442 }
 0x550   : > { %v3429_v6 = vpop.permute.xlu0 %3428  ;;  %v3511_v19 = vsel %vm3482_vm10, %v10632_v45, %v3443_v18  ;;  %v3667_v44 = vld [vmem:[#allocation2 + $0x171] sm:$0xff] }
 0x551   : > { %v3504_v31 = vsel %vm3482_vm10, %v10597_v14, %v3429_v6  ;;  %3600 = vst.msk [vmem:[#allocation2 + $0x169] sm:$0xff] %vm3515_vm11, %v3511_v19  ;;  %v3656_v22 = vld [vmem:[#allocation2 + $0xf1] sm:$0xff]  ;;  %v3868_v6 = vld [vmem:[#allocation2 + $0x82] sm:$0xff] }
 0x552   : > { %3593 = vst.msk [vmem:[#allocation2 + $0x111] sm:$0xff] %vm3515_vm11, %v3504_v31  ;;  %v10920_v30 = vpack.i.bf16 %v3657_v58, %v3656_v22  ;;  %v3663_v0 = vld [vmem:[#allocation2 + $0x141] sm:$0xff]  ;;  %v3669_v18 = vld [vmem:[#allocation2 + $0xa] sm:$0xff]  ;;  %v11064_v47 = vld [vmem:[#allocation2 + $0x172] sm:$0xff] }
 0x553   : > { %6552 = vmatmul.msk.f32.gmra.mxu3 %vm3515_vm11, %v3866_v57  ;;  %v7091_v19 = vpack.i.bf16 %v3669_v18, %v3668_v52  ;;  %v3686_v52 = vld [vmem:[#allocation2 + $0xda] sm:$0xff]  ;;  %v3872_v18 = vld [vmem:[#allocation2 + $0xb2] sm:$0xff]  ;;  %v11062_v42 = vld [vmem:[#allocation2 + $0x142] sm:$0xff] }
 0x554   : > { %7062 = vrot.lane.b32.xlu0 %v10920_v30, %s7889_s28 }
 0x557   : > { %v3449_v45 = vpop.permute.xlu1 %3448 }
 0x558   : > { %v3435_v56 = vpop.permute.xlu0 %3434  ;;  %v3514_v53 = vsel %vm3482_vm10, %v10664_v33, %v3449_v45  ;;  %v3666_v14 = vld [vmem:[#allocation2 + $0x169] sm:$0xff] }
 0x559   : > { %v3507_v34 = vsel %vm3482_vm10, %v10634_v4, %v3435_v56  ;;  %3603 = vst.msk [vmem:[#allocation2 + $0x189] sm:$0xff] %vm3515_vm11, %v3514_v53  ;;  %v3659_v48 = vld [vmem:[#allocation2 + $0x111] sm:$0xff]  ;;  %v10929_v7 = vpack.i.bf16 %v3667_v44, %v3666_v14  ;;  %v3867_v4 = vld [vmem:[#allocation2 + $0x7a] sm:$0xff]  ;;  %v3684_v45 = vld [vmem:[#allocation2 + $0xc2] sm:$0xff] }
 0x55a   : > { %3596 = vst.msk [vmem:[#allocation2 + $0x139] sm:$0xff] %vm3515_vm11, %v3507_v34  ;;  %v10933_v29 = vpack.i.bf16 %v3659_v48, %v3658_v21  ;;  %v10952_v22 = vpack.i.bf16 %v3868_v6, %v3867_v4  ;;  %v3670_v56 = vld [vmem:[#allocation2 + $0x1a] sm:$0xff]  ;;  %v3869_v53 = vld [vmem:[#allocation2 + $0x92] sm:$0xff]  ;;  %v3671_v14 = vld [vmem:[#allocation2 + $0x22] sm:$0xff]  ;;  %v10973_v21 = vpack.i.bf16 %v10893_v13, %v10876_v25  ;;  %v10991_v25 = vpack.i.bf16 %v3866_v57, %v10912_v40 }
 0x55b   : > { %7087 = vrot.lane.b32.xlu2 %v10929_v7, %s7889_s28  ;;  %6553 = vmatmul.msk.f32.gmra.mxu3 %vm3515_vm11, %v3867_v4  ;;  %v10969_v34 = vpack.i.bf16 %v3671_v14, %v3670_v56  ;;  %v10981_v48 = vld [vmem:[#allocation2 + $0x10a] sm:$0xff]  ;;  %v3870_v4 = vld [vmem:[#allocation2 + $0x9a] sm:$0xff]  ;;  %v11005_v40 = vld [vmem:[#allocation2 + $0xe2] sm:$0xff] }
 0x55c   : > { %7067 = vrot.lane.b32.xlu1 %v10933_v29, %s7889_s28  ;;  %v10993_v13 = vpack.i.bf16 %v3870_v4, %v3869_v53  ;;  %v11031_v56 = vld [vmem:[#allocation2 + $0xfa] sm:$0xff]  ;;  %v11058_v28 = vld [vmem:[#allocation2 + $0x16a] sm:$0xff] }
 0x55d   : > { %v11076_v63 = vpack.i.bf16 %v11064_v47, %v11058_v28 }
 0x560   : > { %v3441_v33 = vpop.permute.xlu0 %3440 }
 0x561   : > { %v3510_v37 = vsel %vm3482_vm10, %v10666_v1, %v3441_v33  ;;  %v3662_v61 = vld [vmem:[#allocation2 + $0x139] sm:$0xff] }
 0x562   : > { %3599 = vst.msk [vmem:[#allocation2 + $0x159] sm:$0xff] %vm3515_vm11, %v3510_v37  ;;  %v10945_v10 = vpack.i.bf16 %v3663_v0, %v3662_v61  ;;  %v10983_v33 = vld [vmem:[#allocation2 + $0x112] sm:$0xff]  ;;  %v11056_v24 = vld [vmem:[#allocation2 + $0x13a] sm:$0xff] }
 0x563   : > { %7102 = vrot.lane.b32.xlu2 %v7101_v46, %s7884_s24  ;;  %6554 = vmatmul.msk.f32.gmra.mxu3 %vm3515_vm11, %v3868_v6  ;;  %v10987_v37 = vpack.i.bf16 %v10983_v33, %v10981_v48  ;;  %v3871_v46 = vld [vmem:[#allocation2 + $0xaa] sm:$0xff]  ;;  %v11072_v41 = vpack.i.bf16 %v11062_v42, %v11056_v24 }
 0x564   : > { %7077 = vrot.lane.b32.xlu0 %v10945_v10, %s7889_s28  ;;  %v11012_v6 = vpack.i.bf16 %v3872_v18, %v3871_v46 }
 0x566   : > { %v11048_v32 = vpop.permute.xlu2 %7012 }
 0x568   : > { %v3447_v1 = vpop.permute.xlu0 %3446 }
 0x569   : > { %v3513_v31 = vsel %vm3482_vm10, %v10691_v17, %v3447_v1  ;;  %v3665_v36 = vld [vmem:[#allocation2 + $0x159] sm:$0xff]  ;;  %v10963_v17 = vld [vmem:[#allocation2 + $0xca] sm:$0xff]  ;;  %v11015_v1 = vpack.i.bf16 %v11005_v40, %v3686_v52 }
 0x56a   : > { %3602 = vst.msk [vmem:[#allocation2 + $0x181] sm:$0xff] %vm3515_vm11, %v3513_v31  ;;  %v10956_v58 = vpack.i.bf16 %v3665_v36, %v3664_v54  ;;  %v10966_v44 = vpack.i.bf16 %v10963_v17, %v3684_v45  ;;  %v11001_v61 = vld [vmem:[#allocation2 + $0x152] sm:$0xff]  ;;  %v11003_v0 = vld [vmem:[#allocation2 + $0x15a] sm:$0xff]  ;;  %v11027_v54 = vld [vmem:[#allocation2 + $0x122] sm:$0xff] }
 0x56b   : > { %7117 = vrot.lane.b32.xlu2 %v10952_v22, %s7884_s24  ;;  %6555 = vmatmul.msk.f32.gmra.mxu3 %vm3515_vm11, %v3869_v53  ;;  %v11009_v57 = vpack.i.bf16 %v11003_v0, %v11001_v61  ;;  %v11025_v31 = vld [vmem:[#allocation2 + $0xf2] sm:$0xff]  ;;  %v11033_v53 = vld [vmem:[#allocation2 + $0x12a] sm:$0xff] }
 0x56c   : > { %7082 = vrot.lane.b32.xlu1 %v10956_v58, %s7889_s28  ;;  %7092 = vrot.lane.b32.xlu0 %v7091_v19, %s7884_s24  ;;  %v11023_v19 = vld [vmem:[#allocation2 + $0x38] sm:$0xff]  ;;  %v11029_v36 = vld [vmem:[#allocation2 + $0x30] sm:$0xff] }
 0x56d   : > { %13107 = vst [vmem:[#allocation51_spill] sm:$0xff] %v11023_v19  ;;  %v11037_v14 = vpack.i.bf16 %v11023_v19, %v11029_v36  ;;  %v3718_v19 = vld [vmem:[#allocation2 + $0xf0] sm:$0xff] }
 0x56e   : > { %13108 = vst [vmem:[#allocation75_spill] sm:$0xff] %v11029_v36  ;;  %v3719_v36 = vld [vmem:[#allocation2 + $0xf8] sm:$0xff] }
 0x573   : > { %7132 = vrot.lane.b32.xlu2 %v10966_v44, %s7884_s24  ;;  %6556 = vmatmul.msk.f32.gmra.mxu3 %vm3515_vm11, %v3870_v4  ;;  %v11042_v4 = vpack.i.bf16 %v11031_v56, %v11025_v31 }
 0x574   : > { %7097 = vrot.lane.b32.xlu1 %v10969_v34, %s7884_s24  ;;  %7107 = vrot.lane.b32.xlu0 %v10973_v21, %s7884_s24 }
 0x57b   : > { %7147 = vrot.lane.b32.xlu2 %v10987_v37, %s7884_s24  ;;  %6557 = vmatmul.msk.f32.gmra.mxu3 %vm3515_vm11, %v3871_v46  ;;  %v11046_v46 = vpack.i.bf16 %v11033_v53, %v11027_v54 }
 0x57c   : > { %7112 = vrot.lane.b32.xlu1 %v10991_v25, %s7884_s24  ;;  %7122 = vrot.lane.b32.xlu0 %v10993_v13, %s7884_s24 }
 0x583   : > { %7162 = vrot.lane.b32.xlu2 %v11009_v57, %s7884_s24  ;;  %6558 = vmatmul.msk.f32.gmra.mxu3 %vm3515_vm11, %v3872_v18  ;;  %v3709_v18 = vld [vmem:[#allocation2 + $0x80] sm:$0xff] }
 0x584   : > { %7127 = vrot.lane.b32.xlu1 %v11012_v6, %s7884_s24  ;;  %7137 = vrot.lane.b32.xlu0 %v11015_v1, %s7884_s24  ;;  %v11067_v43 = vpack.i.bf16 %v3709_v18, %v11060_v38  ;;  %v11084_v18 = vpop.permute.xlu2 %7027 }
 0x585   : > { %13110 = vst [vmem:[#allocation58_spill] sm:$0xff] %v11084_v18 }
 0x58b   : > { %7177 = vrot.lane.b32.xlu2 %v11037_v14, %s7890_s10  ;;  %6559 = vmatmul.msk.f32.gmra.mxu3 %vm3515_vm11, %v3684_v45  ;;  %v11086_v45 = vld [vmem:[#allocation2 + $0x48] sm:$0xff] }
 0x58c   : > { %7142 = vrot.lane.b32.xlu1 %v11042_v4, %s7884_s24  ;;  %7152 = vrot.lane.b32.xlu0 %v11046_v46, %s7884_s24  ;;  %13111 = vst [vmem:[#allocation53_spill] sm:$0xff] %v11086_v45  ;;  %v11102_v50 = vpack.i.bf16 %v11088_v3, %v11086_v45  ;;  %v11109_v11 = vpop.permute.xlu2 %7042  ;;  %v11125_v3 = vpack.i.bf16 %v3617_v51, %v11111_v9  ;;  %v3712_v45 = vld [vmem:[#allocation2 + $0xa8] sm:$0xff] }
 0x58d   : > { %13113 = vst [vmem:[#allocation77_spill] sm:$0xff] %v11109_v11  ;;  %v3623_v11 = vld [vmem:[#allocation2 + $0xe0] sm:$0xff] }
 0x593   : > { %7192 = vrot.lane.b32.xlu2 %v11067_v43, %s7890_s10  ;;  %6560 = vmatmul.msk.f32.gmra.mxu3 %vm3515_vm11, %v10963_v17  ;;  %v3721_v17 = vld [vmem:[#allocation2 + $0x110] sm:$0xff] }
 0x594   : > { %7157 = vrot.lane.b32.xlu1 %v11072_v41, %s7884_s24  ;;  %7167 = vrot.lane.b32.xlu0 %v11076_v63, %s7884_s24  ;;  %v11117_v38 = vpack.i.bf16 %v3721_v17, %v3720_v49  ;;  %v3622_v17 = vld [vmem:[#allocation2 + $0xd8] sm:$0xff]  ;;  %s7891_s24 = smov 64  }
 0x595   : > { %v11141_v9 = vpack.i.bf16 %v3623_v11, %v3622_v17  ;;  %v3634_v17 = vld [vmem:[#allocation2 + $0x168] sm:$0xff] }
 0x597   : > { %v11133_v49 = vpop.permute.xlu2 %7057 }
 0x598   : > { %13117 = vst [vmem:[#allocation78_spill] sm:$0xff] %v11133_v49 }
 0x59b   : > { %7207 = vrot.lane.b32.xlu2 %v11094_v27, %s7890_s10  ;;  %6561 = vmatmul.msk.f32.gmra.mxu3 %vm3515_vm11, %v3686_v52  ;;  %v3727_v52 = vld [vmem:[#allocation2 + $0x158] sm:$0xff] }
 0x59c   : > { %7172 = vrot.lane.b32.xlu1 %v7171_v20, %s7890_s10  ;;  %7182 = vrot.lane.b32.xlu0 %v11102_v50, %s7890_s10  ;;  %v11122_v20 = vpack.i.bf16 %v11115_v55, %v11113_v2  ;;  %v3713_v55 = vld [vmem:[#allocation2 + $0xb0] sm:$0xff] }
 0x59d   : > { %v3726_v2 = vld [vmem:[#allocation2 + $0x150] sm:$0xff]  ;;  %v11139_v51 = vpack.i.bf16 %v3713_v55, %v3712_v45  ;;  %v11153_v55 = vpack.i.bf16 %v3719_v36, %v3718_v19  ;;  %v11165_v11 = vpop.permute.xlu0 %7017  ;;  %v3724_v19 = vld [vmem:[#allocation2 + $0x138] sm:$0xff]  ;;  %v3725_v36 = vld [vmem:[#allocation2 + $0x140] sm:$0xff] }
 0x59e   : > { %v11135_v18 = vpack.i.bf16 %v3727_v52, %v3726_v2  ;;  %v3628_v2 = vld [vmem:[#allocation2 + $0x120] sm:$0xff]  ;;  %v3629_v52 = vld [vmem:[#allocation2 + $0x128] sm:$0xff] }
 0x5a3   : > { %7222 = vrot.lane.b32.xlu2 %v11117_v38, %s7890_s10  ;;  %6562 = vmatmul.msk.f32.gmra.mxu3 %vm3515_vm11, %v11005_v40  ;;  %v11155_v40 = vpack.i.bf16 %v3629_v52, %v3628_v2  ;;  %v11169_v2 = vpack.i.bf16 %v3725_v36, %v3724_v19  ;;  %v3731_v19 = vld [vmem:[#allocation2 + $0x188] sm:$0xff] }
 0x5a4   : > { %7187 = vrot.lane.b32.xlu1 %v11122_v20, %s7890_s10  ;;  %7197 = vrot.lane.b32.xlu0 %v11125_v3, %s7890_s10 }
 0x5a7   : > { %v11149_v49 = vpop.permute.xlu2 %7072 }
 0x5a8   : > { %13118 = vst [vmem:[#allocation61_spill] sm:$0xff] %v11149_v49  ;;  %v11183_v49 = vpop.permute.xlu0 %7032 }
 0x5ab   : > { %7237 = vrot.lane.b32.xlu2 %v11135_v18, %s7890_s10  ;;  %6563 = vmatmul.msk.f32.gmra.mxu3 %vm3515_vm11, %v11025_v31  ;;  %v3635_v31 = vld [vmem:[#allocation2 + $0x170] sm:$0xff] }
 0x5ac   : > { %7202 = vrot.lane.b32.xlu1 %v11139_v51, %s7890_s10  ;;  %7212 = vrot.lane.b32.xlu0 %v11141_v9, %s7890_s10 }
 0x5b3   : > { %7252 = vrot.lane.b32.xlu2 %v10822_v5, %s7891_s24  ;;  %6564 = vmatmul.msk.f32.gmra.mxu3 %vm3515_vm11, %v11031_v56  ;;  %v11171_v5 = vpack.i.bf16 %v3635_v31, %v3634_v17  ;;  %v3730_v56 = vld [vmem:[#allocation2 + $0x180] sm:$0xff] }
 0x5b4   : > { %7217 = vrot.lane.b32.xlu1 %v11153_v55, %s7890_s10  ;;  %7227 = vrot.lane.b32.xlu0 %v11155_v40, %s7890_s10  ;;  %v11187_v17 = vpack.i.bf16 %v3731_v19, %v3730_v56  ;;  %v3763_v56 = vld [vmem:[#allocation2 + $0x189] sm:$0xff] }
 0x5b5   : > { %v11163_v45 = vpop.permute.xlu2 %7087 }
 0x5b6   : > { %13119 = vst [vmem:[#allocation79_spill] sm:$0xff] %v11163_v45  ;;  %v11181_v45 = vpop.permute.xlu1 %7022  ;;  %v11199_v36 = vpop.permute.xlu0 %7047 }
 0x5bb   : > { %7267 = vrot.lane.b32.xlu2 %v10845_v59, %s7891_s24  ;;  %6565 = vmatmul.msk.f32.gmra.mxu3 %vm3515_vm11, %v10981_v48 }
 0x5bc   : > { %7232 = vrot.lane.b32.xlu1 %v11169_v2, %s7890_s10  ;;  %7242 = vrot.lane.b32.xlu0 %v11171_v5, %s7890_s10 }
 0x5bd   : > { %v11179_v52 = vpop.permute.xlu2 %7102 }
 0x5be   : > { %v11197_v31 = vpop.permute.xlu1 %7037 }
 0x5c3   : > { %7282 = vrot.lane.b32.xlu2 %v10884_v39, %s7891_s24  ;;  %6566 = vmatmul.msk.f32.gmra.mxu3 %vm3515_vm11, %v10983_v33  ;;  %v3762_v33 = vld [vmem:[#allocation2 + $0x181] sm:$0xff] }
 0x5c4   : > { %7257 = vrot.lane.b32.xlu0 %v10837_v62, %s7891_s24  ;;  %7247 = vrot.lane.b32.xlu1 %v11187_v17, %s7890_s10  ;;  %v11229_v19 = vpack.i.bf16 %v3763_v56, %v3762_v33  ;;  %v3767_v33 = vld [vmem:[#allocation2 + $0x3a] sm:$0xff] }
 0x5c5   : > { %v11195_v59 = vpop.permute.xlu2 %7117 }
 0x5c6   : > { %v11211_v39 = vpop.permute.xlu1 %7052  ;;  %v11213_v48 = vpop.permute.xlu0 %7062 }
 0x5c7   : > { %13120 = vst [vmem:[#allocation64_spill] sm:$0xff] %v11213_v48 }
 0x5cb   : > { %7297 = vrot.lane.b32.xlu2 %v10920_v30, %s7891_s24  ;;  %6567 = vmatmul.msk.f32.gmra.mxu3 %vm3515_vm11, %v11027_v54 }
 0x5cc   : > { %7272 = vrot.lane.b32.xlu0 %v10863_v35, %s7891_s24  ;;  %7262 = vrot.lane.b32.xlu1 %v10816_v23, %s7891_s24 }
 0x5cd   : > { %v11209_v62 = vpop.permute.xlu2 %7132 }
 0x5ce   : > { %v11225_v23 = vpop.permute.xlu1 %7067 }
 0x5cf   : > { %13122 = vst [vmem:[#allocation82_spill] sm:$0xff] %v11225_v23 }
 0x5d3   : > { %7312 = vrot.lane.b32.xlu2 %v10945_v10, %s7891_s24  ;;  %6568 = vmatmul.msk.f32.gmra.mxu3 %vm3515_vm11, %v11033_v53  ;;  %v11259_v53 = vpop.f32.mrf.mxu3 }
 0x5d4   : > { %7287 = vrot.lane.b32.xlu0 %v10901_v8, %s7891_s24  ;;  %7277 = vrot.lane.b32.xlu1 %v10840_v26, %s7891_s24  ;;  %13126 = vst [vmem:[#allocation86_spill] sm:$0xff] %v11259_v53 }
 0x5d5   : > { %v11223_v35 = vpop.permute.xlu2 %7147 }
 0x5d6   : > { %13121 = vst [vmem:[#allocation80_spill] sm:$0xff] %v11223_v35  ;;  %v11227_v30 = vpop.permute.xlu0 %7077  ;;  %v3853_v35 = vld [vmem:[#allocation2 + $0x151] sm:$0xff] }
 0x5d7   : > { %13123 = vst [vmem:[#allocation83_spill] sm:$0xff] %v11227_v30 }
 0x5db   : > { %7327 = vrot.lane.b32.xlu2 %v11229_v19, %s7891_s24  ;;  %6569 = vmatmul.msk.f32.gmra.mxu3 %vm3515_vm11, %v11056_v24  ;;  %v11275_v56 = vpop.f32.mrf.mxu3 }
 0x5dc   : > { %7302 = vrot.lane.b32.xlu0 %v10933_v29, %s7891_s24  ;;  %7292 = vrot.lane.b32.xlu1 %v10866_v12, %s7891_s24  ;;  %13127 = vst [vmem:[#allocation87_spill] sm:$0xff] %v11275_v56 }
 0x5dd   : > { %v11239_v26 = vpop.permute.xlu2 %7162 }
 0x5de   : > { %13124 = vst [vmem:[#allocation84_spill] sm:$0xff] %v11239_v26  ;;  %v11241_v8 = vpop.permute.xlu0 %7092  ;;  %v11243_v10 = vpop.permute.xlu1 %7082 }
 0x5df   : > { %13125 = vst [vmem:[#allocation85_spill] sm:$0xff] %v11243_v10 }
 0x5e3   : > { %7342 = vrot.lane.b32.xlu2 %v10973_v21, %s7880_s18  ;;  %6570 = vmatmul.msk.f32.gmra.mxu3 %vm3515_vm11, %v11062_v42  ;;  %v3766_v21 = vld [vmem:[#allocation2 + $0x32] sm:$0xff]  ;;  %v11292_v26 = vpop.f32.mrf.mxu3 }
 0x5e4   : > { %7317 = vrot.lane.b32.xlu0 %v10956_v58, %s7891_s24  ;;  %7307 = vrot.lane.b32.xlu1 %v10904_v15, %s7891_s24  ;;  %v7336_v42 = vpack.i.bf16 %v3767_v33, %v3766_v21  ;;  %13129 = vst [vmem:[#allocation89_spill] sm:$0xff] %v11292_v26 }
 0x5e5   : > { %v11253_v29 = vpop.permute.xlu2 %7177 }
 0x5e6   : > { %v11255_v12 = vpop.permute.xlu0 %7107  ;;  %v11257_v54 = vpop.permute.xlu1 %7097 }
 0x5eb   : > { %7357 = vrot.lane.b32.xlu2 %v10993_v13, %s7880_s18  ;;  %6571 = vmatmul.msk.f32.gmra.mxu3 %vm3515_vm11, %v11001_v61 }
 0x5ec   : > { %7332 = vrot.lane.b32.xlu0 %v10969_v34, %s7880_s18  ;;  %7322 = vrot.lane.b32.xlu1 %v10929_v7, %s7891_s24 }
 0x5ed   : > { %v11269_v24 = vpop.permute.xlu2 %7192 }
 0x5ee   : > { %v11271_v15 = vpop.permute.xlu0 %7122  ;;  %v11273_v58 = vpop.permute.xlu1 %7112 }
 0x5f3   : > { %7372 = vrot.lane.b32.xlu2 %v11015_v1, %s7880_s18  ;;  %6572 = vmatmul.msk.f32.gmra.mxu3 %vm3515_vm11, %v11003_v0  ;;  %v11314_v0 = vpop.f32.mrf.mxu3 }
 0x5f4   : > { %7347 = vrot.lane.b32.xlu0 %v10991_v25, %s7880_s18  ;;  %7337 = vrot.lane.b32.xlu1 %v7336_v42, %s7880_s18  ;;  %13133 = vst [vmem:[#allocation93_spill] sm:$0xff] %v11314_v0  ;;  %v7014_v0 = vunpack.i.l.bf16 %v11048_v32 }
 0x5f5   : > { %v11284_v7 = vpop.permute.xlu2 %7207 }
 0x5f6   : > { %v11286_v34 = vpop.permute.xlu0 %7137  ;;  %v11288_v13 = vpop.permute.xlu1 %7127 }
 0x5f7   : > { %13128 = vst [vmem:[#allocation88_spill] sm:$0xff] %v11286_v34 }
 0x5fb   : > { %7387 = vrot.lane.b32.xlu2 %v11046_v46, %s7880_s18  ;;  %6573 = vmatmul.msk.f32.gmra.mxu3 %vm3515_vm11, %v11058_v28  ;;  %v11336_v21 = vpop.f32.mrf.mxu3 }
 0x5fc   : > { %7362 = vrot.lane.b32.xlu0 %v11012_v6, %s7880_s18  ;;  %7352 = vrot.lane.b32.xlu1 %v10952_v22, %s7880_s18  ;;  %13137 = vst [vmem:[#allocation97_spill] sm:$0xff] %v11336_v21  ;;  %v3843_v21 = vld [vmem:[#allocation2 + $0xd9] sm:$0xff] }
 0x5fd   : > { %v11300_v25 = vpop.permute.xlu2 %7222 }
 0x5fe   : > { %13130 = vst [vmem:[#allocation90_spill] sm:$0xff] %v11300_v25  ;;  %v11302_v61 = vpop.permute.xlu0 %7152  ;;  %v11304_v1 = vpop.permute.xlu1 %7142 }
 0x5ff   : > { %13131 = vst [vmem:[#allocation91_spill] sm:$0xff] %v11302_v61  ;;  %v3847_v61 = vld [vmem:[#allocation2 + $0x109] sm:$0xff] }
 0x600   : > { %13132 = vst [vmem:[#allocation92_spill] sm:$0xff] %v11304_v1  ;;  %v7094_v1 = vunpack.i.l.bf16 %v11241_v8 }
 0x603   : > { %7402 = vrot.lane.b32.xlu2 %v11076_v63, %s7880_s18  ;;  %6574 = vmatmul.msk.f32.gmra.mxu3 %vm3515_vm11, %v11064_v47  ;;  %v3890_v47 = vld [vmem:[#allocation2 + $0x18a] sm:$0xff]  ;;  %v11350_v42 = vpop.f32.mrf.mxu3 }
 0x604   : > { %7377 = vrot.lane.b32.xlu0 %v11042_v4, %s7880_s18  ;;  %7367 = vrot.lane.b32.xlu1 %v10966_v44, %s7880_s18  ;;  %v3889_v4 = vld [vmem:[#allocation2 + $0x182] sm:$0xff]  ;;  %13138 = vst [vmem:[#allocation98_spill] sm:$0xff] %v11350_v42  ;;  %v3854_v42 = vld [vmem:[#allocation2 + $0x159] sm:$0xff] }
 0x605   : > { %v11316_v22 = vpop.permute.xlu2 %7237  ;;  %v7406_v33 = vpack.i.bf16 %v3890_v47, %v3889_v4 }
 0x606   : > { %13134 = vst [vmem:[#allocation94_spill] sm:$0xff] %v11316_v22  ;;  %v11318_v6 = vpop.permute.xlu0 %7167  ;;  %v11320_v46 = vpop.permute.xlu1 %7157  ;;  %v3832_v22 = vld [vmem:[#allocation2 + $0x51] sm:$0xff] }
 0x607   : > { %13135 = vst [vmem:[#allocation95_spill] sm:$0xff] %v11318_v6  ;;  %v3829_v6 = vld [vmem:[#allocation2 + $0x31] sm:$0xff] }
 0x608   : > { %13136 = vst [vmem:[#allocation96_spill] sm:$0xff] %v11320_v46 }
 0x60b   : > { %7417 = vrot.lane.b32.xlu2 %v11102_v50, %s7892_s14  ;;  %6575 = vmatmul.msk.f32.gmra.mxu3 %vm3515_vm11, %v3889_v4 }
 0x60c   : > { %7392 = vrot.lane.b32.xlu0 %v11072_v41, %s7880_s18  ;;  %7382 = vrot.lane.b32.xlu1 %v10987_v37, %s7880_s18 }
 0x60d   : > { %v11330_v63 = vpop.permute.xlu2 %7252 }
 0x60e   : > { %v11332_v28 = vpop.permute.xlu0 %7182  ;;  %v11334_v44 = vpop.permute.xlu1 %7172 }
 0x60f   : > { %v7174_v48 = vunpack.i.l.bf16 %v11334_v44 }
 0x613   : > { %7432 = vrot.lane.b32.xlu2 %v11125_v3, %s7892_s14  ;;  %6576 = vmatmul.msk.f32.gmra.mxu3 %vm3515_vm11, %v3890_v47  ;;  %v3831_v47 = vld [vmem:[#allocation2 + $0x49] sm:$0xff] }
 0x614   : > { %7407 = vrot.lane.b32.xlu0 %v7406_v33, %s7880_s18  ;;  %7397 = vrot.lane.b32.xlu1 %v11009_v57, %s7880_s18  ;;  %v3830_v33 = vld [vmem:[#allocation2 + $0x39] sm:$0xff]  ;;  %v7476_v46 = vpack.i.bf16 %v3832_v22, %v3831_v47  ;;  %v3842_v47 = vld [vmem:[#allocation2 + $0xc9] sm:$0xff] }
 0x615   : > { %v11344_v50 = vpop.permute.xlu2 %7267  ;;  %v7461_v10 = vpack.i.bf16 %v3830_v33, %v3829_v6  ;;  %v3827_v22 = vld [vmem:[#allocation2 + $0x198] sm:$0xff] }
 0x616   : > { %v11346_v41 = vpop.permute.xlu0 %7197  ;;  %v11348_v37 = vpop.permute.xlu1 %7187 }
 0x61b   : > { %7447 = vrot.lane.b32.xlu2 %v11141_v9, %s7892_s14 }
 0x61c   : > { %7422 = vrot.lane.b32.xlu0 %v11122_v20, %s7892_s14  ;;  %7412 = vrot.lane.b32.xlu1 %v11037_v14, %s7892_s14 }
 0x61d   : > { %v11359_v3 = vpop.permute.xlu2 %7282 }
 0x61e   : > { %v11361_v57 = vpop.permute.xlu0 %7212  ;;  %v11363_v4 = vpop.permute.xlu1 %7202 }
 0x623   : > { %7462 = vrot.lane.b32.xlu2 %v7461_v10, %s7886_s11 }
 0x624   : > { %7437 = vrot.lane.b32.xlu0 %v11139_v51, %s7892_s14  ;;  %7427 = vrot.lane.b32.xlu1 %v11067_v43, %s7892_s14 }
 0x625   : > { %v11370_v9 = vpop.permute.xlu2 %7297 }
 0x626   : > { %13139 = vst [vmem:[#allocation99_spill] sm:$0xff] %v11370_v9  ;;  %v11372_v14 = vpop.permute.xlu0 %7227  ;;  %v11374_v20 = vpop.permute.xlu1 %7217  ;;  %v7095_v9 = vunpack.i.h.bf16 %v11241_v8 }
 0x627   : > { %13140 = vst [vmem:[#allocation100_spill] sm:$0xff] %v11372_v14  ;;  %v3839_v14 = vld [vmem:[#allocation2 + $0xa9] sm:$0xff] }
 0x628   : > { %13141 = vst [vmem:[#allocation101_spill] sm:$0xff] %v11374_v20 }
 0x62b   : > { %7477 = vrot.lane.b32.xlu2 %v7476_v46, %s7886_s11 }
 0x62c   : > { %7452 = vrot.lane.b32.xlu0 %v11153_v55, %s7892_s14  ;;  %7442 = vrot.lane.b32.xlu1 %v11094_v27, %s7892_s14  ;;  %v3828_v55 = vld [vmem:[#allocation2 + $0x1a0] sm:$0xff] }
 0x62d   : > { %v11381_v51 = vpop.permute.xlu2 %7312  ;;  %v7506_v33 = vpack.i.bf16 %v3828_v55, %v3827_v22  ;;  %v3848_v55 = vld [vmem:[#allocation2 + $0x111] sm:$0xff] }
 0x62e   : > { %13142 = vst [vmem:[#allocation102_spill] sm:$0xff] %v11381_v51  ;;  %v11383_v43 = vpop.permute.xlu0 %7242  ;;  %v11385_v10 = vpop.permute.xlu1 %7232  ;;  %v3837_v51 = vld [vmem:[#allocation2 + $0x91] sm:$0xff] }
 0x62f   : > { %13143 = vst [vmem:[#allocation103_spill] sm:$0xff] %v11383_v43  ;;  %v3841_v43 = vld [vmem:[#allocation2 + $0xc1] sm:$0xff] }
 0x630   : > { %13144 = vst [vmem:[#allocation104_spill] sm:$0xff] %v11385_v10  ;;  %v7521_v30 = vpack.i.bf16 %v3842_v47, %v3841_v43  ;;  %v3836_v10 = vld [vmem:[#allocation2 + $0x81] sm:$0xff]  ;;  %v3838_v43 = vld [vmem:[#allocation2 + $0x99] sm:$0xff]  ;;  %v7536_v47 = vpack.i.bf16 %v3848_v55, %v3847_v61  ;;  %v7551_v55 = vpack.i.bf16 %v3854_v42, %v3853_v35  ;;  %v3845_v42 = vld [vmem:[#allocation2 + $0xf1] sm:$0xff] }
 0x631   : > { %v3844_v61 = vld [vmem:[#allocation2 + $0xe1] sm:$0xff] }
 0x632   : > { %v3849_v35 = vld [vmem:[#allocation2 + $0x121] sm:$0xff] }
 0x633   : > { %7492 = vrot.lane.b32.xlu2 %v11171_v5, %s7892_s14 }
 0x634   : > { %7467 = vrot.lane.b32.xlu0 %v11155_v40, %s7892_s14  ;;  %7457 = vrot.lane.b32.xlu1 %v11117_v38, %s7892_s14 }
 0x635   : > { %v11393_v6 = vpop.permute.xlu2 %7327 }
 0x636   : > { %13145 = vst [vmem:[#allocation105_spill] sm:$0xff] %v11393_v6  ;;  %v11395_v27 = vpop.permute.xlu0 %7257  ;;  %v11397_v46 = vpop.permute.xlu1 %7247  ;;  %v3833_v6 = vld [vmem:[#allocation2 + $0x61] sm:$0xff] }
 0x637   : > { %13146 = vst [vmem:[#allocation106_spill] sm:$0xff] %v11397_v46  ;;  %v3834_v46 = vld [vmem:[#allocation2 + $0x69] sm:$0xff] }
 0x638   : > { %v7486_v22 = vpack.i.bf16 %v3834_v46, %v3833_v6  ;;  %v3835_v6 = vld [vmem:[#allocation2 + $0x79] sm:$0xff]  ;;  %v7511_v46 = vpack.i.bf16 %v3838_v43, %v3837_v51  ;;  %v3840_v51 = vld [vmem:[#allocation2 + $0xb1] sm:$0xff] }
 0x639   : > { %v7516_v43 = vpack.i.bf16 %v3840_v51, %v3839_v14  ;;  %v3850_v14 = vld [vmem:[#allocation2 + $0x129] sm:$0xff] }
 0x63b   : > { %7507 = vrot.lane.b32.xlu2 %v7506_v33, %s7892_s14 }
 0x63c   : > { %7482 = vrot.lane.b32.xlu0 %v11135_v18, %s7892_s14  ;;  %7472 = vrot.lane.b32.xlu1 %v11169_v2, %s7892_s14 }
 0x63d   : > { %v11404_v40 = vpop.permute.xlu2 %7342 }
 0x63e   : > { %v11406_v38 = vpop.permute.xlu0 %7272  ;;  %v11408_v5 = vpop.permute.xlu1 %7262 }
 0x643   : > { %7522 = vrot.lane.b32.xlu2 %v7521_v30, %s7886_s11  ;;  %v7501_v30 = vpack.i.bf16 %v3836_v10, %v3835_v6  ;;  %v7526_v10 = vpack.i.bf16 %v3844_v61, %v3843_v21  ;;  %v3860_v6 = vld [vmem:[#allocation2 + $0x1a1] sm:$0xff]  ;;  %v3846_v61 = vld [vmem:[#allocation2 + $0xf9] sm:$0xff] }
 0x644   : > { %7497 = vrot.lane.b32.xlu0 %v11187_v17, %s7892_s14  ;;  %7487 = vrot.lane.b32.xlu1 %v7486_v22, %s7886_s11  ;;  %v7531_v51 = vpack.i.bf16 %v3846_v61, %v3845_v42  ;;  %v3851_v42 = vld [vmem:[#allocation2 + $0x139] sm:$0xff]  ;;  %v3852_v61 = vld [vmem:[#allocation2 + $0x141] sm:$0xff] }
 0x645   : > { %v11418_v33 = vpop.permute.xlu2 %7357 }
 0x646   : > { %v11414_v18 = vpop.permute.xlu0 %7287  ;;  %v11416_v2 = vpop.permute.xlu1 %7277 }
 0x64b   : > { %7537 = vrot.lane.b32.xlu2 %v7536_v47, %s7886_s11  ;;  %v3859_v47 = vld [vmem:[#allocation2 + $0x199] sm:$0xff] }
 0x64c   : > { %7512 = vrot.lane.b32.xlu0 %v7511_v46, %s7886_s11  ;;  %7502 = vrot.lane.b32.xlu1 %v7501_v30, %s7886_s11  ;;  %v5032_v46 = vld [vmem:[%s12594_s5 + $0x78] sm:$0xff]  ;;  %v7566_v21 = vpack.i.bf16 %v3860_v6, %v3859_v47  ;;  %v5030_v47 = vld [vmem:[%s12594_s5 + $0x68] sm:$0xff] }
 0x64d   : > { %v11427_v23 = vpop.permute.xlu2 %7372  ;;  %5135 = vmatpush.msra.mxu2 %v5032_v46 }
 0x64e   : > { %v11423_v17 = vpop.permute.xlu0 %7302  ;;  %v11425_v22 = vpop.permute.xlu1 %7292  ;;  %13148 = vst [vmem:[#allocation108_spill] sm:$0xff] %v11427_v23 }
 0x64f   : > { %13147 = vst [vmem:[#allocation107_spill] sm:$0xff] %v11423_v17 }
 0x653   : > { %7552 = vrot.lane.b32.xlu2 %v7551_v55, %s7886_s11  ;;  %v7541_v55 = vpack.i.bf16 %v3850_v14, %v3849_v35  ;;  %v3855_v35 = vld [vmem:[#allocation2 + $0x169] sm:$0xff]  ;;  %v3856_v14 = vld [vmem:[#allocation2 + $0x171] sm:$0xff] }
 0x654   : > { %7527 = vrot.lane.b32.xlu0 %v7526_v10, %s7886_s11  ;;  %7517 = vrot.lane.b32.xlu1 %v7516_v43, %s7886_s11  ;;  %v5031_v43 = vld [vmem:[%s12594_s5 + $0x70] sm:$0xff] }
 0x655   : > { %v11439_v10 = vpop.permute.xlu2 %7387  ;;  %5136 = vmatpush.msra.mxu2 %v5031_v43 }
 0x656   : > { %v11435_v30 = vpop.permute.xlu0 %7317  ;;  %v11437_v17 = vpop.permute.xlu1 %7307  ;;  %13151 = vst [vmem:[#allocation111_spill] sm:$0xff] %v11439_v10 }
 0x657   : > { %13149 = vst [vmem:[#allocation109_spill] sm:$0xff] %v11435_v30  ;;  %5137 = vmatpush.msra.mxu2 %v5030_v47  ;;  %v5028_v30 = vld [vmem:[%s12594_s5 + $0x58] sm:$0xff]  ;;  %v5027_v47 = vld [vmem:[%s12594_s5 + $0x50] sm:$0xff] }
 0x658   : > { %13150 = vst [vmem:[#allocation110_spill] sm:$0xff] %v11437_v17 }
 0x65b   : > { %7567 = vrot.lane.b32.xlu2 %v7566_v21, %s7886_s11  ;;  %v5029_v21 = vld [vmem:[%s12594_s5 + $0x60] sm:$0xff] }
 0x65c   : > { %7542 = vrot.lane.b32.xlu0 %v7541_v55, %s7886_s11  ;;  %7532 = vrot.lane.b32.xlu1 %v7531_v51, %s7886_s11  ;;  %v7556_v55 = vpack.i.bf16 %v3856_v14, %v3855_v35  ;;  %v7546_v51 = vpack.i.bf16 %v3852_v61, %v3851_v42  ;;  %v5026_v42 = vld [vmem:[%s12594_s5 + $0x48] sm:$0xff]  ;;  %v5023_v14 = vld [vmem:[%s12594_s5 + $0x30] sm:$0xff] }
 0x65d   : > { %5138 = vmatpush.msra.mxu2 %v5029_v21  ;;  %v11462_v43 = vpop.permute.xlu2 %7402  ;;  %v5025_v21 = vld [vmem:[%s12594_s5 + $0x40] sm:$0xff] }
 0x65e   : > { %v11450_v6 = vpop.permute.xlu0 %7332  ;;  %v11452_v46 = vpop.permute.xlu1 %7322  ;;  %13153 = vst [vmem:[#allocation113_spill] sm:$0xff] %v11462_v43 }
 0x65f   : > { %13152 = vst [vmem:[#allocation112_spill] sm:$0xff] %v11452_v46  ;;  %5139 = vmatpush.msra.mxu2 %v5028_v30  ;;  %v5024_v30 = vld [vmem:[%s12594_s5 + $0x38] sm:$0xff]  ;;  %v7334_v56 = vunpack.i.l.bf16 %v11450_v6 }
 0x661   : > { %5140 = vmatpush.msra.mxu2 %v5027_v47 }
 0x663   : > { %5141 = vmatpush.msra.mxu2 %v5026_v42  ;;  %v5020_v42 = vld [vmem:[%s12594_s5 + $0x18] sm:$0xff] }
 0x664   : > { %7557 = vrot.lane.b32.xlu0 %v7556_v55, %s7886_s11  ;;  %7547 = vrot.lane.b32.xlu1 %v7546_v51, %s7886_s11  ;;  %v5022_v51 = vld [vmem:[%s12594_s5 + $0x28] sm:$0xff] }
 0x665   : > { %5142 = vmatpush.msra.mxu2 %v5025_v21  ;;  %v11492_v47 = vpop.permute.xlu2 %7417  ;;  %v5019_v21 = vld [vmem:[%s12594_s5 + $0x10] sm:$0xff] }
 0x666   : > { %v11467_v46 = vpop.permute.xlu0 %7347  ;;  %v11469_v35 = vpop.permute.xlu1 %7337 }
 0x667   : > { %5143 = vmatpush.msra.mxu2 %v5024_v30 }
 0x669   : > { %5144 = vmatpush.msra.mxu2 %v5023_v14  ;;  %v5018_v14 = vld [vmem:[%s12594_s5 + $0x8] sm:$0xff] }
 0x66b   : > { %5145 = vmatpush.msra.mxu2 %v5022_v51  ;;  %v5017_v51 = vld [vmem:[%s12594_s5] sm:$0xff] }
 0x66c   : > { %7562 = vrot.lane.b32.xlu1 %v11229_v19, %s7886_s11  ;;  %v5021_v19 = vld [vmem:[%s12594_s5 + $0x20] sm:$0xff] }
 0x66d   : > { %5146 = vmatpush.msra.mxu2 %v5021_v19  ;;  %v11513_v10 = vpop.permute.xlu2 %7432 }
 0x66e   : > { %v11485_v61 = vpop.permute.xlu0 %7362  ;;  %v11487_v55 = vpop.permute.xlu1 %7352 }
 0x66f   : > { %5147 = vmatpush.msra.mxu2 %v5020_v42 }
 0x671   : > { %5148 = vmatpush.msra.mxu2 %v5019_v21  ;;  %v3604_v21 = vld [vmem:[#allocation2] sm:$0xff] }
 0x672   : > { %v4789_v26 = vsel %vm3515_vm11, %v3604_v21, %v7014_v0  ;;  %v7175_v0 = vunpack.i.h.bf16 %v11334_v44  ;;  %v7335_v44 = vunpack.i.h.bf16 %v11450_v6 }
 0x673   : > { %5149 = vmatpush.msra.mxu2 %v5018_v14  ;;  %v4821_v14 = vsel %vm1943_vm9, %v4789_v26, %v7094_v1 }
 0x675   : > { %5150 = vmatpush.msra.mxu2 %v5017_v51  ;;  %v11519_v17 = vpop.permute.xlu2 %7447  ;;  %v7254_v51 = vunpack.i.l.bf16 %v11330_v63 }
 0x676   : > { %v11503_v30 = vpop.permute.xlu1 %7367  ;;  %v11508_v43 = vpop.permute.xlu0 %7377 }
 0x677   : > { %13154 = vst [vmem:[#allocation114_spill] sm:$0xff] %v11508_v43  ;;  %v3605_v43 = vld [vmem:[#allocation2 + $0x8] sm:$0xff] }
 0x67d   : > { %v7463_v20 = vpop.permute.xlu2 %7462 }
 0x67e   : > { %v11515_v19 = vpop.permute.xlu1 %7382  ;;  %v11517_v42 = vpop.permute.xlu0 %7392 }
 0x67f   : > { %13155 = vst [vmem:[#allocation115_spill] sm:$0xff] %v11515_v19  ;;  %v4854_v19 = vsel %vm4853_vm13, %v4821_v14, %v7174_v48 }
 0x680   : > { %13156 = vst [vmem:[#allocation116_spill] sm:$0xff] %v11517_v42  ;;  %v7015_v42 = vunpack.i.h.bf16 %v11048_v32  ;;  %v4887_v1 = vsel %vm4886_vm14, %v4854_v19, %v7254_v51  ;;  %v7464_v32 = vunpack.i.l.bf16 %v7463_v20 }
 0x681   : > { %v4919_v48 = vsel %vm1811_vm3, %v4887_v1, %v7334_v56  ;;  %v7099_v56 = vunpack.i.l.bf16 %v11257_v54 }
 0x682   : > { %v4790_v34 = vsel %vm3515_vm11, %v3605_v43, %v7015_v42  ;;  %v7019_v43 = vunpack.i.l.bf16 %v11165_v11 }
 0x683   : > { %v4822_v14 = vsel %vm1943_vm9, %v4790_v34, %v7095_v9 }
 0x684   : > { %v4855_v8 = vsel %vm4853_vm13, %v4822_v14, %v7175_v0  ;;  %v4791_v6 = vsel %vm3515_vm11, %v11090_v60, %v7019_v43  ;;  %v7100_v14 = vunpack.i.h.bf16 %v11257_v54  ;;  %v7419_v60 = vunpack.i.l.bf16 %v11492_v47 }
 0x685   : > { %v4823_v0 = vsel %vm1943_vm9, %v4791_v6, %v7099_v56  ;;  %v7478_v1 = vpop.permute.xlu2 %7477  ;;  %v7180_v56 = vunpack.i.h.bf16 %v11253_v29  ;;  %v7260_v54 = vunpack.i.h.bf16 %v11395_v27 }
 0x686   : > { %v11522_v25 = vpop.permute.xlu1 %7397 }
 0x687   : > { %13157 = vst [vmem:[#allocation117_spill] sm:$0xff] %v11522_v25  ;;  %v11532_v25 = vpop.permute.xlu0 %7407 }
 0x688   : > { %13158 = vst [vmem:[#allocation118_spill] sm:$0xff] %v11532_v25  ;;  %v7255_v25 = vunpack.i.h.bf16 %v11330_v63 }
 0x68a   : > { %v4888_v42 = vsel %vm4886_vm14, %v4855_v8, %v7255_v25  ;;  %v7339_v25 = vunpack.i.l.bf16 %v11469_v35  ;;  %v7479_v8 = vunpack.i.l.bf16 %v7478_v1 }
 0x68b   : > { %v4920_v9 = vsel %vm1811_vm3, %v4888_v42, %v7335_v44 }
 0x68e   : > { %v7413_v21 = vpop.permute.xlu1 %7412 }
 0x68f   : > { %v7414_v26 = vunpack.i.l.bf16 %v7413_v21  ;;  %v7415_v19 = vunpack.i.h.bf16 %v7413_v21  ;;  %v11548_v34 = vpop.permute.xlu0 %7422  ;;  %v7259_v21 = vunpack.i.l.bf16 %v11395_v27 }
 0x691   : > { %v4952_v53 = vsel %vm4951_vm15, %v4919_v48, %v7414_v26  ;;  %v4953_v51 = vsel %vm4951_vm15, %v4920_v9, %v7415_v19 }
 0x692   : > { %v4985_v23 = vsel %vm4984_vm0, %v4952_v53, %v7464_v32  ;;  %v7179_v53 = vunpack.i.l.bf16 %v11253_v29  ;;  %v7020_v32 = vunpack.i.h.bf16 %v11165_v11  ;;  %v7480_v29 = vunpack.i.h.bf16 %v7478_v1 }
 0x693   : > { %5151 = vmatmul.f32.vlgmr.msra.gmra.mxu2 %v4985_v23  ;;  %v7465_v23 = vunpack.i.h.bf16 %v7463_v20  ;;  %v7264_v1 = vunpack.i.l.bf16 %v11408_v5 }
 0x694   : > { %v4856_v48 = vsel %vm4853_vm13, %v4823_v0, %v7179_v53  ;;  %v4792_v43 = vsel %vm3515_vm11, %v11092_v16, %v7020_v32  ;;  %v7104_v32 = vunpack.i.l.bf16 %v11179_v52 }
 0x695   : > { %v4986_v26 = vsel %vm4984_vm0, %v4953_v51, %v7465_v23  ;;  %v4889_v20 = vsel %vm4886_vm14, %v4856_v48, %v7259_v21  ;;  %v4824_v11 = vsel %vm1943_vm9, %v4792_v43, %v7100_v14  ;;  %v7340_v51 = vunpack.i.h.bf16 %v11469_v35  ;;  %v13159_v14 = vld [vmem:[#allocation75_spill] sm:$0xff] }
 0x696   : > { %v11550_v63 = vpop.permute.xlu1 %7427  ;;  %v4921_v19 = vsel %vm1811_vm3, %v4889_v20, %v7339_v25  ;;  %v4857_v53 = vsel %vm4853_vm13, %v4824_v11, %v7180_v56  ;;  %v7420_v23 = vunpack.i.h.bf16 %v11492_v47  ;;  %v7184_v47 = vunpack.i.l.bf16 %v11332_v28 }
 0x697   : > { %v11572_v42 = vpop.permute.xlu0 %7437  ;;  %v4954_v9 = vsel %vm4951_vm15, %v4921_v19, %v7419_v60  ;;  %v4890_v16 = vsel %vm4886_vm14, %v4857_v53, %v7260_v54  ;;  %v7344_v19 = vunpack.i.l.bf16 %v11404_v40  ;;  %v7424_v43 = vunpack.i.l.bf16 %v11548_v34 }
 0x698   : > { %v4987_v6 = vsel %vm4984_vm0, %v4954_v9, %v7479_v8  ;;  %v4922_v21 = vsel %vm1811_vm3, %v4890_v16, %v7340_v51  ;;  %v7025_v54 = vunpack.i.h.bf16 %v11181_v45  ;;  %v7105_v9 = vunpack.i.h.bf16 %v11179_v52 }
 0x699   : > { %v4955_v27 = vsel %vm4951_vm15, %v4922_v21, %v7420_v23  ;;  %v7265_v16 = vunpack.i.h.bf16 %v11408_v5  ;;  %v13160_v21 = vld [vmem:[#allocation51_spill] sm:$0xff]  ;;  %v7345_v52 = vunpack.i.h.bf16 %v11404_v40 }
 0x69a   : > { %v4988_v35 = vsel %vm4984_vm0, %v4955_v27, %v7480_v29  ;;  %v4794_v27 = vsel %vm3515_vm11, %v13160_v21, %v7025_v54  ;;  %v7269_v54 = vunpack.i.l.bf16 %v11344_v50 }
 0x69b   : > { %5154 = vmatmul.f32.gmra.mxu2 %v4986_v26  ;;  %v7024_v26 = vunpack.i.l.bf16 %v11181_v45 }
 0x69d   : > { %v4793_v60 = vsel %vm3515_vm11, %v13159_v14, %v7024_v26  ;;  %v4826_v26 = vsel %vm1943_vm9, %v4794_v27, %v7105_v9  ;;  %v7109_v14 = vunpack.i.l.bf16 %v11255_v12  ;;  %v7190_v27 = vunpack.i.h.bf16 %v11348_v37 }
 0x69e   : > { %v11566_v44 = vpop.permute.xlu1 %7442  ;;  %v4825_v20 = vsel %vm1943_vm9, %v4793_v60, %v7104_v32 }
 0x69f   : > { %v11586_v25 = vpop.permute.xlu0 %7452  ;;  %v4858_v8 = vsel %vm4853_vm13, %v4825_v20, %v7184_v47  ;;  %v13161_v47 = vld [vmem:[#allocation58_spill] sm:$0xff]  ;;  %v7189_v20 = vunpack.i.l.bf16 %v11348_v37 }
 0x6a0   : > { %v4891_v11 = vsel %vm4886_vm14, %v4858_v8, %v7264_v1  ;;  %v7029_v5 = vunpack.i.l.bf16 %v13161_v47 }
 0x6a1   : > { %v4923_v23 = vsel %vm1811_vm3, %v4891_v11, %v7344_v19 }
 0x6a2   : > { %v4956_v29 = vsel %vm4951_vm15, %v4923_v23, %v7424_v43  ;;  %v13162_v43 = vld [vmem:[#allocation53_spill] sm:$0xff]  ;;  %v7030_v23 = vunpack.i.h.bf16 %v13161_v47 }
 0x6a3   : > { %5157 = vmatmul.f32.gmra.mxu2 %v4987_v6  ;;  %v7185_v6 = vunpack.i.h.bf16 %v11332_v28  ;;  %v7425_v28 = vunpack.i.h.bf16 %v11548_v34  ;;  %v4795_v40 = vsel %vm3515_vm11, %v13162_v43, %v7029_v5  ;;  %v7270_v5 = vunpack.i.h.bf16 %v11344_v50  ;;  %v13164_v43 = vld [vmem:[#allocation9_spill] sm:$0xff] }
 0x6a4   : > { %v4827_v11 = vsel %vm1943_vm9, %v4795_v40, %v7109_v14  ;;  %v7114_v14 = vunpack.i.l.bf16 %v11273_v58 }
 0x6a5   : > { %v4859_v45 = vsel %vm4853_vm13, %v4826_v26, %v7185_v6  ;;  %v7349_v6 = vunpack.i.l.bf16 %v11467_v46 }
 0x6a6   : > { %v11582_v0 = vpop.permute.xlu1 %7457  ;;  %v4892_v32 = vsel %vm4886_vm14, %v4859_v45, %v7265_v16 }
 0x6a7   : > { %v11601_v56 = vpop.permute.xlu0 %7467  ;;  %v4924_v8 = vsel %vm1811_vm3, %v4892_v32, %v7345_v52  ;;  %v13163_v52 = vld [vmem:[#allocation4_spill] sm:$0xff] }
 0x6a8   : > { %v4957_v19 = vsel %vm4951_vm15, %v4924_v8, %v7425_v28  ;;  %v4796_v28 = vsel %vm3515_vm11, %v13163_v52, %v7030_v23  ;;  %v7115_v23 = vunpack.i.h.bf16 %v11273_v58  ;;  %v7195_v52 = vunpack.i.h.bf16 %v11269_v24 }
 0x6a9   : > { %v7355_v58 = vunpack.i.h.bf16 %v11487_v55 }
 0x6ab   : > { %5160 = vmatmul.f32.gmra.mxu2 %v4988_v35 }
 0x6ae   : > { %v11591_v48 = vpop.permute.xlu1 %7472 }
 0x6af   : > { %v11620_v60 = vpop.permute.xlu0 %7482 }
 0x6b6   : > { %v7488_v51 = vpop.permute.xlu1 %7487 }
 0x6b7   : > { %v7489_v53 = vunpack.i.l.bf16 %v7488_v51  ;;  %v7490_v1 = vunpack.i.h.bf16 %v7488_v51  ;;  %v4860_v51 = vsel %vm4853_vm13, %v4827_v11, %v7189_v20  ;;  %v11638_v26 = vpop.permute.xlu0 %7497  ;;  %v7430_v20 = vunpack.i.h.bf16 %v11550_v63 }
 0x6b8   : > { %v4893_v21 = vsel %vm4886_vm14, %v4860_v51, %v7269_v54  ;;  %v7274_v54 = vunpack.i.l.bf16 %v11406_v38  ;;  %v7354_v51 = vunpack.i.l.bf16 %v11487_v55  ;;  %v7199_v55 = vunpack.i.l.bf16 %v11346_v41 }
 0x6b9   : > { %v4989_v35 = vsel %vm4984_vm0, %v4956_v29, %v7489_v53  ;;  %v4990_v34 = vsel %vm4984_vm0, %v4957_v19, %v7490_v1  ;;  %v7429_v53 = vunpack.i.l.bf16 %v11550_v63  ;;  %v7110_v29 = vunpack.i.h.bf16 %v11255_v12 }
 0x6ba   : > { %5163 = vmatmul.f32.gmra.mxu2 %v4989_v35  ;;  %v4925_v35 = vsel %vm1811_vm3, %v4893_v21, %v7349_v6  ;;  %v7034_v12 = vunpack.i.l.bf16 %v11183_v49  ;;  %v7350_v1 = vunpack.i.h.bf16 %v11467_v46  ;;  %v7035_v6 = vunpack.i.h.bf16 %v11183_v49 }
 0x6bb   : > { %v4958_v45 = vsel %vm4951_vm15, %v4925_v35, %v7429_v53  ;;  %v4828_v47 = vsel %vm1943_vm9, %v4796_v28, %v7110_v29  ;;  %v13165_v35 = vld [vmem:[#allocation74_spill] sm:$0xff]  ;;  %v7275_v49 = vunpack.i.h.bf16 %v11406_v38  ;;  %v7119_v38 = vunpack.i.l.bf16 %v11195_v59 }
 0x6bc   : > { %v4861_v37 = vsel %vm4853_vm13, %v4828_v47, %v7190_v27  ;;  %v4797_v40 = vsel %vm3515_vm11, %v13164_v43, %v7034_v12  ;;  %v7435_v12 = vunpack.i.h.bf16 %v11513_v10  ;;  %v13166_v43 = vld [vmem:[#allocation76_spill] sm:$0xff] }
 0x6bd   : > { %v4894_v19 = vsel %vm4886_vm14, %v4861_v37, %v7270_v5  ;;  %v4829_v11 = vsel %vm1943_vm9, %v4797_v40, %v7114_v14 }
 0x6be   : > { %v7503_v9 = vpop.permute.xlu1 %7502  ;;  %v4926_v50 = vsel %vm1811_vm3, %v4894_v19, %v7350_v1  ;;  %v7039_v1 = vunpack.i.l.bf16 %v11197_v31 }
 0x6bf   : > { %v7504_v16 = vunpack.i.l.bf16 %v7503_v9  ;;  %v7505_v8 = vunpack.i.h.bf16 %v7503_v9  ;;  %v4959_v46 = vsel %vm4951_vm15, %v4926_v50, %v7430_v20  ;;  %v7513_v9 = vpop.permute.xlu0 %7512  ;;  %v11681_v20 = vpop.permute.xlu2 %7492 }
 0x6c0   : > { %v7514_v21 = vunpack.i.l.bf16 %v7513_v9 }
 0x6c1   : > { %v4991_v32 = vsel %vm4984_vm0, %v4958_v45, %v7504_v16  ;;  %v4992_v63 = vsel %vm4984_vm0, %v4959_v46, %v7505_v8  ;;  %v7434_v16 = vunpack.i.l.bf16 %v11513_v10  ;;  %v4798_v45 = vsel %vm3515_vm11, %v13165_v35, %v7035_v6 }
 0x6c2   : > { %5166 = vmatmul.f32.gmra.mxu2 %v4990_v34  ;;  %v7194_v34 = vunpack.i.l.bf16 %v11269_v24  ;;  %v4830_v28 = vsel %vm1943_vm9, %v4798_v45, %v7115_v23  ;;  %v7515_v24 = vunpack.i.h.bf16 %v7513_v9  ;;  %v7279_v8 = vunpack.i.l.bf16 %v11416_v2 }
 0x6c3   : > { %v4863_v5 = vsel %vm4853_vm13, %v4830_v28, %v7195_v52  ;;  %v4799_v10 = vsel %vm3515_vm11, %v13166_v43, %v7039_v1  ;;  %v7439_v46 = vunpack.i.l.bf16 %v11572_v42  ;;  %v7120_v6 = vunpack.i.h.bf16 %v11195_v59  ;;  %v13167_v52 = vld [vmem:[#allocation77_spill] sm:$0xff] }
 0x6c4   : > { %v4862_v53 = vsel %vm4853_vm13, %v4829_v11, %v7194_v34  ;;  %v4896_v37 = vsel %vm4886_vm14, %v4863_v5, %v7275_v49  ;;  %v4831_v34 = vsel %vm1943_vm9, %v4799_v10, %v7119_v38  ;;  %v7044_v59 = vunpack.i.l.bf16 %v13167_v52  ;;  %v13168_v5 = vld [vmem:[#allocation56_spill] sm:$0xff] }
 0x6c5   : > { %v4895_v29 = vsel %vm4886_vm14, %v4862_v53, %v7274_v54  ;;  %v4928_v14 = vsel %vm1811_vm3, %v4896_v37, %v7355_v58  ;;  %v4864_v11 = vsel %vm4853_vm13, %v4831_v34, %v7199_v55  ;;  %v7359_v54 = vunpack.i.l.bf16 %v11418_v33 }
 0x6c6   : > { %v4927_v27 = vsel %vm1811_vm3, %v4895_v29, %v7354_v51  ;;  %v4961_v19 = vsel %vm4951_vm15, %v4928_v14, %v7435_v12  ;;  %v7518_v50 = vpop.permute.xlu1 %7517  ;;  %v4897_v51 = vsel %vm4886_vm14, %v4864_v11, %v7279_v8  ;;  %v7200_v53 = vunpack.i.h.bf16 %v11346_v41 }
 0x6c7   : > { %v4994_v40 = vsel %vm4984_vm0, %v4961_v19, %v7515_v24  ;;  %v7519_v9 = vunpack.i.l.bf16 %v7518_v50  ;;  %v4929_v23 = vsel %vm1811_vm3, %v4897_v51, %v7359_v54  ;;  %v11699_v29 = vpop.permute.xlu2 %7507  ;;  %v7360_v28 = vunpack.i.h.bf16 %v11418_v33  ;;  %v7850_v54 = vld [vmem:[#allocation2 + $0x98] sm:$0xff] }
 0x6c8   : > { %v7440_v49 = vunpack.i.h.bf16 %v11572_v42  ;;  %v7204_v58 = vunpack.i.l.bf16 %v11363_v4  ;;  %v4801_v12 = vsel %vm3515_vm11, %v13168_v5, %v7044_v59  ;;  %v7284_v24 = vunpack.i.l.bf16 %v11359_v3 }
 0x6c9   : > { %v7364_v42 = vunpack.i.l.bf16 %v11485_v61  ;;  %v7444_v8 = vunpack.i.l.bf16 %v11566_v44  ;;  %v7045_v19 = vunpack.i.h.bf16 %v13167_v52  ;;  %v7125_v43 = vunpack.i.h.bf16 %v11271_v15 }
 0x6ca   : > { %5169 = vmatmul.f32.gmra.mxu2 %v4991_v32  ;;  %v4960_v32 = vsel %vm4951_vm15, %v4927_v27, %v7434_v16  ;;  %v7280_v16 = vunpack.i.h.bf16 %v11416_v2  ;;  %v7849_v27 = vld [vmem:[#allocation2 + $0x80] sm:$0xff]  ;;  %v7124_v2 = vunpack.i.l.bf16 %v11271_v15  ;;  %v7365_v15 = vunpack.i.h.bf16 %v11485_v61 }
 0x6cb   : > { %v4993_v47 = vsel %vm4984_vm0, %v4960_v32, %v7514_v21  ;;  %v4962_v21 = vsel %vm4951_vm15, %v4929_v23, %v7439_v46  ;;  %v4802_v46 = vsel %vm3515_vm11, %v7850_v54, %v7045_v19  ;;  %v7129_v23 = vunpack.i.l.bf16 %v11288_v13 }
 0x6cc   : > { %v4995_v45 = vsel %vm4984_vm0, %v4962_v21, %v7519_v9  ;;  %v4833_v1 = vsel %vm1943_vm9, %v4801_v12, %v7124_v2  ;;  %v4834_v51 = vsel %vm1943_vm9, %v4802_v46, %v7125_v43  ;;  %v7209_v61 = vunpack.i.l.bf16 %v11284_v7  ;;  %v7852_v12 = vld [vmem:[#allocation2 + $0xb0] sm:$0xff]  ;;  %v13169_v46 = vld [vmem:[#allocation108_spill] sm:$0xff] }
 0x6cd   : > { %v4866_v14 = vsel %vm4853_vm13, %v4833_v1, %v7204_v58  ;;  %v7369_v52 = vunpack.i.l.bf16 %v11503_v30  ;;  %v7210_v1 = vunpack.i.h.bf16 %v11284_v7  ;;  %v7214_v43 = vunpack.i.l.bf16 %v11361_v57 }
 0x6ce   : > { %v4899_v10 = vsel %vm4886_vm14, %v4866_v14, %v7284_v24 }
 0x6cf   : > { %v7523_v55 = vpop.permute.xlu2 %7522 }
 0x6d0   : > { %v7524_v34 = vunpack.i.l.bf16 %v7523_v55  ;;  %v7525_v21 = vunpack.i.h.bf16 %v7523_v55 }
 0x6d2   : > { %5172 = vmatmul.f32.gmra.mxu2 %v4992_v63  ;;  %v7040_v63 = vunpack.i.h.bf16 %v11197_v31 }
 0x6d4   : > { %v4800_v35 = vsel %vm3515_vm11, %v7849_v27, %v7040_v63  ;;  %v7285_v63 = vunpack.i.h.bf16 %v11359_v3 }
 0x6d5   : > { %v4832_v31 = vsel %vm1943_vm9, %v4800_v35, %v7120_v6  ;;  %v7851_v35 = vld [vmem:[#allocation2 + $0xa8] sm:$0xff] }
 0x6d6   : > { %v4865_v41 = vsel %vm4853_vm13, %v4832_v31, %v7200_v53  ;;  %v7049_v53 = vunpack.i.l.bf16 %v11199_v36 }
 0x6d7   : > { %v4898_v32 = vsel %vm4886_vm14, %v4865_v41, %v7280_v16  ;;  %v7528_v41 = vpop.permute.xlu0 %7527 }
 0x6d8   : > { %v4930_v37 = vsel %vm1811_vm3, %v4898_v32, %v7360_v28  ;;  %v7050_v28 = vunpack.i.h.bf16 %v11199_v36  ;;  %v7449_v32 = vunpack.i.l.bf16 %v11519_v17  ;;  %v7290_v36 = vunpack.i.h.bf16 %v11414_v18 }
 0x6d9   : > { %v4963_v33 = vsel %vm4951_vm15, %v4930_v37, %v7440_v49  ;;  %v7130_v49 = vunpack.i.h.bf16 %v11288_v13  ;;  %v7370_v13 = vunpack.i.h.bf16 %v11503_v30  ;;  %v7530_v7 = vunpack.i.h.bf16 %v7528_v41 }
 0x6da   : > { %5175 = vmatmul.f32.gmra.mxu2 %v4993_v47  ;;  %v7520_v47 = vunpack.i.h.bf16 %v7518_v50  ;;  %v4931_v50 = vsel %vm1811_vm3, %v4899_v10, %v7364_v42  ;;  %v4804_v37 = vsel %vm3515_vm11, %v7852_v12, %v7050_v28  ;;  %v7294_v30 = vunpack.i.l.bf16 %v11425_v22 }
 0x6db   : > { %v4964_v11 = vsel %vm4951_vm15, %v4931_v50, %v7444_v8  ;;  %v4836_v24 = vsel %vm1943_vm9, %v4804_v37, %v7130_v49  ;;  %v7054_v8 = vunpack.i.l.bf16 %v11211_v39  ;;  %v7855_v37 = vld [vmem:[#allocation2 + $0xd8] sm:$0xff] }
 0x6dc   : > { %v4996_v38 = vsel %vm4984_vm0, %v4963_v33, %v7520_v47  ;;  %v4997_v6 = vsel %vm4984_vm0, %v4964_v11, %v7524_v34  ;;  %v7529_v47 = vunpack.i.l.bf16 %v7528_v41  ;;  %v4869_v42 = vsel %vm4853_vm13, %v4836_v24, %v7210_v1  ;;  %v7533_v11 = vpop.permute.xlu1 %7532 }
 0x6dd   : > { %v4902_v55 = vsel %vm4886_vm14, %v4869_v42, %v7290_v36  ;;  %v7375_v41 = vunpack.i.h.bf16 %v13169_v46 }
 0x6de   : > { %v4934_v19 = vsel %vm1811_vm3, %v4902_v55, %v7370_v13  ;;  %v13174_v13 = vld [vmem:[#allocation99_spill] sm:$0xff] }
 0x6e2   : > { %5178 = vmatmul.f32.gmra.mxu2 %v4994_v40  ;;  %v7205_v40 = vunpack.i.h.bf16 %v11363_v4  ;;  %v7445_v4 = vunpack.i.h.bf16 %v11566_v44  ;;  %v7289_v44 = vunpack.i.l.bf16 %v11414_v18  ;;  %v7134_v18 = vunpack.i.l.bf16 %v11209_v62 }
 0x6e4   : > { %v4867_v9 = vsel %vm4853_vm13, %v4834_v51, %v7205_v40  ;;  %v7853_v40 = vld [vmem:[#allocation2 + $0xc0] sm:$0xff]  ;;  %v7374_v51 = vunpack.i.l.bf16 %v13169_v46 }
 0x6e5   : > { %v4900_v16 = vsel %vm4886_vm14, %v4867_v9, %v7285_v63  ;;  %v4805_v34 = vsel %vm3515_vm11, %v7853_v40, %v7054_v8  ;;  %v11776_v63 = vld [vmem:[%s12595_s6] ss:$0 sm:$0xff]  ;;  %v7454_v9 = vunpack.i.l.bf16 %v11586_v25  ;;  %v13176_v8 = vld [vmem:[#allocation87_spill] sm:$0xff] }
 0x6e6   : > { %v4932_v27 = vsel %vm1811_vm3, %v4900_v16, %v7365_v15  ;;  %v4837_v50 = vsel %vm1943_vm9, %v4805_v34, %v7134_v18  ;;  %v7215_v16 = vunpack.i.h.bf16 %v11361_v57  ;;  %v13171_v57 = vld [vmem:[#allocation78_spill] sm:$0xff]  ;;  %v7538_v18 = vpop.permute.xlu2 %7537  ;;  %v7856_v46 = vld [vmem:[#allocation2 + $0xe0] sm:$0xff] }
 0x6e7   : > { %v4965_v3 = vsel %vm4951_vm15, %v4932_v27, %v7445_v4  ;;  %v4870_v54 = vsel %vm4853_vm13, %v4837_v50, %v7214_v43  ;;  %v7534_v4 = vunpack.i.l.bf16 %v7533_v11  ;;  %v7459_v43 = vunpack.i.l.bf16 %v11582_v0 }
 0x6e8   : > { %v4998_v59 = vsel %vm4984_vm0, %v4965_v3, %v7525_v21  ;;  %v4903_v15 = vsel %vm4886_vm14, %v4870_v54, %v7294_v30  ;;  %v7295_v3 = vunpack.i.h.bf16 %v11425_v22  ;;  %v13172_v22 = vld [vmem:[#allocation88_spill] sm:$0xff]  ;;  %v7060_v30 = vunpack.i.h.bf16 %v13171_v57 }
 0x6e9   : > { %v4935_v27 = vsel %vm1811_vm3, %v4903_v15, %v7374_v51  ;;  %v7139_v28 = vunpack.i.l.bf16 %v13172_v22 }
 0x6ea   : > { %5181 = vmatmul.f32.gmra.mxu2 %v4995_v45  ;;  %v4803_v45 = vsel %vm3515_vm11, %v7851_v35, %v7049_v53  ;;  %v7135_v53 = vunpack.i.h.bf16 %v11209_v62  ;;  %v4968_v35 = vsel %vm4951_vm15, %v4935_v27, %v7454_v9  ;;  %v4808_v51 = vsel %vm3515_vm11, %v7856_v46, %v7060_v30 }
 0x6eb   : > { %v4835_v31 = vsel %vm1943_vm9, %v4803_v45, %v7129_v23  ;;  %v7854_v45 = vld [vmem:[#allocation2 + $0xc8] sm:$0xff] }
 0x6ec   : > { %v4868_v2 = vsel %vm4853_vm13, %v4835_v31, %v7209_v61  ;;  %v13170_v31 = vld [vmem:[#allocation86_spill] sm:$0xff] }
 0x6ed   : > { %v4901_v58 = vsel %vm4886_vm14, %v4868_v2, %v7289_v44  ;;  %v7455_v2 = vunpack.i.h.bf16 %v11586_v25 }
 0x6ee   : > { %v4933_v5 = vsel %vm1811_vm3, %v4901_v58, %v7369_v52  ;;  %v7059_v52 = vunpack.i.l.bf16 %v13171_v57  ;;  %v13173_v58 = vld [vmem:[#allocation101_spill] sm:$0xff] }
 0x6ef   : > { %v4966_v33 = vsel %vm4951_vm15, %v4933_v5, %v7449_v32  ;;  %v11801_v32 = vpop.f32.mrf.mxu3  ;;  %v7535_v5 = vunpack.i.h.bf16 %v7533_v11  ;;  %v7220_v34 = vunpack.i.h.bf16 %v13173_v58 }
 0x6f0   : > { %v4999_v14 = vsel %vm4984_vm0, %v4966_v33, %v7529_v47  ;;  %v7219_v47 = vunpack.i.l.bf16 %v13173_v58  ;;  %v4807_v1 = vsel %vm3515_vm11, %v7855_v37, %v7059_v52  ;;  %v13181_v58 = vld [vmem:[#allocation93_spill] sm:$0xff]  ;;  %v13182_v37 = vld [vmem:[#allocation107_spill] sm:$0xff] }
 0x6f1   : > { %v4839_v33 = vsel %vm1943_vm9, %v4807_v1, %v7139_v28  ;;  %v7304_v1 = vunpack.i.l.bf16 %v13182_v37 }
 0x6f2   : > { %5184 = vmatmul.f32.gmra.mxu2 %v4996_v38  ;;  %v7450_v38 = vunpack.i.h.bf16 %v11519_v17  ;;  %v4872_v42 = vsel %vm4853_vm13, %v4839_v33, %v7219_v47 }
 0x6f4   : > { %v4967_v10 = vsel %vm4951_vm15, %v4934_v19, %v7450_v38  ;;  %v13175_v38 = vld [vmem:[#allocation114_spill] sm:$0xff] }
 0x6f5   : > { %v5000_v17 = vsel %vm4984_vm0, %v4967_v10, %v7530_v7  ;;  %v7379_v55 = vunpack.i.l.bf16 %v13175_v38  ;;  %v7140_v10 = vunpack.i.h.bf16 %v13172_v22  ;;  %v7857_v22 = vld [vmem:[#allocation2 + $0xf0] sm:$0xff] }
 0x6f7   : > { %v11826_v9 = vpop.f32.mrf.mxu3 }
 0x6fa   : > { %5187 = vmatmul.f32.gmra.mxu2 %v4997_v6  ;;  %v7055_v6 = vunpack.i.h.bf16 %v11211_v39  ;;  %v5001_v39 = vsel %vm4984_vm0, %v4968_v35, %v7534_v4  ;;  %v7300_v4 = vunpack.i.h.bf16 %v13174_v13 }
 0x6fc   : > { %v4806_v61 = vsel %vm3515_vm11, %v7854_v45, %v7055_v6  ;;  %v4840_v6 = vsel %vm1943_vm9, %v4808_v51, %v7140_v10  ;;  %v13178_v45 = vld [vmem:[#allocation64_spill] sm:$0xff] }
 0x6fd   : > { %v4838_v62 = vsel %vm1943_vm9, %v4806_v61, %v7135_v53  ;;  %v4873_v53 = vsel %vm4853_vm13, %v4840_v6, %v7220_v34  ;;  %v7064_v61 = vunpack.i.l.bf16 %v13178_v45  ;;  %v7305_v34 = vunpack.i.h.bf16 %v13182_v37 }
 0x6fe   : > { %v4906_v35 = vsel %vm4886_vm14, %v4873_v53, %v7300_v4  ;;  %v13185_v4 = vld [vmem:[#allocation80_spill] sm:$0xff] }
 0x6ff   : > { %v11847_v28 = vpop.f32.mrf.mxu3  ;;  %v7149_v53 = vunpack.i.l.bf16 %v13185_v4 }
 0x702   : > { %5190 = vmatmul.f32.gmra.mxu2 %v4998_v59  ;;  %v4871_v59 = vsel %vm4853_vm13, %v4838_v62, %v7215_v16  ;;  %v13177_v16 = vld [vmem:[#allocation89_spill] sm:$0xff]  ;;  %v13179_v62 = vld [vmem:[#allocation92_spill] sm:$0xff] }
 0x703   : > { %v4904_v49 = vsel %vm4886_vm14, %v4871_v59, %v7295_v3  ;;  %v7460_v3 = vunpack.i.h.bf16 %v11582_v0  ;;  %v7144_v57 = vunpack.i.l.bf16 %v13179_v62  ;;  %v4809_v0 = vsel %vm3515_vm11, %v7857_v22, %v7064_v61 }
 0x704   : > { %v4936_v36 = vsel %vm1811_vm3, %v4904_v49, %v7375_v41 }
 0x705   : > { %v4969_v25 = vsel %vm4951_vm15, %v4936_v36, %v7455_v2  ;;  %v13180_v2 = vld [vmem:[#allocation90_spill] sm:$0xff]  ;;  %v13183_v36 = vld [vmem:[#allocation115_spill] sm:$0xff] }
 0x706   : > { %v5002_v19 = vsel %vm4984_vm0, %v4969_v25, %v7535_v5  ;;  %v7224_v49 = vunpack.i.l.bf16 %v13180_v2  ;;  %v7384_v33 = vunpack.i.l.bf16 %v13183_v36  ;;  %v7225_v30 = vunpack.i.h.bf16 %v13180_v2 }
 0x70a   : > { %5193 = vmatmul.f32.gmra.mxu2 %v4999_v14  ;;  %v7299_v14 = vunpack.i.l.bf16 %v13174_v13  ;;  %v7469_v13 = vunpack.i.l.bf16 %v11601_v56 }
 0x70c   : > { %v4905_v40 = vsel %vm4886_vm14, %v4872_v42, %v7299_v14  ;;  %v7065_v14 = vunpack.i.h.bf16 %v13178_v45  ;;  %v13187_v45 = vld [vmem:[#allocation110_spill] sm:$0xff] }
 0x70d   : > { %v4937_v50 = vsel %vm1811_vm3, %v4905_v40, %v7379_v55  ;;  %v7309_v61 = vunpack.i.l.bf16 %v13187_v45 }
 0x70e   : > { %v4970_v54 = vsel %vm4951_vm15, %v4937_v50, %v7459_v43  ;;  %v7385_v50 = vunpack.i.h.bf16 %v13183_v36 }
 0x712   : > { %5196 = vmatmul.f32.gmra.mxu2 %v5000_v17  ;;  %v7539_v17 = vunpack.i.l.bf16 %v7538_v18 }
 0x714   : > { %v5003_v27 = vsel %vm4984_vm0, %v4970_v54, %v7539_v17  ;;  %v11871_v17 = vpop.f32.mrf.mxu3  ;;  %v13184_v54 = vld [vmem:[#allocation82_spill] sm:$0xff] }
 0x715   : > { %v7069_v46 = vunpack.i.l.bf16 %v13184_v54 }
 0x716   : > { %v5152_v23 = vpop.f32.mrf.mxu2 }
 0x717   : > { %v5153_v21 = vadd.f32 %v11776_v63, %v5152_v23  ;;  %v7380_v23 = vunpack.i.h.bf16 %v13175_v38  ;;  %v7145_v38 = vunpack.i.h.bf16 %v13179_v62  ;;  %v7859_v62 = vld [vmem:[#allocation2 + $0x108] sm:$0xff] }
 0x719   : > { %v11789_v44 = vadd.f32 %v13170_v31, %v5153_v21  ;;  %v7540_v31 = vunpack.i.h.bf16 %v7538_v18  ;;  %v7858_v18 = vld [vmem:[#allocation2 + $0xf8] sm:$0xff] }
 0x71a   : > { %5199 = vmatmul.f32.gmra.mxu2 %v5001_v39  ;;  %v4938_v39 = vsel %vm1811_vm3, %v4906_v35, %v7380_v23  ;;  %v4810_v43 = vsel %vm3515_vm11, %v7858_v18, %v7065_v14  ;;  %v7310_v14 = vunpack.i.h.bf16 %v13187_v45 }
 0x71b   : > { %5393 = vrot.lane.b32.xlu0 %v11789_v44, %s7890_s10  ;;  %v4971_v59 = vsel %vm4951_vm15, %v4938_v39, %v7460_v3  ;;  %v4842_v40 = vsel %vm1943_vm9, %v4810_v43, %v7145_v38  ;;  %v13191_v43 = vld [vmem:[#allocation61_spill] sm:$0xff]  ;;  %7701 = vtanh.f32 %v11789_v44 }
 0x71c   : > { %v5004_v5 = vsel %vm4984_vm0, %v4971_v59, %v7540_v31  ;;  %v4875_v6 = vsel %vm4853_vm13, %v4842_v40, %v7225_v30  ;;  %v13188_v31 = vld [vmem:[#allocation97_spill] sm:$0xff]  ;;  %v7074_v30 = vunpack.i.l.bf16 %v13191_v43 }
 0x71e   : > { %v5155_v12 = vpop.f32.mrf.mxu2 }
 0x71f   : > { %v5156_v24 = vadd.f32 %v11776_v63, %v5155_v12  ;;  %v4841_v12 = vsel %vm1943_vm9, %v4809_v0, %v7144_v57  ;;  %v4811_v57 = vsel %vm3515_vm11, %v7859_v62, %v7069_v46  ;;  %v13189_v0 = vld [vmem:[#allocation111_spill] sm:$0xff]  ;;  %v13193_v46 = vld [vmem:[#allocation104_spill] sm:$0xff] }
 0x720   : > { %v4874_v42 = vsel %vm4853_vm13, %v4841_v12, %v7224_v49  ;;  %v4843_v59 = vsel %vm1943_vm9, %v4811_v57, %v7149_v53  ;;  %v7389_v2 = vunpack.i.l.bf16 %v13189_v0  ;;  %v7474_v49 = vunpack.i.l.bf16 %v11591_v48  ;;  %v11897_v12 = vpop.f32.mrf.mxu3  ;;  %v7861_v53 = vld [vmem:[#allocation2 + $0x120] sm:$0xff] }
 0x721   : > { %v11813_v7 = vadd.f32 %v13176_v8, %v5156_v24  ;;  %v7543_v24 = vpop.permute.xlu0 %7542  ;;  %v4907_v55 = vsel %vm4886_vm14, %v4874_v42, %v7304_v1  ;;  %v7390_v40 = vunpack.i.h.bf16 %v13189_v0  ;;  %v7235_v0 = vunpack.i.h.bf16 %v13193_v46 }
 0x722   : > { %5202 = vmatmul.f32.gmra.mxu2 %v5002_v19  ;;  %v7544_v25 = vunpack.i.l.bf16 %v7543_v24  ;;  %v4939_v8 = vsel %vm1811_vm3, %v4907_v55, %v7384_v33  ;;  %v7545_v51 = vunpack.i.h.bf16 %v7543_v24  ;;  %v7150_v24 = vunpack.i.h.bf16 %v13185_v4  ;;  %v7860_v55 = vld [vmem:[#allocation2 + $0x110] sm:$0xff] }
 0x723   : > { %5395 = vrot.lane.b32.xlu1 %v11813_v7, %s7890_s10  ;;  %v4972_v19 = vsel %vm4951_vm15, %v4939_v8, %v7469_v13  ;;  %7703 = vtanh.f32 %v11813_v7 }
 0x724   : > { %v5005_v10 = vsel %vm4984_vm0, %v4972_v19, %v7544_v25  ;;  %v13190_v25 = vld [vmem:[#allocation98_spill] sm:$0xff] }
 0x726   : > { %v5158_v11 = vpop.f32.mrf.mxu2 }
 0x727   : > { %v5159_v15 = vadd.f32 %v11776_v63, %v5158_v11  ;;  %v7470_v11 = vunpack.i.h.bf16 %v11601_v56 }
 0x729   : > { %v11834_v21 = vadd.f32 %v13177_v16, %v5159_v15  ;;  %v4908_v16 = vsel %vm4886_vm14, %v4875_v6, %v7305_v34  ;;  %v13192_v34 = vld [vmem:[#allocation91_spill] sm:$0xff] }
 0x72a   : > { %5205 = vmatmul.f32.gmra.mxu2 %v5003_v27  ;;  %v13186_v27 = vld [vmem:[#allocation100_spill] sm:$0xff]  ;;  %v4940_v35 = vsel %vm1811_vm3, %v4908_v16, %v7385_v50  ;;  %v7154_v50 = vunpack.i.l.bf16 %v13192_v34  ;;  %v11922_v16 = vpop.f32.mrf.mxu3 }
 0x72b   : > { %5397 = vrot.lane.b32.xlu2 %v11834_v21, %s7890_s10  ;;  %v7229_v3 = vunpack.i.l.bf16 %v13186_v27  ;;  %v4973_v39 = vsel %vm4951_vm15, %v4940_v35, %v7470_v11  ;;  %v7230_v33 = vunpack.i.h.bf16 %v13186_v27  ;;  %v7475_v11 = vunpack.i.h.bf16 %v11591_v48  ;;  %v13194_v35 = vld [vmem:[#allocation102_spill] sm:$0xff] }
 0x72c   : > { %v7314_v45 = vunpack.i.l.bf16 %v13194_v35 }
 0x72d   : > { %v4876_v22 = vsel %vm4853_vm13, %v4843_v59, %v7229_v3  ;;  %v7553_v59 = vpop.permute.xlu2 %7552 }
 0x72e   : > { %v5161_v52 = vpop.f32.mrf.mxu2 }
 0x72f   : > { %v5162_v41 = vadd.f32 %v11776_v63, %v5161_v52  ;;  %v5006_v52 = vsel %vm4984_vm0, %v4973_v39, %v7545_v51  ;;  %v7234_v51 = vunpack.i.l.bf16 %v13193_v46  ;;  %v13195_v39 = vld [vmem:[#allocation116_spill] sm:$0xff] }
 0x730   : > { %v7394_v62 = vunpack.i.l.bf16 %v13195_v39 }
 0x731   : > { %v11851_v47 = vadd.f32 %v13181_v58, %v5162_v41  ;;  %v7548_v41 = vpop.permute.xlu1 %7547  ;;  %v4909_v58 = vsel %vm4886_vm14, %v4876_v22, %v7309_v61 }
 0x732   : > { %5208 = vmatmul.f32.gmra.mxu2 %v5004_v5  ;;  %v7070_v5 = vunpack.i.h.bf16 %v13184_v54  ;;  %v7549_v37 = vunpack.i.l.bf16 %v7548_v41  ;;  %v4941_v13 = vsel %vm1811_vm3, %v4909_v58, %v7389_v2  ;;  %v7554_v2 = vunpack.i.l.bf16 %v7553_v59 }
 0x733   : > { %5399 = vrot.lane.b32.xlu0 %v11851_v47, %s7890_s10  ;;  %v4974_v38 = vsel %vm4951_vm15, %v4941_v13, %v7474_v49  ;;  %7705 = vtanh.f32 %v11851_v47 }
 0x734   : > { %v4812_v8 = vsel %vm3515_vm11, %v7860_v55, %v7070_v5  ;;  %v5007_v19 = vsel %vm4984_vm0, %v4974_v38, %v7549_v37  ;;  %v7395_v38 = vunpack.i.h.bf16 %v13195_v39 }
 0x735   : > { %v4844_v18 = vsel %vm1943_vm9, %v4812_v8, %v7150_v24  ;;  %v7485_v8 = vunpack.i.h.bf16 %v11620_v60 }
 0x73a   : > { %5211 = vmatmul.f32.gmra.mxu2 %v5005_v10  ;;  %v4877_v10 = vsel %vm4853_vm13, %v4844_v18, %v7230_v33  ;;  %v7315_v33 = vunpack.i.h.bf16 %v13194_v35  ;;  %v13196_v18 = vld [vmem:[#allocation83_spill] sm:$0xff] }
 0x73b   : > { %v4910_v54 = vsel %vm4886_vm14, %v4877_v10, %v7310_v14  ;;  %v11950_v14 = vpop.f32.mrf.mxu3 }
 0x73c   : > { %v4942_v27 = vsel %vm1811_vm3, %v4910_v54, %v7390_v40  ;;  %v13197_v40 = vld [vmem:[#allocation96_spill] sm:$0xff] }
 0x73d   : > { %v5164_v15 = vpop.f32.mrf.mxu2  ;;  %v4975_v61 = vsel %vm4951_vm15, %v4942_v27, %v7475_v11  ;;  %v7863_v54 = vld [vmem:[#allocation2 + $0x138] sm:$0xff]  ;;  %v7558_v27 = vpop.permute.xlu0 %7557 }
 0x73e   : > { %v5165_v23 = vadd.f32 %v11776_v63, %v5164_v15  ;;  %v7550_v15 = vunpack.i.h.bf16 %v7548_v41  ;;  %v7075_v41 = vunpack.i.h.bf16 %v13191_v43  ;;  %v7079_v43 = vunpack.i.l.bf16 %v13196_v18 }
 0x73f   : > { %v7559_v39 = vunpack.i.l.bf16 %v7558_v27 }
 0x740   : > { %v11884_v56 = vadd.f32 %v13188_v31, %v5165_v23  ;;  %v4813_v23 = vsel %vm3515_vm11, %v7861_v53, %v7074_v30  ;;  %v5008_v57 = vsel %vm4984_vm0, %v4975_v61, %v7550_v15  ;;  %v4815_v46 = vsel %vm3515_vm11, %v7863_v54, %v7079_v43  ;;  %v13199_v53 = vld [vmem:[#allocation109_spill] sm:$0xff] }
 0x741   : > { %v4845_v3 = vsel %vm1943_vm9, %v4813_v23, %v7154_v50  ;;  %v7319_v23 = vunpack.i.l.bf16 %v13199_v53  ;;  %v7080_v61 = vunpack.i.h.bf16 %v13196_v18 }
 0x742   : > { %5214 = vmatmul.f32.gmra.mxu2 %v5006_v52  ;;  %5401 = vrot.lane.b32.xlu1 %v11884_v56, %s7890_s10  ;;  %v4878_v31 = vsel %vm4853_vm13, %v4845_v3, %v7234_v51  ;;  %v7484_v52 = vunpack.i.l.bf16 %v11620_v60  ;;  %v13198_v51 = vld [vmem:[#allocation94_spill] sm:$0xff]  ;;  %7707 = vtanh.f32 %v11884_v56 }
 0x743   : > { %v4911_v22 = vsel %vm4886_vm14, %v4878_v31, %v7314_v45  ;;  %v7239_v15 = vunpack.i.l.bf16 %v13198_v51  ;;  %v11974_v3 = vpop.f32.mrf.mxu3  ;;  %v7494_v45 = vunpack.i.l.bf16 %v11681_v20 }
 0x744   : > { %v4943_v58 = vsel %vm1811_vm3, %v4911_v22, %v7394_v62 }
 0x745   : > { %v5167_v1 = vpop.f32.mrf.mxu2  ;;  %v4976_v37 = vsel %vm4951_vm15, %v4943_v58, %v7484_v52 }
 0x746   : > { %v5168_v36 = vadd.f32 %v11776_v63, %v5167_v1  ;;  %v7862_v1 = vld [vmem:[#allocation2 + $0x128] sm:$0xff]  ;;  %v5009_v55 = vsel %vm4984_vm0, %v4976_v37, %v7554_v2  ;;  %v7320_v37 = vunpack.i.h.bf16 %v13199_v53 }
 0x747   : > { %v4814_v24 = vsel %vm3515_vm11, %v7862_v1, %v7075_v41  ;;  %v13201_v1 = vld [vmem:[#allocation85_spill] sm:$0xff] }
 0x748   : > { %v11905_v42 = vadd.f32 %v13190_v25, %v5168_v36 }
 0x74a   : > { %5217 = vmatmul.f32.gmra.mxu2 %v5007_v19  ;;  %5403 = vrot.lane.b32.xlu2 %v11905_v42, %s7890_s10 }
 0x74d   : > { %v5170_v6 = vpop.f32.mrf.mxu2 }
 0x74e   : > { %v5171_v4 = vadd.f32 %v11776_v63, %v5170_v6 }
 0x750   : > { %v11928_v48 = vadd.f32 %v11801_v32, %v5171_v4  ;;  %v7155_v32 = vunpack.i.h.bf16 %v13192_v34  ;;  %v7159_v34 = vunpack.i.l.bf16 %v13197_v40 }
 0x752   : > { %5220 = vmatmul.f32.gmra.mxu2 %v5008_v57  ;;  %5405 = vrot.lane.b32.xlu0 %v11928_v48, %s7890_s10  ;;  %v4846_v36 = vsel %vm1943_vm9, %v4814_v24, %v7155_v32  ;;  %v4847_v4 = vsel %vm1943_vm9, %v4815_v46, %v7159_v34  ;;  %v7160_v57 = vunpack.i.h.bf16 %v13197_v40  ;;  %v13203_v40 = vld [vmem:[#allocation103_spill] sm:$0xff]  ;;  %7709 = vtanh.f32 %v11928_v48 }
 0x753   : > { %v4879_v25 = vsel %vm4853_vm13, %v4846_v36, %v7235_v0  ;;  %v4880_v31 = vsel %vm4853_vm13, %v4847_v4, %v7239_v15  ;;  %v7864_v0 = vld [vmem:[#allocation2 + $0x140] sm:$0xff]  ;;  %v7244_v34 = vunpack.i.l.bf16 %v13203_v40  ;;  %v7085_v4 = vunpack.i.h.bf16 %v13201_v1 }
 0x754   : > { %v4912_v19 = vsel %vm4886_vm14, %v4879_v25, %v7315_v33  ;;  %v4913_v52 = vsel %vm4886_vm14, %v4880_v31, %v7319_v23  ;;  %v4816_v2 = vsel %vm3515_vm11, %v7864_v0, %v7080_v61  ;;  %v3891_v36 = vld [vmem:[#allocation2 + $0x19a] sm:$0xff]  ;;  %v7495_v33 = vunpack.i.h.bf16 %v11681_v20  ;;  %v11999_v25 = vpop.f32.mrf.mxu3 }
 0x755   : > { %v5173_v49 = vpop.f32.mrf.mxu2  ;;  %v4944_v10 = vsel %vm1811_vm3, %v4912_v19, %v7395_v38  ;;  %6577 = vmatmul.msk.f32.gmra.mxu3 %vm3515_vm11, %v3891_v36  ;;  %v13202_v19 = vld [vmem:[#allocation84_spill] sm:$0xff]  ;;  %v13205_v23 = vld [vmem:[#allocation113_spill] sm:$0xff]  ;;  %7711 = vtanh.f32 %v11834_v21 }
 0x756   : > { %v5174_v5 = vadd.f32 %v11776_v63, %v5173_v49  ;;  %v4977_v11 = vsel %vm4951_vm15, %v4944_v10, %v7485_v8  ;;  %v7240_v49 = vunpack.i.h.bf16 %v13198_v51  ;;  %v7164_v18 = vunpack.i.l.bf16 %v13202_v19 }
 0x757   : > { %v7165_v31 = vunpack.i.h.bf16 %v13202_v19  ;;  %v13208_v19 = vld [vmem:[#allocation106_spill] sm:$0xff] }
 0x758   : > { %v11948_v13 = vadd.f32 %v11826_v9, %v5174_v5  ;;  %v7555_v9 = vunpack.i.h.bf16 %v7553_v59  ;;  %v4848_v5 = vsel %vm1943_vm9, %v4816_v2, %v7160_v57 }
 0x759   : > { %v4881_v38 = vsel %vm4853_vm13, %v4848_v5, %v7240_v49 }
 0x75a   : > { %5223 = vmatmul.f32.gmra.mxu2 %v5009_v55  ;;  %5407 = vrot.lane.b32.xlu1 %v11948_v13, %s7890_s10  ;;  %v5010_v6 = vsel %vm4984_vm0, %v4977_v11, %v7555_v9  ;;  %v7560_v55 = vunpack.i.h.bf16 %v7558_v27  ;;  %v4914_v43 = vsel %vm4886_vm14, %v4881_v38, %v7320_v37  ;;  %v7404_v27 = vunpack.i.l.bf16 %v13205_v23  ;;  %v13207_v38 = vld [vmem:[#allocation95_spill] sm:$0xff] }
 0x75b   : > { %v7405_v37 = vunpack.i.h.bf16 %v13205_v23  ;;  %7713 = vtanh.f32 %v11948_v13 }
 0x75d   : > { %v5176_v30 = vpop.f32.mrf.mxu2 }
 0x75e   : > { %v5177_v50 = vadd.f32 %v11776_v63, %v5176_v30  ;;  %v7865_v30 = vld [vmem:[#allocation2 + $0x150] sm:$0xff] }
 0x760   : > { %v11965_v60 = vadd.f32 %v11847_v28, %v5177_v50  ;;  %v13200_v28 = vld [vmem:[#allocation117_spill] sm:$0xff]  ;;  %v13204_v50 = vld [vmem:[#allocation112_spill] sm:$0xff] }
 0x761   : > { %v7399_v35 = vunpack.i.l.bf16 %v13200_v28  ;;  %v7400_v24 = vunpack.i.h.bf16 %v13200_v28  ;;  %v7324_v11 = vunpack.i.l.bf16 %v13204_v50  ;;  %v3892_v28 = vld [vmem:[#allocation2 + $0x1a2] sm:$0xff] }
 0x762   : > { %5226 = vmatmul.f32.gmra.mxu2 %v5010_v6  ;;  %5409 = vrot.lane.b32.xlu2 %v11965_v60, %s7890_s10  ;;  %v7563_v6 = vpop.permute.xlu1 %7562 }
 0x763   : > { %v4945_v41 = vsel %vm1811_vm3, %v4913_v52, %v7399_v35  ;;  %v4946_v20 = vsel %vm1811_vm3, %v4914_v43, %v7400_v24  ;;  %v7499_v35 = vunpack.i.l.bf16 %v11638_v26  ;;  %6578 = vmatmul.msk.f32.gmra.mxu3 %vm3515_vm11, %v3892_v28  ;;  %v12026_v52 = vpop.f32.mrf.mxu3  ;;  %v7565_v36 = vunpack.i.h.bf16 %v7563_v6 }
 0x764   : > { %v4978_v22 = vsel %vm4951_vm15, %v4945_v41, %v7494_v45  ;;  %v4979_v46 = vsel %vm4951_vm15, %v4946_v20, %v7495_v33  ;;  %v7564_v45 = vunpack.i.l.bf16 %v7563_v6  ;;  %v7509_v6 = vunpack.i.l.bf16 %v11699_v29 }
 0x765   : > { %v5179_v62 = vpop.f32.mrf.mxu2  ;;  %v5011_v58 = vsel %vm4984_vm0, %v4978_v22, %v7559_v39  ;;  %v5012_v51 = vsel %vm4984_vm0, %v4979_v46, %v7560_v55  ;;  %v7325_v22 = vunpack.i.h.bf16 %v13204_v50  ;;  %v7169_v55 = vunpack.i.l.bf16 %v13207_v38  ;;  %v13209_v50 = vld [vmem:[#allocation105_spill] sm:$0xff]  ;;  %v7568_v46 = vpop.permute.xlu2 %7567 }
 0x766   : > { %v5180_v59 = vadd.f32 %v11776_v63, %v5179_v62  ;;  %v7866_v62 = vld [vmem:[#allocation2 + $0x158] sm:$0xff] }
 0x767   : > { %v4818_v57 = vsel %vm3515_vm11, %v7866_v62, %v7085_v4 }
 0x768   : > { %v11985_v32 = vadd.f32 %v11871_v17, %v5180_v59  ;;  %v7084_v17 = vunpack.i.l.bf16 %v13201_v1  ;;  %v7245_v59 = vunpack.i.h.bf16 %v13203_v40 }
 0x76a   : > { %5229 = vmatmul.f32.gmra.mxu2 %v5011_v58  ;;  %5411 = vrot.lane.b32.xlu0 %v11985_v32, %s7890_s10  ;;  %v4817_v10 = vsel %vm3515_vm11, %v7865_v30, %v7084_v17  ;;  %v4850_v58 = vsel %vm1943_vm9, %v4818_v57, %v7165_v31  ;;  %v7500_v17 = vunpack.i.h.bf16 %v11638_v26  ;;  %7715 = vtanh.f32 %v11985_v32 }
 0x76b   : > { %v4849_v15 = vsel %vm1943_vm9, %v4817_v10, %v7164_v18  ;;  %v4883_v5 = vsel %vm4853_vm13, %v4850_v58, %v7245_v59  ;;  %v7249_v18 = vunpack.i.l.bf16 %v13208_v19  ;;  %v7867_v10 = vld [vmem:[#allocation2 + $0x168] sm:$0xff]  ;;  %v5313_v40 = vpop.f32.mrf.mxu3  ;;  %v7570_v58 = vunpack.i.h.bf16 %v7568_v46 }
 0x76c   : > { %v4882_v53 = vsel %vm4853_vm13, %v4849_v15, %v7244_v34  ;;  %v4916_v1 = vsel %vm4886_vm14, %v4883_v5, %v7325_v22  ;;  %7717 = vtanh.f32 %v11905_v42 }
 0x76d   : > { %v5182_v8 = vpop.f32.mrf.mxu2  ;;  %v4948_v43 = vsel %vm1811_vm3, %v4916_v1, %v7405_v37 }
 0x76e   : > { %v5183_v9 = vadd.f32 %v11776_v63, %v5182_v8  ;;  %v4981_v30 = vsel %vm4951_vm15, %v4948_v43, %v7500_v17 }
 0x76f   : > { %v5014_v34 = vsel %vm4984_vm0, %v4981_v30, %v7565_v36 }
 0x770   : > { %v12010_v54 = vadd.f32 %v11897_v12, %v5183_v9  ;;  %v4915_v12 = vsel %vm4886_vm14, %v4882_v53, %v7324_v11  ;;  %v7329_v11 = vunpack.i.l.bf16 %v13209_v50  ;;  %v7569_v53 = vunpack.i.l.bf16 %v7568_v46 }
 0x771   : > { %v4947_v41 = vsel %vm1811_vm3, %v4915_v12, %v7404_v27  ;;  %v7170_v27 = vunpack.i.h.bf16 %v13207_v38 }
 0x772   : > { %5232 = vmatmul.f32.gmra.mxu2 %v5012_v51  ;;  %5413 = vrot.lane.b32.xlu1 %v12010_v54, %s7890_s10  ;;  %v4980_v2 = vsel %vm4951_vm15, %v4947_v41, %v7499_v35  ;;  %v13210_v51 = vld [vmem:[#allocation118_spill] sm:$0xff]  ;;  %v7250_v35 = vunpack.i.h.bf16 %v13208_v19  ;;  %v7330_v41 = vunpack.i.h.bf16 %v13209_v50  ;;  %7719 = vtanh.f32 %v12010_v54 }
 0x773   : > { %v5013_v49 = vsel %vm4984_vm0, %v4980_v2, %v7564_v45  ;;  %v7409_v15 = vunpack.i.l.bf16 %v13210_v51  ;;  %v5316_v22 = vpop.f32.mrf.mxu3 }
 0x775   : > { %v5185_v61 = vpop.f32.mrf.mxu2 }
 0x776   : > { %v5186_v39 = vadd.f32 %v11776_v63, %v5185_v61 }
 0x778   : > { %v12032_v0 = vadd.f32 %v11922_v16, %v5186_v39  ;;  %v13206_v16 = vld [vmem:[#allocation79_spill] sm:$0xff] }
 0x779   : > { %v7089_v24 = vunpack.i.l.bf16 %v13206_v16  ;;  %v7090_v4 = vunpack.i.h.bf16 %v13206_v16  ;;  %v7868_v39 = vld [vmem:[#allocation2 + $0x170] sm:$0xff] }
 0x77a   : > { %5235 = vmatmul.f32.gmra.mxu2 %v5013_v49  ;;  %5415 = vrot.lane.b32.xlu2 %v12032_v0, %s7890_s10  ;;  %v7510_v49 = vunpack.i.h.bf16 %v11699_v29 }
 0x77b   : > { %v4819_v26 = vsel %vm3515_vm11, %v7867_v10, %v7089_v24  ;;  %v4820_v62 = vsel %vm3515_vm11, %v7868_v39, %v7090_v4  ;;  %v5319_v29 = vpop.f32.mrf.mxu3 }
 0x77c   : > { %v4851_v20 = vsel %vm1943_vm9, %v4819_v26, %v7169_v55  ;;  %v4852_v59 = vsel %vm1943_vm9, %v4820_v62, %v7170_v27 }
 0x77d   : > { %v5188_v33 = vpop.f32.mrf.mxu2  ;;  %v4885_v2 = vsel %vm4853_vm13, %v4852_v59, %v7250_v35 }
 0x77e   : > { %v5189_v8 = vadd.f32 %v11776_v63, %v5188_v33  ;;  %v4918_v1 = vsel %vm4886_vm14, %v4885_v2, %v7330_v41 }
 0x780   : > { %v12049_v9 = vadd.f32 %v11950_v14, %v5189_v8  ;;  %v4884_v14 = vsel %vm4853_vm13, %v4851_v20, %v7249_v18 }
 0x781   : > { %v4917_v12 = vsel %vm4886_vm14, %v4884_v14, %v7329_v11 }
 0x782   : > { %5238 = vmatmul.f32.gmra.mxu2 %v5014_v34  ;;  %5417 = vrot.lane.b32.xlu0 %v12049_v9, %s7890_s10  ;;  %v4949_v45 = vsel %vm1811_vm3, %v4917_v12, %v7409_v15  ;;  %7721 = vtanh.f32 %v12049_v9 }
 0x783   : > { %v4982_v31 = vsel %vm4951_vm15, %v4949_v45, %v7509_v6  ;;  %v5322_v19 = vpop.f32.mrf.mxu3  ;;  %7723 = vtanh.f32 %v11965_v60 }
 0x784   : > { %v5015_v57 = vsel %vm4984_vm0, %v4982_v31, %v7569_v53 }
 0x785   : > { %v5191_v23 = vpop.f32.mrf.mxu2  ;;  %v12185_v7 = vpop.permute.xlu2 %5397 }
 0x786   : > { %v5192_v28 = vadd.f32 %v11776_v63, %v5191_v23 }
 0x788   : > { %v12068_v61 = vadd.f32 %v11974_v3, %v5192_v28  ;;  %v7410_v3 = vunpack.i.h.bf16 %v13210_v51 }
 0x78a   : > { %5241 = vmatmul.f32.gmra.mxu2 %v5015_v57  ;;  %5419 = vrot.lane.b32.xlu1 %v12068_v61, %s7890_s10  ;;  %v4950_v17 = vsel %vm1811_vm3, %v4918_v1, %v7410_v3  ;;  %7725 = vtanh.f32 %v12068_v61 }
 0x78b   : > { %v4983_v24 = vsel %vm4951_vm15, %v4950_v17, %v7510_v49  ;;  %v5325_v26 = vpop.f32.mrf.mxu3 }
 0x78c   : > { %v5016_v36 = vsel %vm4984_vm0, %v4983_v24, %v7570_v58 }
 0x78d   : > { %v5194_v5 = vpop.f32.mrf.mxu2  ;;  %v5394_v54 = vpop.permute.xlu0 %5393 }
 0x78e   : > { %v5195_v37 = vadd.f32 %v11776_v63, %v5194_v5 }
 0x790   : > { %v12084_v16 = vadd.f32 %v11999_v25, %v5195_v37 }
 0x792   : > { %5244 = vmatmul.f32.gmra.mxu2 %v5016_v36  ;;  %5421 = vrot.lane.b32.xlu2 %v12084_v16, %s7890_s10 }
 0x795   : > { %v5197_v33 = vpop.f32.mrf.mxu2 }
 0x796   : > { %v5198_v38 = vadd.f32 %v11776_v63, %v5197_v33 }
 0x798   : > { %v12092_v55 = vadd.f32 %v12026_v52, %v5198_v38 }
 0x79a   : > { %5423 = vrot.lane.b32.xlu0 %v12092_v55, %s7890_s10  ;;  %7727 = vtanh.f32 %v12092_v55  ;;  %v12219_v55 = vpop.permute.xlu1 %5395 }
 0x79b   : > { %7729 = vtanh.f32 %v12032_v0 }
 0x79d   : > { %v5200_v25 = vpop.f32.mrf.mxu2 }
 0x79e   : > { %v5201_v8 = vadd.f32 %v11776_v63, %v5200_v25 }
 0x7a0   : > { %v12097_v18 = vadd.f32 %v5313_v40, %v5201_v8  ;;  %v5328_v40 = vpop.f32.mrf.mxu3 }
 0x7a2   : > { %5425 = vrot.lane.b32.xlu1 %v12097_v18, %s7890_s10  ;;  %7731 = vtanh.f32 %v12097_v18 }
 0x7a4   : > { %v12193_v56 = vpop.permute.xlu2 %5403 }
 0x7a5   : > { %v5203_v43 = vpop.f32.mrf.mxu2  ;;  %v5400_v61 = vpop.permute.xlu0 %5399 }
 0x7a6   : > { %v5204_v30 = vadd.f32 %v11776_v63, %v5203_v43 }
 0x7a8   : > { %v12102_v10 = vadd.f32 %v5316_v22, %v5204_v30  ;;  %v5331_v14 = vpop.f32.mrf.mxu3 }
 0x7aa   : > { %5427 = vrot.lane.b32.xlu2 %v12102_v10, %s7890_s10 }
 0x7ad   : > { %v5206_v52 = vpop.f32.mrf.mxu2 }
 0x7ae   : > { %v5207_v34 = vadd.f32 %v11776_v63, %v5206_v52 }
 0x7b0   : > { %v12107_v20 = vadd.f32 %v5319_v29, %v5207_v34  ;;  %v5334_v23 = vpop.f32.mrf.mxu3 }
 0x7b2   : > { %5429 = vrot.lane.b32.xlu0 %v12107_v20, %s7890_s10 }
 0x7b5   : > { %v5209_v50 = vpop.f32.mrf.mxu2 }
 0x7b6   : > { %v5210_v11 = vadd.f32 %v11776_v63, %v5209_v50 }
 0x7b8   : > { %v12112_v46 = vadd.f32 %v5322_v19, %v5210_v11  ;;  %v5337_v45 = vpop.f32.mrf.mxu3  ;;  %v7702_v11 = vpop.eup %7701  ;;  %7733 = vtanh.f32 %v12107_v20 }
 0x7b9   : > { %v12229_v20 = vpop.permute.xlu1 %5401 }
 0x7ba   : > { %5431 = vrot.lane.b32.xlu1 %v12112_v46, %s7890_s10 }
 0x7bc   : > { %v12201_v13 = vpop.permute.xlu2 %5409 }
 0x7bd   : > { %v5212_v51 = vpop.f32.mrf.mxu2 }
 0x7be   : > { %v5213_v15 = vadd.f32 %v11776_v63, %v5212_v51 }
 0x7c0   : > { %v12117_v6 = vadd.f32 %v5325_v26, %v5213_v15  ;;  %v5340_v57 = vpop.f32.mrf.mxu3  ;;  %v7704_v15 = vpop.eup %7703  ;;  %7735 = vtanh.f32 %v12084_v16 }
 0x7c2   : > { %5433 = vrot.lane.b32.xlu2 %v12117_v6, %s7890_s10 }
 0x7c4   : > { %v5406_v16 = vpop.permute.xlu0 %5405 }
 0x7c5   : > { %v5215_v4 = vpop.f32.mrf.mxu2 }
 0x7c6   : > { %v5216_v53 = vadd.f32 %v11776_v63, %v5215_v4 }
 0x7c8   : > { %v12122_v27 = vadd.f32 %v5328_v40, %v5216_v53  ;;  %v5343_v2 = vpop.f32.mrf.mxu3  ;;  %v7706_v53 = vpop.eup %7705  ;;  %7737 = vtanh.f32 %v12112_v46 }
 0x7ca   : > { %5435 = vrot.lane.b32.xlu0 %v12122_v27, %s7890_s10 }
 0x7cd   : > { %v5218_v28 = vpop.f32.mrf.mxu2 }
 0x7ce   : > { %v5219_v12 = vadd.f32 %v11776_v63, %v5218_v28 }
 0x7d0   : > { %v12127_v35 = vadd.f32 %v5331_v14, %v5219_v12  ;;  %v5346_v1 = vpop.f32.mrf.mxu3 }
 0x7d2   : > { %5437 = vrot.lane.b32.xlu1 %v12127_v35, %s7890_s10 }
 0x7d4   : > { %v12209_v9 = vpop.permute.xlu2 %5415 }
 0x7d5   : > { %v5221_v31 = vpop.f32.mrf.mxu2 }
 0x7d6   : > { %v5222_v39 = vadd.f32 %v11776_v63, %v5221_v31 }
 0x7d8   : > { %v12132_v62 = vadd.f32 %v5334_v23, %v5222_v39  ;;  %v5349_v33 = vpop.f32.mrf.mxu3 }
 0x7da   : > { %5439 = vrot.lane.b32.xlu2 %v12132_v62, %s7890_s10 }
 0x7dd   : > { %v5224_v59 = vpop.f32.mrf.mxu2 }
 0x7de   : > { %v5225_v41 = vadd.f32 %v11776_v63, %v5224_v59 }
 0x7e0   : > { %v12137_v22 = vadd.f32 %v5337_v45, %v5225_v41  ;;  %v5352_v19 = vpop.f32.mrf.mxu3 }
 0x7e2   : > { %5441 = vrot.lane.b32.xlu0 %v12137_v22, %s7890_s10 }
 0x7e5   : > { %v5227_v3 = vpop.f32.mrf.mxu2 }
 0x7e6   : > { %v5228_v49 = vadd.f32 %v11776_v63, %v5227_v3 }
 0x7e8   : > { %v12142_v58 = vadd.f32 %v5340_v57, %v5228_v49  ;;  %v5355_v52 = vpop.f32.mrf.mxu3 }
 0x7ea   : > { %5443 = vrot.lane.b32.xlu1 %v12142_v58, %s7890_s10 }
 0x7ec   : > { %v12217_v0 = vpop.permute.xlu2 %5421 }
 0x7ed   : > { %v5230_v5 = vpop.f32.mrf.mxu2 }
 0x7ee   : > { %v5231_v37 = vadd.f32 %v11776_v63, %v5230_v5 }
 0x7f0   : > { %v12147_v17 = vadd.f32 %v5343_v2, %v5231_v37  ;;  %v5358_v51 = vpop.f32.mrf.mxu3 }
 0x7f2   : > { %5445 = vrot.lane.b32.xlu2 %v12147_v17, %s7890_s10 }
 0x7f5   : > { %v5233_v24 = vpop.f32.mrf.mxu2 }
 0x7f6   : > { %v5234_v36 = vadd.f32 %v11776_v63, %v5233_v24 }
 0x7f8   : > { %v12152_v29 = vadd.f32 %v5346_v1, %v5234_v36 }
 0x7fa   : > { %5447 = vrot.lane.b32.xlu0 %v12152_v29, %s7890_s10 }
 0x7fd   : > { %v5236_v38 = vpop.f32.mrf.mxu2 }
 0x7fe   : > { %v5237_v25 = vadd.f32 %v11776_v63, %v5236_v38 }
 0x800   : > { %v12157_v8 = vadd.f32 %v5349_v33, %v5237_v25  ;;  %v13211_v33 = vld [vmem:[#allocation36_spill] sm:$0xff] }
 0x802   : > { %5449 = vrot.lane.b32.xlu1 %v12157_v8, %s7890_s10 }
 0x804   : > { %v12227_v18 = vpop.permute.xlu2 %5427 }
 0x805   : > { %v5239_v43 = vpop.f32.mrf.mxu2 }
 0x806   : > { %v5240_v30 = vadd.f32 %v11776_v63, %v5239_v43 }
 0x808   : > { %v12162_v26 = vadd.f32 %v5352_v19, %v5240_v30 }
 0x80a   : > { %5451 = vrot.lane.b32.xlu2 %v12162_v26, %s7890_s10 }
 0x80d   : > { %v5242_v34 = vpop.f32.mrf.mxu2 }
 0x80e   : > { %v5243_v40 = vadd.f32 %v11776_v63, %v5242_v34 }
 0x810   : > { %v12168_v50 = vadd.f32 %v5355_v52, %v5243_v40 }
 0x812   : > { %5453 = vrot.lane.b32.xlu0 %v12168_v50, %s7890_s10  ;;  %5713 = vrot.lane.b32.xlu2 %v7702_v11, %s7878_s16 }
 0x815   : > { %v5245_v14 = vpop.f32.mrf.mxu2 }
 0x816   : > { %v5246_v44 = vadd.f32 %v11776_v63, %v5245_v14  ;;  %v7708_v63 = vpop.eup %7707  ;;  %7739 = vtanh.f32 %v12122_v27  ;;  %v12239_v27 = vpop.permute.xlu1 %5407 }
 0x817   : > { %v7710_v47 = vpop.eup %7709  ;;  %7741 = vtanh.f32 %v12102_v10  ;;  %v5412_v10 = vpop.permute.xlu0 %5411 }
 0x818   : > { %v12176_v4 = vadd.f32 %v5358_v51, %v5246_v44  ;;  %v7712_v23 = vpop.eup %7711  ;;  %7743 = vtanh.f32 %v12127_v35  ;;  %v13213_v44 = vld [vmem:[#allocation44_spill] sm:$0xff] }
 0x819   : > { %v7714_v21 = vpop.eup %7713  ;;  %7745 = vtanh.f32 %v12137_v22 }
 0x81a   : > { %5715 = vrot.lane.b32.xlu0 %v7704_v15, %s7878_s16  ;;  %5719 = vrot.lane.b32.xlu2 %v7706_v53, %s7878_s16  ;;  %v7716_v48 = vpop.eup %7715  ;;  %7747 = vtanh.f32 %v12117_v6  ;;  %v5495_v15 = vadd.f32 %v5406_v16, %v13213_v44  ;;  %v13221_v44 = vld [vmem:[#allocation34_spill] sm:$0xff] }
 0x81b   : > { %5455 = vrot.lane.b32.xlu1 %v12176_v4, %s7890_s10  ;;  %v7718_v28 = vpop.eup %7717  ;;  %7749 = vtanh.f32 %v12142_v58  ;;  %v5489_v58 = vadd.f32 %v5394_v54, %v13211_v33 }
 0x81c   : > { %v7720_v42 = vpop.eup %7719  ;;  %v12237_v46 = vpop.permute.xlu2 %5433  ;;  %7751 = vtanh.f32 %v12152_v29 }
 0x81d   : > { %v7722_v32 = vpop.eup %7721  ;;  %7753 = vtanh.f32 %v12132_v62  ;;  %v5521_v25 = vmul.f32 0.5, %v5489_v58 }
 0x81e   : > { %v7724_v12 = vpop.eup %7723  ;;  %v12249_v22 = vpop.permute.xlu1 %5413  ;;  %7755 = vtanh.f32 %v12157_v8  ;;  %v13212_v8 = vld [vmem:[#allocation23_spill] sm:$0xff] }
 0x81f   : > { %v7726_v60 = vpop.eup %7725  ;;  %v5418_v6 = vpop.permute.xlu0 %5417  ;;  %7757 = vtanh.f32 %v12168_v50  ;;  %v5492_v52 = vadd.f32 %v5400_v61, %v13212_v8 }
 0x820   : > { %v7728_v45 = vpop.eup %7727  ;;  %7759 = vtanh.f32 %v12147_v17 }
 0x821   : > { %v7730_v31 = vpop.eup %7729  ;;  %7761 = vtanh.f32 %v5521_v25  ;;  %v5524_v50 = vmul.f32 0.5, %v5492_v52 }
 0x822   : > { %5725 = vrot.lane.b32.xlu2 %v7710_v47, %s7878_s16  ;;  %5721 = vrot.lane.b32.xlu0 %v7708_v63, %s7878_s16  ;;  %v7732_v39 = vpop.eup %7731  ;;  %7763 = vtanh.f32 %v12176_v4  ;;  %v5527_v47 = vmul.f32 0.5, %v5495_v15  ;;  %v5494_v15 = vadd.f32 %v12193_v56, %v13221_v44 }
 0x823   : > { %5717 = vrot.lane.b32.xlu1 %v7712_v23, %s7878_s16  ;;  %v7734_v57 = vpop.eup %7733  ;;  %7765 = vtanh.f32 %v12162_v26 }
 0x824   : > { %v7736_v59 = vpop.eup %7735  ;;  %7767 = vtanh.f32 %v5524_v50 }
 0x825   : > { %v7738_v41 = vpop.eup %7737  ;;  %7769 = vtanh.f32 %v5527_v47 }
 0x826   : > { %v7740_v2 = vpop.eup %7739  ;;  %v12260_v38 = vpop.permute.xlu1 %5419 }
 0x827   : > { %v7742_v3 = vpop.eup %7741  ;;  %v5424_v62 = vpop.permute.xlu0 %5423 }
 0x828   : > { %v7744_v49 = vpop.eup %7743 }
 0x829   : > { %v7746_v5 = vpop.eup %7745 }
 0x82a   : > { %5731 = vrot.lane.b32.xlu2 %v7716_v48, %s7878_s16  ;;  %5727 = vrot.lane.b32.xlu0 %v7714_v21, %s7878_s16  ;;  %v7748_v37 = vpop.eup %7747 }
 0x82b   : > { %5723 = vrot.lane.b32.xlu1 %v7718_v28, %s7878_s16  ;;  %v7750_v1 = vpop.eup %7749  ;;  %v13214_v28 = vld [vmem:[#allocation47_spill] sm:$0xff] }
 0x82c   : > { %v7752_v24 = vpop.eup %7751 }
 0x82d   : > { %v7754_v36 = vpop.eup %7753 }
 0x82e   : > { %v7756_v19 = vpop.eup %7755  ;;  %v12272_v40 = vpop.permute.xlu1 %5425 }
 0x82f   : > { %v7758_v43 = vpop.eup %7757  ;;  %v12268_v17 = vpop.permute.xlu0 %5429 }
 0x830   : > { %v7760_v30 = vpop.eup %7759 }
 0x831   : > { %v7762_v11 = vpop.eup %7761 }
 0x832   : > { %5737 = vrot.lane.b32.xlu2 %v7722_v32, %s7878_s16  ;;  %5733 = vrot.lane.b32.xlu0 %v7720_v42, %s7878_s16  ;;  %v7764_v14 = vpop.eup %7763  ;;  %v5585_v4 = vmul.f32 0.5, %v7762_v11  ;;  %v5498_v42 = vadd.f32 %v5412_v10, %v13214_v28  ;;  %v5526_v28 = vmul.f32 0.5, %v5494_v15 }
 0x833   : > { %5729 = vrot.lane.b32.xlu1 %v7724_v12, %s7878_s16  ;;  %v7766_v51 = vpop.eup %7765 }
 0x834   : > { %v12247_v35 = vpop.permute.xlu2 %5439  ;;  %v5617_v23 = vadd.f32 0.5, %v5585_v4  ;;  %v7768_v21 = vpop.eup %7767  ;;  %v5530_v61 = vmul.f32 0.5, %v5498_v42 }
 0x835   : > { %v5588_v32 = vmul.f32 0.5, %v7768_v21  ;;  %v13222_v21 = vld [vmem:[#allocation12_spill] sm:$0xff] }
 0x836   : > { %v12279_v63 = vpop.permute.xlu1 %5431  ;;  %7771 = vtanh.f32 %v5530_v61 }
 0x83a   : > { %5743 = vrot.lane.b32.xlu2 %v7728_v45, %s7878_s16  ;;  %5739 = vrot.lane.b32.xlu0 %v7726_v60, %s7878_s16  ;;  %v13215_v45 = vld [vmem:[#allocation38_spill] sm:$0xff] }
 0x83b   : > { %5735 = vrot.lane.b32.xlu1 %v7730_v31, %s7878_s16  ;;  %v5490_v31 = vadd.f32 %v12219_v55, %v13215_v45 }
 0x83c   : > { %v12277_v53 = vpop.permute.xlu0 %5435 }
 0x83d   : > { %v5522_v16 = vmul.f32 0.5, %v5490_v31 }
 0x83f   : > { %7773 = vtanh.f32 %v5522_v16  ;;  %v13224_v16 = vld [vmem:[#allocation17_spill] sm:$0xff] }
 0x842   : > { %5749 = vrot.lane.b32.xlu2 %v7734_v57, %s7878_s16  ;;  %5745 = vrot.lane.b32.xlu0 %v7732_v39, %s7878_s16  ;;  %v5620_v39 = vadd.f32 0.5, %v5588_v32  ;;  %v7770_v57 = vpop.eup %7769 }
 0x843   : > { %5741 = vrot.lane.b32.xlu1 %v7736_v59, %s7878_s16  ;;  %v7772_v58 = vpop.eup %7771 }
 0x844   : > { %v12285_v60 = vpop.permute.xlu1 %5437  ;;  %v5594_v8 = vmul.f32 0.5, %v7772_v58 }
 0x845   : > { %v7774_v52 = vpop.eup %7773 }
 0x846   : > { %v5586_v4 = vmul.f32 0.5, %v7774_v52 }
 0x848   : > { %v5618_v42 = vadd.f32 0.5, %v5586_v4 }
 0x84a   : > { %5755 = vrot.lane.b32.xlu2 %v7740_v2, %s7878_s16  ;;  %5751 = vrot.lane.b32.xlu0 %v7738_v41, %s7878_s16  ;;  %v13216_v41 = vld [vmem:[#allocation7_spill] sm:$0xff] }
 0x84b   : > { %5747 = vrot.lane.b32.xlu1 %v7742_v3, %s7878_s16  ;;  %v5501_v2 = vadd.f32 %v5418_v6, %v13216_v41  ;;  %v5591_v3 = vmul.f32 0.5, %v7770_v57 }
 0x84c   : > { %v12258_v29 = vpop.permute.xlu2 %5445 }
 0x84d   : > { %v5623_v33 = vadd.f32 0.5, %v5591_v3 }
 0x852   : > { %5761 = vrot.lane.b32.xlu2 %v7746_v5, %s7878_s16  ;;  %5757 = vrot.lane.b32.xlu0 %v7744_v49, %s7878_s16 }
 0x853   : > { %5753 = vrot.lane.b32.xlu1 %v7748_v37, %s7878_s16  ;;  %v13217_v37 = vld [vmem:[#allocation29_spill] sm:$0xff] }
 0x854   : > { %v12283_v12 = vpop.permute.xlu0 %5441  ;;  %v5493_v55 = vadd.f32 %v12229_v20, %v13217_v37 }
 0x856   : > { %v5525_v6 = vmul.f32 0.5, %v5493_v55 }
 0x85a   : > { %5767 = vrot.lane.b32.xlu2 %v7752_v24, %s7878_s16  ;;  %5763 = vrot.lane.b32.xlu0 %v7750_v1, %s7878_s16  ;;  %v5533_v1 = vmul.f32 0.5, %v5501_v2  ;;  %v13218_v24 = vld [vmem:[#allocation10_spill] sm:$0xff] }
 0x85b   : > { %5759 = vrot.lane.b32.xlu1 %v7754_v36, %s7878_s16  ;;  %v5491_v36 = vadd.f32 %v12185_v7, %v13218_v24 }
 0x85c   : > { %v12293_v5 = vpop.permute.xlu1 %5443  ;;  %7775 = vtanh.f32 %v5533_v1  ;;  %v13225_v1 = vld [vmem:[#allocation32_spill] sm:$0xff] }
 0x85d   : > { %7777 = vtanh.f32 %v5525_v6  ;;  %v5510_v24 = vadd.f32 %v12277_v53, %v13225_v1  ;;  %v13227_v53 = vld [vmem:[#allocation27_spill] sm:$0xff] }
 0x862   : > { %5773 = vrot.lane.b32.xlu2 %v7758_v43, %s7878_s16  ;;  %5769 = vrot.lane.b32.xlu0 %v7756_v19, %s7878_s16  ;;  %v13219_v19 = vld [vmem:[#allocation20_spill] sm:$0xff] }
 0x863   : > { %5765 = vrot.lane.b32.xlu1 %v7760_v30, %s7878_s16  ;;  %v5504_v43 = vadd.f32 %v5424_v62, %v13219_v19  ;;  %v5523_v30 = vmul.f32 0.5, %v5491_v36  ;;  %v5626_v62 = vadd.f32 0.5, %v5594_v8  ;;  %v13226_v8 = vld [vmem:[#allocation43_spill] sm:$0xff] }
 0x864   : > { %v12270_v34 = vpop.permute.xlu2 %5451  ;;  %v5502_v52 = vadd.f32 %v12260_v38, %v13226_v8 }
 0x865   : > { %7779 = vtanh.f32 %v5523_v30 }
 0x86a   : > { %5775 = vrot.lane.b32.xlu0 %v7764_v14, %s7878_s16  ;;  %v13220_v14 = vld [vmem:[#allocation40_spill] sm:$0xff] }
 0x86b   : > { %5771 = vrot.lane.b32.xlu1 %v7766_v51, %s7878_s16  ;;  %v5496_v7 = vadd.f32 %v12239_v27, %v13220_v14  ;;  %v5536_v51 = vmul.f32 0.5, %v5504_v43 }
 0x86c   : > { %v5714_v26 = vpop.permute.xlu2 %5713  ;;  %v12291_v10 = vpop.permute.xlu0 %5447 }
 0x86d   : > { %v5809_v48 = vmul.f32 %v5714_v26, %v5617_v23  ;;  %v7776_v26 = vpop.eup %7775  ;;  %v5528_v23 = vmul.f32 0.5, %v5496_v7  ;;  %7781 = vtanh.f32 %v5536_v51  ;;  %v5500_v7 = vadd.f32 %v12209_v9, %v13227_v53 }
 0x86e   : > { %v5597_v32 = vmul.f32 0.5, %v7776_v26  ;;  %v7778_v27 = vpop.eup %7777  ;;  %v5534_v26 = vmul.f32 0.5, %v5502_v52 }
 0x86f   : > { %v7780_v31 = vpop.eup %7779  ;;  %7783 = vtanh.f32 %v5528_v23  ;;  %v5589_v2 = vmul.f32 0.5, %v7778_v27  ;;  %v5532_v23 = vmul.f32 0.5, %v5500_v7 }
 0x870   : > { %7785 = vtanh.f32 %v5526_v28  ;;  %v5629_v41 = vadd.f32 0.5, %v5597_v32 }
 0x873   : > { %5873 = vrot.lane.b32.xlu1 %v5809_v48, %s7880_s18  ;;  %v5507_v48 = vadd.f32 %v12268_v17, %v13222_v21  ;;  %v5497_v17 = vadd.f32 %v12201_v13, %v13224_v16  ;;  %v7782_v3 = vpop.eup %7781 }
 0x874   : > { %v5720_v54 = vpop.permute.xlu2 %5719  ;;  %v12303_v20 = vpop.permute.xlu1 %5449 }
 0x875   : > { %v5812_v59 = vmul.f32 %v5720_v54, %v5620_v39  ;;  %v13223_v39 = vld [vmem:[#allocation22_spill] sm:$0xff]  ;;  %v5529_v36 = vmul.f32 0.5, %v5497_v17  ;;  %v7784_v58 = vpop.eup %7783 }
 0x876   : > { %v5499_v57 = vadd.f32 %v12249_v22, %v13223_v39  ;;  %v5600_v22 = vmul.f32 0.5, %v7782_v3  ;;  %v7786_v19 = vpop.eup %7785  ;;  %v5592_v44 = vmul.f32 0.5, %v7784_v58 }
 0x878   : > { %v5531_v55 = vmul.f32 0.5, %v5499_v57  ;;  %v5632_v51 = vadd.f32 0.5, %v5600_v22 }
 0x87b   : > { %5879 = vrot.lane.b32.xlu1 %v5812_v59, %s7880_s18  ;;  %v5539_v59 = vmul.f32 0.5, %v5507_v48  ;;  %v5624_v48 = vadd.f32 0.5, %v5592_v44  ;;  %v13234_v44 = vld [vmem:[#allocation14_spill] sm:$0xff] }
 0x87c   : > { %v5726_v49 = vpop.permute.xlu2 %5725 }
 0x87d   : > { %v5815_v25 = vmul.f32 %v5726_v49, %v5623_v33  ;;  %v5587_v49 = vmul.f32 0.5, %v7780_v31  ;;  %7787 = vtanh.f32 %v5539_v59  ;;  %v5621_v33 = vadd.f32 0.5, %v5589_v2  ;;  %v13229_v31 = vld [vmem:[#allocation33_spill] sm:$0xff] }
 0x87e   : > { %7789 = vtanh.f32 %v5531_v55 }
 0x87f   : > { %v5619_v13 = vadd.f32 0.5, %v5587_v49  ;;  %7791 = vtanh.f32 %v5529_v36 }
 0x883   : > { %5885 = vrot.lane.b32.xlu1 %v5815_v25, %s7880_s18  ;;  %v7788_v15 = vpop.eup %7787 }
 0x884   : > { %v12301_v50 = vpop.permute.xlu0 %5453  ;;  %v5732_v11 = vpop.permute.xlu2 %5731  ;;  %v5603_v21 = vmul.f32 0.5, %v7788_v15 }
 0x885   : > { %v5818_v47 = vmul.f32 %v5732_v11, %v5626_v62  ;;  %v5542_v11 = vmul.f32 0.5, %v5510_v24  ;;  %v5590_v62 = vmul.f32 0.5, %v7786_v19  ;;  %v7790_v9 = vpop.eup %7789 }
 0x886   : > { %v7792_v27 = vpop.eup %7791  ;;  %v5635_v16 = vadd.f32 0.5, %v5603_v21  ;;  %v5595_v17 = vmul.f32 0.5, %v7790_v9  ;;  %v13235_v9 = vld [vmem:[#allocation35_spill] sm:$0xff] }
 0x887   : > { %7793 = vtanh.f32 %v5542_v11  ;;  %v5593_v2 = vmul.f32 0.5, %v7792_v27 }
 0x888   : > { %7795 = vtanh.f32 %v5534_v26  ;;  %v5627_v24 = vadd.f32 0.5, %v5595_v17 }
 0x889   : > { %7797 = vtanh.f32 %v5532_v23  ;;  %v5625_v22 = vadd.f32 0.5, %v5593_v2 }
 0x88b   : > { %5891 = vrot.lane.b32.xlu1 %v5818_v47, %s7880_s18  ;;  %v13228_v47 = vld [vmem:[#allocation19_spill] sm:$0xff] }
 0x88c   : > { %v5716_v54 = vpop.permute.xlu0 %5715  ;;  %v5738_v45 = vpop.permute.xlu2 %5737  ;;  %v5513_v38 = vadd.f32 %v12283_v12, %v13228_v47  ;;  %v13230_v12 = vld [vmem:[#allocation16_spill] sm:$0xff] }
 0x88d   : > { %v5810_v61 = vmul.f32 %v5716_v54, %v5618_v42  ;;  %v12312_v56 = vpop.permute.xlu1 %5455  ;;  %v5821_v37 = vmul.f32 %v5738_v45, %v5629_v41  ;;  %v5622_v42 = vadd.f32 0.5, %v5590_v62  ;;  %v5503_v59 = vadd.f32 %v12217_v0, %v13230_v12  ;;  %v7794_v41 = vpop.eup %7793 }
 0x88e   : > { %v5545_v39 = vmul.f32 0.5, %v5513_v38  ;;  %v5606_v1 = vmul.f32 0.5, %v7794_v41  ;;  %v7796_v0 = vpop.eup %7795 }
 0x88f   : > { %5875 = vrot.lane.b32.xlu2 %v5810_v61, %s7880_s18  ;;  %v5505_v61 = vadd.f32 %v12272_v40, %v13229_v31  ;;  %v5535_v55 = vmul.f32 0.5, %v5503_v59  ;;  %v7798_v58 = vpop.eup %7797  ;;  %v5598_v11 = vmul.f32 0.5, %v7796_v0 }
 0x890   : > { %7799 = vtanh.f32 %v5545_v39  ;;  %v5638_v52 = vadd.f32 0.5, %v5606_v1  ;;  %v5596_v53 = vmul.f32 0.5, %v7798_v58  ;;  %v13238_v1 = vld [vmem:[#allocation46_spill] sm:$0xff] }
 0x891   : > { %v5537_v49 = vmul.f32 0.5, %v5505_v61 }
 0x892   : > { %v5628_v47 = vadd.f32 0.5, %v5596_v53 }
 0x893   : > { %5897 = vrot.lane.b32.xlu1 %v5821_v37, %s7880_s18  ;;  %v13231_v37 = vld [vmem:[#allocation3_spill] sm:$0xff]  ;;  %7801 = vtanh.f32 %v5537_v49 }
 0x894   : > { %v5744_v25 = vpop.permute.xlu2 %5743  ;;  %v5722_v6 = vpop.permute.xlu0 %5721  ;;  %v5516_v40 = vadd.f32 %v12291_v10, %v13231_v37  ;;  %7803 = vtanh.f32 %v5535_v55  ;;  %v13233_v10 = vld [vmem:[#allocation8_spill] sm:$0xff] }
 0x895   : > { %v5718_v43 = vpop.permute.xlu1 %5717  ;;  %v5813_v30 = vmul.f32 %v5722_v6, %v5621_v33  ;;  %v5824_v4 = vmul.f32 %v5744_v25, %v5632_v51  ;;  %v13232_v6 = vld [vmem:[#allocation13_spill] sm:$0xff]  ;;  %v5506_v8 = vadd.f32 %v12227_v18, %v13233_v10  ;;  %v13237_v37 = vld [vmem:[#allocation28_spill] sm:$0xff] }
 0x896   : > { %v5811_v14 = vmul.f32 %v5718_v43, %v5619_v13  ;;  %v5508_v19 = vadd.f32 %v12279_v63, %v13232_v6  ;;  %v5548_v43 = vmul.f32 0.5, %v5516_v40  ;;  %v5519_v63 = vadd.f32 %v12301_v50, %v13234_v44  ;;  %v13236_v50 = vld [vmem:[#allocation26_spill] sm:$0xff] }
 0x897   : > { %5881 = vrot.lane.b32.xlu2 %v5813_v30, %s7880_s18  ;;  %v5538_v15 = vmul.f32 0.5, %v5506_v8  ;;  %v5509_v27 = vadd.f32 %v12237_v46, %v13236_v50  ;;  %v5514_v40 = vadd.f32 %v12293_v5, %v13237_v37 }
 0x898   : > { %5877 = vrot.lane.b32.xlu0 %v5811_v14, %s7880_s18  ;;  %v7800_v14 = vpop.eup %7799  ;;  %v5540_v51 = vmul.f32 0.5, %v5508_v19  ;;  %7805 = vtanh.f32 %v5548_v43 }
 0x899   : > { %v5609_v62 = vmul.f32 0.5, %v7800_v14  ;;  %v7802_v18 = vpop.eup %7801  ;;  %v5541_v12 = vmul.f32 0.5, %v5509_v27 }
 0x89a   : > { %v7804_v23 = vpop.eup %7803  ;;  %7807 = vtanh.f32 %v5540_v51 }
 0x89b   : > { %5903 = vrot.lane.b32.xlu1 %v5824_v4, %s7880_s18  ;;  %v5630_v4 = vadd.f32 0.5, %v5598_v11  ;;  %7809 = vtanh.f32 %v5538_v15  ;;  %v5599_v61 = vmul.f32 0.5, %v7804_v23 }
 0x89c   : > { %v5750_v28 = vpop.permute.xlu2 %5749  ;;  %v5728_v32 = vpop.permute.xlu0 %5727 }
 0x89d   : > { %v5724_v54 = vpop.permute.xlu1 %5723  ;;  %v5816_v45 = vmul.f32 %v5728_v32, %v5624_v48  ;;  %v5827_v3 = vmul.f32 %v5750_v28, %v5635_v16  ;;  %v5511_v28 = vadd.f32 %v12285_v60, %v13235_v9  ;;  %v5631_v41 = vadd.f32 0.5, %v5599_v61 }
 0x89e   : > { %v5814_v57 = vmul.f32 %v5724_v54, %v5622_v42  ;;  %v5551_v42 = vmul.f32 0.5, %v5519_v63  ;;  %v5641_v54 = vadd.f32 0.5, %v5609_v62  ;;  %v7806_v31 = vpop.eup %7805 }
 0x89f   : > { %5887 = vrot.lane.b32.xlu2 %v5816_v45, %s7880_s18  ;;  %v5601_v45 = vmul.f32 0.5, %v7802_v18  ;;  %v5612_v60 = vmul.f32 0.5, %v7806_v31  ;;  %v13243_v31 = vld [vmem:[#allocation25_spill] sm:$0xff] }
 0x8a0   : > { %5883 = vrot.lane.b32.xlu0 %v5814_v57, %s7880_s18  ;;  %v5543_v57 = vmul.f32 0.5, %v5511_v28  ;;  %7811 = vtanh.f32 %v5551_v42  ;;  %v7808_v16 = vpop.eup %7807  ;;  %v13242_v42 = vld [vmem:[#allocation24_spill] sm:$0xff] }
 0x8a1   : > { %v5633_v59 = vadd.f32 0.5, %v5601_v45  ;;  %v7810_v2 = vpop.eup %7809  ;;  %v5644_v0 = vadd.f32 0.5, %v5612_v60 }
 0x8a2   : > { %7813 = vtanh.f32 %v5543_v57 }
 0x8a3   : > { %5909 = vrot.lane.b32.xlu1 %v5827_v3, %s7880_s18  ;;  %7815 = vtanh.f32 %v5541_v12 }
 0x8a4   : > { %v5756_v36 = vpop.permute.xlu2 %5755  ;;  %v5734_v33 = vpop.permute.xlu0 %5733 }
 0x8a5   : > { %v5730_v25 = vpop.permute.xlu1 %5729  ;;  %v5819_v13 = vmul.f32 %v5734_v33, %v5627_v24  ;;  %v5830_v7 = vmul.f32 %v5756_v36, %v5638_v52  ;;  %v5512_v24 = vadd.f32 %v12247_v35, %v13238_v1  ;;  %v5604_v36 = vmul.f32 0.5, %v7808_v16  ;;  %v13239_v52 = vld [vmem:[#allocation42_spill] sm:$0xff] }
 0x8a6   : > { %v5817_v30 = vmul.f32 %v5730_v25, %v5625_v22  ;;  %v7812_v22 = vpop.eup %7811  ;;  %v5602_v33 = vmul.f32 0.5, %v7810_v2  ;;  %v5546_v25 = vmul.f32 0.5, %v5514_v40  ;;  %v5517_v11 = vadd.f32 %v12303_v20, %v13239_v52  ;;  %v13250_v52 = vld [vmem:[#allocation57_spill] sm:$0xff] }
 0x8a7   : > { %5893 = vrot.lane.b32.xlu2 %v5819_v13, %s7880_s18  ;;  %v5544_v13 = vmul.f32 0.5, %v5512_v24  ;;  %v5615_v6 = vmul.f32 0.5, %v7812_v22  ;;  %v5636_v5 = vadd.f32 0.5, %v5604_v36  ;;  %v13245_v36 = vld [vmem:[#allocation39_spill] sm:$0xff] }
 0x8a8   : > { %5889 = vrot.lane.b32.xlu0 %v5817_v30, %s7880_s18  ;;  %v7814_v19 = vpop.eup %7813  ;;  %v5634_v43 = vadd.f32 0.5, %v5602_v33  ;;  %7817 = vtanh.f32 %v5546_v25 }
 0x8a9   : > { %v7816_v10 = vpop.eup %7815  ;;  %7819 = vtanh.f32 %v5544_v13  ;;  %v5647_v44 = vadd.f32 0.5, %v5615_v6  ;;  %v5607_v63 = vmul.f32 0.5, %v7814_v19 }
 0x8aa   : > { %v5605_v15 = vmul.f32 0.5, %v7816_v10 }
 0x8ab   : > { %5915 = vrot.lane.b32.xlu1 %v5830_v7, %s7880_s18  ;;  %v13240_v7 = vld [vmem:[#allocation45_spill] sm:$0xff] }
 0x8ac   : > { %v5762_v26 = vpop.permute.xlu2 %5761  ;;  %v5740_v38 = vpop.permute.xlu0 %5739  ;;  %v5515_v51 = vadd.f32 %v12258_v29, %v13240_v7  ;;  %v13241_v29 = vld [vmem:[#allocation18_spill] sm:$0xff] }
 0x8ad   : > { %v5736_v21 = vpop.permute.xlu1 %5735  ;;  %v5822_v48 = vmul.f32 %v5740_v38, %v5630_v4  ;;  %v5833_v39 = vmul.f32 %v5762_v26, %v5641_v54  ;;  %v5549_v4 = vmul.f32 0.5, %v5517_v11  ;;  %v5639_v26 = vadd.f32 0.5, %v5607_v63  ;;  %v13251_v11 = vld [vmem:[#allocation41_spill] sm:$0xff] }
 0x8ae   : > { %v5820_v32 = vmul.f32 %v5736_v21, %v5628_v47  ;;  %v5547_v18 = vmul.f32 0.5, %v5515_v51  ;;  %v7818_v20 = vpop.eup %7817  ;;  %v5637_v47 = vadd.f32 0.5, %v5605_v15  ;;  %v5520_v9 = vadd.f32 %v12312_v56, %v13241_v29  ;;  %v13253_v51 = vld [vmem:[#allocation6_spill] sm:$0xff]  ;;  %v13255_v15 = vld [vmem:[#allocation63_spill] sm:$0xff] }
 0x8af   : > { %5899 = vrot.lane.b32.xlu2 %v5822_v48, %s7880_s18  ;;  %v7820_v23 = vpop.eup %7819  ;;  %7821 = vtanh.f32 %v5549_v4  ;;  %v5610_v50 = vmul.f32 0.5, %v7818_v20  ;;  %v13256_v4 = vld [vmem:[#allocation60_spill] sm:$0xff]  ;;  %v13261_v29 = vld [vmem:[#allocation70_spill] sm:$0xff] }
 0x8b0   : > { %5895 = vrot.lane.b32.xlu0 %v5820_v32, %s7880_s18  ;;  %7823 = vtanh.f32 %v5547_v18  ;;  %v5518_v32 = vadd.f32 %v12270_v34, %v13242_v42  ;;  %v5608_v27 = vmul.f32 0.5, %v7820_v23  ;;  %v5552_v54 = vmul.f32 0.5, %v5520_v9  ;;  %v13257_v18 = vld [vmem:[#allocation62_spill] sm:$0xff]  ;;  %v13258_v20 = vld [vmem:[#allocation48_spill] sm:$0xff]  ;;  %v13260_v23 = vld [vmem:[#allocation21_spill] sm:$0xff] }
 0x8b1   : > { %v5642_v61 = vadd.f32 0.5, %v5610_v50  ;;  %v13263_v42 = vld [vmem:[#allocation66_spill] sm:$0xff] }
 0x8b2   : > { %v5550_v45 = vmul.f32 0.5, %v5518_v32  ;;  %v5640_v57 = vadd.f32 0.5, %v5608_v27  ;;  %7825 = vtanh.f32 %v5552_v54  ;;  %v13264_v27 = vld [vmem:[#allocation54_spill] sm:$0xff] }
 0x8b3   : > { %5921 = vrot.lane.b32.xlu1 %v5833_v39, %s7880_s18 }
 0x8b4   : > { %v5768_v17 = vpop.permute.xlu2 %5767  ;;  %v5746_v46 = vpop.permute.xlu0 %5745  ;;  %7827 = vtanh.f32 %v5550_v45  ;;  %v13265_v45 = vld [vmem:[#allocation67_spill] sm:$0xff] }
 0x8b5   : > { %v5742_v3 = vpop.permute.xlu1 %5741  ;;  %v5825_v49 = vmul.f32 %v5746_v46, %v5633_v59  ;;  %v5836_v58 = vmul.f32 %v5768_v17, %v5644_v0  ;;  %v7822_v39 = vpop.eup %7821 }
 0x8b6   : > { %v5823_v55 = vmul.f32 %v5742_v3, %v5631_v41  ;;  %v7824_v12 = vpop.eup %7823  ;;  %v5613_v16 = vmul.f32 0.5, %v7822_v39  ;;  %v13244_v41 = vld [vmem:[#allocation5_spill] sm:$0xff] }
 0x8b7   : > { %5905 = vrot.lane.b32.xlu2 %v5825_v49, %s7880_s18  ;;  %v5611_v17 = vmul.f32 0.5, %v7824_v12  ;;  %v13268_v12 = vld [vmem:[#allocation52_spill] sm:$0xff] }
 0x8b8   : > { %5901 = vrot.lane.b32.xlu0 %v5823_v55, %s7880_s18  ;;  %v5645_v46 = vadd.f32 0.5, %v5613_v16  ;;  %v7826_v2 = vpop.eup %7825 }
 0x8b9   : > { %v5643_v3 = vadd.f32 0.5, %v5611_v17  ;;  %v5616_v24 = vmul.f32 0.5, %v7826_v2  ;;  %v13270_v17 = vld [vmem:[#allocation81_spill] sm:$0xff] }
 0x8ba   : > { %v7828_v37 = vpop.eup %7827 }
 0x8bb   : > { %5927 = vrot.lane.b32.xlu1 %v5836_v58, %s7880_s18  ;;  %v5614_v0 = vmul.f32 0.5, %v7828_v37  ;;  %v5648_v22 = vadd.f32 0.5, %v5616_v24  ;;  %v13273_v37 = vld [vmem:[#allocation55_spill] sm:$0xff]  ;;  %v13274_v24 = vld [vmem:[#allocation50_spill] sm:$0xff] }
 0x8bc   : > { %v5752_v30 = vpop.permute.xlu0 %5751  ;;  %v5774_v14 = vpop.permute.xlu2 %5773 }
 0x8bd   : > { %v5748_v35 = vpop.permute.xlu1 %5747  ;;  %v5828_v8 = vmul.f32 %v5752_v30, %v5636_v5  ;;  %v5839_v62 = vmul.f32 %v5774_v14, %v5647_v44  ;;  %v5646_v33 = vadd.f32 0.5, %v5614_v0  ;;  %v13246_v5 = vld [vmem:[#allocation31_spill] sm:$0xff]  ;;  %v13248_v30 = vld [vmem:[#allocation69_spill] sm:$0xff] }
 0x8be   : > { %v5826_v53 = vmul.f32 %v5748_v35, %v5634_v43  ;;  %v13247_v43 = vld [vmem:[#allocation15_spill] sm:$0xff]  ;;  %v13254_v44 = vld [vmem:[#allocation37_spill] sm:$0xff] }
 0x8bf   : > { %5911 = vrot.lane.b32.xlu2 %v5828_v8, %s7880_s18  ;;  %v13249_v35 = vld [vmem:[#allocation59_spill] sm:$0xff] }
 0x8c0   : > { %5907 = vrot.lane.b32.xlu0 %v5826_v53, %s7880_s18  ;;  %v13252_v53 = vld [vmem:[#allocation11_spill] sm:$0xff] }
 0x8c3   : > { %5933 = vrot.lane.b32.xlu1 %v5839_v62, %s7880_s18 }
 0x8c4   : > { %v5758_v38 = vpop.permute.xlu0 %5757 }
 0x8c5   : > { %v5754_v21 = vpop.permute.xlu1 %5753  ;;  %v5831_v48 = vmul.f32 %v5758_v38, %v5639_v26  ;;  %v13259_v38 = vld [vmem:[#allocation30_spill] sm:$0xff] }
 0x8c6   : > { %v5829_v28 = vmul.f32 %v5754_v21, %v5637_v47 }
 0x8c7   : > { %5917 = vrot.lane.b32.xlu2 %v5831_v48, %s7880_s18 }
 0x8c8   : > { %5913 = vrot.lane.b32.xlu0 %v5829_v28, %s7880_s18  ;;  %v13262_v28 = vld [vmem:[#allocation65_spill] sm:$0xff] }
 0x8cb   : > { %6035 = vrot.lane.b32.xlu1 %v13243_v31, %s7892_s14  ;;  %v13266_v31 = vld [vmem:[#allocation71_spill] sm:$0xff] }
 0x8cc   : > { %v5764_v56 = vpop.permute.xlu0 %5763 }
 0x8cd   : > { %v5760_v60 = vpop.permute.xlu1 %5759  ;;  %v5834_v59 = vmul.f32 %v5764_v56, %v5642_v61 }
 0x8ce   : > { %v5832_v34 = vmul.f32 %v5760_v60, %v5640_v57  ;;  %v13267_v57 = vld [vmem:[#allocation68_spill] sm:$0xff]  ;;  %v13269_v60 = vld [vmem:[#allocation49_spill] sm:$0xff] }
 0x8cf   : > { %5923 = vrot.lane.b32.xlu2 %v5834_v59, %s7880_s18 }
 0x8d0   : > { %5919 = vrot.lane.b32.xlu0 %v5832_v34, %s7880_s18 }
 0x8d3   : > { %6041 = vrot.lane.b32.xlu1 %v13244_v41, %s7892_s14  ;;  %v13271_v41 = vld [vmem:[#allocation72_spill] sm:$0xff] }
 0x8d4   : > { %v5770_v49 = vpop.permute.xlu0 %5769 }
 0x8d5   : > { %v5766_v40 = vpop.permute.xlu1 %5765  ;;  %v5837_v55 = vmul.f32 %v5770_v49, %v5645_v46  ;;  %v13272_v49 = vld [vmem:[#allocation73_spill] sm:$0xff] }
 0x8d6   : > { %v5835_v1 = vmul.f32 %v5766_v40, %v5643_v3 }
 0x8d7   : > { %5929 = vrot.lane.b32.xlu2 %v5837_v55, %s7880_s18 }
 0x8d8   : > { %5925 = vrot.lane.b32.xlu0 %v5835_v1, %s7880_s18 }
 0x8db   : > { %6047 = vrot.lane.b32.xlu1 %v13245_v36, %s7892_s14 }
 0x8dc   : > { %v5776_v58 = vpop.permute.xlu0 %5775 }
 0x8dd   : > { %v5772_v25 = vpop.permute.xlu1 %5771  ;;  %v5840_v13 = vmul.f32 %v5776_v58, %v5648_v22 }
 0x8de   : > { %v5838_v6 = vmul.f32 %v5772_v25, %v5646_v33 }
 0x8df   : > { %5935 = vrot.lane.b32.xlu2 %v5840_v13, %s7880_s18 }
 0x8e0   : > { %5931 = vrot.lane.b32.xlu0 %v5838_v6, %s7880_s18 }
 0x8e3   : > { %6053 = vrot.lane.b32.xlu1 %v13246_v5, %s7892_s14 }
 0x8e5   : > { %v5874_v19 = vpop.permute.xlu1 %5873 }
 0x8e6   : > { %5969 = vst.msk [vmem:[%s12394_s20] sm:$0xff] %vm3482_vm10, %v5874_v19 }
 0x8e7   : > { %6037 = vrot.lane.b32.xlu2 %v13247_v43, %s7892_s14 }
 0x8e8   : > { %6033 = vrot.lane.b32.xlu0 %v13248_v30, %s7892_s14 }
 0x8e9   : > { %v5876_v10 = vpop.permute.xlu2 %5875 }
 0x8ea   : > { %5970 = vst.msk [vmem:[%s12394_s20 + $0x8] sm:$0xff] %vm3482_vm10, %v5876_v10 }
 0x8eb   : > { %6059 = vrot.lane.b32.xlu1 %v13249_v35, %s7892_s14 }
 0x8ed   : > { %v5880_v8 = vpop.permute.xlu1 %5879 }
 0x8ee   : > { %5972 = vst.msk [vmem:[%s12394_s20 + $0x18] sm:$0xff] %vm3482_vm10, %v5880_v8 }
 0x8ef   : > { %6043 = vrot.lane.b32.xlu2 %v13250_v52, %s7892_s14 }
 0x8f0   : > { %6039 = vrot.lane.b32.xlu0 %v13251_v11, %s7892_s14 }
 0x8f1   : > { %v5882_v14 = vpop.permute.xlu2 %5881 }
 0x8f2   : > { %5973 = vst.msk [vmem:[%s12394_s20 + $0x20] sm:$0xff] %vm3482_vm10, %v5882_v14 }
 0x8f3   : > { %6065 = vrot.lane.b32.xlu1 %v13252_v53, %s7892_s14 }
 0x8f5   : > { %v5886_v7 = vpop.permute.xlu1 %5885 }
 0x8f6   : > { %5975 = vst.msk [vmem:[%s12394_s20 + $0x30] sm:$0xff] %vm3482_vm10, %v5886_v7 }
 0x8f7   : > { %6049 = vrot.lane.b32.xlu2 %v13253_v51, %s7892_s14 }
 0x8f8   : > { %6045 = vrot.lane.b32.xlu0 %v13254_v44, %s7892_s14 }
 0x8f9   : > { %v5888_v63 = vpop.permute.xlu2 %5887 }
 0x8fa   : > { %5976 = vst.msk [vmem:[%s12394_s20 + $0x38] sm:$0xff] %vm3482_vm10, %v5888_v63 }
 0x8fb   : > { %6071 = vrot.lane.b32.xlu1 %v13255_v15, %s7892_s14 }
 0x8fd   : > { %v5892_v62 = vpop.permute.xlu1 %5891 }
 0x8fe   : > { %5978 = vst.msk [vmem:[%s12394_s20 + $0x48] sm:$0xff] %vm3482_vm10, %v5892_v62 }
 0x8ff   : > { %6055 = vrot.lane.b32.xlu2 %v13256_v4, %s7892_s14 }
 0x900   : > { %6051 = vrot.lane.b32.xlu0 %v13257_v18, %s7892_s14 }
 0x901   : > { %v5894_v26 = vpop.permute.xlu2 %5893 }
 0x902   : > { %5979 = vst.msk [vmem:[%s12394_s20 + $0x50] sm:$0xff] %vm3482_vm10, %v5894_v26 }
 0x903   : > { %6077 = vrot.lane.b32.xlu1 %v13258_v20, %s7892_s14 }
 0x905   : > { %v5898_v47 = vpop.permute.xlu1 %5897 }
 0x906   : > { %5981 = vst.msk [vmem:[%s12394_s20 + $0x60] sm:$0xff] %vm3482_vm10, %v5898_v47 }
 0x907   : > { %6061 = vrot.lane.b32.xlu2 %v13259_v38, %s7892_s14 }
 0x908   : > { %6057 = vrot.lane.b32.xlu0 %v13260_v23, %s7892_s14 }
 0x909   : > { %v5900_v21 = vpop.permute.xlu2 %5899 }
 0x90a   : > { %5982 = vst.msk [vmem:[%s12394_s20 + $0x68] sm:$0xff] %vm3482_vm10, %v5900_v21  ;;  %v5878_v48 = vpop.permute.xlu0 %5877 }
 0x90b   : > { %5971 = vst.msk [vmem:[%s12394_s20 + $0x10] sm:$0xff] %vm3482_vm10, %v5878_v48  ;;  %6083 = vrot.lane.b32.xlu1 %v13261_v29, %s7892_s14 }
 0x90d   : > { %v5904_v9 = vpop.permute.xlu1 %5903 }
 0x90e   : > { %5984 = vst.msk [vmem:[%s12394_s20 + $0x78] sm:$0xff] %vm3482_vm10, %v5904_v9 }
 0x90f   : > { %6067 = vrot.lane.b32.xlu2 %v13262_v28, %s7892_s14 }
 0x910   : > { %6063 = vrot.lane.b32.xlu0 %v13263_v42, %s7892_s14 }
 0x911   : > { %v5906_v32 = vpop.permute.xlu2 %5905 }
 0x912   : > { %5985 = vst.msk [vmem:[%s12394_s20 + $0x80] sm:$0xff] %vm3482_vm10, %v5906_v32  ;;  %v5884_v50 = vpop.permute.xlu0 %5883 }
 0x913   : > { %5974 = vst.msk [vmem:[%s12394_s20 + $0x28] sm:$0xff] %vm3482_vm10, %v5884_v50  ;;  %6089 = vrot.lane.b32.xlu1 %v13264_v27, %s7892_s14 }
 0x915   : > { %v5910_v54 = vpop.permute.xlu1 %5909 }
 0x916   : > { %5987 = vst.msk [vmem:[%s12394_s20 + $0x90] sm:$0xff] %vm3482_vm10, %v5910_v54 }
 0x917   : > { %6073 = vrot.lane.b32.xlu2 %v13265_v45, %s7892_s14 }
 0x918   : > { %6069 = vrot.lane.b32.xlu0 %v13266_v31, %s7892_s14 }
 0x919   : > { %v5912_v61 = vpop.permute.xlu2 %5911 }
 0x91a   : > { %5988 = vst.msk [vmem:[%s12394_s20 + $0x98] sm:$0xff] %vm3482_vm10, %v5912_v61  ;;  %v5890_v39 = vpop.permute.xlu0 %5889 }
 0x91b   : > { %5977 = vst.msk [vmem:[%s12394_s20 + $0x40] sm:$0xff] %vm3482_vm10, %v5890_v39  ;;  %6095 = vrot.lane.b32.xlu1 %v13267_v57, %s7892_s14 }
 0x91d   : > { %v5916_v56 = vpop.permute.xlu1 %5915 }
 0x91e   : > { %5990 = vst.msk [vmem:[%s12394_s20 + $0xa8] sm:$0xff] %vm3482_vm10, %v5916_v56 }
 0x91f   : > { %6079 = vrot.lane.b32.xlu2 %v13268_v12, %s7892_s14 }
 0x920   : > { %6075 = vrot.lane.b32.xlu0 %v13269_v60, %s7892_s14 }
 0x921   : > { %v5918_v59 = vpop.permute.xlu2 %5917 }
 0x922   : > { %5991 = vst.msk [vmem:[%s12394_s20 + $0xb0] sm:$0xff] %vm3482_vm10, %v5918_v59  ;;  %v5896_v34 = vpop.permute.xlu0 %5895 }
 0x923   : > { %5980 = vst.msk [vmem:[%s12394_s20 + $0x58] sm:$0xff] %vm3482_vm10, %v5896_v34 }
 0x925   : > { %v5922_v16 = vpop.permute.xlu1 %5921 }
 0x926   : > { %5993 = vst.msk [vmem:[%s12394_s20 + $0xc0] sm:$0xff] %vm3482_vm10, %v5922_v16 }
 0x927   : > { %6085 = vrot.lane.b32.xlu2 %v13270_v17, %s7892_s14 }
 0x928   : > { %6081 = vrot.lane.b32.xlu0 %v13271_v41, %s7892_s14 }
 0x929   : > { %v5924_v46 = vpop.permute.xlu2 %5923 }
 0x92a   : > { %5994 = vst.msk [vmem:[%s12394_s20 + $0xc8] sm:$0xff] %vm3482_vm10, %v5924_v46  ;;  %v5902_v2 = vpop.permute.xlu0 %5901 }
 0x92b   : > { %5983 = vst.msk [vmem:[%s12394_s20 + $0x70] sm:$0xff] %vm3482_vm10, %v5902_v2 }
 0x92d   : > { %v5928_v3 = vpop.permute.xlu1 %5927 }
 0x92e   : > { %5996 = vst.msk [vmem:[%s12394_s20 + $0xd8] sm:$0xff] %vm3482_vm10, %v5928_v3 }
 0x92f   : > { %6091 = vrot.lane.b32.xlu2 %v13272_v49, %s7892_s14 }
 0x930   : > { %6087 = vrot.lane.b32.xlu0 %v13273_v37, %s7892_s14 }
 0x931   : > { %v5930_v40 = vpop.permute.xlu2 %5929 }
 0x932   : > { %5997 = vst.msk [vmem:[%s12394_s20 + $0xe0] sm:$0xff] %vm3482_vm10, %v5930_v40  ;;  %v5908_v55 = vpop.permute.xlu0 %5907 }
 0x933   : > { %5986 = vst.msk [vmem:[%s12394_s20 + $0x88] sm:$0xff] %vm3482_vm10, %v5908_v55 }
 0x935   : > { %v5934_v1 = vpop.permute.xlu1 %5933 }
 0x936   : > { %5999 = vst.msk [vmem:[%s12394_s20 + $0xf0] sm:$0xff] %vm3482_vm10, %v5934_v1 }
 0x938   : > { %6093 = vrot.lane.b32.xlu0 %v13274_v24, %s7892_s14 }
 0x939   : > { %v5936_v0 = vpop.permute.xlu2 %5935 }
 0x93a   : > { %6000 = vst.msk [vmem:[%s12394_s20 + $0xf8] sm:$0xff] %vm3482_vm10, %v5936_v0  ;;  %v5914_v36 = vpop.permute.xlu0 %5913 }
 0x93b   : > { %5989 = vst.msk [vmem:[%s12394_s20 + $0xa0] sm:$0xff] %vm3482_vm10, %v5914_v36 }
 0x93d   : > { %v6036_v22 = vpop.permute.xlu1 %6035 }
 0x93e   : > { %6130 = vst.msk [vmem:[%s12514_s21 + $0x8] sm:$0xff] %vm3482_vm10, %v6036_v22 }
 0x941   : > { %v6038_v33 = vpop.permute.xlu2 %6037 }
 0x942   : > { %6131 = vst.msk [vmem:[%s12514_s21 + $0x10] sm:$0xff] %vm3482_vm10, %v6038_v33  ;;  %v5920_v58 = vpop.permute.xlu0 %5919 }
 0x943   : > { %5992 = vst.msk [vmem:[%s12394_s20 + $0xb8] sm:$0xff] %vm3482_vm10, %v5920_v58 }
 0x945   : > { %v6042_v25 = vpop.permute.xlu1 %6041 }
 0x946   : > { %6133 = vst.msk [vmem:[%s12514_s21 + $0x20] sm:$0xff] %vm3482_vm10, %v6042_v25 }
 0x949   : > { %v6044_v13 = vpop.permute.xlu2 %6043 }
 0x94a   : > { %6134 = vst.msk [vmem:[%s12514_s21 + $0x28] sm:$0xff] %vm3482_vm10, %v6044_v13  ;;  %v5926_v6 = vpop.permute.xlu0 %5925 }
 0x94b   : > { %5995 = vst.msk [vmem:[%s12394_s20 + $0xd0] sm:$0xff] %vm3482_vm10, %v5926_v6 }
 0x94d   : > { %v6048_v5 = vpop.permute.xlu1 %6047 }
 0x94e   : > { %6136 = vst.msk [vmem:[%s12514_s21 + $0x38] sm:$0xff] %vm3482_vm10, %v6048_v5 }
 0x951   : > { %v6050_v19 = vpop.permute.xlu2 %6049 }
 0x952   : > { %6137 = vst.msk [vmem:[%s12514_s21 + $0x40] sm:$0xff] %vm3482_vm10, %v6050_v19  ;;  %v5932_v43 = vpop.permute.xlu0 %5931 }
 0x953   : > { %5998 = vst.msk [vmem:[%s12394_s20 + $0xe8] sm:$0xff] %vm3482_vm10, %v5932_v43 }
 0x955   : > { %v6054_v30 = vpop.permute.xlu1 %6053 }
 0x956   : > { %6139 = vst.msk [vmem:[%s12514_s21 + $0x50] sm:$0xff] %vm3482_vm10, %v6054_v30 }
 0x959   : > { %v6056_v10 = vpop.permute.xlu2 %6055 }
 0x95a   : > { %6140 = vst.msk [vmem:[%s12514_s21 + $0x58] sm:$0xff] %vm3482_vm10, %v6056_v10  ;;  %v6034_v35 = vpop.permute.xlu0 %6033 }
 0x95b   : > { %6129 = vst.msk [vmem:[%s12514_s21] sm:$0xff] %vm3482_vm10, %v6034_v35 }
 0x95d   : > { %v6060_v8 = vpop.permute.xlu1 %6059 }
 0x95e   : > { %6142 = vst.msk [vmem:[%s12514_s21 + $0x68] sm:$0xff] %vm3482_vm10, %v6060_v8 }
 0x961   : > { %v6062_v52 = vpop.permute.xlu2 %6061 }
 0x962   : > { %6143 = vst.msk [vmem:[%s12514_s21 + $0x70] sm:$0xff] %vm3482_vm10, %v6062_v52  ;;  %v6040_v11 = vpop.permute.xlu0 %6039 }
 0x963   : > { %6132 = vst.msk [vmem:[%s12514_s21 + $0x18] sm:$0xff] %vm3482_vm10, %v6040_v11 }
 0x965   : > { %v6066_v14 = vpop.permute.xlu1 %6065 }
 0x966   : > { %6145 = vst.msk [vmem:[%s12514_s21 + $0x80] sm:$0xff] %vm3482_vm10, %v6066_v14 }
 0x969   : > { %v6068_v53 = vpop.permute.xlu2 %6067 }
 0x96a   : > { %6146 = vst.msk [vmem:[%s12514_s21 + $0x88] sm:$0xff] %vm3482_vm10, %v6068_v53  ;;  %v6046_v7 = vpop.permute.xlu0 %6045 }
 0x96b   : > { %6135 = vst.msk [vmem:[%s12514_s21 + $0x30] sm:$0xff] %vm3482_vm10, %v6046_v7 }
 0x96d   : > { %v6072_v51 = vpop.permute.xlu1 %6071 }
 0x96e   : > { %6148 = vst.msk [vmem:[%s12514_s21 + $0x98] sm:$0xff] %vm3482_vm10, %v6072_v51 }
 0x971   : > { %v6074_v44 = vpop.permute.xlu2 %6073 }
 0x972   : > { %6149 = vst.msk [vmem:[%s12514_s21 + $0xa0] sm:$0xff] %vm3482_vm10, %v6074_v44  ;;  %v6052_v63 = vpop.permute.xlu0 %6051 }
 0x973   : > { %6138 = vst.msk [vmem:[%s12514_s21 + $0x48] sm:$0xff] %vm3482_vm10, %v6052_v63 }
 0x975   : > { %v6078_v15 = vpop.permute.xlu1 %6077 }
 0x976   : > { %6151 = vst.msk [vmem:[%s12514_s21 + $0xb0] sm:$0xff] %vm3482_vm10, %v6078_v15 }
 0x979   : > { %v6080_v62 = vpop.permute.xlu2 %6079 }
 0x97a   : > { %6152 = vst.msk [vmem:[%s12514_s21 + $0xb8] sm:$0xff] %vm3482_vm10, %v6080_v62  ;;  %v6058_v4 = vpop.permute.xlu0 %6057 }
 0x97b   : > { %6141 = vst.msk [vmem:[%s12514_s21 + $0x60] sm:$0xff] %vm3482_vm10, %v6058_v4 }
 0x97d   : > { %v6084_v18 = vpop.permute.xlu1 %6083 }
 0x97e   : > { %6154 = vst.msk [vmem:[%s12514_s21 + $0xc8] sm:$0xff] %vm3482_vm10, %v6084_v18 }
 0x981   : > { %v6086_v26 = vpop.permute.xlu2 %6085 }
 0x982   : > { %6155 = vst.msk [vmem:[%s12514_s21 + $0xd0] sm:$0xff] %vm3482_vm10, %v6086_v26  ;;  %v6064_v20 = vpop.permute.xlu0 %6063 }
 0x983   : > { %6144 = vst.msk [vmem:[%s12514_s21 + $0x78] sm:$0xff] %vm3482_vm10, %v6064_v20 }
 0x985   : > { %v6090_v47 = vpop.permute.xlu1 %6089 }
 0x986   : > { %6157 = vst.msk [vmem:[%s12514_s21 + $0xe0] sm:$0xff] %vm3482_vm10, %v6090_v47 }
 0x989   : > { %v6092_v38 = vpop.permute.xlu2 %6091 }
 0x98a   : > { %6158 = vst.msk [vmem:[%s12514_s21 + $0xe8] sm:$0xff] %vm3482_vm10, %v6092_v38  ;;  %v6070_v23 = vpop.permute.xlu0 %6069 }
 0x98b   : > { %6147 = vst.msk [vmem:[%s12514_s21 + $0x90] sm:$0xff] %vm3482_vm10, %v6070_v23 }
 0x98d   : > { %v6096_v21 = vpop.permute.xlu1 %6095 }
 0x98e   : > { %6160 = vst.msk [vmem:[%s12514_s21 + $0xf8] sm:$0xff] %vm3482_vm10, %v6096_v21 }
 0x992   : > { %v6076_v48 = vpop.permute.xlu0 %6075 }
 0x993   : > { %6150 = vst.msk [vmem:[%s12514_s21 + $0xa8] sm:$0xff] %vm3482_vm10, %v6076_v48 }
 0x99a   : > { %v6082_v29 = vpop.permute.xlu0 %6081 }
 0x99b   : > { %6153 = vst.msk [vmem:[%s12514_s21 + $0xc0] sm:$0xff] %vm3482_vm10, %v6082_v29 }
 0x9a2   : > { %v6088_v9 = vpop.permute.xlu0 %6087 }
 0x9a3   : > { %6156 = vst.msk [vmem:[%s12514_s21 + $0xd8] sm:$0xff] %vm3482_vm10, %v6088_v9 }
 0x9aa   : > { %v6094_v28 = vpop.permute.xlu0 %6093 }
 0x9ab   : > { %6159 = vst.msk [vmem:[%s12514_s21 + $0xf0] sm:$0xff] %vm3482_vm10, %v6094_v28 }
 0x9ac PF: > { %s20_s30 = sadd.s32 1, %s7875_s30  }
 0x9ad   : > { %p17_p4 = scmp.ge.s32.totalorder %s20_s30, 4  }
 0x9af   :  { %19 = sbr.rel (!%p17_p4) target bundleno = 1 (0x1), region = 112 }

</bundles_post_ra>
